<compile_context>
chip_gen: v7x
topology: tpu7x:2x2x1
jax: 0.10.0
libtpu: 0.0.40
codegen_flags: <defaults>
</compile_context>

<pallas_src>
import functools
import math

import jax
import jax.numpy as jnp
from jax.experimental import pallas as pl
from jax.experimental.pallas import tpu as pltpu


def _round_up(x, m):
    return ((x + m - 1) // m) * m


# ----------------------------------------------------------------------------
# Fused bidirectional, time-chunked, sub-chunk-pipelined LSTM layer kernel
# ----------------------------------------------------------------------------
def _make_bilstm_kernel(Tc, S, C, B, Hp, n_streams):
    """One grid step runs Tc timesteps for BOTH directions.

    Activations are time-major and batch-flattened: row index = t * B + b.
    B is the padded batch (multiple of 16), Hp the lane-padded hidden size.
    """
    NS = Tc // S          # sub-chunks per chunk
    SB = S * B            # rows per sub-chunk
    B2 = 2 * B            # fwd rows stacked on top of bwd rows
    G = 4 * Hp            # gate width per direction

    def kernel(*refs):
        len_ref = refs[0]
        x_refs = refs[1:1 + 2 * n_streams]                # (fwd view, bwd view) per stream
        wf_refs = refs[1 + 2 * n_streams:1 + 3 * n_streams]
        wb_refs = refs[1 + 3 * n_streams:1 + 4 * n_streams]
        whh_ref, bf_ref, bb_ref = refs[1 + 4 * n_streams:4 + 4 * n_streams]
        (yf_ref, yb_ref, hf_fin_ref, hb_fin_ref,
         h_scr, c_scr) = refs[4 + 4 * n_streams:]

        cidx = pl.program_id(0)

        @pl.when(cidx == 0)
        def _():
            h_scr[...] = jnp.zeros_like(h_scr)
            c_scr[...] = jnp.zeros_like(c_scr)

        t0_f = cidx * Tc                      # first global time of fwd chunk
        t0_b = (C - 1 - cidx) * Tc            # first global time of bwd chunk

        lengths = len_ref[...]                                      # [B, 1] i32
        len2 = jnp.concatenate([lengths, lengths], axis=0)          # [2B, 1]
        fwd_rows = jax.lax.broadcasted_iota(jnp.int32, (B2, 1), 0) < B
        w_hh = whh_ref[...]                                         # [Hp, 8Hp] bf16
        bias_f = bf_ref[...]                                        # [1, 4Hp] f32
        bias_b = bb_ref[...]

        def proj(s):
            """Input projection (bias fused) for sub-chunk s, both directions."""
            off_f = s * SB
            off_b = (NS - 1 - s) * SB
            if not isinstance(s, int):
                off_f = pl.multiple_of(off_f, SB)
                off_b = pl.multiple_of(off_b, SB)
            gf = None
            gb = None
            for k in range(n_streams):
                pf = jnp.dot(x_refs[2 * k][pl.ds(off_f, SB), :], wf_refs[k][...],
                             preferred_element_type=jnp.float32)
                pb = jnp.dot(x_refs[2 * k + 1][pl.ds(off_b, SB), :], wb_refs[k][...],
                             preferred_element_type=jnp.float32)
                gf = pf if gf is None else gf + pf
                gb = pb if gb is None else gb + pb
            return gf + bias_f, gb + bias_b

        def sub_chunk(s, carry):
            h, c_st, gf, gb = carry
            # Projection for the NEXT sub-chunk: no dependence on the recurrent
            # state, so it overlaps with the serial loop below (fills MXU-idle
            # slots) and bounds the live f32 gate temporaries to one sub-chunk.
            gf_nxt, gb_nxt = proj(jnp.minimum(s + 1, NS - 1))

            for j in range(S):                                 # short static unroll
                l = s * S + j                                  # exec step within chunk
                # Pre-computed gate inputs for this step (off the serial chain).
                g_in = jnp.concatenate(
                    [gf[j * B:(j + 1) * B, :],
                     gb[(S - 1 - j) * B:(S - j) * B, :]], axis=0)   # [2B, 4Hp]

                # ONE fused recurrent matmul for both directions.
                hh = jnp.dot(h.astype(jnp.bfloat16), w_hh,
                             preferred_element_type=jnp.float32)    # [2B, 8Hp]
                gates = g_in + jnp.where(fwd_rows, hh[:, :G], hh[:, G:])

                i_g = jax.nn.sigmoid(gates[:, 0 * Hp:1 * Hp])
                f_g = jax.nn.sigmoid(gates[:, 1 * Hp:2 * Hp])
                g_g = jnp.tanh(gates[:, 2 * Hp:3 * Hp])
                o_g = jax.nn.sigmoid(gates[:, 3 * Hp:4 * Hp])
                c_new = f_g * c_st + i_g * g_g
                h_new = o_g * jnp.tanh(c_new)

                # Packed-sequence masking: freeze state / zero output for
                # t >= length.  Single mask per step, broadcast once.
                t_vec = jnp.where(fwd_rows, t0_f + l, t0_b + (Tc - 1) - l)
                m = jnp.broadcast_to(t_vec < len2, (B2, Hp))
                h = jnp.where(m, h_new, h)
                c_st = jnp.where(m, c_new, c_st)
                y = jnp.where(m, h_new, 0.0)

                # Full-tile (16 bf16 sublanes) lane-dense stores.
                yf_ref[pl.ds(pl.multiple_of(l * B, B), B), :] = (
                    y[:B, :].astype(yf_ref.dtype))
                yb_ref[pl.ds(pl.multiple_of((Tc - 1 - l) * B, B), B), :] = (
                    y[B:, :].astype(yb_ref.dtype))
            return h, c_st, gf_nxt, gb_nxt

        gf0, gb0 = proj(0)
        carry = (h_scr[...], c_scr[...], gf0, gb0)
        h, c_st, _, _ = jax.lax.fori_loop(0, NS, sub_chunk, carry)
        h_scr[...] = h
        c_scr[...] = c_st

        @pl.when(cidx == C - 1)
        def _():
            hf_fin_ref[...] = h_scr[:B, :]
            hb_fin_ref[...] = h_scr[B:, :]

    return kernel


def bilstm_layer(x_streams, lengths_col, T_pad, B_pad, Tc, S, layer, Hp):
    """One fused bidirectional LSTM layer over 1 or 2 pre-flattened input streams."""
    n_streams = len(x_streams)
    assert n_streams == len(layer["fwd"]["w_ih_parts"]) == len(layer["bwd"]["w_ih_parts"])
    C = T_pad // Tc
    kernel = _make_bilstm_kernel(Tc, S, C, B_pad, Hp, n_streams)

    in_specs = [pl.BlockSpec((B_pad, 1), lambda c: (0, 0))]           # lengths
    for xs in x_streams:
        Dk = xs.shape[-1]
        in_specs.append(pl.BlockSpec((Tc * B_pad, Dk), lambda c: (c, 0)))          # fwd chunk
        in_specs.append(pl.BlockSpec((Tc * B_pad, Dk), lambda c: (C - 1 - c, 0)))  # bwd chunk
    for parts in (layer["fwd"]["w_ih_parts"], layer["bwd"]["w_ih_parts"]):
        for w in parts:
            in_specs.append(pl.BlockSpec(w.shape, lambda c: (0, 0)))
    in_specs += [
        pl.BlockSpec(layer["w_hh_wide"].shape, lambda c: (0, 0)),
        pl.BlockSpec((1, 4 * Hp), lambda c: (0, 0)),
        pl.BlockSpec((1, 4 * Hp), lambda c: (0, 0)),
    ]
    # TODO(synk): pipeline_mode=pl.Buffered(1) on the constant weight/bias blocks
    # would drop their second VMEM buffer (pure VMEM savings for large H).

    out_specs = (
        pl.BlockSpec((Tc * B_pad, Hp), lambda c: (c, 0)),             # y fwd
        pl.BlockSpec((Tc * B_pad, Hp), lambda c: (C - 1 - c, 0)),     # y bwd
        pl.BlockSpec((B_pad, Hp), lambda c: (0, 0)),                  # h_final fwd
        pl.BlockSpec((B_pad, Hp), lambda c: (0, 0)),                  # h_final bwd
    )
    out_shape = (
        jax.ShapeDtypeStruct((T_pad * B_pad, Hp), jnp.bfloat16),
        jax.ShapeDtypeStruct((T_pad * B_pad, Hp), jnp.bfloat16),
        jax.ShapeDtypeStruct((B_pad, Hp), jnp.float32),
        jax.ShapeDtypeStruct((B_pad, Hp), jnp.float32),
    )

    # Advisory cost estimate so XLA schedules surrounding ops around the long
    # sequential kernel.
    d_sum = sum(int(xs.shape[-1]) for xs in x_streams)
    flops = (2 * 2 * T_pad * B_pad * d_sum * 4 * Hp            # input projections
             + 2 * T_pad * 2 * B_pad * Hp * 8 * Hp)            # fused recurrence
    transcendentals = T_pad * 2 * B_pad * 5 * Hp
    bytes_accessed = (2 * T_pad * B_pad * d_sum * 2            # x (both dir views)
                      + 2 * T_pad * B_pad * Hp * 2             # y writes
                      + (2 * d_sum * 4 * Hp + Hp * 8 * Hp) * 2)  # weights
    cost = pl.CostEstimate(flops=int(flops), transcendentals=int(transcendentals),
                           bytes_accessed=int(bytes_accessed))

    grid_spec = pltpu.PrefetchScalarGridSpec(
        num_scalar_prefetch=0,
        grid=(C,),
        in_specs=in_specs,
        out_specs=out_specs,
        scratch_shapes=[pltpu.VMEM((2 * B_pad, Hp), jnp.float32),    # h (fwd;bwd)
                        pltpu.VMEM((2 * B_pad, Hp), jnp.float32)],   # c (fwd;bwd)
    )

    args = [lengths_col]
    for xs in x_streams:
        args += [xs, xs]
    args += list(layer["fwd"]["w_ih_parts"]) + list(layer["bwd"]["w_ih_parts"])
    args += [layer["w_hh_wide"], layer["fwd"]["b"], layer["bwd"]["b"]]

    yf, yb, hf, hb = pl.pallas_call(
        kernel,
        out_shape=out_shape,
        grid_spec=grid_spec,
        compiler_params=pltpu.CompilerParams(
            # time-chunk axis carries the recurrence -> strictly sequential
            dimension_semantics=("arbitrary",),
            # explicit scoped-VMEM budget; raise per generation for large H/Tc
            # (v7x has only 64 MiB physical VMEM -> re-derive Tc there).
            vmem_limit_bytes=32 * 1024 * 1024,
        ),
        cost_estimate=cost,
    )(*args)
    return yf, yb, hf, hb


# ----------------------------------------------------------------------------
# Forward pass (eval mode: dropout = identity)
# ----------------------------------------------------------------------------
def rnn_forward(params, text, text_lengths, *, max_time_chunk=32, sub_chunk=4):
    T, B = text.shape
    H = params["fc_w_t"].shape[0] // 2            # true hidden size (static)
    Hp = params["lstm"][0]["w_hh_wide"].shape[0]  # lane-padded hidden size

    # time-chunk / sub-chunk sizing (knobs for per-generation VMEM tuning)
    S = max(1, min(sub_chunk, max_time_chunk))
    Tc = max(S, (min(max_time_chunk, _round_up(T, S)) // S) * S)
    T_pad = _round_up(T, Tc)
    B_pad = _round_up(B, 16)                      # full bf16 sublane tiles per step

    # embedding lookup (plain JAX gather); padding_idx row of the table is 0
    embedded = jnp.take(params["embedding"], text, axis=0)       # [T, B, E_pad] f32
    # TODO(synk): dropout is identity here (inference semantics).

    x = embedded.astype(jnp.bfloat16)
    x = jnp.pad(x, ((0, T_pad - T), (0, B_pad - B), (0, 0)))
    x_flat = x.reshape(T_pad * B_pad, x.shape[-1])               # time-major rows

    lengths = jnp.pad(text_lengths.astype(jnp.int32), (0, B_pad - B))
    lengths_col = lengths.reshape(B_pad, 1)

    streams = [x_flat]
    hf = hb = None
    for layer in params["lstm"]:
        yf, yb, hf, hb = bilstm_layer(streams, lengths_col, T_pad, B_pad, Tc, S,
                                      layer, Hp)
        streams = [yf, yb]          # no inter-layer concat: fed as two streams

    # hidden = cat(last-layer fwd final, last-layer bwd final); dropout=identity
    hidden = jnp.concatenate([hf[:B, :H], hb[:B, :H]], axis=-1)  # [B, 2H] f32
    # tiny [B,2H]x[2H,O] GEMV: leave to XLA (a grid=(1,) pallas_call is overhead)
    return jnp.dot(hidden, params["fc_w_t"]) + params["fc_b"]    # [B, output_dim]


# ----------------------------------------------------------------------------
# Deterministic parameter init (PyTorch-style shapes, uniform(-k, k)),
# with lane padding (H -> Hp, E -> Ep) and kernel-friendly pre-layout.
# ----------------------------------------------------------------------------
def init_params(key, vocab_size, embedding_dim, hidden_dim, output_dim,
                n_layers, pad_idx):
    keys = iter(jax.random.split(key, 8 + 8 * n_layers))
    H = hidden_dim
    Hp = _round_up(H, 128)                 # lane-dense gates / outputs
    Ep = _round_up(embedding_dim, 128)
    k = 1.0 / math.sqrt(hidden_dim)

    def pad_gates_last(wt):
        # (..., 4H) -> (..., 4Hp): zero-pad each of the i/f/g/o blocks to Hp.
        lead = wt.shape[:-1]
        w4 = wt.reshape(lead + (4, H))
        w4 = jnp.pad(w4, [(0, 0)] * len(lead) + [(0, 0), (0, Hp - H)])
        return w4.reshape(lead + (4 * Hp,))

    def pad_rows(w, rows_to):
        return jnp.pad(w, ((0, rows_to - w.shape[0]), (0, 0)))

    emb = jax.random.normal(next(keys), (vocab_size, embedding_dim),
                            jnp.float32) * 0.1
    emb = emb.at[pad_idx].set(0.0)                               # padding_idx row = 0
    emb = jnp.pad(emb, ((0, 0), (0, Ep - embedding_dim)))        # lane padding

    lstm_layers = []
    for layer in range(n_layers):
        in_dim = embedding_dim if layer == 0 else 2 * hidden_dim
        per_dir = {}
        for name in ("fwd", "bwd"):
            w_ih = jax.random.uniform(next(keys), (4 * H, in_dim), jnp.float32, -k, k)
            w_hh = jax.random.uniform(next(keys), (4 * H, H), jnp.float32, -k, k)
            b_ih = jax.random.uniform(next(keys), (4 * H,), jnp.float32, -k, k)
            b_hh = jax.random.uniform(next(keys), (4 * H,), jnp.float32, -k, k)

            if layer == 0:
                # single input stream (embeddings), rows padded E -> Ep
                parts = [pad_rows(pad_gates_last(w_ih.T), Ep).astype(jnp.bfloat16)]
            else:
                # two input streams (prev-layer fwd / bwd outputs): split the
                # transposed [2H, 4H] weight into fwd-half / bwd-half rows so
                # the next layer never needs a concatenated input.
                w_t = w_ih.T
                parts = [pad_rows(pad_gates_last(w_t[:H, :]), Hp).astype(jnp.bfloat16),
                         pad_rows(pad_gates_last(w_t[H:, :]), Hp).astype(jnp.bfloat16)]

            per_dir[name] = {
                "w_ih_parts": parts,                                  # bf16 [Dk, 4Hp]
                "w_hh_t": pad_rows(pad_gates_last(w_hh.T), Hp),       # f32  [Hp, 4Hp]
                "b": pad_gates_last((b_ih + b_hh).reshape(1, 4 * H)), # f32  [1, 4Hp]
            }
        # fused wide recurrent weight: one MXU matmul per step covers BOTH dirs
        w_hh_wide = jnp.concatenate([per_dir["fwd"]["w_hh_t"],
                                     per_dir["bwd"]["w_hh_t"]],
                                    axis=1).astype(jnp.bfloat16)      # [Hp, 8Hp]
        lstm_layers.append({
            "fwd": {"w_ih_parts": per_dir["fwd"]["w_ih_parts"], "b": per_dir["fwd"]["b"]},
            "bwd": {"w_ih_parts": per_dir["bwd"]["w_ih_parts"], "b": per_dir["bwd"]["b"]},
            "w_hh_wide": w_hh_wide,
        })

    kf = 1.0 / math.sqrt(2.0 * hidden_dim)
    fc_w = jax.random.uniform(next(keys), (output_dim, 2 * hidden_dim),
                              jnp.float32, -kf, kf)
    fc_b = jax.random.uniform(next(keys), (output_dim,), jnp.float32, -kf, kf)

    return {"embedding": emb, "lstm": lstm_layers,
            "fc_w_t": fc_w.T, "fc_b": fc_b.reshape(1, output_dim)}


# ----------------------------------------------------------------------------
if __name__ == "__main__":
    vocab_size, embedding_dim, hidden_dim, output_dim = 50, 32, 32, 4
    n_layers, pad_idx = 2, 1
    T, B = 10, 4

    key = jax.random.PRNGKey(0)
    k_par, k_txt = jax.random.split(key)
    params = init_params(k_par, vocab_size, embedding_dim, hidden_dim,
                         output_dim, n_layers, pad_idx)

    # lengths sorted descending (pack_padded_sequence enforce_sorted default)
    text_lengths = jnp.array([10, 9, 7, 3], dtype=jnp.int32)
    text = jax.random.randint(k_txt, (T, B), 2, vocab_size, dtype=jnp.int32)
    t_ids = jnp.arange(T)[:, None]
    text = jnp.where(t_ids < text_lengths[None, :], text, pad_idx)

    # small Tc/S so the demo exercises multiple chunks AND multiple sub-chunks
    fwd_fn = jax.jit(functools.partial(rnn_forward, max_time_chunk=8, sub_chunk=4))
    out = fwd_fn(params, text, text_lengths)
    jax.block_until_ready(out)
    assert out.shape == (B, output_dim)
    print("KERNEL_OK")
</pallas_src>

<mosaic_0001>
module attributes {stable_mosaic.version = 11 : i64} {
  func.func @kernel(%arg0: i32, %arg1: memref<16x1xi32, #tpu.memory_space<vmem>>, %arg2: memref<128x128xbf16, #tpu.memory_space<vmem>>, %arg3: memref<128x128xbf16, #tpu.memory_space<vmem>>, %arg4: memref<128x128xbf16, #tpu.memory_space<vmem>>, %arg5: memref<128x128xbf16, #tpu.memory_space<vmem>>, %arg6: memref<128x512xbf16, #tpu.memory_space<vmem>>, %arg7: memref<128x512xbf16, #tpu.memory_space<vmem>>, %arg8: memref<128x512xbf16, #tpu.memory_space<vmem>>, %arg9: memref<128x512xbf16, #tpu.memory_space<vmem>>, %arg10: memref<128x1024xbf16, #tpu.memory_space<vmem>>, %arg11: memref<1x512xf32, #tpu.memory_space<vmem>>, %arg12: memref<1x512xf32, #tpu.memory_space<vmem>>, %arg13: memref<128x128xbf16, #tpu.memory_space<vmem>>, %arg14: memref<128x128xbf16, #tpu.memory_space<vmem>>, %arg15: memref<16x128xf32, #tpu.memory_space<vmem>>, %arg16: memref<16x128xf32, #tpu.memory_space<vmem>>, %arg17: memref<32x128xf32, #tpu.memory_space<vmem>>, %arg18: memref<32x128xf32, #tpu.memory_space<vmem>>) attributes {dimension_semantics = [#tpu.dimension_semantics<arbitrary>], iteration_bounds = array<i64: 2>, scalar_prefetch = 0 : i64, scratch_operands = 2 : i64, tpu.core_type = #tpu.core_type<tc>, window_params = [{pipeline_mode = #tpu.pipeline_mode<synchronous>, transform_indices = @transform_0, window_bounds = array<i64: 16, 1>}, {transform_indices = @transform_1, window_bounds = array<i64: 128, 128>}, {transform_indices = @transform_2, window_bounds = array<i64: 128, 128>}, {transform_indices = @transform_3, window_bounds = array<i64: 128, 128>}, {transform_indices = @transform_4, window_bounds = array<i64: 128, 128>}, {pipeline_mode = #tpu.pipeline_mode<synchronous>, transform_indices = @transform_5, window_bounds = array<i64: 128, 512>}, {pipeline_mode = #tpu.pipeline_mode<synchronous>, transform_indices = @transform_6, window_bounds = array<i64: 128, 512>}, {pipeline_mode = #tpu.pipeline_mode<synchronous>, transform_indices = @transform_7, window_bounds = array<i64: 128, 512>}, {pipeline_mode = #tpu.pipeline_mode<synchronous>, transform_indices = @transform_8, window_bounds = array<i64: 128, 512>}, {pipeline_mode = #tpu.pipeline_mode<synchronous>, transform_indices = @transform_9, window_bounds = array<i64: 128, 1024>}, {pipeline_mode = #tpu.pipeline_mode<synchronous>, transform_indices = @transform_10, window_bounds = array<i64: 1, 512>}, {pipeline_mode = #tpu.pipeline_mode<synchronous>, transform_indices = @transform_11, window_bounds = array<i64: 1, 512>}, {transform_indices = @transform_12, window_bounds = array<i64: 128, 128>}, {transform_indices = @transform_13, window_bounds = array<i64: 128, 128>}, {pipeline_mode = #tpu.pipeline_mode<synchronous>, transform_indices = @transform_14, window_bounds = array<i64: 16, 128>}, {pipeline_mode = #tpu.pipeline_mode<synchronous>, transform_indices = @transform_15, window_bounds = array<i64: 16, 128>}]} {
    %c0_i32 = arith.constant 0 : i32
    %0 = arith.cmpi eq, %arg0, %c0_i32 : i32
    %1 = arith.extui %0 : i1 to i32
    %c0_i32_0 = arith.constant 0 : i32
    %2 = arith.cmpi ne, %1, %c0_i32_0 : i32
    scf.if %2 {
      %cst_40 = arith.constant 0.000000e+00 : f32
      %41 = vector.broadcast %cst_40 : f32 to vector<32x128xf32>
      %c0_41 = arith.constant 0 : index
      %c0_42 = arith.constant 0 : index
      %42 = vector.load %arg17[%c0_41, %c0_42] : memref<32x128xf32, #tpu.memory_space<vmem>>, vector<32x128xf32>
      tpu.vector_store %arg17[%c0_41, %c0_42], %41 {strides = array<i32>} : memref<32x128xf32, #tpu.memory_space<vmem>>, vector<32x128xf32>,
      %cst_43 = arith.constant 0.000000e+00 : f32
      %43 = vector.broadcast %cst_43 : f32 to vector<32x128xf32>
      %c0_44 = arith.constant 0 : index
      %c0_45 = arith.constant 0 : index
      %44 = vector.load %arg18[%c0_44, %c0_45] : memref<32x128xf32, #tpu.memory_space<vmem>>, vector<32x128xf32>
      tpu.vector_store %arg18[%c0_44, %c0_45], %43 {strides = array<i32>} : memref<32x128xf32, #tpu.memory_space<vmem>>, vector<32x128xf32>,
    } else {
    }
    %c8_i32 = arith.constant 8 : i32
    %3 = arith.muli %arg0, %c8_i32 : i32
    %c1_i32 = arith.constant 1 : i32
    %4 = arith.subi %c1_i32, %arg0 : i32
    %c8_i32_1 = arith.constant 8 : i32
    %5 = arith.muli %4, %c8_i32_1 : i32
    %c0 = arith.constant 0 : index
    %c0_2 = arith.constant 0 : index
    %6 = vector.load %arg1[%c0, %c0_2] : memref<16x1xi32, #tpu.memory_space<vmem>>, vector<16x1xi32>
    %7 = tpu.concatenate %6, %6 in 0 : vector<16x1xi32>, vector<16x1xi32> -> vector<32x1xi32>
    %8 = tpu.iota {dimensions = array<i32: 0>} : vector<32x1xi32>
    %c16_i32 = arith.constant 16 : i32
    %9 = vector.broadcast %c16_i32 : i32 to vector<32x1xi32>
    %10 = arith.cmpi slt, %8, %9 : vector<32x1xi32>
    %c0_3 = arith.constant 0 : index
    %c0_4 = arith.constant 0 : index
    %11 = vector.load %arg10[%c0_3, %c0_4] : memref<128x1024xbf16, #tpu.memory_space<vmem>>, vector<128x1024xbf16>
    %c0_5 = arith.constant 0 : index
    %c0_6 = arith.constant 0 : index
    %12 = vector.load %arg11[%c0_5, %c0_6] : memref<1x512xf32, #tpu.memory_space<vmem>>, vector<1x512xf32>
    %c0_7 = arith.constant 0 : index
    %c0_8 = arith.constant 0 : index
    %13 = vector.load %arg12[%c0_7, %c0_8] : memref<1x512xf32, #tpu.memory_space<vmem>>, vector<1x512xf32>
    %c0_9 = arith.constant 0 : index
    %c0_10 = arith.constant 0 : index
    %14 = vector.load %arg2[%c0_9, %c0_10] : memref<128x128xbf16, #tpu.memory_space<vmem>>, vector<64x128xbf16>
    %c0_11 = arith.constant 0 : index
    %c0_12 = arith.constant 0 : index
    %15 = vector.load %arg6[%c0_11, %c0_12] : memref<128x512xbf16, #tpu.memory_space<vmem>>, vector<128x512xbf16>
    %cst = arith.constant dense<0.000000e+00> : vector<64x512xf32>
    %16 = tpu.matmul %14, %15, %cst {dimension_numbers = #tpu.dot_dimension_numbers<[1], [0], [0], [1], [0, 0, 1, 1], [], []>} : vector<64x128xbf16>, vector<128x512xbf16>, vector<64x512xf32> -> vector<64x512xf32>
    %c64 = arith.constant 64 : index
    %c0_13 = arith.constant 0 : index
    %17 = vector.load %arg3[%c64, %c0_13] : memref<128x128xbf16, #tpu.memory_space<vmem>>, vector<64x128xbf16>
    %c0_14 = arith.constant 0 : index
    %c0_15 = arith.constant 0 : index
    %18 = vector.load %arg8[%c0_14, %c0_15] : memref<128x512xbf16, #tpu.memory_space<vmem>>, vector<128x512xbf16>
    %cst_16 = arith.constant dense<0.000000e+00> : vector<64x512xf32>
    %19 = tpu.matmul %17, %18, %cst_16 {dimension_numbers = #tpu.dot_dimension_numbers<[1], [0], [0], [1], [0, 0, 1, 1], [], []>} : vector<64x128xbf16>, vector<128x512xbf16>, vector<64x512xf32> -> vector<64x512xf32>
    %c0_17 = arith.constant 0 : index
    %c0_18 = arith.constant 0 : index
    %20 = vector.load %arg4[%c0_17, %c0_18] : memref<128x128xbf16, #tpu.memory_space<vmem>>, vector<64x128xbf16>
    %c0_19 = arith.constant 0 : index
    %c0_20 = arith.constant 0 : index
    %21 = vector.load %arg7[%c0_19, %c0_20] : memref<128x512xbf16, #tpu.memory_space<vmem>>, vector<128x512xbf16>
    %cst_21 = arith.constant dense<0.000000e+00> : vector<64x512xf32>
    %22 = tpu.matmul %20, %21, %cst_21 {dimension_numbers = #tpu.dot_dimension_numbers<[1], [0], [0], [1], [0, 0, 1, 1], [], []>} : vector<64x128xbf16>, vector<128x512xbf16>, vector<64x512xf32> -> vector<64x512xf32>
    %c64_22 = arith.constant 64 : index
    %c0_23 = arith.constant 0 : index
    %23 = vector.load %arg5[%c64_22, %c0_23] : memref<128x128xbf16, #tpu.memory_space<vmem>>, vector<64x128xbf16>
    %c0_24 = arith.constant 0 : index
    %c0_25 = arith.constant 0 : index
    %24 = vector.load %arg9[%c0_24, %c0_25] : memref<128x512xbf16, #tpu.memory_space<vmem>>, vector<128x512xbf16>
    %cst_26 = arith.constant dense<0.000000e+00> : vector<64x512xf32>
    %25 = tpu.matmul %23, %24, %cst_26 {dimension_numbers = #tpu.dot_dimension_numbers<[1], [0], [0], [1], [0, 0, 1, 1], [], []>} : vector<64x128xbf16>, vector<128x512xbf16>, vector<64x512xf32> -> vector<64x512xf32>
    %26 = arith.addf %16, %22 : vector<64x512xf32>
    %27 = arith.addf %19, %25 : vector<64x512xf32>
    %28 = vector.broadcast %12 : vector<1x512xf32> to vector<64x512xf32>
    %29 = arith.addf %26, %28 : vector<64x512xf32>
    %30 = vector.broadcast %13 : vector<1x512xf32> to vector<64x512xf32>
    %31 = arith.addf %27, %30 : vector<64x512xf32>
    %c0_27 = arith.constant 0 : index
    %c0_28 = arith.constant 0 : index
    %32 = vector.load %arg17[%c0_27, %c0_28] : memref<32x128xf32, #tpu.memory_space<vmem>>, vector<32x128xf32>
    %c0_29 = arith.constant 0 : index
    %c0_30 = arith.constant 0 : index
    %33 = vector.load %arg18[%c0_29, %c0_30] : memref<32x128xf32, #tpu.memory_space<vmem>>, vector<32x128xf32>
    %c0_i32_31 = arith.constant 0 : i32
    %c2_i32 = arith.constant 2 : i32
    %34 = arith.addi %c0_i32_31, %c2_i32 : i32
    %c1_i32_32 = arith.constant 1 : i32
    %35:4 = scf.for %arg19 = %c0_i32_31 to %34 step %c1_i32_32 iter_args(%arg20 = %32, %arg21 = %33, %arg22 = %29, %arg23 = %31) -> (vector<32x128xf32>, vector<32x128xf32>, vector<64x512xf32>, vector<64x512xf32>)  : i32 {
      %c1_i32_40 = arith.constant 1 : i32
      %41 = arith.addi %arg19, %c1_i32_40 : i32
      %c1_i32_41 = arith.constant 1 : i32
      %42 = arith.minsi %41, %c1_i32_41 : i32
      %c64_i32 = arith.constant 64 : i32
      %43 = arith.muli %42, %c64_i32 : i32
      %c1_i32_42 = arith.constant 1 : i32
      %44 = arith.subi %c1_i32_42, %42 : i32
      %c64_i32_43 = arith.constant 64 : i32
      %45 = arith.muli %44, %c64_i32_43 : i32
      %46 = tpu.assume_multiple %43, 64 : i32
      %47 = tpu.assume_multiple %45, 64 : i32
      %48 = arith.index_cast %46 : i32 to index
      %c0_44 = arith.constant 0 : index
      %49 = vector.load %arg2[%48, %c0_44] : memref<128x128xbf16, #tpu.memory_space<vmem>>, vector<64x128xbf16>
      %c0_45 = arith.constant 0 : index
      %c0_46 = arith.constant 0 : index
      %50 = vector.load %arg6[%c0_45, %c0_46] : memref<128x512xbf16, #tpu.memory_space<vmem>>, vector<128x512xbf16>
      %cst_47 = arith.constant dense<0.000000e+00> : vector<64x512xf32>
      %51 = tpu.matmul %49, %50, %cst_47 {dimension_numbers = #tpu.dot_dimension_numbers<[1], [0], [0], [1], [0, 0, 1, 1], [], []>} : vector<64x128xbf16>, vector<128x512xbf16>, vector<64x512xf32> -> vector<64x512xf32>
      %52 = arith.index_cast %47 : i32 to index
      %c0_48 = arith.constant 0 : index
      %53 = vector.load %arg3[%52, %c0_48] : memref<128x128xbf16, #tpu.memory_space<vmem>>, vector<64x128xbf16>
      %c0_49 = arith.constant 0 : index
      %c0_50 = arith.constant 0 : index
      %54 = vector.load %arg8[%c0_49, %c0_50] : memref<128x512xbf16, #tpu.memory_space<vmem>>, vector<128x512xbf16>
      %cst_51 = arith.constant dense<0.000000e+00> : vector<64x512xf32>
      %55 = tpu.matmul %53, %54, %cst_51 {dimension_numbers = #tpu.dot_dimension_numbers<[1], [0], [0], [1], [0, 0, 1, 1], [], []>} : vector<64x128xbf16>, vector<128x512xbf16>, vector<64x512xf32> -> vector<64x512xf32>
      %56 = arith.index_cast %46 : i32 to index
      %c0_52 = arith.constant 0 : index
      %57 = vector.load %arg4[%56, %c0_52] : memref<128x128xbf16, #tpu.memory_space<vmem>>, vector<64x128xbf16>
      %c0_53 = arith.constant 0 : index
      %c0_54 = arith.constant 0 : index
      %58 = vector.load %arg7[%c0_53, %c0_54] : memref<128x512xbf16, #tpu.memory_space<vmem>>, vector<128x512xbf16>
      %cst_55 = arith.constant dense<0.000000e+00> : vector<64x512xf32>
      %59 = tpu.matmul %57, %58, %cst_55 {dimension_numbers = #tpu.dot_dimension_numbers<[1], [0], [0], [1], [0, 0, 1, 1], [], []>} : vector<64x128xbf16>, vector<128x512xbf16>, vector<64x512xf32> -> vector<64x512xf32>
      %60 = arith.index_cast %47 : i32 to index
      %c0_56 = arith.constant 0 : index
      %61 = vector.load %arg5[%60, %c0_56] : memref<128x128xbf16, #tpu.memory_space<vmem>>, vector<64x128xbf16>
      %c0_57 = arith.constant 0 : index
      %c0_58 = arith.constant 0 : index
      %62 = vector.load %arg9[%c0_57, %c0_58] : memref<128x512xbf16, #tpu.memory_space<vmem>>, vector<128x512xbf16>
      %cst_59 = arith.constant dense<0.000000e+00> : vector<64x512xf32>
      %63 = tpu.matmul %61, %62, %cst_59 {dimension_numbers = #tpu.dot_dimension_numbers<[1], [0], [0], [1], [0, 0, 1, 1], [], []>} : vector<64x128xbf16>, vector<128x512xbf16>, vector<64x512xf32> -> vector<64x512xf32>
      %64 = arith.addf %51, %59 : vector<64x512xf32>
      %65 = arith.addf %55, %63 : vector<64x512xf32>
      %66 = vector.broadcast %12 : vector<1x512xf32> to vector<64x512xf32>
      %67 = arith.addf %64, %66 : vector<64x512xf32>
      %68 = vector.broadcast %13 : vector<1x512xf32> to vector<64x512xf32>
      %69 = arith.addf %65, %68 : vector<64x512xf32>
      %c4_i32 = arith.constant 4 : i32
      %70 = arith.muli %arg19, %c4_i32 : i32
      %c0_i32_60 = arith.constant 0 : i32
      %71 = arith.addi %70, %c0_i32_60 : i32
      %72 = vector.extract_strided_slice %arg22 {offsets = [0, 0], sizes = [16, 512], strides = [1, 1]} : vector<64x512xf32> to vector<16x512xf32>
      %73 = vector.extract_strided_slice %arg23 {offsets = [48, 0], sizes = [16, 512], strides = [1, 1]} : vector<64x512xf32> to vector<16x512xf32>
      %74 = tpu.concatenate %72, %73 in 0 : vector<16x512xf32>, vector<16x512xf32> -> vector<32x512xf32>
      %75 = arith.truncf %arg20 : vector<32x128xf32> to vector<32x128xbf16>
      %cst_61 = arith.constant dense<0.000000e+00> : vector<32x1024xf32>
      %76 = tpu.matmul %75, %11, %cst_61 {dimension_numbers = #tpu.dot_dimension_numbers<[1], [0], [0], [1], [0, 0, 1, 1], [], []>} : vector<32x128xbf16>, vector<128x1024xbf16>, vector<32x1024xf32> -> vector<32x1024xf32>
      %77 = vector.extract_strided_slice %76 {offsets = [0, 0], sizes = [32, 512], strides = [1, 1]} : vector<32x1024xf32> to vector<32x512xf32>
      %78 = vector.extract_strided_slice %76 {offsets = [0, 512], sizes = [32, 512], strides = [1, 1]} : vector<32x1024xf32> to vector<32x512xf32>
      %79 = vector.shape_cast %10 : vector<32x1xi1> to vector<32x1xi1>
      %80 = vector.broadcast %79 : vector<32x1xi1> to vector<32x512xi1>
      %81 = arith.select %80, %77, %78 : vector<32x512xi1>, vector<32x512xf32>
      %82 = arith.addf %74, %81 : vector<32x512xf32>
      %83 = vector.extract_strided_slice %82 {offsets = [0, 0], sizes = [32, 128], strides = [1, 1]} : vector<32x512xf32> to vector<32x128xf32>
      %84 = arith.negf %83 : vector<32x128xf32>
      %85 = math.exp %84 : vector<32x128xf32>
      %cst_62 = arith.constant 1.000000e+00 : f32
      %86 = vector.broadcast %cst_62 : f32 to vector<32x128xf32>
      %87 = arith.addf %86, %85 : vector<32x128xf32>
      %88 = arith.divf %86, %87 : vector<32x128xf32>
      %89 = vector.extract_strided_slice %82 {offsets = [0, 128], sizes = [32, 128], strides = [1, 1]} : vector<32x512xf32> to vector<32x128xf32>
      %90 = arith.negf %89 : vector<32x128xf32>
      %91 = math.exp %90 : vector<32x128xf32>
      %cst_63 = arith.constant 1.000000e+00 : f32
      %92 = vector.broadcast %cst_63 : f32 to vector<32x128xf32>
      %93 = arith.addf %92, %91 : vector<32x128xf32>
      %94 = arith.divf %92, %93 : vector<32x128xf32>
      %95 = vector.extract_strided_slice %82 {offsets = [0, 256], sizes = [32, 128], strides = [1, 1]} : vector<32x512xf32> to vector<32x128xf32>
      %96 = math.tanh %95 : vector<32x128xf32>
      %97 = vector.extract_strided_slice %82 {offsets = [0, 384], sizes = [32, 128], strides = [1, 1]} : vector<32x512xf32> to vector<32x128xf32>
      %98 = arith.negf %97 : vector<32x128xf32>
      %99 = math.exp %98 : vector<32x128xf32>
      %cst_64 = arith.constant 1.000000e+00 : f32
      %100 = vector.broadcast %cst_64 : f32 to vector<32x128xf32>
      %101 = arith.addf %100, %99 : vector<32x128xf32>
      %102 = arith.divf %100, %101 : vector<32x128xf32>
      %103 = arith.mulf %94, %arg21 : vector<32x128xf32>
      %104 = arith.mulf %88, %96 : vector<32x128xf32>
      %105 = arith.addf %103, %104 : vector<32x128xf32>
      %106 = math.tanh %105 : vector<32x128xf32>
      %107 = arith.mulf %102, %106 : vector<32x128xf32>
      %108 = arith.addi %3, %71 : i32
      %c7_i32 = arith.constant 7 : i32
      %109 = arith.addi %5, %c7_i32 : i32
      %110 = arith.subi %109, %71 : i32
      %111 = vector.broadcast %108 : i32 to vector<32x1xi32>
      %112 = vector.broadcast %110 : i32 to vector<32x1xi32>
      %113 = arith.select %10, %111, %112 : vector<32x1xi1>, vector<32x1xi32>
      %114 = arith.cmpi slt, %113, %7 : vector<32x1xi32>
      %115 = vector.shape_cast %114 : vector<32x1xi1> to vector<32x1xi1>
      %116 = vector.broadcast %115 : vector<32x1xi1> to vector<32x128xi1>
      %117 = arith.select %116, %107, %arg20 : vector<32x128xi1>, vector<32x128xf32>
      %118 = arith.select %116, %105, %arg21 : vector<32x128xi1>, vector<32x128xf32>
      %cst_65 = arith.constant 0.000000e+00 : f32
      %119 = vector.broadcast %cst_65 : f32 to vector<32x128xf32>
      %120 = arith.select %116, %107, %119 : vector<32x128xi1>, vector<32x128xf32>
      %121 = vector.extract_strided_slice %120 {offsets = [0, 0], sizes = [16, 128], strides = [1, 1]} : vector<32x128xf32> to vector<16x128xf32>
      %122 = arith.truncf %121 : vector<16x128xf32> to vector<16x128xbf16>
      %c16_i32_66 = arith.constant 16 : i32
      %123 = arith.muli %71, %c16_i32_66 : i32
      %124 = tpu.assume_multiple %123, 16 : i32
      %125 = arith.index_cast %124 : i32 to index
      %c0_67 = arith.constant 0 : index
      %126 = vector.load %arg13[%125, %c0_67] : memref<128x128xbf16, #tpu.memory_space<vmem>>, vector<16x128xbf16>
      tpu.vector_store %arg13[%125, %c0_67], %122 {strides = array<i32>} : memref<128x128xbf16, #tpu.memory_space<vmem>>, vector<16x128xbf16>,
      %127 = vector.extract_strided_slice %120 {offsets = [16, 0], sizes = [16, 128], strides = [1, 1]} : vector<32x128xf32> to vector<16x128xf32>
      %128 = arith.truncf %127 : vector<16x128xf32> to vector<16x128xbf16>
      %c7_i32_68 = arith.constant 7 : i32
      %129 = arith.subi %c7_i32_68, %71 : i32
      %c16_i32_69 = arith.constant 16 : i32
      %130 = arith.muli %129, %c16_i32_69 : i32
      %131 = tpu.assume_multiple %130, 16 : i32
      %132 = arith.index_cast %131 : i32 to index
      %c0_70 = arith.constant 0 : index
      %133 = vector.load %arg14[%132, %c0_70] : memref<128x128xbf16, #tpu.memory_space<vmem>>, vector<16x128xbf16>
      tpu.vector_store %arg14[%132, %c0_70], %128 {strides = array<i32>} : memref<128x128xbf16, #tpu.memory_space<vmem>>, vector<16x128xbf16>,
      %c4_i32_71 = arith.constant 4 : i32
      %134 = arith.muli %arg19, %c4_i32_71 : i32
      %c1_i32_72 = arith.constant 1 : i32
      %135 = arith.addi %134, %c1_i32_72 : i32
      %136 = vector.extract_strided_slice %arg22 {offsets = [16, 0], sizes = [16, 512], strides = [1, 1]} : vector<64x512xf32> to vector<16x512xf32>
      %137 = vector.extract_strided_slice %arg23 {offsets = [32, 0], sizes = [16, 512], strides = [1, 1]} : vector<64x512xf32> to vector<16x512xf32>
      %138 = tpu.concatenate %136, %137 in 0 : vector<16x512xf32>, vector<16x512xf32> -> vector<32x512xf32>
      %139 = arith.truncf %117 : vector<32x128xf32> to vector<32x128xbf16>
      %cst_73 = arith.constant dense<0.000000e+00> : vector<32x1024xf32>
      %140 = tpu.matmul %139, %11, %cst_73 {dimension_numbers = #tpu.dot_dimension_numbers<[1], [0], [0], [1], [0, 0, 1, 1], [], []>} : vector<32x128xbf16>, vector<128x1024xbf16>, vector<32x1024xf32> -> vector<32x1024xf32>
      %141 = vector.extract_strided_slice %140 {offsets = [0, 0], sizes = [32, 512], strides = [1, 1]} : vector<32x1024xf32> to vector<32x512xf32>
      %142 = vector.extract_strided_slice %140 {offsets = [0, 512], sizes = [32, 512], strides = [1, 1]} : vector<32x1024xf32> to vector<32x512xf32>
      %143 = vector.shape_cast %10 : vector<32x1xi1> to vector<32x1xi1>
      %144 = vector.broadcast %143 : vector<32x1xi1> to vector<32x512xi1>
      %145 = arith.select %144, %141, %142 : vector<32x512xi1>, vector<32x512xf32>
      %146 = arith.addf %138, %145 : vector<32x512xf32>
      %147 = vector.extract_strided_slice %146 {offsets = [0, 0], sizes = [32, 128], strides = [1, 1]} : vector<32x512xf32> to vector<32x128xf32>
      %148 = arith.negf %147 : vector<32x128xf32>
      %149 = math.exp %148 : vector<32x128xf32>
      %cst_74 = arith.constant 1.000000e+00 : f32
      %150 = vector.broadcast %cst_74 : f32 to vector<32x128xf32>
      %151 = arith.addf %150, %149 : vector<32x128xf32>
      %152 = arith.divf %150, %151 : vector<32x128xf32>
      %153 = vector.extract_strided_slice %146 {offsets = [0, 128], sizes = [32, 128], strides = [1, 1]} : vector<32x512xf32> to vector<32x128xf32>
      %154 = arith.negf %153 : vector<32x128xf32>
      %155 = math.exp %154 : vector<32x128xf32>
      %cst_75 = arith.constant 1.000000e+00 : f32
      %156 = vector.broadcast %cst_75 : f32 to vector<32x128xf32>
      %157 = arith.addf %156, %155 : vector<32x128xf32>
      %158 = arith.divf %156, %157 : vector<32x128xf32>
      %159 = vector.extract_strided_slice %146 {offsets = [0, 256], sizes = [32, 128], strides = [1, 1]} : vector<32x512xf32> to vector<32x128xf32>
      %160 = math.tanh %159 : vector<32x128xf32>
      %161 = vector.extract_strided_slice %146 {offsets = [0, 384], sizes = [32, 128], strides = [1, 1]} : vector<32x512xf32> to vector<32x128xf32>
      %162 = arith.negf %161 : vector<32x128xf32>
      %163 = math.exp %162 : vector<32x128xf32>
      %cst_76 = arith.constant 1.000000e+00 : f32
      %164 = vector.broadcast %cst_76 : f32 to vector<32x128xf32>
      %165 = arith.addf %164, %163 : vector<32x128xf32>
      %166 = arith.divf %164, %165 : vector<32x128xf32>
      %167 = arith.mulf %158, %118 : vector<32x128xf32>
      %168 = arith.mulf %152, %160 : vector<32x128xf32>
      %169 = arith.addf %167, %168 : vector<32x128xf32>
      %170 = math.tanh %169 : vector<32x128xf32>
      %171 = arith.mulf %166, %170 : vector<32x128xf32>
      %172 = arith.addi %3, %135 : i32
      %c7_i32_77 = arith.constant 7 : i32
      %173 = arith.addi %5, %c7_i32_77 : i32
      %174 = arith.subi %173, %135 : i32
      %175 = vector.broadcast %172 : i32 to vector<32x1xi32>
      %176 = vector.broadcast %174 : i32 to vector<32x1xi32>
      %177 = arith.select %10, %175, %176 : vector<32x1xi1>, vector<32x1xi32>
      %178 = arith.cmpi slt, %177, %7 : vector<32x1xi32>
      %179 = vector.shape_cast %178 : vector<32x1xi1> to vector<32x1xi1>
      %180 = vector.broadcast %179 : vector<32x1xi1> to vector<32x128xi1>
      %181 = arith.select %180, %171, %117 : vector<32x128xi1>, vector<32x128xf32>
      %182 = arith.select %180, %169, %118 : vector<32x128xi1>, vector<32x128xf32>
      %cst_78 = arith.constant 0.000000e+00 : f32
      %183 = vector.broadcast %cst_78 : f32 to vector<32x128xf32>
      %184 = arith.select %180, %171, %183 : vector<32x128xi1>, vector<32x128xf32>
      %185 = vector.extract_strided_slice %184 {offsets = [0, 0], sizes = [16, 128], strides = [1, 1]} : vector<32x128xf32> to vector<16x128xf32>
      %186 = arith.truncf %185 : vector<16x128xf32> to vector<16x128xbf16>
      %c16_i32_79 = arith.constant 16 : i32
      %187 = arith.muli %135, %c16_i32_79 : i32
      %188 = tpu.assume_multiple %187, 16 : i32
      %189 = arith.index_cast %188 : i32 to index
      %c0_80 = arith.constant 0 : index
      %190 = vector.load %arg13[%189, %c0_80] : memref<128x128xbf16, #tpu.memory_space<vmem>>, vector<16x128xbf16>
      tpu.vector_store %arg13[%189, %c0_80], %186 {strides = array<i32>} : memref<128x128xbf16, #tpu.memory_space<vmem>>, vector<16x128xbf16>,
      %191 = vector.extract_strided_slice %184 {offsets = [16, 0], sizes = [16, 128], strides = [1, 1]} : vector<32x128xf32> to vector<16x128xf32>
      %192 = arith.truncf %191 : vector<16x128xf32> to vector<16x128xbf16>
      %c7_i32_81 = arith.constant 7 : i32
      %193 = arith.subi %c7_i32_81, %135 : i32
      %c16_i32_82 = arith.constant 16 : i32
      %194 = arith.muli %193, %c16_i32_82 : i32
      %195 = tpu.assume_multiple %194, 16 : i32
      %196 = arith.index_cast %195 : i32 to index
      %c0_83 = arith.constant 0 : index
      %197 = vector.load %arg14[%196, %c0_83] : memref<128x128xbf16, #tpu.memory_space<vmem>>, vector<16x128xbf16>
      tpu.vector_store %arg14[%196, %c0_83], %192 {strides = array<i32>} : memref<128x128xbf16, #tpu.memory_space<vmem>>, vector<16x128xbf16>,
      %c4_i32_84 = arith.constant 4 : i32
      %198 = arith.muli %arg19, %c4_i32_84 : i32
      %c2_i32_85 = arith.constant 2 : i32
      %199 = arith.addi %198, %c2_i32_85 : i32
      %200 = vector.extract_strided_slice %arg22 {offsets = [32, 0], sizes = [16, 512], strides = [1, 1]} : vector<64x512xf32> to vector<16x512xf32>
      %201 = vector.extract_strided_slice %arg23 {offsets = [16, 0], sizes = [16, 512], strides = [1, 1]} : vector<64x512xf32> to vector<16x512xf32>
      %202 = tpu.concatenate %200, %201 in 0 : vector<16x512xf32>, vector<16x512xf32> -> vector<32x512xf32>
      %203 = arith.truncf %181 : vector<32x128xf32> to vector<32x128xbf16>
      %cst_86 = arith.constant dense<0.000000e+00> : vector<32x1024xf32>
      %204 = tpu.matmul %203, %11, %cst_86 {dimension_numbers = #tpu.dot_dimension_numbers<[1], [0], [0], [1], [0, 0, 1, 1], [], []>} : vector<32x128xbf16>, vector<128x1024xbf16>, vector<32x1024xf32> -> vector<32x1024xf32>
      %205 = vector.extract_strided_slice %204 {offsets = [0, 0], sizes = [32, 512], strides = [1, 1]} : vector<32x1024xf32> to vector<32x512xf32>
      %206 = vector.extract_strided_slice %204 {offsets = [0, 512], sizes = [32, 512], strides = [1, 1]} : vector<32x1024xf32> to vector<32x512xf32>
      %207 = vector.shape_cast %10 : vector<32x1xi1> to vector<32x1xi1>
      %208 = vector.broadcast %207 : vector<32x1xi1> to vector<32x512xi1>
      %209 = arith.select %208, %205, %206 : vector<32x512xi1>, vector<32x512xf32>
      %210 = arith.addf %202, %209 : vector<32x512xf32>
      %211 = vector.extract_strided_slice %210 {offsets = [0, 0], sizes = [32, 128], strides = [1, 1]} : vector<32x512xf32> to vector<32x128xf32>
      %212 = arith.negf %211 : vector<32x128xf32>
      %213 = math.exp %212 : vector<32x128xf32>
      %cst_87 = arith.constant 1.000000e+00 : f32
      %214 = vector.broadcast %cst_87 : f32 to vector<32x128xf32>
      %215 = arith.addf %214, %213 : vector<32x128xf32>
      %216 = arith.divf %214, %215 : vector<32x128xf32>
      %217 = vector.extract_strided_slice %210 {offsets = [0, 128], sizes = [32, 128], strides = [1, 1]} : vector<32x512xf32> to vector<32x128xf32>
      %218 = arith.negf %217 : vector<32x128xf32>
      %219 = math.exp %218 : vector<32x128xf32>
      %cst_88 = arith.constant 1.000000e+00 : f32
      %220 = vector.broadcast %cst_88 : f32 to vector<32x128xf32>
      %221 = arith.addf %220, %219 : vector<32x128xf32>
      %222 = arith.divf %220, %221 : vector<32x128xf32>
      %223 = vector.extract_strided_slice %210 {offsets = [0, 256], sizes = [32, 128], strides = [1, 1]} : vector<32x512xf32> to vector<32x128xf32>
      %224 = math.tanh %223 : vector<32x128xf32>
      %225 = vector.extract_strided_slice %210 {offsets = [0, 384], sizes = [32, 128], strides = [1, 1]} : vector<32x512xf32> to vector<32x128xf32>
      %226 = arith.negf %225 : vector<32x128xf32>
      %227 = math.exp %226 : vector<32x128xf32>
      %cst_89 = arith.constant 1.000000e+00 : f32
      %228 = vector.broadcast %cst_89 : f32 to vector<32x128xf32>
      %229 = arith.addf %228, %227 : vector<32x128xf32>
      %230 = arith.divf %228, %229 : vector<32x128xf32>
      %231 = arith.mulf %222, %182 : vector<32x128xf32>
      %232 = arith.mulf %216, %224 : vector<32x128xf32>
      %233 = arith.addf %231, %232 : vector<32x128xf32>
      %234 = math.tanh %233 : vector<32x128xf32>
      %235 = arith.mulf %230, %234 : vector<32x128xf32>
      %236 = arith.addi %3, %199 : i32
      %c7_i32_90 = arith.constant 7 : i32
      %237 = arith.addi %5, %c7_i32_90 : i32
      %238 = arith.subi %237, %199 : i32
      %239 = vector.broadcast %236 : i32 to vector<32x1xi32>
      %240 = vector.broadcast %238 : i32 to vector<32x1xi32>
      %241 = arith.select %10, %239, %240 : vector<32x1xi1>, vector<32x1xi32>
      %242 = arith.cmpi slt, %241, %7 : vector<32x1xi32>
      %243 = vector.shape_cast %242 : vector<32x1xi1> to vector<32x1xi1>
      %244 = vector.broadcast %243 : vector<32x1xi1> to vector<32x128xi1>
      %245 = arith.select %244, %235, %181 : vector<32x128xi1>, vector<32x128xf32>
      %246 = arith.select %244, %233, %182 : vector<32x128xi1>, vector<32x128xf32>
      %cst_91 = arith.constant 0.000000e+00 : f32
      %247 = vector.broadcast %cst_91 : f32 to vector<32x128xf32>
      %248 = arith.select %244, %235, %247 : vector<32x128xi1>, vector<32x128xf32>
      %249 = vector.extract_strided_slice %248 {offsets = [0, 0], sizes = [16, 128], strides = [1, 1]} : vector<32x128xf32> to vector<16x128xf32>
      %250 = arith.truncf %249 : vector<16x128xf32> to vector<16x128xbf16>
      %c16_i32_92 = arith.constant 16 : i32
      %251 = arith.muli %199, %c16_i32_92 : i32
      %252 = tpu.assume_multiple %251, 16 : i32
      %253 = arith.index_cast %252 : i32 to index
      %c0_93 = arith.constant 0 : index
      %254 = vector.load %arg13[%253, %c0_93] : memref<128x128xbf16, #tpu.memory_space<vmem>>, vector<16x128xbf16>
      tpu.vector_store %arg13[%253, %c0_93], %250 {strides = array<i32>} : memref<128x128xbf16, #tpu.memory_space<vmem>>, vector<16x128xbf16>,
      %255 = vector.extract_strided_slice %248 {offsets = [16, 0], sizes = [16, 128], strides = [1, 1]} : vector<32x128xf32> to vector<16x128xf32>
      %256 = arith.truncf %255 : vector<16x128xf32> to vector<16x128xbf16>
      %c7_i32_94 = arith.constant 7 : i32
      %257 = arith.subi %c7_i32_94, %199 : i32
      %c16_i32_95 = arith.constant 16 : i32
      %258 = arith.muli %257, %c16_i32_95 : i32
      %259 = tpu.assume_multiple %258, 16 : i32
      %260 = arith.index_cast %259 : i32 to index
      %c0_96 = arith.constant 0 : index
      %261 = vector.load %arg14[%260, %c0_96] : memref<128x128xbf16, #tpu.memory_space<vmem>>, vector<16x128xbf16>
      tpu.vector_store %arg14[%260, %c0_96], %256 {strides = array<i32>} : memref<128x128xbf16, #tpu.memory_space<vmem>>, vector<16x128xbf16>,
      %c4_i32_97 = arith.constant 4 : i32
      %262 = arith.muli %arg19, %c4_i32_97 : i32
      %c3_i32 = arith.constant 3 : i32
      %263 = arith.addi %262, %c3_i32 : i32
      %264 = vector.extract_strided_slice %arg22 {offsets = [48, 0], sizes = [16, 512], strides = [1, 1]} : vector<64x512xf32> to vector<16x512xf32>
      %265 = vector.extract_strided_slice %arg23 {offsets = [0, 0], sizes = [16, 512], strides = [1, 1]} : vector<64x512xf32> to vector<16x512xf32>
      %266 = tpu.concatenate %264, %265 in 0 : vector<16x512xf32>, vector<16x512xf32> -> vector<32x512xf32>
      %267 = arith.truncf %245 : vector<32x128xf32> to vector<32x128xbf16>
      %cst_98 = arith.constant dense<0.000000e+00> : vector<32x1024xf32>
      %268 = tpu.matmul %267, %11, %cst_98 {dimension_numbers = #tpu.dot_dimension_numbers<[1], [0], [0], [1], [0, 0, 1, 1], [], []>} : vector<32x128xbf16>, vector<128x1024xbf16>, vector<32x1024xf32> -> vector<32x1024xf32>
      %269 = vector.extract_strided_slice %268 {offsets = [0, 0], sizes = [32, 512], strides = [1, 1]} : vector<32x1024xf32> to vector<32x512xf32>
      %270 = vector.extract_strided_slice %268 {offsets = [0, 512], sizes = [32, 512], strides = [1, 1]} : vector<32x1024xf32> to vector<32x512xf32>
      %271 = vector.shape_cast %10 : vector<32x1xi1> to vector<32x1xi1>
      %272 = vector.broadcast %271 : vector<32x1xi1> to vector<32x512xi1>
      %273 = arith.select %272, %269, %270 : vector<32x512xi1>, vector<32x512xf32>
      %274 = arith.addf %266, %273 : vector<32x512xf32>
      %275 = vector.extract_strided_slice %274 {offsets = [0, 0], sizes = [32, 128], strides = [1, 1]} : vector<32x512xf32> to vector<32x128xf32>
      %276 = arith.negf %275 : vector<32x128xf32>
      %277 = math.exp %276 : vector<32x128xf32>
      %cst_99 = arith.constant 1.000000e+00 : f32
      %278 = vector.broadcast %cst_99 : f32 to vector<32x128xf32>
      %279 = arith.addf %278, %277 : vector<32x128xf32>
      %280 = arith.divf %278, %279 : vector<32x128xf32>
      %281 = vector.extract_strided_slice %274 {offsets = [0, 128], sizes = [32, 128], strides = [1, 1]} : vector<32x512xf32> to vector<32x128xf32>
      %282 = arith.negf %281 : vector<32x128xf32>
      %283 = math.exp %282 : vector<32x128xf32>
      %cst_100 = arith.constant 1.000000e+00 : f32
      %284 = vector.broadcast %cst_100 : f32 to vector<32x128xf32>
      %285 = arith.addf %284, %283 : vector<32x128xf32>
      %286 = arith.divf %284, %285 : vector<32x128xf32>
      %287 = vector.extract_strided_slice %274 {offsets = [0, 256], sizes = [32, 128], strides = [1, 1]} : vector<32x512xf32> to vector<32x128xf32>
      %288 = math.tanh %287 : vector<32x128xf32>
      %289 = vector.extract_strided_slice %274 {offsets = [0, 384], sizes = [32, 128], strides = [1, 1]} : vector<32x512xf32> to vector<32x128xf32>
      %290 = arith.negf %289 : vector<32x128xf32>
      %291 = math.exp %290 : vector<32x128xf32>
      %cst_101 = arith.constant 1.000000e+00 : f32
      %292 = vector.broadcast %cst_101 : f32 to vector<32x128xf32>
      %293 = arith.addf %292, %291 : vector<32x128xf32>
      %294 = arith.divf %292, %293 : vector<32x128xf32>
      %295 = arith.mulf %286, %246 : vector<32x128xf32>
      %296 = arith.mulf %280, %288 : vector<32x128xf32>
      %297 = arith.addf %295, %296 : vector<32x128xf32>
      %298 = math.tanh %297 : vector<32x128xf32>
      %299 = arith.mulf %294, %298 : vector<32x128xf32>
      %300 = arith.addi %3, %263 : i32
      %c7_i32_102 = arith.constant 7 : i32
      %301 = arith.addi %5, %c7_i32_102 : i32
      %302 = arith.subi %301, %263 : i32
      %303 = vector.broadcast %300 : i32 to vector<32x1xi32>
      %304 = vector.broadcast %302 : i32 to vector<32x1xi32>
      %305 = arith.select %10, %303, %304 : vector<32x1xi1>, vector<32x1xi32>
      %306 = arith.cmpi slt, %305, %7 : vector<32x1xi32>
      %307 = vector.shape_cast %306 : vector<32x1xi1> to vector<32x1xi1>
      %308 = vector.broadcast %307 : vector<32x1xi1> to vector<32x128xi1>
      %309 = arith.select %308, %299, %245 : vector<32x128xi1>, vector<32x128xf32>
      %310 = arith.select %308, %297, %246 : vector<32x128xi1>, vector<32x128xf32>
      %cst_103 = arith.constant 0.000000e+00 : f32
      %311 = vector.broadcast %cst_103 : f32 to vector<32x128xf32>
      %312 = arith.select %308, %299, %311 : vector<32x128xi1>, vector<32x128xf32>
      %313 = vector.extract_strided_slice %312 {offsets = [0, 0], sizes = [16, 128], strides = [1, 1]} : vector<32x128xf32> to vector<16x128xf32>
      %314 = arith.truncf %313 : vector<16x128xf32> to vector<16x128xbf16>
      %c16_i32_104 = arith.constant 16 : i32
      %315 = arith.muli %263, %c16_i32_104 : i32
      %316 = tpu.assume_multiple %315, 16 : i32
      %317 = arith.index_cast %316 : i32 to index
      %c0_105 = arith.constant 0 : index
      %318 = vector.load %arg13[%317, %c0_105] : memref<128x128xbf16, #tpu.memory_space<vmem>>, vector<16x128xbf16>
      tpu.vector_store %arg13[%317, %c0_105], %314 {strides = array<i32>} : memref<128x128xbf16, #tpu.memory_space<vmem>>, vector<16x128xbf16>,
      %319 = vector.extract_strided_slice %312 {offsets = [16, 0], sizes = [16, 128], strides = [1, 1]} : vector<32x128xf32> to vector<16x128xf32>
      %320 = arith.truncf %319 : vector<16x128xf32> to vector<16x128xbf16>
      %c7_i32_106 = arith.constant 7 : i32
      %321 = arith.subi %c7_i32_106, %263 : i32
      %c16_i32_107 = arith.constant 16 : i32
      %322 = arith.muli %321, %c16_i32_107 : i32
      %323 = tpu.assume_multiple %322, 16 : i32
      %324 = arith.index_cast %323 : i32 to index
      %c0_108 = arith.constant 0 : index
      %325 = vector.load %arg14[%324, %c0_108] : memref<128x128xbf16, #tpu.memory_space<vmem>>, vector<16x128xbf16>
      tpu.vector_store %arg14[%324, %c0_108], %320 {strides = array<i32>} : memref<128x128xbf16, #tpu.memory_space<vmem>>, vector<16x128xbf16>,
      scf.yield %309, %310, %67, %69 : vector<32x128xf32>, vector<32x128xf32>, vector<64x512xf32>, vector<64x512xf32>
    }
    %c2_i32_33 = arith.constant 2 : i32
    %c0_34 = arith.constant 0 : index
    %c0_35 = arith.constant 0 : index
    %36 = vector.load %arg17[%c0_34, %c0_35] : memref<32x128xf32, #tpu.memory_space<vmem>>, vector<32x128xf32>
    tpu.vector_store %arg17[%c0_34, %c0_35], %35#0 {strides = array<i32>} : memref<32x128xf32, #tpu.memory_space<vmem>>, vector<32x128xf32>,
    %c0_36 = arith.constant 0 : index
    %c0_37 = arith.constant 0 : index
    %37 = vector.load %arg18[%c0_36, %c0_37] : memref<32x128xf32, #tpu.memory_space<vmem>>, vector<32x128xf32>
    tpu.vector_store %arg18[%c0_36, %c0_37], %35#1 {strides = array<i32>} : memref<32x128xf32, #tpu.memory_space<vmem>>, vector<32x128xf32>,
    %c1_i32_38 = arith.constant 1 : i32
    %38 = arith.cmpi eq, %arg0, %c1_i32_38 : i32
    %39 = arith.extui %38 : i1 to i32
    %c0_i32_39 = arith.constant 0 : i32
    %40 = arith.cmpi ne, %39, %c0_i32_39 : i32
    scf.if %40 {
      %c0_40 = arith.constant 0 : index
      %c0_41 = arith.constant 0 : index
      %41 = vector.load %arg17[%c0_40, %c0_41] : memref<32x128xf32, #tpu.memory_space<vmem>>, vector<16x128xf32>
      %c0_42 = arith.constant 0 : index
      %c0_43 = arith.constant 0 : index
      %42 = vector.load %arg15[%c0_42, %c0_43] : memref<16x128xf32, #tpu.memory_space<vmem>>, vector<16x128xf32>
      tpu.vector_store %arg15[%c0_42, %c0_43], %41 {strides = array<i32>} : memref<16x128xf32, #tpu.memory_space<vmem>>, vector<16x128xf32>,
      %c16 = arith.constant 16 : index
      %c0_44 = arith.constant 0 : index
      %43 = vector.load %arg17[%c16, %c0_44] : memref<32x128xf32, #tpu.memory_space<vmem>>, vector<16x128xf32>
      %c0_45 = arith.constant 0 : index
      %c0_46 = arith.constant 0 : index
      %44 = vector.load %arg16[%c0_45, %c0_46] : memref<16x128xf32, #tpu.memory_space<vmem>>, vector<16x128xf32>
      tpu.vector_store %arg16[%c0_45, %c0_46], %43 {strides = array<i32>} : memref<16x128xf32, #tpu.memory_space<vmem>>, vector<16x128xf32>,
    } else {
    }
    return
  }
  func.func @transform_0(%arg0: i32) -> (i32, i32) {
    %c0_i32 = arith.constant 0 : i32
    %c0_i32_0 = arith.constant 0 : i32
    %c0_i32_1 = arith.constant 0 : i32
    return %c0_i32, %c0_i32_0 : i32, i32
  }
  func.func @transform_1(%arg0: i32) -> (i32, i32) {
    %c0_i32 = arith.constant 0 : i32
    %c0_i32_0 = arith.constant 0 : i32
    return %arg0, %c0_i32 : i32, i32
  }
  func.func @transform_2(%arg0: i32) -> (i32, i32) {
    %c1_i32 = arith.constant 1 : i32
    %0 = arith.subi %c1_i32, %arg0 : i32
    %c0_i32 = arith.constant 0 : i32
    %c0_i32_0 = arith.constant 0 : i32
    return %0, %c0_i32 : i32, i32
  }
  func.func @transform_3(%arg0: i32) -> (i32, i32) {
    %c0_i32 = arith.constant 0 : i32
    %c0_i32_0 = arith.constant 0 : i32
    return %arg0, %c0_i32 : i32, i32
  }
  func.func @transform_4(%arg0: i32) -> (i32, i32) {
    %c1_i32 = arith.constant 1 : i32
    %0 = arith.subi %c1_i32, %arg0 : i32
    %c0_i32 = arith.constant 0 : i32
    %c0_i32_0 = arith.constant 0 : i32
    return %0, %c0_i32 : i32, i32
  }
  func.func @transform_5(%arg0: i32) -> (i32, i32) {
    %c0_i32 = arith.constant 0 : i32
    %c0_i32_0 = arith.constant 0 : i32
    %c0_i32_1 = arith.constant 0 : i32
    return %c0_i32, %c0_i32_0 : i32, i32
  }
  func.func @transform_6(%arg0: i32) -> (i32, i32) {
    %c0_i32 = arith.constant 0 : i32
    %c0_i32_0 = arith.constant 0 : i32
    %c0_i32_1 = arith.constant 0 : i32
    return %c0_i32, %c0_i32_0 : i32, i32
  }
  func.func @transform_7(%arg0: i32) -> (i32, i32) {
    %c0_i32 = arith.constant 0 : i32
    %c0_i32_0 = arith.constant 0 : i32
    %c0_i32_1 = arith.constant 0 : i32
    return %c0_i32, %c0_i32_0 : i32, i32
  }
  func.func @transform_8(%arg0: i32) -> (i32, i32) {
    %c0_i32 = arith.constant 0 : i32
    %c0_i32_0 = arith.constant 0 : i32
    %c0_i32_1 = arith.constant 0 : i32
    return %c0_i32, %c0_i32_0 : i32, i32
  }
  func.func @transform_9(%arg0: i32) -> (i32, i32) {
    %c0_i32 = arith.constant 0 : i32
    %c0_i32_0 = arith.constant 0 : i32
    %c0_i32_1 = arith.constant 0 : i32
    return %c0_i32, %c0_i32_0 : i32, i32
  }
  func.func @transform_10(%arg0: i32) -> (i32, i32) {
    %c0_i32 = arith.constant 0 : i32
    %c0_i32_0 = arith.constant 0 : i32
    %c0_i32_1 = arith.constant 0 : i32
    return %c0_i32, %c0_i32_0 : i32, i32
  }
  func.func @transform_11(%arg0: i32) -> (i32, i32) {
    %c0_i32 = arith.constant 0 : i32
    %c0_i32_0 = arith.constant 0 : i32
    %c0_i32_1 = arith.constant 0 : i32
    return %c0_i32, %c0_i32_0 : i32, i32
  }
  func.func @transform_12(%arg0: i32) -> (i32, i32) {
    %c0_i32 = arith.constant 0 : i32
    %c0_i32_0 = arith.constant 0 : i32
    return %arg0, %c0_i32 : i32, i32
  }
  func.func @transform_13(%arg0: i32) -> (i32, i32) {
    %c1_i32 = arith.constant 1 : i32
    %0 = arith.subi %c1_i32, %arg0 : i32
    %c0_i32 = arith.constant 0 : i32
    %c0_i32_0 = arith.constant 0 : i32
    return %0, %c0_i32 : i32, i32
  }
  func.func @transform_14(%arg0: i32) -> (i32, i32) {
    %c0_i32 = arith.constant 0 : i32
    %c0_i32_0 = arith.constant 0 : i32
    %c0_i32_1 = arith.constant 0 : i32
    return %c0_i32, %c0_i32_0 : i32, i32
  }
  func.func @transform_15(%arg0: i32) -> (i32, i32) {
    %c0_i32 = arith.constant 0 : i32
    %c0_i32_0 = arith.constant 0 : i32
    %c0_i32_1 = arith.constant 0 : i32
    return %c0_i32, %c0_i32_0 : i32, i32
  }
}

module attributes {stable_mosaic.version = 11 : i64} {
  func.func @kernel(%arg0: i32, %arg1: memref<16x1xi32, #tpu.memory_space<vmem>>, %arg2: memref<128x128xbf16, #tpu.memory_space<vmem>>, %arg3: memref<128x128xbf16, #tpu.memory_space<vmem>>, %arg4: memref<128x512xbf16, #tpu.memory_space<vmem>>, %arg5: memref<128x512xbf16, #tpu.memory_space<vmem>>, %arg6: memref<128x1024xbf16, #tpu.memory_space<vmem>>, %arg7: memref<1x512xf32, #tpu.memory_space<vmem>>, %arg8: memref<1x512xf32, #tpu.memory_space<vmem>>, %arg9: memref<128x128xbf16, #tpu.memory_space<vmem>>, %arg10: memref<128x128xbf16, #tpu.memory_space<vmem>>, %arg11: memref<16x128xf32, #tpu.memory_space<vmem>>, %arg12: memref<16x128xf32, #tpu.memory_space<vmem>>, %arg13: memref<32x128xf32, #tpu.memory_space<vmem>>, %arg14: memref<32x128xf32, #tpu.memory_space<vmem>>) attributes {dimension_semantics = [#tpu.dimension_semantics<arbitrary>], iteration_bounds = array<i64: 2>, scalar_prefetch = 0 : i64, scratch_operands = 2 : i64, tpu.core_type = #tpu.core_type<tc>, window_params = [{pipeline_mode = #tpu.pipeline_mode<synchronous>, transform_indices = @transform_0, window_bounds = array<i64: 16, 1>}, {transform_indices = @transform_1, window_bounds = array<i64: 128, 128>}, {transform_indices = @transform_2, window_bounds = array<i64: 128, 128>}, {pipeline_mode = #tpu.pipeline_mode<synchronous>, transform_indices = @transform_3, window_bounds = array<i64: 128, 512>}, {pipeline_mode = #tpu.pipeline_mode<synchronous>, transform_indices = @transform_4, window_bounds = array<i64: 128, 512>}, {pipeline_mode = #tpu.pipeline_mode<synchronous>, transform_indices = @transform_5, window_bounds = array<i64: 128, 1024>}, {pipeline_mode = #tpu.pipeline_mode<synchronous>, transform_indices = @transform_6, window_bounds = array<i64: 1, 512>}, {pipeline_mode = #tpu.pipeline_mode<synchronous>, transform_indices = @transform_7, window_bounds = array<i64: 1, 512>}, {transform_indices = @transform_8, window_bounds = array<i64: 128, 128>}, {transform_indices = @transform_9, window_bounds = array<i64: 128, 128>}, {pipeline_mode = #tpu.pipeline_mode<synchronous>, transform_indices = @transform_10, window_bounds = array<i64: 16, 128>}, {pipeline_mode = #tpu.pipeline_mode<synchronous>, transform_indices = @transform_11, window_bounds = array<i64: 16, 128>}]} {
    %c0_i32 = arith.constant 0 : i32
    %0 = arith.cmpi eq, %arg0, %c0_i32 : i32
    %1 = arith.extui %0 : i1 to i32
    %c0_i32_0 = arith.constant 0 : i32
    %2 = arith.cmpi ne, %1, %c0_i32_0 : i32
    scf.if %2 {
      %cst_30 = arith.constant 0.000000e+00 : f32
      %33 = vector.broadcast %cst_30 : f32 to vector<32x128xf32>
      %c0_31 = arith.constant 0 : index
      %c0_32 = arith.constant 0 : index
      %34 = vector.load %arg13[%c0_31, %c0_32] : memref<32x128xf32, #tpu.memory_space<vmem>>, vector<32x128xf32>
      tpu.vector_store %arg13[%c0_31, %c0_32], %33 {strides = array<i32>} : memref<32x128xf32, #tpu.memory_space<vmem>>, vector<32x128xf32>,
      %cst_33 = arith.constant 0.000000e+00 : f32
      %35 = vector.broadcast %cst_33 : f32 to vector<32x128xf32>
      %c0_34 = arith.constant 0 : index
      %c0_35 = arith.constant 0 : index
      %36 = vector.load %arg14[%c0_34, %c0_35] : memref<32x128xf32, #tpu.memory_space<vmem>>, vector<32x128xf32>
      tpu.vector_store %arg14[%c0_34, %c0_35], %35 {strides = array<i32>} : memref<32x128xf32, #tpu.memory_space<vmem>>, vector<32x128xf32>,
    } else {
    }
    %c8_i32 = arith.constant 8 : i32
    %3 = arith.muli %arg0, %c8_i32 : i32
    %c1_i32 = arith.constant 1 : i32
    %4 = arith.subi %c1_i32, %arg0 : i32
    %c8_i32_1 = arith.constant 8 : i32
    %5 = arith.muli %4, %c8_i32_1 : i32
    %c0 = arith.constant 0 : index
    %c0_2 = arith.constant 0 : index
    %6 = vector.load %arg1[%c0, %c0_2] : memref<16x1xi32, #tpu.memory_space<vmem>>, vector<16x1xi32>
    %7 = tpu.concatenate %6, %6 in 0 : vector<16x1xi32>, vector<16x1xi32> -> vector<32x1xi32>
    %8 = tpu.iota {dimensions = array<i32: 0>} : vector<32x1xi32>
    %c16_i32 = arith.constant 16 : i32
    %9 = vector.broadcast %c16_i32 : i32 to vector<32x1xi32>
    %10 = arith.cmpi slt, %8, %9 : vector<32x1xi32>
    %c0_3 = arith.constant 0 : index
    %c0_4 = arith.constant 0 : index
    %11 = vector.load %arg6[%c0_3, %c0_4] : memref<128x1024xbf16, #tpu.memory_space<vmem>>, vector<128x1024xbf16>
    %c0_5 = arith.constant 0 : index
    %c0_6 = arith.constant 0 : index
    %12 = vector.load %arg7[%c0_5, %c0_6] : memref<1x512xf32, #tpu.memory_space<vmem>>, vector<1x512xf32>
    %c0_7 = arith.constant 0 : index
    %c0_8 = arith.constant 0 : index
    %13 = vector.load %arg8[%c0_7, %c0_8] : memref<1x512xf32, #tpu.memory_space<vmem>>, vector<1x512xf32>
    %c0_9 = arith.constant 0 : index
    %c0_10 = arith.constant 0 : index
    %14 = vector.load %arg2[%c0_9, %c0_10] : memref<128x128xbf16, #tpu.memory_space<vmem>>, vector<64x128xbf16>
    %c0_11 = arith.constant 0 : index
    %c0_12 = arith.constant 0 : index
    %15 = vector.load %arg4[%c0_11, %c0_12] : memref<128x512xbf16, #tpu.memory_space<vmem>>, vector<128x512xbf16>
    %cst = arith.constant dense<0.000000e+00> : vector<64x512xf32>
    %16 = tpu.matmul %14, %15, %cst {dimension_numbers = #tpu.dot_dimension_numbers<[1], [0], [0], [1], [0, 0, 1, 1], [], []>} : vector<64x128xbf16>, vector<128x512xbf16>, vector<64x512xf32> -> vector<64x512xf32>
    %c64 = arith.constant 64 : index
    %c0_13 = arith.constant 0 : index
    %17 = vector.load %arg3[%c64, %c0_13] : memref<128x128xbf16, #tpu.memory_space<vmem>>, vector<64x128xbf16>
    %c0_14 = arith.constant 0 : index
    %c0_15 = arith.constant 0 : index
    %18 = vector.load %arg5[%c0_14, %c0_15] : memref<128x512xbf16, #tpu.memory_space<vmem>>, vector<128x512xbf16>
    %cst_16 = arith.constant dense<0.000000e+00> : vector<64x512xf32>
    %19 = tpu.matmul %17, %18, %cst_16 {dimension_numbers = #tpu.dot_dimension_numbers<[1], [0], [0], [1], [0, 0, 1, 1], [], []>} : vector<64x128xbf16>, vector<128x512xbf16>, vector<64x512xf32> -> vector<64x512xf32>
    %20 = vector.broadcast %12 : vector<1x512xf32> to vector<64x512xf32>
    %21 = arith.addf %16, %20 : vector<64x512xf32>
    %22 = vector.broadcast %13 : vector<1x512xf32> to vector<64x512xf32>
    %23 = arith.addf %19, %22 : vector<64x512xf32>
    %c0_17 = arith.constant 0 : index
    %c0_18 = arith.constant 0 : index
    %24 = vector.load %arg13[%c0_17, %c0_18] : memref<32x128xf32, #tpu.memory_space<vmem>>, vector<32x128xf32>
    %c0_19 = arith.constant 0 : index
    %c0_20 = arith.constant 0 : index
    %25 = vector.load %arg14[%c0_19, %c0_20] : memref<32x128xf32, #tpu.memory_space<vmem>>, vector<32x128xf32>
    %c0_i32_21 = arith.constant 0 : i32
    %c2_i32 = arith.constant 2 : i32
    %26 = arith.addi %c0_i32_21, %c2_i32 : i32
    %c1_i32_22 = arith.constant 1 : i32
    %27:4 = scf.for %arg15 = %c0_i32_21 to %26 step %c1_i32_22 iter_args(%arg16 = %24, %arg17 = %25, %arg18 = %21, %arg19 = %23) -> (vector<32x128xf32>, vector<32x128xf32>, vector<64x512xf32>, vector<64x512xf32>)  : i32 {
      %c1_i32_30 = arith.constant 1 : i32
      %33 = arith.addi %arg15, %c1_i32_30 : i32
      %c1_i32_31 = arith.constant 1 : i32
      %34 = arith.minsi %33, %c1_i32_31 : i32
      %c64_i32 = arith.constant 64 : i32
      %35 = arith.muli %34, %c64_i32 : i32
      %c1_i32_32 = arith.constant 1 : i32
      %36 = arith.subi %c1_i32_32, %34 : i32
      %c64_i32_33 = arith.constant 64 : i32
      %37 = arith.muli %36, %c64_i32_33 : i32
      %38 = tpu.assume_multiple %35, 64 : i32
      %39 = tpu.assume_multiple %37, 64 : i32
      %40 = arith.index_cast %38 : i32 to index
      %c0_34 = arith.constant 0 : index
      %41 = vector.load %arg2[%40, %c0_34] : memref<128x128xbf16, #tpu.memory_space<vmem>>, vector<64x128xbf16>
      %c0_35 = arith.constant 0 : index
      %c0_36 = arith.constant 0 : index
      %42 = vector.load %arg4[%c0_35, %c0_36] : memref<128x512xbf16, #tpu.memory_space<vmem>>, vector<128x512xbf16>
      %cst_37 = arith.constant dense<0.000000e+00> : vector<64x512xf32>
      %43 = tpu.matmul %41, %42, %cst_37 {dimension_numbers = #tpu.dot_dimension_numbers<[1], [0], [0], [1], [0, 0, 1, 1], [], []>} : vector<64x128xbf16>, vector<128x512xbf16>, vector<64x512xf32> -> vector<64x512xf32>
      %44 = arith.index_cast %39 : i32 to index
      %c0_38 = arith.constant 0 : index
      %45 = vector.load %arg3[%44, %c0_38] : memref<128x128xbf16, #tpu.memory_space<vmem>>, vector<64x128xbf16>
      %c0_39 = arith.constant 0 : index
      %c0_40 = arith.constant 0 : index
      %46 = vector.load %arg5[%c0_39, %c0_40] : memref<128x512xbf16, #tpu.memory_space<vmem>>, vector<128x512xbf16>
      %cst_41 = arith.constant dense<0.000000e+00> : vector<64x512xf32>
      %47 = tpu.matmul %45, %46, %cst_41 {dimension_numbers = #tpu.dot_dimension_numbers<[1], [0], [0], [1], [0, 0, 1, 1], [], []>} : vector<64x128xbf16>, vector<128x512xbf16>, vector<64x512xf32> -> vector<64x512xf32>
      %48 = vector.broadcast %12 : vector<1x512xf32> to vector<64x512xf32>
      %49 = arith.addf %43, %48 : vector<64x512xf32>
      %50 = vector.broadcast %13 : vector<1x512xf32> to vector<64x512xf32>
      %51 = arith.addf %47, %50 : vector<64x512xf32>
      %c4_i32 = arith.constant 4 : i32
      %52 = arith.muli %arg15, %c4_i32 : i32
      %c0_i32_42 = arith.constant 0 : i32
      %53 = arith.addi %52, %c0_i32_42 : i32
      %54 = vector.extract_strided_slice %arg18 {offsets = [0, 0], sizes = [16, 512], strides = [1, 1]} : vector<64x512xf32> to vector<16x512xf32>
      %55 = vector.extract_strided_slice %arg19 {offsets = [48, 0], sizes = [16, 512], strides = [1, 1]} : vector<64x512xf32> to vector<16x512xf32>
      %56 = tpu.concatenate %54, %55 in 0 : vector<16x512xf32>, vector<16x512xf32> -> vector<32x512xf32>
      %57 = arith.truncf %arg16 : vector<32x128xf32> to vector<32x128xbf16>
      %cst_43 = arith.constant dense<0.000000e+00> : vector<32x1024xf32>
      %58 = tpu.matmul %57, %11, %cst_43 {dimension_numbers = #tpu.dot_dimension_numbers<[1], [0], [0], [1], [0, 0, 1, 1], [], []>} : vector<32x128xbf16>, vector<128x1024xbf16>, vector<32x1024xf32> -> vector<32x1024xf32>
      %59 = vector.extract_strided_slice %58 {offsets = [0, 0], sizes = [32, 512], strides = [1, 1]} : vector<32x1024xf32> to vector<32x512xf32>
      %60 = vector.extract_strided_slice %58 {offsets = [0, 512], sizes = [32, 512], strides = [1, 1]} : vector<32x1024xf32> to vector<32x512xf32>
      %61 = vector.shape_cast %10 : vector<32x1xi1> to vector<32x1xi1>
      %62 = vector.broadcast %61 : vector<32x1xi1> to vector<32x512xi1>
      %63 = arith.select %62, %59, %60 : vector<32x512xi1>, vector<32x512xf32>
      %64 = arith.addf %56, %63 : vector<32x512xf32>
      %65 = vector.extract_strided_slice %64 {offsets = [0, 0], sizes = [32, 128], strides = [1, 1]} : vector<32x512xf32> to vector<32x128xf32>
      %66 = arith.negf %65 : vector<32x128xf32>
      %67 = math.exp %66 : vector<32x128xf32>
      %cst_44 = arith.constant 1.000000e+00 : f32
      %68 = vector.broadcast %cst_44 : f32 to vector<32x128xf32>
      %69 = arith.addf %68, %67 : vector<32x128xf32>
      %70 = arith.divf %68, %69 : vector<32x128xf32>
      %71 = vector.extract_strided_slice %64 {offsets = [0, 128], sizes = [32, 128], strides = [1, 1]} : vector<32x512xf32> to vector<32x128xf32>
      %72 = arith.negf %71 : vector<32x128xf32>
      %73 = math.exp %72 : vector<32x128xf32>
      %cst_45 = arith.constant 1.000000e+00 : f32
      %74 = vector.broadcast %cst_45 : f32 to vector<32x128xf32>
      %75 = arith.addf %74, %73 : vector<32x128xf32>
      %76 = arith.divf %74, %75 : vector<32x128xf32>
      %77 = vector.extract_strided_slice %64 {offsets = [0, 256], sizes = [32, 128], strides = [1, 1]} : vector<32x512xf32> to vector<32x128xf32>
      %78 = math.tanh %77 : vector<32x128xf32>
      %79 = vector.extract_strided_slice %64 {offsets = [0, 384], sizes = [32, 128], strides = [1, 1]} : vector<32x512xf32> to vector<32x128xf32>
      %80 = arith.negf %79 : vector<32x128xf32>
      %81 = math.exp %80 : vector<32x128xf32>
      %cst_46 = arith.constant 1.000000e+00 : f32
      %82 = vector.broadcast %cst_46 : f32 to vector<32x128xf32>
      %83 = arith.addf %82, %81 : vector<32x128xf32>
      %84 = arith.divf %82, %83 : vector<32x128xf32>
      %85 = arith.mulf %76, %arg17 : vector<32x128xf32>
      %86 = arith.mulf %70, %78 : vector<32x128xf32>
      %87 = arith.addf %85, %86 : vector<32x128xf32>
      %88 = math.tanh %87 : vector<32x128xf32>
      %89 = arith.mulf %84, %88 : vector<32x128xf32>
      %90 = arith.addi %3, %53 : i32
      %c7_i32 = arith.constant 7 : i32
      %91 = arith.addi %5, %c7_i32 : i32
      %92 = arith.subi %91, %53 : i32
      %93 = vector.broadcast %90 : i32 to vector<32x1xi32>
      %94 = vector.broadcast %92 : i32 to vector<32x1xi32>
      %95 = arith.select %10, %93, %94 : vector<32x1xi1>, vector<32x1xi32>
      %96 = arith.cmpi slt, %95, %7 : vector<32x1xi32>
      %97 = vector.shape_cast %96 : vector<32x1xi1> to vector<32x1xi1>
      %98 = vector.broadcast %97 : vector<32x1xi1> to vector<32x128xi1>
      %99 = arith.select %98, %89, %arg16 : vector<32x128xi1>, vector<32x128xf32>
      %100 = arith.select %98, %87, %arg17 : vector<32x128xi1>, vector<32x128xf32>
      %cst_47 = arith.constant 0.000000e+00 : f32
      %101 = vector.broadcast %cst_47 : f32 to vector<32x128xf32>
      %102 = arith.select %98, %89, %101 : vector<32x128xi1>, vector<32x128xf32>
      %103 = vector.extract_strided_slice %102 {offsets = [0, 0], sizes = [16, 128], strides = [1, 1]} : vector<32x128xf32> to vector<16x128xf32>
      %104 = arith.truncf %103 : vector<16x128xf32> to vector<16x128xbf16>
      %c16_i32_48 = arith.constant 16 : i32
      %105 = arith.muli %53, %c16_i32_48 : i32
      %106 = tpu.assume_multiple %105, 16 : i32
      %107 = arith.index_cast %106 : i32 to index
      %c0_49 = arith.constant 0 : index
      %108 = vector.load %arg9[%107, %c0_49] : memref<128x128xbf16, #tpu.memory_space<vmem>>, vector<16x128xbf16>
      tpu.vector_store %arg9[%107, %c0_49], %104 {strides = array<i32>} : memref<128x128xbf16, #tpu.memory_space<vmem>>, vector<16x128xbf16>,
      %109 = vector.extract_strided_slice %102 {offsets = [16, 0], sizes = [16, 128], strides = [1, 1]} : vector<32x128xf32> to vector<16x128xf32>
      %110 = arith.truncf %109 : vector<16x128xf32> to vector<16x128xbf16>
      %c7_i32_50 = arith.constant 7 : i32
      %111 = arith.subi %c7_i32_50, %53 : i32
      %c16_i32_51 = arith.constant 16 : i32
      %112 = arith.muli %111, %c16_i32_51 : i32
      %113 = tpu.assume_multiple %112, 16 : i32
      %114 = arith.index_cast %113 : i32 to index
      %c0_52 = arith.constant 0 : index
      %115 = vector.load %arg10[%114, %c0_52] : memref<128x128xbf16, #tpu.memory_space<vmem>>, vector<16x128xbf16>
      tpu.vector_store %arg10[%114, %c0_52], %110 {strides = array<i32>} : memref<128x128xbf16, #tpu.memory_space<vmem>>, vector<16x128xbf16>,
      %c4_i32_53 = arith.constant 4 : i32
      %116 = arith.muli %arg15, %c4_i32_53 : i32
      %c1_i32_54 = arith.constant 1 : i32
      %117 = arith.addi %116, %c1_i32_54 : i32
      %118 = vector.extract_strided_slice %arg18 {offsets = [16, 0], sizes = [16, 512], strides = [1, 1]} : vector<64x512xf32> to vector<16x512xf32>
      %119 = vector.extract_strided_slice %arg19 {offsets = [32, 0], sizes = [16, 512], strides = [1, 1]} : vector<64x512xf32> to vector<16x512xf32>
      %120 = tpu.concatenate %118, %119 in 0 : vector<16x512xf32>, vector<16x512xf32> -> vector<32x512xf32>
      %121 = arith.truncf %99 : vector<32x128xf32> to vector<32x128xbf16>
      %cst_55 = arith.constant dense<0.000000e+00> : vector<32x1024xf32>
      %122 = tpu.matmul %121, %11, %cst_55 {dimension_numbers = #tpu.dot_dimension_numbers<[1], [0], [0], [1], [0, 0, 1, 1], [], []>} : vector<32x128xbf16>, vector<128x1024xbf16>, vector<32x1024xf32> -> vector<32x1024xf32>
      %123 = vector.extract_strided_slice %122 {offsets = [0, 0], sizes = [32, 512], strides = [1, 1]} : vector<32x1024xf32> to vector<32x512xf32>
      %124 = vector.extract_strided_slice %122 {offsets = [0, 512], sizes = [32, 512], strides = [1, 1]} : vector<32x1024xf32> to vector<32x512xf32>
      %125 = vector.shape_cast %10 : vector<32x1xi1> to vector<32x1xi1>
      %126 = vector.broadcast %125 : vector<32x1xi1> to vector<32x512xi1>
      %127 = arith.select %126, %123, %124 : vector<32x512xi1>, vector<32x512xf32>
      %128 = arith.addf %120, %127 : vector<32x512xf32>
      %129 = vector.extract_strided_slice %128 {offsets = [0, 0], sizes = [32, 128], strides = [1, 1]} : vector<32x512xf32> to vector<32x128xf32>
      %130 = arith.negf %129 : vector<32x128xf32>
      %131 = math.exp %130 : vector<32x128xf32>
      %cst_56 = arith.constant 1.000000e+00 : f32
      %132 = vector.broadcast %cst_56 : f32 to vector<32x128xf32>
      %133 = arith.addf %132, %131 : vector<32x128xf32>
      %134 = arith.divf %132, %133 : vector<32x128xf32>
      %135 = vector.extract_strided_slice %128 {offsets = [0, 128], sizes = [32, 128], strides = [1, 1]} : vector<32x512xf32> to vector<32x128xf32>
      %136 = arith.negf %135 : vector<32x128xf32>
      %137 = math.exp %136 : vector<32x128xf32>
      %cst_57 = arith.constant 1.000000e+00 : f32
      %138 = vector.broadcast %cst_57 : f32 to vector<32x128xf32>
      %139 = arith.addf %138, %137 : vector<32x128xf32>
      %140 = arith.divf %138, %139 : vector<32x128xf32>
      %141 = vector.extract_strided_slice %128 {offsets = [0, 256], sizes = [32, 128], strides = [1, 1]} : vector<32x512xf32> to vector<32x128xf32>
      %142 = math.tanh %141 : vector<32x128xf32>
      %143 = vector.extract_strided_slice %128 {offsets = [0, 384], sizes = [32, 128], strides = [1, 1]} : vector<32x512xf32> to vector<32x128xf32>
      %144 = arith.negf %143 : vector<32x128xf32>
      %145 = math.exp %144 : vector<32x128xf32>
      %cst_58 = arith.constant 1.000000e+00 : f32
      %146 = vector.broadcast %cst_58 : f32 to vector<32x128xf32>
      %147 = arith.addf %146, %145 : vector<32x128xf32>
      %148 = arith.divf %146, %147 : vector<32x128xf32>
      %149 = arith.mulf %140, %100 : vector<32x128xf32>
      %150 = arith.mulf %134, %142 : vector<32x128xf32>
      %151 = arith.addf %149, %150 : vector<32x128xf32>
      %152 = math.tanh %151 : vector<32x128xf32>
      %153 = arith.mulf %148, %152 : vector<32x128xf32>
      %154 = arith.addi %3, %117 : i32
      %c7_i32_59 = arith.constant 7 : i32
      %155 = arith.addi %5, %c7_i32_59 : i32
      %156 = arith.subi %155, %117 : i32
      %157 = vector.broadcast %154 : i32 to vector<32x1xi32>
      %158 = vector.broadcast %156 : i32 to vector<32x1xi32>
      %159 = arith.select %10, %157, %158 : vector<32x1xi1>, vector<32x1xi32>
      %160 = arith.cmpi slt, %159, %7 : vector<32x1xi32>
      %161 = vector.shape_cast %160 : vector<32x1xi1> to vector<32x1xi1>
      %162 = vector.broadcast %161 : vector<32x1xi1> to vector<32x128xi1>
      %163 = arith.select %162, %153, %99 : vector<32x128xi1>, vector<32x128xf32>
      %164 = arith.select %162, %151, %100 : vector<32x128xi1>, vector<32x128xf32>
      %cst_60 = arith.constant 0.000000e+00 : f32
      %165 = vector.broadcast %cst_60 : f32 to vector<32x128xf32>
      %166 = arith.select %162, %153, %165 : vector<32x128xi1>, vector<32x128xf32>
      %167 = vector.extract_strided_slice %166 {offsets = [0, 0], sizes = [16, 128], strides = [1, 1]} : vector<32x128xf32> to vector<16x128xf32>
      %168 = arith.truncf %167 : vector<16x128xf32> to vector<16x128xbf16>
      %c16_i32_61 = arith.constant 16 : i32
      %169 = arith.muli %117, %c16_i32_61 : i32
      %170 = tpu.assume_multiple %169, 16 : i32
      %171 = arith.index_cast %170 : i32 to index
      %c0_62 = arith.constant 0 : index
      %172 = vector.load %arg9[%171, %c0_62] : memref<128x128xbf16, #tpu.memory_space<vmem>>, vector<16x128xbf16>
      tpu.vector_store %arg9[%171, %c0_62], %168 {strides = array<i32>} : memref<128x128xbf16, #tpu.memory_space<vmem>>, vector<16x128xbf16>,
      %173 = vector.extract_strided_slice %166 {offsets = [16, 0], sizes = [16, 128], strides = [1, 1]} : vector<32x128xf32> to vector<16x128xf32>
      %174 = arith.truncf %173 : vector<16x128xf32> to vector<16x128xbf16>
      %c7_i32_63 = arith.constant 7 : i32
      %175 = arith.subi %c7_i32_63, %117 : i32
      %c16_i32_64 = arith.constant 16 : i32
      %176 = arith.muli %175, %c16_i32_64 : i32
      %177 = tpu.assume_multiple %176, 16 : i32
      %178 = arith.index_cast %177 : i32 to index
      %c0_65 = arith.constant 0 : index
      %179 = vector.load %arg10[%178, %c0_65] : memref<128x128xbf16, #tpu.memory_space<vmem>>, vector<16x128xbf16>
      tpu.vector_store %arg10[%178, %c0_65], %174 {strides = array<i32>} : memref<128x128xbf16, #tpu.memory_space<vmem>>, vector<16x128xbf16>,
      %c4_i32_66 = arith.constant 4 : i32
      %180 = arith.muli %arg15, %c4_i32_66 : i32
      %c2_i32_67 = arith.constant 2 : i32
      %181 = arith.addi %180, %c2_i32_67 : i32
      %182 = vector.extract_strided_slice %arg18 {offsets = [32, 0], sizes = [16, 512], strides = [1, 1]} : vector<64x512xf32> to vector<16x512xf32>
      %183 = vector.extract_strided_slice %arg19 {offsets = [16, 0], sizes = [16, 512], strides = [1, 1]} : vector<64x512xf32> to vector<16x512xf32>
      %184 = tpu.concatenate %182, %183 in 0 : vector<16x512xf32>, vector<16x512xf32> -> vector<32x512xf32>
      %185 = arith.truncf %163 : vector<32x128xf32> to vector<32x128xbf16>
      %cst_68 = arith.constant dense<0.000000e+00> : vector<32x1024xf32>
      %186 = tpu.matmul %185, %11, %cst_68 {dimension_numbers = #tpu.dot_dimension_numbers<[1], [0], [0], [1], [0, 0, 1, 1], [], []>} : vector<32x128xbf16>, vector<128x1024xbf16>, vector<32x1024xf32> -> vector<32x1024xf32>
      %187 = vector.extract_strided_slice %186 {offsets = [0, 0], sizes = [32, 512], strides = [1, 1]} : vector<32x1024xf32> to vector<32x512xf32>
      %188 = vector.extract_strided_slice %186 {offsets = [0, 512], sizes = [32, 512], strides = [1, 1]} : vector<32x1024xf32> to vector<32x512xf32>
      %189 = vector.shape_cast %10 : vector<32x1xi1> to vector<32x1xi1>
      %190 = vector.broadcast %189 : vector<32x1xi1> to vector<32x512xi1>
      %191 = arith.select %190, %187, %188 : vector<32x512xi1>, vector<32x512xf32>
      %192 = arith.addf %184, %191 : vector<32x512xf32>
      %193 = vector.extract_strided_slice %192 {offsets = [0, 0], sizes = [32, 128], strides = [1, 1]} : vector<32x512xf32> to vector<32x128xf32>
      %194 = arith.negf %193 : vector<32x128xf32>
      %195 = math.exp %194 : vector<32x128xf32>
      %cst_69 = arith.constant 1.000000e+00 : f32
      %196 = vector.broadcast %cst_69 : f32 to vector<32x128xf32>
      %197 = arith.addf %196, %195 : vector<32x128xf32>
      %198 = arith.divf %196, %197 : vector<32x128xf32>
      %199 = vector.extract_strided_slice %192 {offsets = [0, 128], sizes = [32, 128], strides = [1, 1]} : vector<32x512xf32> to vector<32x128xf32>
      %200 = arith.negf %199 : vector<32x128xf32>
      %201 = math.exp %200 : vector<32x128xf32>
      %cst_70 = arith.constant 1.000000e+00 : f32
      %202 = vector.broadcast %cst_70 : f32 to vector<32x128xf32>
      %203 = arith.addf %202, %201 : vector<32x128xf32>
      %204 = arith.divf %202, %203 : vector<32x128xf32>
      %205 = vector.extract_strided_slice %192 {offsets = [0, 256], sizes = [32, 128], strides = [1, 1]} : vector<32x512xf32> to vector<32x128xf32>
      %206 = math.tanh %205 : vector<32x128xf32>
      %207 = vector.extract_strided_slice %192 {offsets = [0, 384], sizes = [32, 128], strides = [1, 1]} : vector<32x512xf32> to vector<32x128xf32>
      %208 = arith.negf %207 : vector<32x128xf32>
      %209 = math.exp %208 : vector<32x128xf32>
      %cst_71 = arith.constant 1.000000e+00 : f32
      %210 = vector.broadcast %cst_71 : f32 to vector<32x128xf32>
      %211 = arith.addf %210, %209 : vector<32x128xf32>
      %212 = arith.divf %210, %211 : vector<32x128xf32>
      %213 = arith.mulf %204, %164 : vector<32x128xf32>
      %214 = arith.mulf %198, %206 : vector<32x128xf32>
      %215 = arith.addf %213, %214 : vector<32x128xf32>
      %216 = math.tanh %215 : vector<32x128xf32>
      %217 = arith.mulf %212, %216 : vector<32x128xf32>
      %218 = arith.addi %3, %181 : i32
      %c7_i32_72 = arith.constant 7 : i32
      %219 = arith.addi %5, %c7_i32_72 : i32
      %220 = arith.subi %219, %181 : i32
      %221 = vector.broadcast %218 : i32 to vector<32x1xi32>
      %222 = vector.broadcast %220 : i32 to vector<32x1xi32>
      %223 = arith.select %10, %221, %222 : vector<32x1xi1>, vector<32x1xi32>
      %224 = arith.cmpi slt, %223, %7 : vector<32x1xi32>
      %225 = vector.shape_cast %224 : vector<32x1xi1> to vector<32x1xi1>
      %226 = vector.broadcast %225 : vector<32x1xi1> to vector<32x128xi1>
      %227 = arith.select %226, %217, %163 : vector<32x128xi1>, vector<32x128xf32>
      %228 = arith.select %226, %215, %164 : vector<32x128xi1>, vector<32x128xf32>
      %cst_73 = arith.constant 0.000000e+00 : f32
      %229 = vector.broadcast %cst_73 : f32 to vector<32x128xf32>
      %230 = arith.select %226, %217, %229 : vector<32x128xi1>, vector<32x128xf32>
      %231 = vector.extract_strided_slice %230 {offsets = [0, 0], sizes = [16, 128], strides = [1, 1]} : vector<32x128xf32> to vector<16x128xf32>
      %232 = arith.truncf %231 : vector<16x128xf32> to vector<16x128xbf16>
      %c16_i32_74 = arith.constant 16 : i32
      %233 = arith.muli %181, %c16_i32_74 : i32
      %234 = tpu.assume_multiple %233, 16 : i32
      %235 = arith.index_cast %234 : i32 to index
      %c0_75 = arith.constant 0 : index
      %236 = vector.load %arg9[%235, %c0_75] : memref<128x128xbf16, #tpu.memory_space<vmem>>, vector<16x128xbf16>
      tpu.vector_store %arg9[%235, %c0_75], %232 {strides = array<i32>} : memref<128x128xbf16, #tpu.memory_space<vmem>>, vector<16x128xbf16>,
      %237 = vector.extract_strided_slice %230 {offsets = [16, 0], sizes = [16, 128], strides = [1, 1]} : vector<32x128xf32> to vector<16x128xf32>
      %238 = arith.truncf %237 : vector<16x128xf32> to vector<16x128xbf16>
      %c7_i32_76 = arith.constant 7 : i32
      %239 = arith.subi %c7_i32_76, %181 : i32
      %c16_i32_77 = arith.constant 16 : i32
      %240 = arith.muli %239, %c16_i32_77 : i32
      %241 = tpu.assume_multiple %240, 16 : i32
      %242 = arith.index_cast %241 : i32 to index
      %c0_78 = arith.constant 0 : index
      %243 = vector.load %arg10[%242, %c0_78] : memref<128x128xbf16, #tpu.memory_space<vmem>>, vector<16x128xbf16>
      tpu.vector_store %arg10[%242, %c0_78], %238 {strides = array<i32>} : memref<128x128xbf16, #tpu.memory_space<vmem>>, vector<16x128xbf16>,
      %c4_i32_79 = arith.constant 4 : i32
      %244 = arith.muli %arg15, %c4_i32_79 : i32
      %c3_i32 = arith.constant 3 : i32
      %245 = arith.addi %244, %c3_i32 : i32
      %246 = vector.extract_strided_slice %arg18 {offsets = [48, 0], sizes = [16, 512], strides = [1, 1]} : vector<64x512xf32> to vector<16x512xf32>
      %247 = vector.extract_strided_slice %arg19 {offsets = [0, 0], sizes = [16, 512], strides = [1, 1]} : vector<64x512xf32> to vector<16x512xf32>
      %248 = tpu.concatenate %246, %247 in 0 : vector<16x512xf32>, vector<16x512xf32> -> vector<32x512xf32>
      %249 = arith.truncf %227 : vector<32x128xf32> to vector<32x128xbf16>
      %cst_80 = arith.constant dense<0.000000e+00> : vector<32x1024xf32>
      %250 = tpu.matmul %249, %11, %cst_80 {dimension_numbers = #tpu.dot_dimension_numbers<[1], [0], [0], [1], [0, 0, 1, 1], [], []>} : vector<32x128xbf16>, vector<128x1024xbf16>, vector<32x1024xf32> -> vector<32x1024xf32>
      %251 = vector.extract_strided_slice %250 {offsets = [0, 0], sizes = [32, 512], strides = [1, 1]} : vector<32x1024xf32> to vector<32x512xf32>
      %252 = vector.extract_strided_slice %250 {offsets = [0, 512], sizes = [32, 512], strides = [1, 1]} : vector<32x1024xf32> to vector<32x512xf32>
      %253 = vector.shape_cast %10 : vector<32x1xi1> to vector<32x1xi1>
      %254 = vector.broadcast %253 : vector<32x1xi1> to vector<32x512xi1>
      %255 = arith.select %254, %251, %252 : vector<32x512xi1>, vector<32x512xf32>
      %256 = arith.addf %248, %255 : vector<32x512xf32>
      %257 = vector.extract_strided_slice %256 {offsets = [0, 0], sizes = [32, 128], strides = [1, 1]} : vector<32x512xf32> to vector<32x128xf32>
      %258 = arith.negf %257 : vector<32x128xf32>
      %259 = math.exp %258 : vector<32x128xf32>
      %cst_81 = arith.constant 1.000000e+00 : f32
      %260 = vector.broadcast %cst_81 : f32 to vector<32x128xf32>
      %261 = arith.addf %260, %259 : vector<32x128xf32>
      %262 = arith.divf %260, %261 : vector<32x128xf32>
      %263 = vector.extract_strided_slice %256 {offsets = [0, 128], sizes = [32, 128], strides = [1, 1]} : vector<32x512xf32> to vector<32x128xf32>
      %264 = arith.negf %263 : vector<32x128xf32>
      %265 = math.exp %264 : vector<32x128xf32>
      %cst_82 = arith.constant 1.000000e+00 : f32
      %266 = vector.broadcast %cst_82 : f32 to vector<32x128xf32>
      %267 = arith.addf %266, %265 : vector<32x128xf32>
      %268 = arith.divf %266, %267 : vector<32x128xf32>
      %269 = vector.extract_strided_slice %256 {offsets = [0, 256], sizes = [32, 128], strides = [1, 1]} : vector<32x512xf32> to vector<32x128xf32>
      %270 = math.tanh %269 : vector<32x128xf32>
      %271 = vector.extract_strided_slice %256 {offsets = [0, 384], sizes = [32, 128], strides = [1, 1]} : vector<32x512xf32> to vector<32x128xf32>
      %272 = arith.negf %271 : vector<32x128xf32>
      %273 = math.exp %272 : vector<32x128xf32>
      %cst_83 = arith.constant 1.000000e+00 : f32
      %274 = vector.broadcast %cst_83 : f32 to vector<32x128xf32>
      %275 = arith.addf %274, %273 : vector<32x128xf32>
      %276 = arith.divf %274, %275 : vector<32x128xf32>
      %277 = arith.mulf %268, %228 : vector<32x128xf32>
      %278 = arith.mulf %262, %270 : vector<32x128xf32>
      %279 = arith.addf %277, %278 : vector<32x128xf32>
      %280 = math.tanh %279 : vector<32x128xf32>
      %281 = arith.mulf %276, %280 : vector<32x128xf32>
      %282 = arith.addi %3, %245 : i32
      %c7_i32_84 = arith.constant 7 : i32
      %283 = arith.addi %5, %c7_i32_84 : i32
      %284 = arith.subi %283, %245 : i32
      %285 = vector.broadcast %282 : i32 to vector<32x1xi32>
      %286 = vector.broadcast %284 : i32 to vector<32x1xi32>
      %287 = arith.select %10, %285, %286 : vector<32x1xi1>, vector<32x1xi32>
      %288 = arith.cmpi slt, %287, %7 : vector<32x1xi32>
      %289 = vector.shape_cast %288 : vector<32x1xi1> to vector<32x1xi1>
      %290 = vector.broadcast %289 : vector<32x1xi1> to vector<32x128xi1>
      %291 = arith.select %290, %281, %227 : vector<32x128xi1>, vector<32x128xf32>
      %292 = arith.select %290, %279, %228 : vector<32x128xi1>, vector<32x128xf32>
      %cst_85 = arith.constant 0.000000e+00 : f32
      %293 = vector.broadcast %cst_85 : f32 to vector<32x128xf32>
      %294 = arith.select %290, %281, %293 : vector<32x128xi1>, vector<32x128xf32>
      %295 = vector.extract_strided_slice %294 {offsets = [0, 0], sizes = [16, 128], strides = [1, 1]} : vector<32x128xf32> to vector<16x128xf32>
      %296 = arith.truncf %295 : vector<16x128xf32> to vector<16x128xbf16>
      %c16_i32_86 = arith.constant 16 : i32
      %297 = arith.muli %245, %c16_i32_86 : i32
      %298 = tpu.assume_multiple %297, 16 : i32
      %299 = arith.index_cast %298 : i32 to index
      %c0_87 = arith.constant 0 : index
      %300 = vector.load %arg9[%299, %c0_87] : memref<128x128xbf16, #tpu.memory_space<vmem>>, vector<16x128xbf16>
      tpu.vector_store %arg9[%299, %c0_87], %296 {strides = array<i32>} : memref<128x128xbf16, #tpu.memory_space<vmem>>, vector<16x128xbf16>,
      %301 = vector.extract_strided_slice %294 {offsets = [16, 0], sizes = [16, 128], strides = [1, 1]} : vector<32x128xf32> to vector<16x128xf32>
      %302 = arith.truncf %301 : vector<16x128xf32> to vector<16x128xbf16>
      %c7_i32_88 = arith.constant 7 : i32
      %303 = arith.subi %c7_i32_88, %245 : i32
      %c16_i32_89 = arith.constant 16 : i32
      %304 = arith.muli %303, %c16_i32_89 : i32
      %305 = tpu.assume_multiple %304, 16 : i32
      %306 = arith.index_cast %305 : i32 to index
      %c0_90 = arith.constant 0 : index
      %307 = vector.load %arg10[%306, %c0_90] : memref<128x128xbf16, #tpu.memory_space<vmem>>, vector<16x128xbf16>
      tpu.vector_store %arg10[%306, %c0_90], %302 {strides = array<i32>} : memref<128x128xbf16, #tpu.memory_space<vmem>>, vector<16x128xbf16>,
      scf.yield %291, %292, %49, %51 : vector<32x128xf32>, vector<32x128xf32>, vector<64x512xf32>, vector<64x512xf32>
    }
    %c2_i32_23 = arith.constant 2 : i32
    %c0_24 = arith.constant 0 : index
    %c0_25 = arith.constant 0 : index
    %28 = vector.load %arg13[%c0_24, %c0_25] : memref<32x128xf32, #tpu.memory_space<vmem>>, vector<32x128xf32>
    tpu.vector_store %arg13[%c0_24, %c0_25], %27#0 {strides = array<i32>} : memref<32x128xf32, #tpu.memory_space<vmem>>, vector<32x128xf32>,
    %c0_26 = arith.constant 0 : index
    %c0_27 = arith.constant 0 : index
    %29 = vector.load %arg14[%c0_26, %c0_27] : memref<32x128xf32, #tpu.memory_space<vmem>>, vector<32x128xf32>
    tpu.vector_store %arg14[%c0_26, %c0_27], %27#1 {strides = array<i32>} : memref<32x128xf32, #tpu.memory_space<vmem>>, vector<32x128xf32>,
    %c1_i32_28 = arith.constant 1 : i32
    %30 = arith.cmpi eq, %arg0, %c1_i32_28 : i32
    %31 = arith.extui %30 : i1 to i32
    %c0_i32_29 = arith.constant 0 : i32
    %32 = arith.cmpi ne, %31, %c0_i32_29 : i32
    scf.if %32 {
      %c0_30 = arith.constant 0 : index
      %c0_31 = arith.constant 0 : index
      %33 = vector.load %arg13[%c0_30, %c0_31] : memref<32x128xf32, #tpu.memory_space<vmem>>, vector<16x128xf32>
      %c0_32 = arith.constant 0 : index
      %c0_33 = arith.constant 0 : index
      %34 = vector.load %arg11[%c0_32, %c0_33] : memref<16x128xf32, #tpu.memory_space<vmem>>, vector<16x128xf32>
      tpu.vector_store %arg11[%c0_32, %c0_33], %33 {strides = array<i32>} : memref<16x128xf32, #tpu.memory_space<vmem>>, vector<16x128xf32>,
      %c16 = arith.constant 16 : index
      %c0_34 = arith.constant 0 : index
      %35 = vector.load %arg13[%c16, %c0_34] : memref<32x128xf32, #tpu.memory_space<vmem>>, vector<16x128xf32>
      %c0_35 = arith.constant 0 : index
      %c0_36 = arith.constant 0 : index
      %36 = vector.load %arg12[%c0_35, %c0_36] : memref<16x128xf32, #tpu.memory_space<vmem>>, vector<16x128xf32>
      tpu.vector_store %arg12[%c0_35, %c0_36], %35 {strides = array<i32>} : memref<16x128xf32, #tpu.memory_space<vmem>>, vector<16x128xf32>,
    } else {
    }
    return
  }
  func.func @transform_0(%arg0: i32) -> (i32, i32) {
    %c0_i32 = arith.constant 0 : i32
    %c0_i32_0 = arith.constant 0 : i32
    %c0_i32_1 = arith.constant 0 : i32
    return %c0_i32, %c0_i32_0 : i32, i32
  }
  func.func @transform_1(%arg0: i32) -> (i32, i32) {
    %c0_i32 = arith.constant 0 : i32
    %c0_i32_0 = arith.constant 0 : i32
    return %arg0, %c0_i32 : i32, i32
  }
  func.func @transform_2(%arg0: i32) -> (i32, i32) {
    %c1_i32 = arith.constant 1 : i32
    %0 = arith.subi %c1_i32, %arg0 : i32
    %c0_i32 = arith.constant 0 : i32
    %c0_i32_0 = arith.constant 0 : i32
    return %0, %c0_i32 : i32, i32
  }
  func.func @transform_3(%arg0: i32) -> (i32, i32) {
    %c0_i32 = arith.constant 0 : i32
    %c0_i32_0 = arith.constant 0 : i32
    %c0_i32_1 = arith.constant 0 : i32
    return %c0_i32, %c0_i32_0 : i32, i32
  }
  func.func @transform_4(%arg0: i32) -> (i32, i32) {
    %c0_i32 = arith.constant 0 : i32
    %c0_i32_0 = arith.constant 0 : i32
    %c0_i32_1 = arith.constant 0 : i32
    return %c0_i32, %c0_i32_0 : i32, i32
  }
  func.func @transform_5(%arg0: i32) -> (i32, i32) {
    %c0_i32 = arith.constant 0 : i32
    %c0_i32_0 = arith.constant 0 : i32
    %c0_i32_1 = arith.constant 0 : i32
    return %c0_i32, %c0_i32_0 : i32, i32
  }
  func.func @transform_6(%arg0: i32) -> (i32, i32) {
    %c0_i32 = arith.constant 0 : i32
    %c0_i32_0 = arith.constant 0 : i32
    %c0_i32_1 = arith.constant 0 : i32
    return %c0_i32, %c0_i32_0 : i32, i32
  }
  func.func @transform_7(%arg0: i32) -> (i32, i32) {
    %c0_i32 = arith.constant 0 : i32
    %c0_i32_0 = arith.constant 0 : i32
    %c0_i32_1 = arith.constant 0 : i32
    return %c0_i32, %c0_i32_0 : i32, i32
  }
  func.func @transform_8(%arg0: i32) -> (i32, i32) {
    %c0_i32 = arith.constant 0 : i32
    %c0_i32_0 = arith.constant 0 : i32
    return %arg0, %c0_i32 : i32, i32
  }
  func.func @transform_9(%arg0: i32) -> (i32, i32) {
    %c1_i32 = arith.constant 1 : i32
    %0 = arith.subi %c1_i32, %arg0 : i32
    %c0_i32 = arith.constant 0 : i32
    %c0_i32_0 = arith.constant 0 : i32
    return %0, %c0_i32 : i32, i32
  }
  func.func @transform_10(%arg0: i32) -> (i32, i32) {
    %c0_i32 = arith.constant 0 : i32
    %c0_i32_0 = arith.constant 0 : i32
    %c0_i32_1 = arith.constant 0 : i32
    return %c0_i32, %c0_i32_0 : i32, i32
  }
  func.func @transform_11(%arg0: i32) -> (i32, i32) {
    %c0_i32 = arith.constant 0 : i32
    %c0_i32_0 = arith.constant 0 : i32
    %c0_i32_1 = arith.constant 0 : i32
    return %c0_i32, %c0_i32_0 : i32, i32
  }
}

</mosaic_0001>

<bundles_post_ra>
// kernel: rnn_forward.2
= control target key start
LH: loop header
LB: loop body
LE: loop exit
PB: predicated region body
PF: predicated region fallthrough
CT: control target
= control target key end

     0   :  { %s9434_s0 = inlined_call_operand.vmem [shape: s32[16,1], index: 0, kind: input, shape index: {}]   ;;  %s9435_s1 = inlined_call_operand.vmem [shape: bf16[256,128], index: 1, kind: input, shape index: {}, may-alias: {1,2}]   ;;  %s9436_s2 = inlined_call_operand.vmem [shape: bf16[256,128], index: 2, kind: input, shape index: {}, may-alias: {1,2}]   ;;  %s9437_s3 = inlined_call_operand.vmem [shape: bf16[128,512], index: 3, kind: input, shape index: {}]   ;;  %s9438_s4 = inlined_call_operand.hbm [shape: bf16[128,512], index: 4, kind: input, shape index: {}]   ;;  %s9439_s5 = inlined_call_operand.hbm [shape: bf16[128,1024], index: 5, kind: input, shape index: {}]   ;;  %s9440_s6 = inlined_call_operand.vmem [shape: f32[1,512], index: 6, kind: input, shape index: {}]   ;;  %s9441_s7 = inlined_call_operand.vmem [shape: f32[1,512], index: 7, kind: input, shape index: {}]   ;;  %s9442_s8 = inlined_call_operand.vmem [shape: bf16[256,128], index: 8, kind: output, shape index: {0}]   ;;  %s9443_s9 = inlined_call_operand.vmem [shape: bf16[256,128], index: 9, kind: output, shape index: {1}]   ;;  %s9444_s10 = inlined_call_operand.hbm [shape: f32[16,128], index: 10, kind: output, shape index: {2}]   ;;  %s9445_s11 = inlined_call_operand.hbm [shape: f32[16,128], index: 11, kind: output, shape index: {3}]  }
   0x1   :  { %9721 = sst [smem:[#allocation262_spill]] %s9434_s0 }
   0x2   :  { %9722 = sst [smem:[#allocation263_spill]] %s9435_s1 }
   0x3   :  { %9723 = sst [smem:[#allocation264_spill]] %s9436_s2 }
   0x4   :  { %9724 = sst [smem:[#allocation265_spill]] %s9438_s4 }
   0x5   :  { %9725 = sst [smem:[#allocation266_spill]] %s9439_s5 }
   0x6   :  { %17 = vsyncpa [#allocation5], 0 }
   0x7   :  { %18 = vsyncpa [#allocation8], 0 }
   0x8   :  { %19 = vsyncpa [#allocation6], 0 }
   0x9   :  { %20 = vsyncpa [#allocation11], 0  ;;  %s6894_s17 = smov 0  }
   0xa LB: > { %s6821_s18 = smov [#allocation4]   ;;  %s6900_s20 = sadd.s32 4294967295, %s6527_s17   ;;  %s6527_s17 = sphi %s6894_s17, %s26_s17  }
   0xb   : > { %s325_s19 = sshll.u32 %s6821_s18, 4  ;;  %p4620_p0 = scmp.ge.s32.totalorder %s6527_s17, 1  ;;  %s326_s19 = int_to_ptr.vmem [resolvable:$true] %s325_s19 }
   0xc   : > { %p307_p1 = scmp.lt.s32.totalorder %s6527_s17, 3  ;;  %p9446_p4 = scmp.eq.s32.totalorder %s6900_s20, 0 }
   0xd   : > { %s6822_s22 = smov [#allocation7]   ;;  %s9728_s4 = sld [smem:[#allocation265_spill]] }
   0xe   : > { %p6905_p3 = pnand %p4620_p0, %p307_p1  ;;  %s338_s23 = sshll.u32 %s6822_s22, 4  ;;  %s6918_s23 = int_to_ptr.vmem [resolvable:$true] %s338_s23 }
  0x10   : > { %s9726_s21 = scalar_select %p6905_p3, 1, 0 }
  0x11   : > { %p5019_p5 = pneg %p6905_p3 }
  0x13   : > { %p6914_p6 = pnand %p9446_p4, %p5019_p5  ;;  %s6105_s27 = scalar_lea.hbm %s9728_s4, 4096 }
  0x14   : > { %p6106_p7 = scmp.ne.s32.totalorder %s9728_s4, %s6105_s27  ;;  %p6112_p11 = scmp.lt.u32.totalorder %s6105_s27, %s9728_s4 }
  0x15   : > { %p6107_p8 = pneg %p6914_p6 }
  0x17   : > { %p6108_p9 = pnand %p6107_p8, %p6106_p7 }
  0x19   : > { %p6109_p10 = pneg %p6108_p9 }
  0x1b   : > { %p6114_p12 = pnand %p6112_p11, %p6109_p10 }
  0x1d   : > { %6117 = shalt.err (!%p6114_p12)
}
  0x1e   : > { %s6118_s13 = scalar_lea.vmem %s326_s19, 4096  ;;  %p6126_p5 = scmp.lt.s32.totalorder %s326_s19, %s326_s19 }
  0x1f   : > { %p6119_p13 = scmp.ne.s32.totalorder %s326_s19, %s6118_s13  ;;  %p6127_p2 = scmp.lt.s32.totalorder %s6118_s13, %s6118_s13 }
  0x21   : > { %p6121_p0 = pnand %p6119_p13, %p6107_p8  ;;  %p6128_p4 = por %p6127_p2, %p6126_p5 }
  0x23   : > { %p6122_p1 = pneg %p6121_p0 }
  0x25   : > { %p6129_p3 = pnand %p6128_p4, %p6122_p1 }
  0x27   : > { %6132 = shalt.err (!%p6129_p3)
}
  0x28   : > { %s6823_s14 = smov 256   ;;  %s6824_s15 = smov 16  }
  0x29   : > { %5022 = dma.hbm_to_vmem [thread:$0]  (!%p6914_p6), %s9728_s4, 4096, %s326_s19, [#allocation5], %s6823_s14, %s6823_s14, %s6824_s15  }
  0x2a   : > { %s9729_s5 = sld [smem:[#allocation266_spill]] }
  0x30   : > { %s6133_s26 = scalar_lea.hbm %s9729_s5, 8192 }
  0x31   : > { %p6134_p7 = scmp.ne.s32.totalorder %s9729_s5, %s6133_s26  ;;  %p6140_p4 = scmp.lt.u32.totalorder %s6133_s26, %s9729_s5 }
  0x33   : > { %p6136_p2 = pnand %p6134_p7, %p6107_p8 }
  0x35   : > { %p6137_p3 = pneg %p6136_p2 }
  0x37   : > { %p6142_p9 = pnand %p6140_p4, %p6137_p3 }
  0x39   : > { %6145 = shalt.err (!%p6142_p9)
}
  0x3a   : > { %s6146_s19 = scalar_lea.vmem %s6918_s23, 8192  ;;  %p6154_p13 = scmp.lt.s32.totalorder %s6918_s23, %s6918_s23 }
  0x3b   : > { %p6147_p10 = scmp.ne.s32.totalorder %s6918_s23, %s6146_s19  ;;  %p6155_p0 = scmp.lt.s32.totalorder %s6146_s19, %s6146_s19 }
  0x3d   : > { %p6149_p11 = pnand %p6147_p10, %p6107_p8  ;;  %p6156_p1 = por %p6155_p0, %p6154_p13 }
  0x3f   : > { %p6150_p12 = pneg %p6149_p11 }
  0x41   : > { %p6157_p5 = pnand %p6156_p1, %p6150_p12 }
  0x43   : > { %6160 = shalt.err (!%p6157_p5)
}
  0x44   : > { %s6825_s12 = smov 512   ;;  %s6826_s13 = smov 32  }
  0x45   : > { %5025 = dma.hbm_to_vmem [thread:$0]  (!%p6914_p6), %s9729_s5, 8192, %s6918_s23, [#allocation8], %s6825_s12, %s6825_s12, %s6826_s13  }
  0x46   : > { %p9730_p7 = scmp.ne.s32.totalorder %s9726_s21, 0 }
  0x48   : > { %380 = sbr.rel (%p9730_p7) target bundleno = 1761 (0x6e1), region = 52 }
  0x4f   : > { %p9731_p8 = scmp.eq.s32.totalorder %s6900_s20, 0 }
  0x51   : > { %6510 = dma.done.wait (%p9731_p8), [#allocation5], 4096   ;;  %p9732_p2 = pmov %p9731_p8 }
  0x53   : > { %6512 = vsyncadd (%p9732_p2), [#allocation5], 4294963200  ;;  %p9733_p3 = pmov %p9732_p2 }
  0x54   : > { %p9734_p4 = pmov %p9732_p2 }
  0x55   : > { %6514 = dma.done.wait (%p9733_p3), [#allocation8], 8192  }
  0x56   : > { %6516 = vsyncadd (%p9734_p4), [#allocation8], 4294959104  ;;  %s4627_s24 = sshll.u32 %s6900_s20, 4  ;;  %s442_s16 = ssub.s32 1, %s6900_s20 }
  0x57   : > { %p437_p6 = scmp.lt.s32.totalorder %s4627_s24, 31  ;;  %s4629_s23 = sshll.u32 %s442_s16, 4 }
  0x58   : > { %p444_p9 = scmp.lt.s32.totalorder %s4629_s23, 31  ;;  %s9735_s1 = sld [smem:[#allocation263_spill]] }
  0x59   : > { %s10457_s24 = smov (!%p437_p6, %s4627_s24), 31  ;;  %s9736_s2 = sld [smem:[#allocation264_spill]] }
  0x5a   : > { %s10459_s23 = smov (!%p444_p9, %s4629_s23), 31  ;;  %s4628_s21 = sshll.u32 %s10457_s24, 2 }
  0x5b   : > { %s4630_s26 = sshll.u32 %s10459_s23, 2  ;;  %s6992_s12 = scalar_lea.vmem %s9442_s8, %s4628_s21 }
  0x5c   : > { %s6997_s15 = scalar_lea.vmem %s9443_s9, %s4630_s26  ;;  %p9737_p10 = scmp.ne.s32.totalorder %s6900_s20, 0 }
  0x5d   : > { %v6827_v0 = vmov (!%p9737_p10), 0.0  }
  0x5e   : > { %s6982_s25 = scalar_lea.vmem %s9735_s1, %s4628_s21  ;;  %468 = sbr.rel (%p9737_p10) target bundleno = 101 (0x65), region = 64  ;;  %469 = vst [vmem:[#allocation2] sm:$0xff] (!%p9737_p10), %v6827_v0  ;;  %470 = vst [vmem:[#allocation2 + $0x8] sm:$0xff] (!%p9737_p10), %v6827_v0 }
  0x5f   : > { %s6987_s29 = scalar_lea.vmem %s9736_s2, %s4630_s26  ;;  %471 = vst [vmem:[#allocation2 + $0x10] sm:$0xff] (!%p9737_p10), %v6827_v0  ;;  %472 = vst [vmem:[#allocation2 + $0x18] sm:$0xff] (!%p9737_p10), %v6827_v0 }
  0x60   : > { %473 = vst [vmem:[#allocation3] sm:$0xff] (!%p9737_p10), %v6827_v0  ;;  %474 = vst [vmem:[#allocation3 + $0x8] sm:$0xff] (!%p9737_p10), %v6827_v0 }
  0x61   : > { %475 = vst [vmem:[#allocation3 + $0x10] sm:$0xff] (!%p9737_p10), %v6827_v0  ;;  %476 = vst [vmem:[#allocation3 + $0x18] sm:$0xff] (!%p9737_p10), %v6827_v0 }
  0x65 PF: > { %s7002_s24 = sshll.u32 %s6900_s20, 3  ;;  %s7004_s23 = sshll.u32 %s442_s16, 3  ;;  %v7016_v3 = vld [vmem:[#allocation7] sm:$0xff]  ;;  %v7018_v4 = vld [vmem:[#allocation7 + $0x8] sm:$0xff]  ;;  %v7020_v5 = vld [vmem:[#allocation7 + $0x10] sm:$0xff]  ;;  %v9448_v7 = vmov 0  }
  0x66   : > { %s9738_s0 = sld [smem:[#allocation262_spill]]  ;;  %9741 = vst [vmem:[#allocation18_spill] sm:$0xff] %v7016_v3  ;;  %9742 = vst [vmem:[#allocation19_spill] sm:$0xff] %v7018_v4  ;;  %v7022_v6 = vld [vmem:[#allocation7 + $0x18] sm:$0xff]  ;;  %874 = vmatprep.mubr.bf16.mxu0 %v9448_v7  ;;  %947 = vmatprep.mubr.bf16.mxu1 %v9448_v7  ;;  %v7026_v8 = vld [vmem:[#allocation7 + $0x20] sm:$0xff]  ;;  %s7669_s28 = smov 0  }
  0x67   : > { %9743 = vst [vmem:[#allocation20_spill] sm:$0xff] %v7020_v5  ;;  %9744 = vst [vmem:[#allocation21_spill] sm:$0xff] %v7022_v6  ;;  %v7028_v9 = vld [vmem:[#allocation7 + $0x28] sm:$0xff]  ;;  %v7030_v10 = vld [vmem:[#allocation7 + $0x30] sm:$0xff] }
  0x68   : > { %9745 = vst [vmem:[#allocation22_spill] sm:$0xff] %v7026_v8  ;;  %9746 = vst [vmem:[#allocation23_spill] sm:$0xff] %v7028_v9  ;;  %v7032_v11 = vld [vmem:[#allocation7 + $0x38] sm:$0xff]  ;;  %v7034_v12 = vld [vmem:[#allocation7 + $0x40] sm:$0xff] }
  0x69   : > { %9747 = vst [vmem:[#allocation24_spill] sm:$0xff] %v7030_v10  ;;  %9748 = vst [vmem:[#allocation25_spill] sm:$0xff] %v7032_v11  ;;  %v7036_v13 = vld [vmem:[#allocation7 + $0x48] sm:$0xff]  ;;  %v7038_v14 = vld [vmem:[#allocation7 + $0x50] sm:$0xff] }
  0x6a   : > { %9749 = vst [vmem:[#allocation26_spill] sm:$0xff] %v7034_v12  ;;  %9750 = vst [vmem:[#allocation27_spill] sm:$0xff] %v7036_v13  ;;  %v7040_v15 = vld [vmem:[#allocation7 + $0x58] sm:$0xff]  ;;  %v7042_v16 = vld [vmem:[#allocation7 + $0x60] sm:$0xff] }
  0x6b   : > { %9751 = vst [vmem:[#allocation28_spill] sm:$0xff] %v7038_v14  ;;  %9752 = vst [vmem:[#allocation29_spill] sm:$0xff] %v7040_v15  ;;  %v7044_v17 = vld [vmem:[#allocation7 + $0x68] sm:$0xff]  ;;  %v7046_v18 = vld [vmem:[#allocation7 + $0x70] sm:$0xff] }
  0x6c   : > { %v7009_v1 = vld [vmem:[%s9738_s0] sm:$0xff]  ;;  %v7014_v2 = vld [vmem:[%s9738_s0 + $0x8] sm:$0xff]  ;;  %9753 = vst [vmem:[#allocation30_spill] sm:$0xff] %v7042_v16  ;;  %9754 = vst [vmem:[#allocation31_spill] sm:$0xff] %v7044_v17 }
  0x6d   : > { %9739 = vst [vmem:[#allocation16_spill] sm:$0xff] %v7009_v1  ;;  %9740 = vst [vmem:[#allocation17_spill] sm:$0xff] %v7014_v2  ;;  %v7048_v19 = vld [vmem:[#allocation7 + $0x78] sm:$0xff]  ;;  %v7050_v20 = vld [vmem:[#allocation7 + $0x80] sm:$0xff] }
  0x6e   : > { %9755 = vst [vmem:[#allocation32_spill] sm:$0xff] %v7046_v18  ;;  %9756 = vst [vmem:[#allocation33_spill] sm:$0xff] %v7048_v19  ;;  %v7052_v21 = vld [vmem:[#allocation7 + $0x88] sm:$0xff]  ;;  %v7054_v22 = vld [vmem:[#allocation7 + $0x90] sm:$0xff] }
  0x6f   : > { %9757 = vst [vmem:[#allocation34_spill] sm:$0xff] %v7050_v20  ;;  %9758 = vst [vmem:[#allocation35_spill] sm:$0xff] %v7052_v21  ;;  %v7056_v23 = vld [vmem:[#allocation7 + $0x98] sm:$0xff]  ;;  %v7058_v24 = vld [vmem:[#allocation7 + $0xa0] sm:$0xff] }
  0x70   : > { %9759 = vst [vmem:[#allocation36_spill] sm:$0xff] %v7054_v22  ;;  %9760 = vst [vmem:[#allocation37_spill] sm:$0xff] %v7056_v23  ;;  %v7060_v25 = vld [vmem:[#allocation7 + $0xa8] sm:$0xff]  ;;  %v7062_v26 = vld [vmem:[#allocation7 + $0xb0] sm:$0xff] }
  0x71   : > { %9761 = vst [vmem:[#allocation38_spill] sm:$0xff] %v7058_v24  ;;  %9762 = vst [vmem:[#allocation39_spill] sm:$0xff] %v7060_v25  ;;  %v7064_v27 = vld [vmem:[#allocation7 + $0xb8] sm:$0xff]  ;;  %v7066_v28 = vld [vmem:[#allocation7 + $0xc0] sm:$0xff] }
  0x72   : > { %9763 = vst [vmem:[#allocation40_spill] sm:$0xff] %v7062_v26  ;;  %9764 = vst [vmem:[#allocation41_spill] sm:$0xff] %v7064_v27  ;;  %v7068_v29 = vld [vmem:[#allocation7 + $0xc8] sm:$0xff]  ;;  %v7070_v30 = vld [vmem:[#allocation7 + $0xd0] sm:$0xff] }
  0x73   : > { %9765 = vst [vmem:[#allocation42_spill] sm:$0xff] %v7066_v28  ;;  %9766 = vst [vmem:[#allocation43_spill] sm:$0xff] %v7068_v29  ;;  %v7072_v31 = vld [vmem:[#allocation7 + $0xd8] sm:$0xff]  ;;  %v7074_v32 = vld [vmem:[#allocation7 + $0xe0] sm:$0xff] }
  0x74   : > { %9767 = vst [vmem:[#allocation44_spill] sm:$0xff] %v7070_v30  ;;  %9768 = vst [vmem:[#allocation45_spill] sm:$0xff] %v7072_v31  ;;  %v7076_v33 = vld [vmem:[#allocation7 + $0xe8] sm:$0xff]  ;;  %v7078_v34 = vld [vmem:[#allocation7 + $0xf0] sm:$0xff] }
  0x75   : > { %9769 = vst [vmem:[#allocation46_spill] sm:$0xff] %v7074_v32  ;;  %9770 = vst [vmem:[#allocation47_spill] sm:$0xff] %v7076_v33  ;;  %v7080_v35 = vld [vmem:[#allocation7 + $0xf8] sm:$0xff]  ;;  %v7082_v36 = vld [vmem:[#allocation7 + $0x100] sm:$0xff] }
  0x76   : > { %9771 = vst [vmem:[#allocation48_spill] sm:$0xff] %v7078_v34  ;;  %9772 = vst [vmem:[#allocation49_spill] sm:$0xff] %v7080_v35  ;;  %v7084_v37 = vld [vmem:[#allocation7 + $0x108] sm:$0xff]  ;;  %v7086_v38 = vld [vmem:[#allocation7 + $0x110] sm:$0xff]  ;;  %v9805_v35 = vmov 0  }
  0x77   : > { %9773 = vst [vmem:[#allocation50_spill] sm:$0xff] %v7082_v36  ;;  %9774 = vst [vmem:[#allocation51_spill] sm:$0xff] %v7084_v37  ;;  %v7088_v39 = vld [vmem:[#allocation7 + $0x118] sm:$0xff]  ;;  %v7090_v40 = vld [vmem:[#allocation7 + $0x120] sm:$0xff] }
  0x78   : > { %9775 = vst [vmem:[#allocation52_spill] sm:$0xff] %v7086_v38  ;;  %9776 = vst [vmem:[#allocation53_spill] sm:$0xff] %v7088_v39  ;;  %v7092_v41 = vld [vmem:[#allocation7 + $0x128] sm:$0xff]  ;;  %v7094_v42 = vld [vmem:[#allocation7 + $0x130] sm:$0xff] }
  0x79   : > { %9777 = vst [vmem:[#allocation54_spill] sm:$0xff] %v7090_v40  ;;  %9778 = vst [vmem:[#allocation55_spill] sm:$0xff] %v7092_v41  ;;  %v7096_v43 = vld [vmem:[#allocation7 + $0x138] sm:$0xff]  ;;  %v7098_v44 = vld [vmem:[#allocation7 + $0x140] sm:$0xff] }
  0x7a   : > { %9779 = vst [vmem:[#allocation56_spill] sm:$0xff] %v7094_v42  ;;  %9780 = vst [vmem:[#allocation57_spill] sm:$0xff] %v7096_v43  ;;  %v7100_v45 = vld [vmem:[#allocation7 + $0x148] sm:$0xff]  ;;  %v7102_v46 = vld [vmem:[#allocation7 + $0x150] sm:$0xff] }
  0x7b   : > { %9781 = vst [vmem:[#allocation58_spill] sm:$0xff] %v7098_v44  ;;  %9782 = vst [vmem:[#allocation59_spill] sm:$0xff] %v7100_v45  ;;  %v7104_v47 = vld [vmem:[#allocation7 + $0x158] sm:$0xff]  ;;  %v7106_v48 = vld [vmem:[#allocation7 + $0x160] sm:$0xff] }
  0x7c   : > { %9783 = vst [vmem:[#allocation60_spill] sm:$0xff] %v7102_v46  ;;  %9784 = vst [vmem:[#allocation61_spill] sm:$0xff] %v7104_v47  ;;  %v7108_v49 = vld [vmem:[#allocation7 + $0x168] sm:$0xff]  ;;  %v7110_v50 = vld [vmem:[#allocation7 + $0x170] sm:$0xff] }
  0x7d   : > { %9785 = vst [vmem:[#allocation62_spill] sm:$0xff] %v7106_v48  ;;  %9786 = vst [vmem:[#allocation63_spill] sm:$0xff] %v7108_v49  ;;  %v7112_v51 = vld [vmem:[#allocation7 + $0x178] sm:$0xff]  ;;  %v7114_v52 = vld [vmem:[#allocation7 + $0x180] sm:$0xff] }
  0x7e   : > { %9787 = vst [vmem:[#allocation64_spill] sm:$0xff] %v7110_v50  ;;  %9788 = vst [vmem:[#allocation65_spill] sm:$0xff] %v7112_v51  ;;  %v7116_v53 = vld [vmem:[#allocation7 + $0x188] sm:$0xff]  ;;  %v7118_v54 = vld [vmem:[#allocation7 + $0x190] sm:$0xff] }
  0x7f   : > { %9789 = vst [vmem:[#allocation66_spill] sm:$0xff] %v7114_v52  ;;  %9790 = vst [vmem:[#allocation67_spill] sm:$0xff] %v7116_v53  ;;  %v7120_v55 = vld [vmem:[#allocation7 + $0x198] sm:$0xff]  ;;  %v7122_v56 = vld [vmem:[#allocation7 + $0x1a0] sm:$0xff] }
  0x80   : > { %9791 = vst [vmem:[#allocation68_spill] sm:$0xff] %v7118_v54  ;;  %9792 = vst [vmem:[#allocation69_spill] sm:$0xff] %v7120_v55  ;;  %v7124_v57 = vld [vmem:[#allocation7 + $0x1a8] sm:$0xff]  ;;  %v7126_v58 = vld [vmem:[#allocation7 + $0x1b0] sm:$0xff] }
  0x81   : > { %9793 = vst [vmem:[#allocation70_spill] sm:$0xff] %v7122_v56  ;;  %9794 = vst [vmem:[#allocation71_spill] sm:$0xff] %v7124_v57  ;;  %v7128_v59 = vld [vmem:[#allocation7 + $0x1b8] sm:$0xff]  ;;  %v7130_v60 = vld [vmem:[#allocation7 + $0x1c0] sm:$0xff] }
  0x82   : > { %9795 = vst [vmem:[#allocation72_spill] sm:$0xff] %v7126_v58  ;;  %9796 = vst [vmem:[#allocation73_spill] sm:$0xff] %v7128_v59  ;;  %v7132_v61 = vld [vmem:[#allocation7 + $0x1c8] sm:$0xff]  ;;  %v7134_v62 = vld [vmem:[#allocation7 + $0x1d0] sm:$0xff] }
  0x83   : > { %9797 = vst [vmem:[#allocation74_spill] sm:$0xff] %v7130_v60  ;;  %9798 = vst [vmem:[#allocation75_spill] sm:$0xff] %v7132_v61  ;;  %v7136_v63 = vld [vmem:[#allocation7 + $0x1d8] sm:$0xff]  ;;  %v7138_v0 = vld [vmem:[#allocation7 + $0x1e0] sm:$0xff] }
  0x84   : > { %9799 = vst [vmem:[#allocation76_spill] sm:$0xff] %v7134_v62  ;;  %9800 = vst [vmem:[#allocation77_spill] sm:$0xff] %v7136_v63  ;;  %v7140_v7 = vld [vmem:[#allocation7 + $0x1e8] sm:$0xff]  ;;  %v7142_v55 = vld [vmem:[#allocation7 + $0x1f0] sm:$0xff] }
  0x85   : > { %9801 = vst [vmem:[#allocation78_spill] sm:$0xff] %v7138_v0  ;;  %9802 = vst [vmem:[#allocation79_spill] sm:$0xff] %v7140_v7  ;;  %v7144_v47 = vld [vmem:[#allocation7 + $0x1f8] sm:$0xff]  ;;  %v5639_v59 = vld [vmem:[%s9437_s3 + $0x4] ss:$16 sps:$4 sm:$0xff]  }
  0x86   : > { %9803 = vst [vmem:[#allocation80_spill] sm:$0xff] %v7142_v55  ;;  %9804 = vst [vmem:[#allocation81_spill] sm:$0xff] %v7144_v47  ;;  %v5641_v51 = vld [vmem:[%s9437_s3 + $0xc] ss:$16 sps:$4 sm:$0xff]   ;;  %842 = vmatprep.subr.bf16.mxu0 %v5639_v59  ;;  %v5643_v63 = vld [vmem:[%s9437_s3] ss:$16 sps:$4 sm:$0xff]  }
  0x87   : > { %v5644_v62 = vld [vmem:[%s9437_s3 + $0x8] ss:$16 sps:$4 sm:$0xff]   ;;  %915 = vmatprep.subr.bf16.mxu1 %v5641_v51  ;;  %v5645_v47 = vld [vmem:[%s9437_s3 + $0x24] ss:$16 sps:$4 sm:$0xff]   ;;  %843 = vmatpush1.bf16.msra.mxu0 %v5643_v63  ;;  %v5647_v55 = vld [vmem:[%s9437_s3 + $0x2c] ss:$16 sps:$4 sm:$0xff]  }
  0x88   : > { %916 = vmatpush1.bf16.msra.mxu1 %v5644_v62  ;;  %v5649_v59 = vld [vmem:[%s9437_s3 + $0x20] ss:$16 sps:$4 sm:$0xff]   ;;  %844 = vmatprep.subr.bf16.mxu0 %v5645_v47  ;;  %v5650_v54 = vld [vmem:[%s9437_s3 + $0x28] ss:$16 sps:$4 sm:$0xff]   ;;  %v5651_v51 = vld [vmem:[%s9437_s3 + $0x44] ss:$16 sps:$4 sm:$0xff]  }
  0x89   : > { %917 = vmatprep.subr.bf16.mxu1 %v5647_v55  ;;  %v5653_v62 = vld [vmem:[%s9437_s3 + $0x4c] ss:$16 sps:$4 sm:$0xff]   ;;  %v5655_v63 = vld [vmem:[%s9437_s3 + $0x40] ss:$16 sps:$4 sm:$0xff]   ;;  %v5656_v47 = vld [vmem:[%s9437_s3 + $0x48] ss:$16 sps:$4 sm:$0xff]  }
  0x8a   : > { %v5657_v55 = vld [vmem:[%s9437_s3 + $0x64] ss:$16 sps:$4 sm:$0xff]   ;;  %v5659_v58 = vld [vmem:[%s9437_s3 + $0x6c] ss:$16 sps:$4 sm:$0xff]   ;;  %v5661_v39 = vld [vmem:[%s9437_s3 + $0x60] ss:$16 sps:$4 sm:$0xff]  }
  0x8b   : > { %845 = vmatpush1.bf16.msra.mxu0 %v5649_v59  ;;  %v5663_v59 = vld [vmem:[%s9437_s3 + $0x84] ss:$16 sps:$4 sm:$0xff]   ;;  %v5693_v43 = vld [vmem:[#allocation4 + $0xc] ss:$16 sps:$4 sm:$0xff]   ;;  %v5691_v46 = vld [vmem:[#allocation4 + $0x8] ss:$16 sps:$4 sm:$0xff]  }
  0x8c   : > { %918 = vmatpush1.bf16.msra.mxu1 %v5650_v54  ;;  %846 = vmatprep.subr.bf16.mxu0 %v5651_v51  ;;  %v5662_v54 = vld [vmem:[%s9437_s3 + $0x68] ss:$16 sps:$4 sm:$0xff]   ;;  %v5665_v51 = vld [vmem:[%s9437_s3 + $0x8c] ss:$16 sps:$4 sm:$0xff]   ;;  %v5696_v50 = vld [vmem:[#allocation4 + $0x24] ss:$16 sps:$4 sm:$0xff]  }
  0x8d   : > { %919 = vmatprep.subr.bf16.mxu1 %v5653_v62  ;;  %v5667_v62 = vld [vmem:[%s9437_s3 + $0x80] ss:$16 sps:$4 sm:$0xff]   ;;  %v5699_v31 = vld [vmem:[#allocation4 + $0x2c] ss:$16 sps:$4 sm:$0xff]   ;;  %v5717_v38 = vld [vmem:[#allocation4 + $0x88] ss:$16 sps:$4 sm:$0xff]  }
  0x8f   : > { %847 = vmatpush1.bf16.msra.mxu0 %v5655_v63  ;;  %v5668_v63 = vld [vmem:[%s9437_s3 + $0x88] ss:$16 sps:$4 sm:$0xff]  }
  0x90   : > { %920 = vmatpush1.bf16.msra.mxu1 %v5656_v47  ;;  %848 = vmatprep.subr.bf16.mxu0 %v5657_v55  ;;  %v5669_v47 = vld [vmem:[%s9437_s3 + $0xa4] ss:$16 sps:$4 sm:$0xff]   ;;  %v5673_v55 = vld [vmem:[%s9437_s3 + $0xa0] ss:$16 sps:$4 sm:$0xff]  }
  0x91   : > { %921 = vmatprep.subr.bf16.mxu1 %v5659_v58  ;;  %v5671_v58 = vld [vmem:[%s9437_s3 + $0xac] ss:$16 sps:$4 sm:$0xff]  }
  0x93   : > { %849 = vmatpush1.bf16.msra.mxu0 %v5661_v39  ;;  %v5674_v39 = vld [vmem:[%s9437_s3 + $0xa8] ss:$16 sps:$4 sm:$0xff]  }
  0x94   : > { %922 = vmatpush1.bf16.msra.mxu1 %v5662_v54  ;;  %850 = vmatprep.subr.bf16.mxu0 %v5663_v59  ;;  %v5675_v54 = vld [vmem:[%s9437_s3 + $0xc4] ss:$16 sps:$4 sm:$0xff]   ;;  %v5677_v59 = vld [vmem:[%s9437_s3 + $0xcc] ss:$16 sps:$4 sm:$0xff]  }
  0x95   : > { %923 = vmatprep.subr.bf16.mxu1 %v5665_v51  ;;  %v5679_v51 = vld [vmem:[%s9437_s3 + $0xc0] ss:$16 sps:$4 sm:$0xff]  }
  0x97   : > { %851 = vmatpush1.bf16.msra.mxu0 %v5667_v62  ;;  %v5680_v62 = vld [vmem:[%s9437_s3 + $0xc8] ss:$16 sps:$4 sm:$0xff]  }
  0x98   : > { %924 = vmatpush1.bf16.msra.mxu1 %v5668_v63  ;;  %852 = vmatprep.subr.bf16.mxu0 %v5669_v47  ;;  %v5681_v63 = vld [vmem:[%s9437_s3 + $0xe4] ss:$16 sps:$4 sm:$0xff]   ;;  %v5683_v47 = vld [vmem:[%s9437_s3 + $0xec] ss:$16 sps:$4 sm:$0xff]  }
  0x99   : > { %925 = vmatprep.subr.bf16.mxu1 %v5671_v58  ;;  %v5685_v58 = vld [vmem:[%s9437_s3 + $0xe0] ss:$16 sps:$4 sm:$0xff]  }
  0x9b   : > { %853 = vmatpush1.bf16.msra.mxu0 %v5673_v55  ;;  %v5686_v55 = vld [vmem:[%s9437_s3 + $0xe8] ss:$16 sps:$4 sm:$0xff]  }
  0x9c   : > { %926 = vmatpush1.bf16.msra.mxu1 %v5674_v39  ;;  %854 = vmatprep.subr.bf16.mxu0 %v5675_v54  ;;  %v5690_v39 = vld [vmem:[#allocation4 + $0x4] ss:$16 sps:$4 sm:$0xff]  }
  0x9d   : > { %927 = vmatprep.subr.bf16.mxu1 %v5677_v59  ;;  %v5687_v54 = vld [vmem:[%s6982_s25] sm:$0xff]  }
  0x9e   : > { %v5688_v59 = vld [vmem:[#allocation4] ss:$16 sps:$4 sm:$0xff]  }
  0x9f   : > { %855 = vmatpush1.bf16.msra.mxu0 %v5679_v51  ;;  %v5694_v51 = vld [vmem:[#allocation4 + $0x20] ss:$16 sps:$4 sm:$0xff]  }
  0xa0   : > { %928 = vmatpush1.bf16.msra.mxu1 %v5680_v62  ;;  %856 = vmatprep.subr.bf16.mxu0 %v5681_v63  ;;  %v5697_v62 = vld [vmem:[#allocation4 + $0x28] ss:$16 sps:$4 sm:$0xff]   ;;  %v5703_v63 = vld [vmem:[#allocation4 + $0x44] ss:$16 sps:$4 sm:$0xff]  }
  0xa1   : > { %929 = vmatprep.subr.bf16.mxu1 %v5683_v47  ;;  %v5706_v47 = vld [vmem:[#allocation4 + $0x4c] ss:$16 sps:$4 sm:$0xff]  }
  0xa3   : > { %857 = vmatpush1.bf16.msra.mxu0 %v5685_v58  ;;  %v5700_v58 = vld [vmem:[%s6982_s25 + $0x8] sm:$0xff]  }
  0xa4   : > { %930 = vmatpush1.bf16.msra.mxu1 %v5686_v55  ;;  %1193 = vmatprep.subr.bf16.mxu0 %v5690_v39  ;;  %v5701_v55 = vld [vmem:[#allocation4 + $0x40] ss:$16 sps:$4 sm:$0xff]   ;;  %v5704_v39 = vld [vmem:[#allocation4 + $0x48] ss:$16 sps:$4 sm:$0xff]  }
  0xa5   : > { %1266 = vmatprep.subr.bf16.mxu1 %v5693_v43  ;;  %v5709_v43 = vld [vmem:[#allocation4 + $0x64] ss:$16 sps:$4 sm:$0xff]  }
  0xa6   : > { %875 = vmatmul.mubr.bf16.vlgmr.msra.gmra.mrb[0].mxu0 %v5687_v54 }
  0xa7   : > { %948 = vmatmul.mubr.bf16.vlgmr.msra.gmra.mrb[0].mxu1 %v5687_v54  ;;  %1194 = vmatpush1.bf16.msra.mxu0 %v5688_v59  ;;  %v5712_v54 = vld [vmem:[#allocation4 + $0x6c] ss:$16 sps:$4 sm:$0xff]  }
  0xa8   : > { %1267 = vmatpush1.bf16.msra.mxu1 %v5691_v46  ;;  %1195 = vmatprep.subr.bf16.mxu0 %v5696_v50  ;;  %v5707_v46 = vld [vmem:[#allocation4 + $0x60] ss:$16 sps:$4 sm:$0xff]   ;;  %v5716_v50 = vld [vmem:[#allocation4 + $0x84] ss:$16 sps:$4 sm:$0xff]   ;;  %v5719_v59 = vld [vmem:[#allocation4 + $0x8c] ss:$16 sps:$4 sm:$0xff]  }
  0xa9   : > { %1268 = vmatprep.subr.bf16.mxu1 %v5699_v31  ;;  %884 = vmatprep.mubr.bf16.mxu0 %v9805_v35  ;;  %v5710_v31 = vld [vmem:[#allocation4 + $0x68] ss:$16 sps:$4 sm:$0xff]  }
  0xaa   : > { %957 = vmatprep.mubr.bf16.mxu1 %v9805_v35 }
  0xab   : > { %1196 = vmatpush1.bf16.msra.mxu0 %v5694_v51  ;;  %v5713_v51 = vld [vmem:[%s6982_s25 + $0x10] sm:$0xff]  }
  0xac   : > { %1269 = vmatpush1.bf16.msra.mxu1 %v5697_v62  ;;  %1197 = vmatprep.subr.bf16.mxu0 %v5703_v63  ;;  %v5714_v62 = vld [vmem:[#allocation4 + $0x80] ss:$16 sps:$4 sm:$0xff]   ;;  %v5722_v63 = vld [vmem:[#allocation4 + $0xa4] ss:$16 sps:$4 sm:$0xff]  }
  0xad   : > { %1270 = vmatprep.subr.bf16.mxu1 %v5706_v47  ;;  %v5725_v47 = vld [vmem:[#allocation4 + $0xac] ss:$16 sps:$4 sm:$0xff]  }
  0xae   : > { %885 = vmatmul.mubr.bf16.gmra.mrb[4].mxu0 %v5700_v58 }
  0xaf   : > { %958 = vmatmul.mubr.bf16.gmra.mrb[4].mxu1 %v5700_v58  ;;  %1198 = vmatpush1.bf16.msra.mxu0 %v5701_v55  ;;  %v5720_v58 = vld [vmem:[#allocation4 + $0xa0] ss:$16 sps:$4 sm:$0xff]   ;;  %v5723_v55 = vld [vmem:[#allocation4 + $0xa8] ss:$16 sps:$4 sm:$0xff]  }
  0xb0   : > { %1271 = vmatpush1.bf16.msra.mxu1 %v5704_v39  ;;  %1199 = vmatprep.subr.bf16.mxu0 %v5709_v43  ;;  %v5729_v39 = vld [vmem:[#allocation4 + $0xc4] ss:$16 sps:$4 sm:$0xff]   ;;  %v5732_v43 = vld [vmem:[#allocation4 + $0xcc] ss:$16 sps:$4 sm:$0xff]  }
  0xb1   : > { %1272 = vmatprep.subr.bf16.mxu1 %v5712_v54  ;;  %894 = vmatprep.mubr.bf16.mxu0 %v9805_v35  ;;  %v5726_v54 = vld [vmem:[%s6982_s25 + $0x18] sm:$0xff]  }
  0xb2   : > { %967 = vmatprep.mubr.bf16.mxu1 %v9805_v35 }
  0xb3   : > { %1200 = vmatpush1.bf16.msra.mxu0 %v5707_v46  ;;  %v5727_v46 = vld [vmem:[#allocation4 + $0xc0] ss:$16 sps:$4 sm:$0xff]  }
  0xb4   : > { %1273 = vmatpush1.bf16.msra.mxu1 %v5710_v31  ;;  %1201 = vmatprep.subr.bf16.mxu0 %v5716_v50  ;;  %v5730_v31 = vld [vmem:[#allocation4 + $0xc8] ss:$16 sps:$4 sm:$0xff]   ;;  %v5735_v50 = vld [vmem:[#allocation4 + $0xe4] ss:$16 sps:$4 sm:$0xff]  }
  0xb5   : > { %1274 = vmatprep.subr.bf16.mxu1 %v5719_v59  ;;  %v5733_v59 = vld [vmem:[#allocation4 + $0xe0] ss:$16 sps:$4 sm:$0xff]  }
  0xb6   : > { %895 = vmatmul.mubr.bf16.gmra.mrb[8].mxu0 %v5713_v51 }
  0xb7   : > { %968 = vmatmul.mubr.bf16.gmra.mrb[8].mxu1 %v5713_v51  ;;  %1202 = vmatpush1.bf16.msra.mxu0 %v5714_v62  ;;  %v5736_v51 = vld [vmem:[#allocation4 + $0xe8] ss:$16 sps:$4 sm:$0xff]   ;;  %v5739_v62 = vld [vmem:[%s6987_s29 + $0x20] sm:$0xff]  }
  0xb8   : > { %1275 = vmatpush1.bf16.msra.mxu1 %v5717_v38  ;;  %1203 = vmatprep.subr.bf16.mxu0 %v5722_v63  ;;  %v5738_v38 = vld [vmem:[#allocation4 + $0xec] ss:$16 sps:$4 sm:$0xff]  }
  0xb9   : > { %1276 = vmatprep.subr.bf16.mxu1 %v5725_v47  ;;  %904 = vmatprep.mubr.bf16.mxu0 %v9805_v35  ;;  %v5740_v63 = vld [vmem:[%s6987_s29 + $0x28] sm:$0xff]   ;;  %v5741_v47 = vld [vmem:[%s6987_s29 + $0x30] sm:$0xff]  }
  0xba   : > { %977 = vmatprep.mubr.bf16.mxu1 %v9805_v35 }
  0xbb   : > { %1204 = vmatpush1.bf16.msra.mxu0 %v5720_v58  ;;  %v5742_v58 = vld [vmem:[%s6987_s29 + $0x38] sm:$0xff]  }
  0xbc   : > { %1277 = vmatpush1.bf16.msra.mxu1 %v5723_v55  ;;  %1205 = vmatprep.subr.bf16.mxu0 %v5729_v39  ;;  %v7264_v55 = vld [vmem:[#allocation2] sm:$0xff]   ;;  %v7266_v39 = vld [vmem:[#allocation2 + $0x8] sm:$0xff]  }
  0xbd   : > { %1278 = vmatprep.subr.bf16.mxu1 %v5732_v43  ;;  %9806 = vst [vmem:[#allocation82_spill] sm:$0xff] %v7264_v55  ;;  %9807 = vst [vmem:[#allocation83_spill] sm:$0xff] %v7266_v39  ;;  %v7268_v43 = vld [vmem:[#allocation2 + $0x10] sm:$0xff]  }
  0xbe   : > { %905 = vmatmul.mubr.bf16.gmra.mrb[12].mxu0 %v5726_v54  ;;  %9808 = vst [vmem:[#allocation84_spill] sm:$0xff] %v7268_v43 }
  0xbf   : > { %978 = vmatmul.mubr.bf16.gmra.mrb[12].mxu1 %v5726_v54  ;;  %1206 = vmatpush1.bf16.msra.mxu0 %v5727_v46  ;;  %v7270_v54 = vld [vmem:[#allocation2 + $0x18] sm:$0xff]   ;;  %v7272_v46 = vld [vmem:[#allocation3] sm:$0xff]  }
  0xc0   : > { %1279 = vmatpush1.bf16.msra.mxu1 %v5730_v31  ;;  %1207 = vmatprep.subr.bf16.mxu0 %v5735_v50  ;;  %9809 = vst [vmem:[#allocation85_spill] sm:$0xff] %v7270_v54  ;;  %9810 = vst [vmem:[#allocation86_spill] sm:$0xff] %v7272_v46  ;;  %v7274_v31 = vld [vmem:[#allocation3 + $0x8] sm:$0xff]   ;;  %v7276_v50 = vld [vmem:[#allocation3 + $0x10] sm:$0xff]  }
  0xc1   : > { %1280 = vmatprep.subr.bf16.mxu1 %v5738_v38  ;;  %1225 = vmatprep.mubr.bf16.mxu0 %v9805_v35  ;;  %9811 = vst [vmem:[#allocation87_spill] sm:$0xff] %v7274_v31  ;;  %9812 = vst [vmem:[#allocation88_spill] sm:$0xff] %v7276_v50  ;;  %v7278_v38 = vld [vmem:[#allocation3 + $0x18] sm:$0xff]  }
  0xc2   : > { %1298 = vmatprep.mubr.bf16.mxu1 %v9805_v35  ;;  %9813 = vst [vmem:[#allocation89_spill] sm:$0xff] %v7278_v38 }
  0xc3   : > { %1208 = vmatpush1.bf16.msra.mxu0 %v5733_v59 }
  0xc4   : > { %1281 = vmatpush1.bf16.msra.mxu1 %v5736_v51 }
  0xc6   : > { %1226 = vmatmul.mubr.bf16.vlgmr.msra.gmra.mrb[16].mxu0 %v5739_v62 }
  0xc7   : > { %1299 = vmatmul.mubr.bf16.vlgmr.msra.gmra.mrb[16].mxu1 %v5739_v62  ;;  %1235 = vmatprep.mubr.bf16.mxu0 %v9805_v35 }
  0xc8   : > { %1308 = vmatprep.mubr.bf16.mxu1 %v9805_v35 }
  0xce   : > { %1236 = vmatmul.mubr.bf16.gmra.mrb[20].mxu0 %v5740_v63 }
  0xcf   : > { %1309 = vmatmul.mubr.bf16.gmra.mrb[20].mxu1 %v5740_v63  ;;  %1245 = vmatprep.mubr.bf16.mxu0 %v9805_v35  ;;  %v555_v63 = vld [vmem:[%s9440_s6] sm:$0xf] }
  0xd0   : > { %1318 = vmatprep.mubr.bf16.mxu1 %v9805_v35 }
  0xd6   : > { %1246 = vmatmul.mubr.bf16.gmra.mrb[24].mxu0 %v5741_v47 }
  0xd7   : > { %1319 = vmatmul.mubr.bf16.gmra.mrb[24].mxu1 %v5741_v47  ;;  %1255 = vmatprep.mubr.bf16.mxu0 %v9805_v35 }
  0xd8   : > { %1328 = vmatprep.mubr.bf16.mxu1 %v9805_v35  ;;  %v638_v35 = vlaneseq }
  0xda   : > { %v7280_v59 = vshrl.u32 %v638_v35, 7 }
  0xdc   : > { %v9473_v51 = vsub.s32 0, %v7280_v59  ;;  %v9476_v62 = vsub.s32 2, %v7280_v59  ;;  %v9477_v47 = vsub.s32 1, %v7280_v59  ;;  %v9829_v28 = vsub.s32 0, %v7280_v59 }
  0xdd   : > { %v9831_v13 = vsub.s32 2, %v7280_v59 }
  0xde   : > { %1256 = vmatmul.mubr.bf16.gmra.mrb[28].mxu0 %v5742_v58  ;;  %v7291_v42 = vrot.slane %v555_v63, %v9473_v51  ;;  %v7295_v35 = vrot.slane %v555_v63, %v9476_v62  ;;  %v7299_v23 = vrot.slane %v555_v63, %v9477_v47 }
  0xdf   : > { %1329 = vmatmul.mubr.bf16.gmra.mrb[28].mxu1 %v5742_v58  ;;  %v9480_v58 = vsub.s32 3, %v7280_v59 }
  0xe0   : > { %9814 = vst [vmem:[#allocation90_spill] sm:$0xff] %v7291_v42  ;;  %9815 = vst [vmem:[#allocation91_spill] sm:$0xff] %v7295_v35 }
  0xe1   : > { %9816 = vst [vmem:[#allocation92_spill] sm:$0xff] %v7299_v23  ;;  %v7303_v27 = vrot.slane %v555_v63, %v9480_v58 }
  0xe3   : > { %9817 = vst [vmem:[#allocation93_spill] sm:$0xff] %v7303_v27 }
 0x179   : > { %v876_v30 = vpop.f32.mrb[0].mxu0 }
 0x17a   : > { %v949_v34 = vpop.f32.mrb[0].mxu1  ;;  %v7306_v15 = vadd.f32 %v876_v30, %v7291_v42   ;;  %v878_v19 = vpop.f32.mrb[1].mxu0 }
 0x17b   : > { %v7309_v51 = vadd.f32 %v949_v34, %v7295_v35   ;;  %v951_v22 = vpop.f32.mrb[1].mxu1  ;;  %v7312_v62 = vadd.f32 %v878_v19, %v7299_v23   ;;  %v880_v26 = vpop.f32.mrb[2].mxu0 }
 0x17c   : > { %9818 = vst [vmem:[#allocation94_spill] sm:$0xff] %v7306_v15  ;;  %v7315_v47 = vadd.f32 %v951_v22, %v7303_v27   ;;  %v953_v6 = vpop.f32.mrb[2].mxu1  ;;  %v7318_v63 = vadd.f32 %v880_v26, %v7291_v42   ;;  %v882_v30 = vpop.f32.mrb[3].mxu0 }
 0x17d   : > { %9819 = vst [vmem:[#allocation95_spill] sm:$0xff] %v7309_v51  ;;  %9820 = vst [vmem:[#allocation96_spill] sm:$0xff] %v7312_v62  ;;  %v7321_v58 = vadd.f32 %v953_v6, %v7295_v35   ;;  %v955_v11 = vpop.f32.mrb[3].mxu1  ;;  %v7324_v34 = vadd.f32 %v882_v30, %v7299_v23  }
 0x17e   : > { %9821 = vst [vmem:[#allocation97_spill] sm:$0xff] %v7315_v47  ;;  %9822 = vst [vmem:[#allocation98_spill] sm:$0xff] %v7318_v63  ;;  %v7327_v14 = vadd.f32 %v955_v11, %v7303_v27  }
 0x17f   : > { %9823 = vst [vmem:[#allocation99_spill] sm:$0xff] %v7321_v58  ;;  %9824 = vst [vmem:[#allocation100_spill] sm:$0xff] %v7324_v34 }
 0x180   : > { %9825 = vst [vmem:[#allocation101_spill] sm:$0xff] %v7327_v14 }
 0x181   : > { %v886_v19 = vpop.f32.mrb[4].mxu0 }
 0x182   : > { %v959_v18 = vpop.f32.mrb[4].mxu1  ;;  %v7330_v22 = vadd.f32 %v886_v19, %v7291_v42   ;;  %v888_v26 = vpop.f32.mrb[5].mxu0 }
 0x183   : > { %v7333_v61 = vadd.f32 %v959_v18, %v7295_v35   ;;  %v961_v7 = vpop.f32.mrb[5].mxu1  ;;  %v7336_v6 = vadd.f32 %v888_v26, %v7299_v23   ;;  %v890_v30 = vpop.f32.mrb[6].mxu0 }
 0x184   : > { %9826 = vst [vmem:[#allocation102_spill] sm:$0xff] %v7330_v22  ;;  %v7339_v5 = vadd.f32 %v961_v7, %v7303_v27   ;;  %v963_v10 = vpop.f32.mrb[6].mxu1  ;;  %v7342_v11 = vadd.f32 %v890_v30, %v7291_v42   ;;  %v892_v19 = vpop.f32.mrb[7].mxu0 }
 0x185   : > { %9827 = vst [vmem:[#allocation103_spill] sm:$0xff] %v7333_v61  ;;  %9828 = vst [vmem:[#allocation104_spill] sm:$0xff] %v7336_v6  ;;  %v7345_v53 = vadd.f32 %v963_v10, %v7295_v35   ;;  %v965_v57 = vpop.f32.mrb[7].mxu1  ;;  %v7348_v18 = vadd.f32 %v892_v19, %v7299_v23  }
 0x186   : > { %v7351_v60 = vadd.f32 %v965_v57, %v7303_v27   ;;  %9837 = vst [vmem:[#allocation109_spill] sm:$0xff] %v7342_v11  ;;  %9838 = vst [vmem:[#allocation110_spill] sm:$0xff] %v7339_v5 }
 0x189   : > { %v896_v26 = vpop.f32.mrb[8].mxu0 }
 0x18a   : > { %v969_v0 = vpop.f32.mrb[8].mxu1  ;;  %v7354_v7 = vadd.f32 %v896_v26, %v7291_v42   ;;  %v898_v30 = vpop.f32.mrb[9].mxu0 }
 0x18b   : > { %v7357_v45 = vadd.f32 %v969_v0, %v7295_v35   ;;  %v971_v49 = vpop.f32.mrb[9].mxu1  ;;  %v7360_v10 = vadd.f32 %v898_v30, %v7299_v23   ;;  %v900_v19 = vpop.f32.mrb[10].mxu0 }
 0x18c   : > { %v7363_v52 = vadd.f32 %v971_v49, %v7303_v27   ;;  %v973_v56 = vpop.f32.mrb[10].mxu1  ;;  %v7366_v57 = vadd.f32 %v900_v19, %v7291_v42   ;;  %v902_v26 = vpop.f32.mrb[11].mxu0 }
 0x18d   : > { %v7369_v37 = vadd.f32 %v973_v56, %v7295_v35   ;;  %v975_v41 = vpop.f32.mrb[11].mxu1  ;;  %v7372_v0 = vadd.f32 %v902_v26, %v7299_v23  }
 0x18e   : > { %v7375_v44 = vadd.f32 %v975_v41, %v7303_v27   ;;  %v556_v41 = vld [vmem:[%s9441_s7] sm:$0xf] }
 0x18f   : > { %v7406_v32 = vrot.slane %v556_v41, %v9829_v28  ;;  %v7410_v17 = vrot.slane %v556_v41, %v9831_v13 }
 0x191   : > { %v906_v30 = vpop.f32.mrb[12].mxu0  ;;  %9830 = vst [vmem:[#allocation105_spill] sm:$0xff] %v7406_v32  ;;  %9832 = vst [vmem:[#allocation106_spill] sm:$0xff] %v7410_v17 }
 0x192   : > { %v979_v48 = vpop.f32.mrb[12].mxu1  ;;  %v7378_v49 = vadd.f32 %v906_v30, %v7291_v42   ;;  %v908_v19 = vpop.f32.mrb[13].mxu0 }
 0x193   : > { %v7381_v29 = vadd.f32 %v979_v48, %v7295_v35   ;;  %v981_v33 = vpop.f32.mrb[13].mxu1  ;;  %v7384_v56 = vadd.f32 %v908_v19, %v7299_v23   ;;  %v910_v26 = vpop.f32.mrb[14].mxu0 }
 0x194   : > { %v7387_v36 = vadd.f32 %v981_v33, %v7303_v27   ;;  %v983_v40 = vpop.f32.mrb[14].mxu1  ;;  %v7393_v30 = vadd.f32 %v910_v26, %v7291_v42   ;;  %v912_v21 = vpop.f32.mrb[15].mxu0  ;;  %v9833_v26 = vsub.s32 1, %v7280_v59 }
 0x195   : > { %v7396_v48 = vadd.f32 %v983_v40, %v7295_v35   ;;  %v985_v25 = vpop.f32.mrb[15].mxu1  ;;  %v7399_v19 = vadd.f32 %v912_v21, %v7299_v23   ;;  %v9835_v35 = vsub.s32 3, %v7280_v59 }
 0x196   : > { %v7402_v33 = vadd.f32 %v985_v25, %v7303_v27   ;;  %v7414_v40 = vrot.slane %v556_v41, %v9833_v26 }
 0x197   : > { %v7418_v42 = vrot.slane %v556_v41, %v9835_v35 }
 0x198   : > { %9834 = vst [vmem:[#allocation107_spill] sm:$0xff] %v7414_v40 }
 0x199   : > { %9836 = vst [vmem:[#allocation108_spill] sm:$0xff] %v7418_v42  ;;  %v1227_v21 = vpop.f32.mrb[16].mxu0 }
 0x19a   : > { %v1300_v23 = vpop.f32.mrb[16].mxu1  ;;  %v7421_v25 = vadd.f32 %v1227_v21, %v7406_v32   ;;  %v1229_v27 = vpop.f32.mrb[17].mxu0 }
 0x19b   : > { %v7424_v28 = vadd.f32 %v1300_v23, %v7410_v17   ;;  %v1302_v20 = vpop.f32.mrb[17].mxu1  ;;  %v7427_v13 = vadd.f32 %v1229_v27, %v7414_v40   ;;  %v1231_v24 = vpop.f32.mrb[18].mxu0 }
 0x19c   : > { %v7430_v26 = vadd.f32 %v1302_v20, %v7418_v42   ;;  %v1304_v59 = vpop.f32.mrb[18].mxu1  ;;  %v7433_v35 = vadd.f32 %v1231_v24, %v7406_v32   ;;  %v1233_v21 = vpop.f32.mrb[19].mxu0 }
 0x19d   : > { %v7436_v41 = vadd.f32 %v1304_v59, %v7410_v17   ;;  %v1306_v4 = vpop.f32.mrb[19].mxu1  ;;  %v7439_v23 = vadd.f32 %v1233_v21, %v7414_v40  }
 0x19e   : > { %v7442_v9 = vadd.f32 %v1306_v4, %v7418_v42  }
 0x1a1   : > { %v1237_v27 = vpop.f32.mrb[20].mxu0 }
 0x1a2   : > { %v1310_v12 = vpop.f32.mrb[20].mxu1  ;;  %v7445_v20 = vadd.f32 %v1237_v27, %v7406_v32   ;;  %v1239_v24 = vpop.f32.mrb[21].mxu0 }
 0x1a3   : > { %v7448_v16 = vadd.f32 %v1310_v12, %v7410_v17   ;;  %v1312_v3 = vpop.f32.mrb[21].mxu1  ;;  %v7451_v59 = vadd.f32 %v1239_v24, %v7414_v40   ;;  %v1241_v21 = vpop.f32.mrb[22].mxu0 }
 0x1a4   : > { %v1313_v8 = vadd.f32 %v1312_v3, %v7418_v42   ;;  %v1314_v2 = vpop.f32.mrb[22].mxu1  ;;  %v1242_v4 = vadd.f32 %v1241_v21, %v7406_v32   ;;  %v1243_v55 = vpop.f32.mrb[23].mxu0 }
 0x1a5   : > { %v1315_v1 = vadd.f32 %v1314_v2, %v7410_v17   ;;  %v1316_v39 = vpop.f32.mrb[23].mxu1  ;;  %v1244_v27 = vadd.f32 %v1243_v55, %v7414_v40  }
 0x1a6   : > { %v1317_v12 = vadd.f32 %v1316_v39, %v7418_v42  }
 0x1a9   : > { %v1247_v43 = vpop.f32.mrb[24].mxu0 }
 0x1aa   : > { %v1320_v54 = vpop.f32.mrb[24].mxu1  ;;  %v1248_v46 = vadd.f32 %v1247_v43, %v7406_v32   ;;  %v1249_v31 = vpop.f32.mrb[25].mxu0 }
 0x1ab   : > { %v1321_v24 = vadd.f32 %v1320_v54, %v7410_v17   ;;  %v1322_v3 = vpop.f32.mrb[25].mxu1  ;;  %v1250_v50 = vadd.f32 %v1249_v31, %v7414_v40   ;;  %v1251_v38 = vpop.f32.mrb[26].mxu0 }
 0x1ac   : > { %v1323_v21 = vadd.f32 %v1322_v3, %v7418_v42   ;;  %v1324_v2 = vpop.f32.mrb[26].mxu1  ;;  %v1252_v15 = vadd.f32 %v1251_v38, %v7406_v32   ;;  %v1253_v62 = vpop.f32.mrb[27].mxu0 }
 0x1ad   : > { %v1325_v55 = vadd.f32 %v1324_v2, %v7410_v17   ;;  %v1326_v39 = vpop.f32.mrb[27].mxu1  ;;  %v1254_v51 = vadd.f32 %v1253_v62, %v7414_v40  }
 0x1ae   : > { %v1327_v43 = vadd.f32 %v1326_v39, %v7418_v42  }
 0x1b1   : > { %v1257_v47 = vpop.f32.mrb[28].mxu0 }
 0x1b2   : > { %v1330_v54 = vpop.f32.mrb[28].mxu1  ;;  %v1258_v63 = vadd.f32 %v1257_v47, %v7406_v32   ;;  %v1259_v34 = vpop.f32.mrb[29].mxu0 }
 0x1b3   : > { %v1331_v31 = vadd.f32 %v1330_v54, %v7410_v17   ;;  %v1332_v3 = vpop.f32.mrb[29].mxu1  ;;  %v1260_v58 = vadd.f32 %v1259_v34, %v7414_v40   ;;  %v1261_v14 = vpop.f32.mrb[30].mxu0  ;;  %v9841_v34 = vld [vmem:[#allocation104_spill] sm:$0xff]  ;;  %v9845_v54 = vld [vmem:[#allocation101_spill] sm:$0xff] }
 0x1b4   : > { %v1333_v38 = vadd.f32 %v1332_v3, %v7418_v42   ;;  %v1334_v2 = vpop.f32.mrb[30].mxu1  ;;  %v1262_v22 = vadd.f32 %v1261_v14, %v7406_v32   ;;  %v1263_v6 = vpop.f32.mrb[31].mxu0  ;;  %v9839_v14 = vld [vmem:[#allocation103_spill] sm:$0xff]  ;;  %9842 = vst [vmem:[#allocation104_spill] sm:$0xff] %v9841_v34  ;;  %9846 = vst [vmem:[#allocation101_spill] sm:$0xff] %v9845_v54  ;;  %v9859_v32 = vld [vmem:[#allocation94_spill] sm:$0xff] }
 0x1b5   : > { %v1335_v62 = vadd.f32 %v1334_v2, %v7410_v17   ;;  %v1336_v39 = vpop.f32.mrb[31].mxu1  ;;  %v1264_v61 = vadd.f32 %v1263_v6, %v7414_v40   ;;  %9840 = vst [vmem:[#allocation103_spill] sm:$0xff] %v9839_v14  ;;  %v9843_v6 = vld [vmem:[#allocation102_spill] sm:$0xff]  ;;  %v9847_v3 = vld [vmem:[#allocation99_spill] sm:$0xff]  ;;  %v9849_v2 = vld [vmem:[#allocation100_spill] sm:$0xff] }
 0x1b6   : > { %v1337_v47 = vadd.f32 %v1336_v39, %v7418_v42   ;;  %9844 = vst [vmem:[#allocation102_spill] sm:$0xff] %v9843_v6  ;;  %9848 = vst [vmem:[#allocation99_spill] sm:$0xff] %v9847_v3  ;;  %v9851_v39 = vld [vmem:[#allocation98_spill] sm:$0xff]  ;;  %v9853_v42 = vld [vmem:[#allocation97_spill] sm:$0xff] }
 0x1b7   : > { %9850 = vst [vmem:[#allocation100_spill] sm:$0xff] %v9849_v2  ;;  %9852 = vst [vmem:[#allocation98_spill] sm:$0xff] %v9851_v39  ;;  %v9855_v17 = vld [vmem:[#allocation95_spill] sm:$0xff]  ;;  %v9857_v40 = vld [vmem:[#allocation96_spill] sm:$0xff] }
 0x1b8   : > { %9854 = vst [vmem:[#allocation97_spill] sm:$0xff] %v9853_v42  ;;  %9856 = vst [vmem:[#allocation95_spill] sm:$0xff] %v9855_v17  ;;  %v9861_v54 = vld [vmem:[#allocation89_spill] sm:$0xff]  ;;  %v9863_v3 = vld [vmem:[#allocation88_spill] sm:$0xff] }
 0x1b9   : > { %9858 = vst [vmem:[#allocation96_spill] sm:$0xff] %v9857_v40  ;;  %9860 = vst [vmem:[#allocation94_spill] sm:$0xff] %v9859_v32  ;;  %v9865_v2 = vld [vmem:[#allocation87_spill] sm:$0xff]  ;;  %v9867_v39 = vld [vmem:[#allocation86_spill] sm:$0xff] }
 0x1ba   : > { %9862 = vst [vmem:[#allocation89_spill] sm:$0xff] %v9861_v54  ;;  %9864 = vst [vmem:[#allocation88_spill] sm:$0xff] %v9863_v3  ;;  %v9869_v42 = vld [vmem:[#allocation85_spill] sm:$0xff]  ;;  %v9871_v17 = vld [vmem:[#allocation84_spill] sm:$0xff] }
 0x1bb   : > { %9866 = vst [vmem:[#allocation87_spill] sm:$0xff] %v9865_v2  ;;  %9868 = vst [vmem:[#allocation86_spill] sm:$0xff] %v9867_v39  ;;  %v9873_v40 = vld [vmem:[#allocation83_spill] sm:$0xff]  ;;  %v9875_v32 = vld [vmem:[#allocation82_spill] sm:$0xff] }
 0x1bc   : > { %9870 = vst [vmem:[#allocation85_spill] sm:$0xff] %v9869_v42  ;;  %9872 = vst [vmem:[#allocation84_spill] sm:$0xff] %v9871_v17 }
 0x1bd   : > { %9874 = vst [vmem:[#allocation83_spill] sm:$0xff] %v9873_v40  ;;  %9876 = vst [vmem:[#allocation82_spill] sm:$0xff] %v9875_v32 }
 0x1be LB: >> { %9898 = vst [vmem:[#allocation111_spill] sm:$0xff] %v6563_v43  ;;  %9899 = vst [vmem:[#allocation112_spill] sm:$0xff] %v6567_v55  ;;  %v9941_v11 = vld [vmem:[#allocation109_spill] sm:$0xff]  ;;  %v9943_v5 = vld [vmem:[#allocation110_spill] sm:$0xff]  ;;  %s7902_s22 = sadd.s32 1, %s6819_s28   ;;  %s7957_s19 = sshll.u32 %s6819_s28, 2  ;;  %s6819_s28 = sphi %s7669_s28, %s10453_s28   ;;  %v6731_v18 = vphi %v7348_v18, %v10416_v18   ;;  %v6727_v53 = vphi %v7345_v53, %v10415_v53   ;;  %v6723_v60 = vphi %v7351_v60, %v10414_v60   ;;  %v6719_v7 = vphi %v7354_v7, %v10413_v7   ;;  %v6715_v10 = vphi %v7360_v10, %v10412_v10   ;;  %v6711_v45 = vphi %v7357_v45, %v10411_v45   ;;  %v6707_v52 = vphi %v7363_v52, %v10410_v52   ;;  %v6703_v57 = vphi %v7366_v57, %v10409_v57   ;;  %v6699_v0 = vphi %v7372_v0, %v10408_v0   ;;  %v6695_v37 = vphi %v7369_v37, %v10407_v37   ;;  %v6691_v44 = vphi %v7375_v44, %v10406_v44   ;;  %v6687_v49 = vphi %v7378_v49, %v10405_v49   ;;  %v6683_v56 = vphi %v7384_v56, %v10404_v56   ;;  %v6679_v29 = vphi %v7381_v29, %v10403_v29   ;;  %v6675_v36 = vphi %v7387_v36, %v10402_v36   ;;  %v6671_v30 = vphi %v7393_v30, %v10401_v30   ;;  %v6667_v19 = vphi %v7399_v19, %v10400_v19   ;;  %v6663_v48 = vphi %v7396_v48, %v10399_v48   ;;  %v6659_v33 = vphi %v7402_v33, %v10398_v33   ;;  %v6655_v25 = vphi %v7421_v25, %v10397_v25   ;;  %v6651_v13 = vphi %v7427_v13, %v10396_v13   ;;  %v6647_v28 = vphi %v7424_v28, %v10395_v28   ;;  %v6643_v26 = vphi %v7430_v26, %v10394_v26   ;;  %v6639_v35 = vphi %v7433_v35, %v10393_v35   ;;  %v6635_v23 = vphi %v7439_v23, %v10392_v23   ;;  %v6631_v41 = vphi %v7436_v41, %v10391_v41   ;;  %v6627_v9 = vphi %v7442_v9, %v10390_v9   ;;  %v6623_v20 = vphi %v7445_v20, %v10389_v20   ;;  %v6619_v59 = vphi %v7451_v59, %v10388_v59   ;;  %v6615_v16 = vphi %v7448_v16, %v10387_v16   ;;  %v6611_v8 = vphi %v1313_v8, %v10386_v8   ;;  %v6607_v4 = vphi %v1242_v4, %v10385_v4   ;;  %v6603_v27 = vphi %v1244_v27, %v10384_v27   ;;  %v6599_v1 = vphi %v1315_v1, %v10383_v1   ;;  %v6595_v12 = vphi %v1317_v12, %v10382_v12   ;;  %v6591_v46 = vphi %v1248_v46, %v10381_v46   ;;  %v6587_v50 = vphi %v1250_v50, %v10380_v50   ;;  %v6583_v24 = vphi %v1321_v24, %v10379_v24   ;;  %v6579_v21 = vphi %v1323_v21, %v10378_v21   ;;  %v6575_v15 = vphi %v1252_v15, %v10377_v15   ;;  %v6571_v51 = vphi %v1254_v51, %v10376_v51   ;;  %v6567_v55 = vphi %v1325_v55, %v10375_v55   ;;  %v6563_v43 = vphi %v1327_v43, %v10374_v43   ;;  %v6559_v63 = vphi %v1258_v63, %v10373_v63   ;;  %v6555_v58 = vphi %v1260_v58, %v10372_v58   ;;  %v6551_v31 = vphi %v1331_v31, %v10371_v31   ;;  %v6547_v38 = vphi %v1333_v38, %v10370_v38   ;;  %v6543_v22 = vphi %v1262_v22, %v10369_v22   ;;  %v6539_v61 = vphi %v1264_v61, %v10368_v61   ;;  %v6535_v62 = vphi %v1335_v62, %v10367_v62   ;;  %v6531_v47 = vphi %v1337_v47, %v10366_v47  }
 0x1bf   : >> { %9900 = vst [vmem:[#allocation113_spill] sm:$0xff] %v6571_v51  ;;  %9901 = vst [vmem:[#allocation114_spill] sm:$0xff] %v6575_v15  ;;  %v9945_v14 = vld [vmem:[#allocation103_spill] sm:$0xff]  ;;  %v9947_v34 = vld [vmem:[#allocation104_spill] sm:$0xff]  ;;  %p1426_p11 = scmp.lt.s32.totalorder %s7902_s22, 1  ;;  %s2850_s1 = sadd.s32 %s7957_s19, %s7002_s24 }
 0x1c0   : >> { %9902 = vst [vmem:[#allocation115_spill] sm:$0xff] %v6579_v21  ;;  %9903 = vst [vmem:[#allocation116_spill] sm:$0xff] %v6583_v24  ;;  %v9949_v6 = vld [vmem:[#allocation102_spill] sm:$0xff]  ;;  %s2926_s18 = sadd.s32 1, %s7957_s19  ;;  %s7975_s4 = sadd.s32 7, %s7004_s23  ;;  %v10066_v55 = vld [vmem:[#allocation75_spill] sm:$0xff] }
 0x1c1   : >> { %9904 = vst [vmem:[#allocation117_spill] sm:$0xff] %v6587_v50  ;;  %9905 = vst [vmem:[#allocation118_spill] sm:$0xff] %v6591_v46  ;;  %v9959_v54 = vld [vmem:[#allocation89_spill] sm:$0xff]  ;;  %v9961_v3 = vld [vmem:[#allocation88_spill] sm:$0xff]  ;;  %s7915_s14 = scalar_select %p1426_p11, %s7902_s22, 1 }
 0x1c2   : >> { %9906 = vst [vmem:[#allocation119_spill] sm:$0xff] %v6595_v12  ;;  %9907 = vst [vmem:[#allocation120_spill] sm:$0xff] %v6599_v1  ;;  %v9963_v2 = vld [vmem:[#allocation87_spill] sm:$0xff]  ;;  %v9965_v39 = vld [vmem:[#allocation86_spill] sm:$0xff]  ;;  %s7972_s30 = sadd.s32 %s7002_s24, %s2926_s18  ;;  %s2852_s13 = ssub.s32 %s7975_s4, %s7957_s19 }
 0x1c3   : >> { %9908 = vst [vmem:[#allocation121_spill] sm:$0xff] %v6603_v27  ;;  %9909 = vst [vmem:[#allocation122_spill] sm:$0xff] %v6607_v4  ;;  %v9967_v42 = vld [vmem:[#allocation85_spill] sm:$0xff]  ;;  %v9969_v17 = vld [vmem:[#allocation84_spill] sm:$0xff]  ;;  %s4710_s27 = sshll.u32 %s7915_s14, 6  ;;  %s7999_s21 = ssub.s32 %s7975_s4, %s2926_s18  ;;  %v2854_v27 = vstv %s2852_s13 }
 0x1c4   : >> { %9910 = vst [vmem:[#allocation123_spill] sm:$0xff] %v6611_v8  ;;  %9911 = vst [vmem:[#allocation124_spill] sm:$0xff] %v6615_v16  ;;  %v9971_v40 = vld [vmem:[#allocation83_spill] sm:$0xff]  ;;  %v9973_v32 = vld [vmem:[#allocation82_spill] sm:$0xff]  ;;  %s1431_s26 = sshra.s32 %s4710_s27, 3  ;;  %v3271_v8 = vstv %s7972_s30  ;;  %s1429_s0 = ssub.s32 1, %s7915_s14 }
 0x1c5   : >> { %9912 = vst [vmem:[#allocation125_spill] sm:$0xff] %v6619_v59  ;;  %9913 = vst [vmem:[#allocation126_spill] sm:$0xff] %v6623_v20  ;;  %s4712_s27 = sshll.u32 %s1431_s26, 2  ;;  %v5764_v1 = vld [vmem:[%s9437_s3 + $0x80] ss:$16 sps:$4 sm:$0xff]   ;;  %s3344_s26 = sadd.s32 2, %s7957_s19 }
 0x1c6   : >> { %9914 = vst [vmem:[#allocation127_spill] sm:$0xff] %v6627_v9  ;;  %9915 = vst [vmem:[#allocation128_spill] sm:$0xff] %v6631_v41  ;;  %v9951_v41 = vld [vmem:[#allocation101_spill] sm:$0xff]  ;;  %v9952_v9 = vld [vmem:[#allocation99_spill] sm:$0xff]  ;;  %s7954_s2 = scalar_lea.vmem %s6982_s25, %s4712_s27  ;;  %s8020_s5 = sadd.s32 %s7002_s24, %s3344_s26 }
 0x1c7   : >> { %9916 = vst [vmem:[#allocation129_spill] sm:$0xff] %v6635_v23  ;;  %9917 = vst [vmem:[#allocation130_spill] sm:$0xff] %v6639_v35  ;;  %v9955_v23 = vld [vmem:[#allocation97_spill] sm:$0xff]  ;;  %v9956_v35 = vld [vmem:[#allocation95_spill] sm:$0xff]  ;;  %v9541_v4 = vstv %s8020_s5  ;;  %s3762_s14 = sadd.s32 3, %s7957_s19  ;;  %s4711_s27 = sshll.u32 %s1429_s0, 6 }
 0x1c8   : >> { %9918 = vst [vmem:[#allocation131_spill] sm:$0xff] %v6643_v26  ;;  %9919 = vst [vmem:[#allocation132_spill] sm:$0xff] %v6647_v28  ;;  %v9953_v28 = vld [vmem:[#allocation100_spill] sm:$0xff]  ;;  %v9954_v26 = vld [vmem:[#allocation98_spill] sm:$0xff]  ;;  %s1475_s0 = sshra.s32 %s4711_s27, 3  ;;  %s8070_s13 = ssub.s32 %s7975_s4, %s3762_s14 }
 0x1c9   : >> { %9920 = vst [vmem:[#allocation133_spill] sm:$0xff] %v6651_v13  ;;  %9921 = vst [vmem:[#allocation134_spill] sm:$0xff] %v6655_v25  ;;  %v9957_v13 = vld [vmem:[#allocation96_spill] sm:$0xff]  ;;  %v9958_v25 = vld [vmem:[#allocation94_spill] sm:$0xff]  ;;  %s4713_s18 = sshll.u32 %s1475_s0, 2  ;;  %p1349_p12 = scmp.ge.s32.totalorder %s7902_s22, 2  }
 0x1ca   : >> { %9922 = vst [vmem:[#allocation135_spill] sm:$0xff] %v6659_v33  ;;  %9923 = vst [vmem:[#allocation136_spill] sm:$0xff] %v6663_v48  ;;  %v5745_v48 = vld [vmem:[%s9437_s3 + $0x4] ss:$16 sps:$4 sm:$0xff]   ;;  %v5747_v33 = vld [vmem:[%s9437_s3] ss:$16 sps:$4 sm:$0xff]   ;;  %s8077_s27 = scalar_lea.vmem %s6987_s29, %s4713_s18 }
 0x1cb   : >> { %9924 = vst [vmem:[#allocation137_spill] sm:$0xff] %v6667_v19  ;;  %9925 = vst [vmem:[#allocation138_spill] sm:$0xff] %v6671_v30  ;;  %1703 = vmatprep.subr.bf16.mxu0 %v5745_v48  ;;  %v5750_v19 = vld [vmem:[%s9437_s3 + $0x20] ss:$16 sps:$4 sm:$0xff]   ;;  %v5756_v48 = vld [vmem:[%s9437_s3 + $0xc] ss:$16 sps:$4 sm:$0xff]  }
 0x1cc   : >> { %9926 = vst [vmem:[#allocation139_spill] sm:$0xff] %v6675_v36  ;;  %9927 = vst [vmem:[#allocation140_spill] sm:$0xff] %v6679_v29  ;;  %v9536_v29 = vmov 0   ;;  %v5748_v36 = vld [vmem:[%s9437_s3 + $0x24] ss:$16 sps:$4 sm:$0xff]   ;;  %1704 = vmatpush1.bf16.msra.mxu0 %v5747_v33  ;;  %v9975_v30 = vmov 0   ;;  %1776 = vmatprep.subr.bf16.mxu1 %v5756_v48 }
 0x1cd   : >> { %9928 = vst [vmem:[#allocation141_spill] sm:$0xff] %v6683_v56  ;;  %9929 = vst [vmem:[#allocation142_spill] sm:$0xff] %v6687_v49  ;;  %1735 = vmatprep.mubr.bf16.mxu0 %v9536_v29  ;;  %1808 = vmatprep.mubr.bf16.mxu1 %v9536_v29  ;;  %v5751_v29 = vld [vmem:[%s9437_s3 + $0x44] ss:$16 sps:$4 sm:$0xff]   ;;  %v5759_v33 = vld [vmem:[%s9437_s3 + $0x8] ss:$16 sps:$4 sm:$0xff]  }
 0x1ce   : >> { %9930 = vst [vmem:[#allocation143_spill] sm:$0xff] %v6691_v44  ;;  %9931 = vst [vmem:[#allocation144_spill] sm:$0xff] %v6695_v37  ;;  %1705 = vmatprep.subr.bf16.mxu0 %v5748_v36  ;;  %5743 = vset.pattern.permute.xlu0 %v9975_v30  ;;  %v5753_v36 = vld [vmem:[%s9437_s3 + $0x40] ss:$16 sps:$4 sm:$0xff]   ;;  %v5754_v56 = vld [vmem:[%s9437_s3 + $0x64] ss:$16 sps:$4 sm:$0xff]  }
 0x1cf   : >> { %9932 = vst [vmem:[#allocation145_spill] sm:$0xff] %v6699_v0  ;;  %9933 = vst [vmem:[#allocation146_spill] sm:$0xff] %v6703_v57  ;;  %5744 = vset.pattern.permute.xlu1 %v9975_v30  ;;  %1777 = vmatpush1.bf16.msra.mxu1 %v5759_v33  ;;  %v5762_v49 = vld [vmem:[%s9437_s3 + $0x2c] ss:$16 sps:$4 sm:$0xff]   ;;  %v5760_v48 = vld [vmem:[%s9437_s3 + $0x84] ss:$16 sps:$4 sm:$0xff]  }
 0x1d0   : >> { %9934 = vst [vmem:[#allocation147_spill] sm:$0xff] %v6707_v52  ;;  %9935 = vst [vmem:[#allocation148_spill] sm:$0xff] %v6711_v45  ;;  %1706 = vmatpush1.bf16.msra.mxu0 %v5750_v19  ;;  %v5765_v19 = vld [vmem:[%s9437_s3 + $0x28] ss:$16 sps:$4 sm:$0xff]   ;;  %1778 = vmatprep.subr.bf16.mxu1 %v5762_v49  ;;  %v5768_v33 = vld [vmem:[%s9437_s3 + $0x4c] ss:$16 sps:$4 sm:$0xff]  }
 0x1d1   : >> { %9936 = vst [vmem:[#allocation149_spill] sm:$0xff] %v6715_v10  ;;  %9937 = vst [vmem:[#allocation150_spill] sm:$0xff] %v6719_v7  ;;  %1707 = vmatprep.subr.bf16.mxu0 %v5751_v29  ;;  %v5758_v29 = vld [vmem:[%s9437_s3 + $0x60] ss:$16 sps:$4 sm:$0xff]   ;;  %v5771_v49 = vld [vmem:[%s9437_s3 + $0x48] ss:$16 sps:$4 sm:$0xff]  }
 0x1d2   : >> { %9938 = vst [vmem:[#allocation151_spill] sm:$0xff] %v6723_v60  ;;  %9939 = vst [vmem:[#allocation152_spill] sm:$0xff] %v6727_v53  ;;  %v9976_v12 = vld [vmem:[#allocation16_spill] sm:$0xff]  ;;  %v5785_v16 = vld [vmem:[%s9437_s3 + $0xac] ss:$16 sps:$4 sm:$0xff]   ;;  %p4931_p13 = scmp.ne.s32.totalorder (%p1349_p12), %s6900_s20, 1 }
 0x1d3   : >> { %9940 = vst [vmem:[#allocation153_spill] sm:$0xff] %v6731_v18  ;;  %9942 = vst [vmem:[#allocation109_spill] sm:$0xff] %v9941_v11  ;;  %1779 = vmatpush1.bf16.msra.mxu1 %v5765_v19  ;;  %v5777_v19 = vld [vmem:[%s9437_s3 + $0x68] ss:$16 sps:$4 sm:$0xff]   ;;  %v10029_v44 = vld [vmem:[#allocation58_spill] sm:$0xff] }
 0x1d4   : >> { %9944 = vst [vmem:[#allocation110_spill] sm:$0xff] %v9943_v5  ;;  %9946 = vst [vmem:[#allocation103_spill] sm:$0xff] %v9945_v14  ;;  %1708 = vmatpush1.bf16.msra.mxu0 %v5753_v36  ;;  %1780 = vmatprep.subr.bf16.mxu1 %v5768_v33  ;;  %v5774_v36 = vld [vmem:[%s9437_s3 + $0x6c] ss:$16 sps:$4 sm:$0xff]   ;;  %v2853_v33 = vstv %s2850_s1  ;;  %s8042_s1 = ssub.s32 %s7975_s4, %s3344_s26  ;;  %s8057_s26 = sadd.s32 %s7002_s24, %s3762_s14  ;;  %v10030_v5 = vmov %v10029_v44  ;;  %v10050_v10 = vld [vmem:[#allocation74_spill] sm:$0xff] }
 0x1d5   : >> { %9948 = vst [vmem:[#allocation104_spill] sm:$0xff] %v9947_v34  ;;  %9950 = vst [vmem:[#allocation102_spill] sm:$0xff] %v9949_v6  ;;  %1709 = vmatprep.subr.bf16.mxu0 %v5754_v56  ;;  %v5766_v56 = vld [vmem:[%s9437_s3 + $0xa4] ss:$16 sps:$4 sm:$0xff]   ;;  %vm2859_vm0 = vcmp.lt.s32.totalorder %v2853_v33, %v9976_v12  ;;  %v5797_v59 = vld [vmem:[%s7954_s2 + $0x8] sm:$0xff]   ;;  %v10051_v11 = vmov %v10050_v10  ;;  %s8719_s4 = sshll.u32 %s6819_s28, 6 }
 0x1d6   : >> { %9960 = vst [vmem:[#allocation101_spill] sm:$0xff] %v9959_v54  ;;  %9962 = vst [vmem:[#allocation99_spill] sm:$0xff] %v9961_v3  ;;  %v10023_v20 = vld [vmem:[#allocation43_spill] sm:$0xff]  ;;  %v10082_v15 = vld [vmem:[#allocation33_spill] sm:$0xff] }
 0x1d7   : >> { %9964 = vst [vmem:[#allocation100_spill] sm:$0xff] %v9963_v2  ;;  %9966 = vst [vmem:[#allocation98_spill] sm:$0xff] %v9965_v39  ;;  %1781 = vmatpush1.bf16.msra.mxu1 %v5771_v49  ;;  %v5772_v49 = vld [vmem:[%s9437_s3 + $0xc4] ss:$16 sps:$4 sm:$0xff]   ;;  %v10042_v52 = vld [vmem:[#allocation63_spill] sm:$0xff] }
 0x1d8   : >> { %9968 = vst [vmem:[#allocation97_spill] sm:$0xff] %v9967_v42  ;;  %9970 = vst [vmem:[#allocation95_spill] sm:$0xff] %v9969_v17  ;;  %1710 = vmatpush1.bf16.msra.mxu0 %v5758_v29  ;;  %1782 = vmatprep.subr.bf16.mxu1 %v5774_v36  ;;  %v5780_v29 = vld [vmem:[%s9437_s3 + $0x8c] ss:$16 sps:$4 sm:$0xff]   ;;  %v5783_v36 = vld [vmem:[%s9437_s3 + $0x88] ss:$16 sps:$4 sm:$0xff]  }
 0x1d9   : >> { %9972 = vst [vmem:[#allocation96_spill] sm:$0xff] %v9971_v40  ;;  %9974 = vst [vmem:[#allocation94_spill] sm:$0xff] %v9973_v32  ;;  %1711 = vmatprep.subr.bf16.mxu0 %v5760_v48  ;;  %v5770_v48 = vld [vmem:[%s9437_s3 + $0xa0] ss:$16 sps:$4 sm:$0xff]   ;;  %v9977_v32 = vmov %v9976_v12  ;;  %v5778_v12 = vld [vmem:[%s9437_s3 + $0xe4] ss:$16 sps:$4 sm:$0xff]  }
 0x1da   : >> { %vm2861_vm2 = vcmp.lt.s32.totalorder %v2854_v27, %v9977_v32  ;;  %vm3277_vm3 = vcmp.lt.s32.totalorder %v3271_v8, %v9977_v32  ;;  %vm3695_vm7 = vcmp.lt.s32.totalorder %v9541_v4, %v9977_v32  ;;  %v9542_v4 = vstv %s8057_s26  ;;  %v10044_v0 = vld [vmem:[#allocation59_spill] sm:$0xff]  ;;  %v10084_v50 = vld [vmem:[#allocation29_spill] sm:$0xff] }
 0x1db   : >> { %1783 = vmatpush1.bf16.msra.mxu1 %v5777_v19  ;;  %v5776_v19 = vld [vmem:[%s9437_s3 + $0xc0] ss:$16 sps:$4 sm:$0xff]   ;;  %vm4113_vm9 = vcmp.lt.s32.totalorder %v9542_v4, %v9977_v32  ;;  %v10064_v7 = vld [vmem:[#allocation79_spill] sm:$0xff] }
 0x1dc   : >> { %1712 = vmatpush1.bf16.msra.mxu0 %v5764_v1  ;;  %v9978_v1 = vld [vmem:[#allocation17_spill] sm:$0xff]  ;;  %1784 = vmatprep.subr.bf16.mxu1 %v5780_v29  ;;  %v5810_v4 = vld [vmem:[%s7954_s2 + $0x10] sm:$0xff]  }
 0x1dd   : >> { %1713 = vmatprep.subr.bf16.mxu0 %v5766_v56  ;;  %v9979_v40 = vmov %v9978_v1  ;;  %vm2860_vm1 = vcmp.lt.s32.totalorder %v2853_v33, %v9978_v1  ;;  %v2863_v56 = vsel %vm2859_vm0, 1, %v9975_v30  ;;  %v5790_v33 = vld [vmem:[%s9437_s3 + $0xa8] ss:$16 sps:$4 sm:$0xff]   ;;  %v9540_v1 = vstv %s7999_s21 }
 0x1de   : >> { %2868 = vperm.xlu0 %5743, %v2863_v56   ;;  %v2864_v29 = vsel %vm2860_vm1, 1, %v9975_v30  ;;  %vm2862_vm4 = vcmp.lt.s32.totalorder %v2854_v27, %v9979_v40  ;;  %v3281_v27 = vsel %vm3277_vm3, 1, %v9975_v30  ;;  %v5789_v56 = vld [vmem:[#allocation4 + $0x4] ss:$16 sps:$4 sm:$0xff]   ;;  %vm3279_vm5 = vcmp.lt.s32.totalorder %v9540_v1, %v9977_v32 }
 0x1df   : >> { %1785 = vmatpush1.bf16.msra.mxu1 %v5783_v36  ;;  %v2866_v36 = vsel %vm2862_vm4, 1, %v9975_v30  ;;  %v3283_v1 = vsel %vm3279_vm5, 1, %v9975_v30  ;;  %vm3278_vm6 = vcmp.lt.s32.totalorder %v3271_v8, %v9979_v40  ;;  %v10088_v46 = vld [vmem:[#allocation97_spill] sm:$0xff] }
 0x1e0   : >> { %1714 = vmatpush1.bf16.msra.mxu0 %v5770_v48  ;;  %1786 = vmatprep.subr.bf16.mxu1 %v5785_v16  ;;  %v5791_v48 = vld [vmem:[%s9437_s3 + $0xcc] ss:$16 sps:$4 sm:$0xff]   ;;  %v5782_v16 = vld [vmem:[%s9437_s3 + $0xe0] ss:$16 sps:$4 sm:$0xff]   ;;  %v3282_v8 = vsel %vm3278_vm6, 1, %v9975_v30 }
 0x1e1   : >> { %1715 = vmatprep.subr.bf16.mxu0 %v5772_v49  ;;  %v2865_v49 = vsel %vm2861_vm2, 1, %v9975_v30  ;;  %v10070_v43 = vld [vmem:[#allocation96_spill] sm:$0xff] }
 0x1e2   : >> { %2871 = vperm.xlu0 %5743, %v2864_v29   ;;  %2874 = vperm.xlu1 %5744, %v2865_v49   ;;  %v5796_v29 = vld [vmem:[%s9437_s3 + $0xc8] ss:$16 sps:$4 sm:$0xff]   ;;  %v5798_v49 = vld [vmem:[%s9437_s3 + $0xec] ss:$16 sps:$4 sm:$0xff]  }
 0x1e3   : >> { %1787 = vmatpush1.bf16.msra.mxu1 %v5790_v33  ;;  %v5795_v33 = vld [vmem:[#allocation4 + $0x24] ss:$16 sps:$4 sm:$0xff]  }
 0x1e4   : >> { %1716 = vmatpush1.bf16.msra.mxu0 %v5776_v19  ;;  %v5784_v19 = vld [vmem:[%s7954_s2] sm:$0xff]   ;;  %1788 = vmatprep.subr.bf16.mxu1 %v5791_v48  ;;  %v5803_v48 = vld [vmem:[%s9437_s3 + $0xe8] ss:$16 sps:$4 sm:$0xff]  }
 0x1e5   : >> { %1717 = vmatprep.subr.bf16.mxu0 %v5778_v12  ;;  %v5787_v12 = vld [vmem:[#allocation4] ss:$16 sps:$4 sm:$0xff]  }
 0x1e6   : >> { %3286 = vperm.xlu0 %5743, %v3281_v27   ;;  %2877 = vperm.xlu1 %5744, %v2866_v36   ;;  %v9543_v27 = vstv %s8042_s1  ;;  %v5793_v36 = vld [vmem:[#allocation4 + $0x20] ss:$16 sps:$4 sm:$0xff]  }
 0x1e7   : >> { %1789 = vmatpush1.bf16.msra.mxu1 %v5796_v29  ;;  %v3699_v29 = vsel %vm3695_vm7, 1, %v9975_v30  ;;  %vm3697_vm8 = vcmp.lt.s32.totalorder %v9543_v27, %v9977_v32  ;;  %v5811_v27 = vld [vmem:[#allocation4 + $0x80] ss:$16 sps:$4 sm:$0xff]  }
 0x1e8   : >> { %1718 = vmatpush1.bf16.msra.mxu0 %v5782_v16  ;;  %1790 = vmatprep.subr.bf16.mxu1 %v5798_v49  ;;  %v5809_v16 = vld [vmem:[#allocation4 + $0xc] ss:$16 sps:$4 sm:$0xff]   ;;  %v5807_v49 = vld [vmem:[#allocation4 + $0x8] ss:$16 sps:$4 sm:$0xff]  }
 0x1e9   : >> { %2033 = vmatprep.subr.bf16.mxu0 %v5789_v56  ;;  %v5802_v56 = vld [vmem:[#allocation4 + $0x44] ss:$16 sps:$4 sm:$0xff]  }
 0x1ea   : >> { %3292 = vperm.xlu0 %5743, %v3283_v1   ;;  %v5816_v1 = vld [vmem:[#allocation4 + $0x2c] ss:$16 sps:$4 sm:$0xff]   ;;  %3289 = vperm.xlu1 %5744, %v3282_v8  }
 0x1eb   : >> { %1736 = vmatmul.mubr.bf16.vlgmr.msra.gmra.mrb[0].mxu0 %v5784_v19  ;;  %1791 = vmatpush1.bf16.msra.mxu1 %v5803_v48  ;;  %v3701_v48 = vsel %vm3697_vm8, 1, %v9975_v30  ;;  %v5822_v8 = vld [vmem:[#allocation4 + $0x4c] ss:$16 sps:$4 sm:$0xff]  }
 0x1ec   : >> { %2034 = vmatpush1.bf16.msra.mxu0 %v5787_v12  ;;  %1745 = vmatprep.mubr.bf16.mxu0 %v9975_v30  ;;  %v5800_v12 = vld [vmem:[#allocation4 + $0x40] ss:$16 sps:$4 sm:$0xff]  }
 0x1ed   : >> { %2035 = vmatprep.subr.bf16.mxu0 %v5795_v33  ;;  %2106 = vmatprep.subr.bf16.mxu1 %v5809_v16  ;;  %v5806_v33 = vld [vmem:[#allocation4 + $0x64] ss:$16 sps:$4 sm:$0xff]   ;;  %v5814_v16 = vld [vmem:[#allocation4 + $0x28] ss:$16 sps:$4 sm:$0xff]  }
 0x1ee   : >> { %3704 = vperm.xlu0 %5743, %v3699_v29   ;;  %1809 = vmatmul.mubr.bf16.vlgmr.msra.gmra.mrb[0].mxu1 %v5784_v19  ;;  %v5804_v19 = vld [vmem:[#allocation4 + $0x60] ss:$16 sps:$4 sm:$0xff]   ;;  %v5813_v29 = vld [vmem:[#allocation4 + $0x84] ss:$16 sps:$4 sm:$0xff]  }
 0x1ef   : >> { %2107 = vmatpush1.bf16.msra.mxu1 %v5807_v49  ;;  %1818 = vmatprep.mubr.bf16.mxu1 %v9975_v30  ;;  %v5820_v49 = vld [vmem:[#allocation4 + $0x48] ss:$16 sps:$4 sm:$0xff]  }
 0x1f0   : >> { %2036 = vmatpush1.bf16.msra.mxu0 %v5793_v36  ;;  %2108 = vmatprep.subr.bf16.mxu1 %v5816_v1  ;;  %v9544_v36 = vstv %s8070_s13  ;;  %v5829_v1 = vld [vmem:[#allocation4 + $0x6c] ss:$16 sps:$4 sm:$0xff]  }
 0x1f1   : >> { %2037 = vmatprep.subr.bf16.mxu0 %v5802_v56  ;;  %v4117_v56 = vsel %vm4113_vm9, 1, %v9975_v30  ;;  %vm4115_vm10 = vcmp.lt.s32.totalorder %v9544_v36, %v9977_v32  ;;  %v5837_v36 = vld [vmem:[#allocation4 + $0xa8] ss:$16 sps:$4 sm:$0xff]  }
 0x1f2   : >> { %3710 = vperm.xlu0 %5743, %v3701_v48   ;;  %v5819_v48 = vld [vmem:[#allocation4 + $0xa4] ss:$16 sps:$4 sm:$0xff]  }
 0x1f3   : >> { %1746 = vmatmul.mubr.bf16.gmra.mrb[4].mxu0 %v5797_v59  ;;  %2109 = vmatpush1.bf16.msra.mxu1 %v5814_v16  ;;  %v5835_v16 = vld [vmem:[#allocation4 + $0x8c] ss:$16 sps:$4 sm:$0xff]  }
 0x1f4   : >> { %2038 = vmatpush1.bf16.msra.mxu0 %v5800_v12  ;;  %1755 = vmatprep.mubr.bf16.mxu0 %v9975_v30  ;;  %v4119_v12 = vsel %vm4115_vm10, 1, %v9975_v30 }
 0x1f5   : >> { %2039 = vmatprep.subr.bf16.mxu0 %v5806_v33  ;;  %2110 = vmatprep.subr.bf16.mxu1 %v5822_v8  ;;  %v5827_v33 = vld [vmem:[#allocation4 + $0x68] ss:$16 sps:$4 sm:$0xff]   ;;  %v5817_v8 = vld [vmem:[#allocation4 + $0xa0] ss:$16 sps:$4 sm:$0xff]  }
 0x1f6   : >> { %4122 = vperm.xlu0 %5743, %v4117_v56   ;;  %1819 = vmatmul.mubr.bf16.gmra.mrb[4].mxu1 %v5797_v59  ;;  %v5833_v59 = vld [vmem:[#allocation4 + $0x88] ss:$16 sps:$4 sm:$0xff]   ;;  %v5839_v56 = vld [vmem:[#allocation4 + $0xac] ss:$16 sps:$4 sm:$0xff]  }
 0x1f7   : >> { %2111 = vmatpush1.bf16.msra.mxu1 %v5820_v49  ;;  %1828 = vmatprep.mubr.bf16.mxu1 %v9975_v30  ;;  %v5824_v49 = vld [vmem:[#allocation4 + $0xc0] ss:$16 sps:$4 sm:$0xff]  }
 0x1f8   : >> { %2040 = vmatpush1.bf16.msra.mxu0 %v5804_v19  ;;  %2112 = vmatprep.subr.bf16.mxu1 %v5829_v1  ;;  %v5826_v19 = vld [vmem:[#allocation4 + $0xc4] ss:$16 sps:$4 sm:$0xff]  }
 0x1f9   : >> { %2041 = vmatprep.subr.bf16.mxu0 %v5813_v29  ;;  %v5823_v29 = vld [vmem:[%s7954_s2 + $0x18] sm:$0xff]   ;;  %v5832_v1 = vld [vmem:[#allocation4 + $0xe4] ss:$16 sps:$4 sm:$0xff]   ;;  %s2904_s2 = sshra.s32 %s8719_s4, 3 }
 0x1fa   : >> { %4128 = vperm.xlu0 %5743, %v4119_v12   ;;  %v5830_v12 = vld [vmem:[#allocation4 + $0xe0] ss:$16 sps:$4 sm:$0xff]   ;;  %s4866_s28 = sshll.u32 %s2904_s2, 2 }
 0x1fb   : >> { %1756 = vmatmul.mubr.bf16.gmra.mrb[8].mxu0 %v5810_v4  ;;  %2113 = vmatpush1.bf16.msra.mxu1 %v5827_v33  ;;  %v9982_v33 = vld [vmem:[#allocation18_spill] sm:$0xff] }
 0x1fc   : >> { %2042 = vmatpush1.bf16.msra.mxu0 %v5811_v27  ;;  %1765 = vmatprep.mubr.bf16.mxu0 %v9975_v30  ;;  %v5842_v27 = vld [vmem:[#allocation4 + $0xcc] ss:$16 sps:$4 sm:$0xff]   ;;  %v9983_v40 = vmov %v9982_v33 }
 0x1fd   : >> { %2043 = vmatprep.subr.bf16.mxu0 %v5819_v48  ;;  %2114 = vmatprep.subr.bf16.mxu1 %v5835_v16  ;;  %v9980_v48 = vld [vmem:[#allocation22_spill] sm:$0xff] }
 0x1fe   : >> { %1829 = vmatmul.mubr.bf16.gmra.mrb[8].mxu1 %v5810_v4  ;;  %v9981_v32 = vmov %v9980_v48  ;;  %v8095_v16 = vcombine.high %v9982_v33, %v9980_v48  ;;  %v5840_v4 = vld [vmem:[#allocation4 + $0xc8] ss:$16 sps:$4 sm:$0xff]   ;;  %v9995_v33 = vld [vmem:[#allocation38_spill] sm:$0xff] }
 0x1ff   : >> { %2115 = vmatpush1.bf16.msra.mxu1 %v5833_v59  ;;  %1838 = vmatprep.mubr.bf16.mxu1 %v9975_v30  ;;  %v8100_v59 = vcombine.low %v9983_v40, %v9981_v32  ;;  %v5844_v48 = vld [vmem:[#allocation4 + $0xe8] ss:$16 sps:$4 sm:$0xff]   ;;  %v9996_v32 = vmov %v9995_v33 }
 0x200   : >> { %2044 = vmatpush1.bf16.msra.mxu0 %v5817_v8  ;;  %2116 = vmatprep.subr.bf16.mxu1 %v5839_v56  ;;  %v5846_v8 = vld [vmem:[#allocation4 + $0xec] ss:$16 sps:$4 sm:$0xff]   ;;  %v9984_v56 = vld [vmem:[#allocation30_spill] sm:$0xff] }
 0x201   : >> { %2045 = vmatprep.subr.bf16.mxu0 %v5826_v19  ;;  %v5836_v19 = vld [vmem:[%s8077_s27] sm:$0xff]   ;;  %v9985_v17 = vmov %v9984_v56 }
 0x203   : >> { %1766 = vmatmul.mubr.bf16.gmra.mrb[12].mxu0 %v5823_v29  ;;  %2117 = vmatpush1.bf16.msra.mxu1 %v5837_v36  ;;  %v9989_v36 = vld [vmem:[#allocation23_spill] sm:$0xff] }
 0x204   : >> { %2046 = vmatpush1.bf16.msra.mxu0 %v5824_v49  ;;  %2065 = vmatprep.mubr.bf16.mxu0 %v9975_v30  ;;  %v9986_v49 = vld [vmem:[#allocation26_spill] sm:$0xff]  ;;  %v9990_v39 = vmov %v9989_v36 }
 0x205   : >> { %2047 = vmatprep.subr.bf16.mxu0 %v5832_v1  ;;  %2118 = vmatprep.subr.bf16.mxu1 %v5842_v27  ;;  %v9987_v42 = vmov %v9986_v49  ;;  %v8105_v1 = vcombine.high %v9986_v49, %v9984_v56  ;;  %v9991_v27 = vld [vmem:[#allocation19_spill] sm:$0xff] }
 0x206   : >> { %1839 = vmatmul.mubr.bf16.gmra.mrb[12].mxu1 %v5823_v29  ;;  %v9992_v2 = vmov %v9991_v27  ;;  %v8115_v29 = vcombine.low %v9987_v42, %v9985_v17  ;;  %v10000_v49 = vld [vmem:[#allocation31_spill] sm:$0xff]  ;;  %v5843_v17 = vld [vmem:[%s8077_s27 + $0x8] sm:$0xff]  }
 0x207   : >> { %9988 = vst [vmem:[#allocation89_spill] sm:$0xff] %v8105_v1  ;;  %2119 = vmatpush1.bf16.msra.mxu1 %v5840_v4  ;;  %2138 = vmatprep.mubr.bf16.mxu1 %v9975_v30  ;;  %v9997_v4 = vld [vmem:[#allocation34_spill] sm:$0xff]  ;;  %v8125_v56 = vcombine.low %v9992_v2, %v9990_v39  ;;  %v10001_v3 = vmov %v10000_v49 }
 0x208   : >> { %2048 = vmatpush1.bf16.msra.mxu0 %v5830_v12  ;;  %2120 = vmatprep.subr.bf16.mxu1 %v5846_v8  ;;  %v8110_v12 = vcombine.high %v9991_v27, %v9989_v36  ;;  %9994 = vst [vmem:[#allocation87_spill] sm:$0xff] %v8115_v29  ;;  %v9998_v40 = vmov %v9997_v4  ;;  %v8121_v8 = vcombine.high %v9997_v4, %v9995_v33  ;;  %v10002_v36 = vld [vmem:[#allocation27_spill] sm:$0xff]  ;;  %v10008_v33 = vld [vmem:[#allocation42_spill] sm:$0xff] }
 0x209   : >> { %2502 = vmatprep.subr.bf16.mxu0 %v8095_v16  ;;  %v10003_v54 = vmov %v10002_v36  ;;  %v8130_v27 = vcombine.high %v10002_v36, %v10000_v49  ;;  %v8136_v42 = vcombine.low %v9998_v40, %v9996_v32  ;;  %v10009_v34 = vmov %v10008_v33  ;;  %v10012_v36 = vld [vmem:[#allocation39_spill] sm:$0xff]  ;;  %v10019_v39 = vld [vmem:[#allocation50_spill] sm:$0xff] }
 0x20a   : >> { %9993 = vst [vmem:[#allocation88_spill] sm:$0xff] %v8110_v12  ;;  %9999 = vst [vmem:[#allocation86_spill] sm:$0xff] %v8121_v8  ;;  %v8146_v49 = vcombine.low %v10003_v54, %v10001_v3  ;;  %v10013_v2 = vmov %v10012_v36  ;;  %v10014_v32 = vld [vmem:[#allocation35_spill] sm:$0xff] }
 0x20b   : >> { %2066 = vmatmul.mubr.bf16.vlgmr.msra.gmra.mrb[16].mxu0 %v5836_v19  ;;  %2121 = vmatpush1.bf16.msra.mxu1 %v5844_v48  ;;  %10004 = vst [vmem:[#allocation85_spill] sm:$0xff] %v8130_v27  ;;  %10005 = vst [vmem:[#allocation84_spill] sm:$0xff] %v8136_v42  ;;  %v10006_v48 = vld [vmem:[#allocation46_spill] sm:$0xff]  ;;  %v10022_v54 = vld [vmem:[#allocation47_spill] sm:$0xff] }
 0x20c   : >> { %2503 = vmatpush1.bf16.msra.mxu0 %v8100_v59  ;;  %2075 = vmatprep.mubr.bf16.mxu0 %v9975_v30  ;;  %v10007_v6 = vmov %v10006_v48  ;;  %v8141_v4 = vcombine.high %v10008_v33, %v10006_v48  ;;  %10011 = vst [vmem:[#allocation82_spill] sm:$0xff] %v8146_v49  ;;  %v10017_v33 = vld [vmem:[#allocation54_spill] sm:$0xff] }
 0x20d   : >> { %2504 = vmatprep.subr.bf16.mxu0 %v8105_v1  ;;  %2555 = vmatprep.subr.bf16.mxu1 %v8110_v12  ;;  %v8157_v48 = vcombine.low %v10009_v34, %v10007_v6  ;;  %v10018_v3 = vmov %v10017_v33  ;;  %v8163_v40 = vcombine.high %v10019_v39, %v10017_v33  ;;  %v8173_v6 = vcombine.high %v10023_v20, %v10022_v54  ;;  %v5847_v34 = vld [vmem:[%s8077_s27 + $0x10] sm:$0xff]  }
 0x20e   : >> { %2139 = vmatmul.mubr.bf16.vlgmr.msra.gmra.mrb[16].mxu1 %v5836_v19  ;;  %10010 = vst [vmem:[#allocation83_spill] sm:$0xff] %v8141_v4  ;;  %v8152_v19 = vcombine.high %v10014_v32, %v10012_v36  ;;  %v8168_v36 = vcombine.low %v10014_v32, %v10013_v2  ;;  %v8179_v37 = vcombine.low %v10019_v39, %v10018_v3  ;;  %v10027_v33 = vld [vmem:[#allocation62_spill] sm:$0xff]  ;;  %v10033_v3 = vld [vmem:[#allocation55_spill] sm:$0xff] }
 0x20f   : >> { %2556 = vmatpush1.bf16.msra.mxu1 %v8125_v56  ;;  %2148 = vmatprep.mubr.bf16.mxu1 %v9975_v30  ;;  %10016 = vst [vmem:[#allocation155_spill] sm:$0xff] %v8157_v48  ;;  %10020 = vst [vmem:[#allocation156_spill] sm:$0xff] %v8163_v40  ;;  %v10028_v14 = vmov %v10027_v33  ;;  %v8184_v2 = vcombine.high %v10029_v44, %v10027_v33  ;;  %v10034_v32 = vld [vmem:[#allocation51_spill] sm:$0xff]  ;;  %v10037_v33 = vld [vmem:[#allocation70_spill] sm:$0xff] }
 0x210   : >> { %2505 = vmatpush1.bf16.msra.mxu0 %v8115_v29  ;;  %2557 = vmatprep.subr.bf16.mxu1 %v8130_v27  ;;  %10015 = vst [vmem:[#allocation154_spill] sm:$0xff] %v8152_v19  ;;  %10021 = vst [vmem:[#allocation157_spill] sm:$0xff] %v8168_v36  ;;  %v8200_v44 = vcombine.low %v10030_v5, %v10028_v14  ;;  %v10038_v39 = vmov %v10037_v33  ;;  %v8211_v45 = vcombine.low %v10034_v32, %v10033_v3  ;;  %v5848_v14 = vld [vmem:[%s8077_s27 + $0x18] sm:$0xff]   ;;  %s3329_s27 = ssub.s32 6, %s7957_s19 }
 0x211   : >> { %2506 = vmatprep.subr.bf16.mxu0 %v8121_v8  ;;  %10025 = vst [vmem:[#allocation158_spill] sm:$0xff] %v8173_v6  ;;  %10026 = vst [vmem:[#allocation159_spill] sm:$0xff] %v8179_v37  ;;  %v8216_v5 = vcombine.high %v10044_v0, %v10042_v52  ;;  %s4887_s2 = sshll.u32 %s3329_s27, 4 }
 0x212   : >> { %10031 = vst [vmem:[#allocation160_spill] sm:$0xff] %v8184_v2  ;;  %10036 = vst [vmem:[#allocation163_spill] sm:$0xff] %v8200_v44 }
 0x213   : >> { %2076 = vmatmul.mubr.bf16.gmra.mrb[20].mxu0 %v5843_v17  ;;  %2558 = vmatpush1.bf16.msra.mxu1 %v8146_v49  ;;  %10041 = vst [vmem:[#allocation165_spill] sm:$0xff] %v8211_v45  ;;  %10046 = vst [vmem:[#allocation166_spill] sm:$0xff] %v8216_v5 }
 0x214   : >> { %2507 = vmatpush1.bf16.msra.mxu0 %v8136_v42  ;;  %2085 = vmatprep.mubr.bf16.mxu0 %v9975_v30  ;;  %v10024_v42 = vmov %v10023_v20 }
 0x215   : >> { %2508 = vmatprep.subr.bf16.mxu0 %v8141_v4  ;;  %2559 = vmatprep.subr.bf16.mxu1 %v8152_v19  ;;  %v8189_v20 = vcombine.low %v10024_v42, %v10022_v54  ;;  %v10039_v42 = vld [vmem:[#allocation66_spill] sm:$0xff] }
 0x216   : >> { %2149 = vmatmul.mubr.bf16.gmra.mrb[20].mxu1 %v5843_v17  ;;  %v8195_v17 = vcombine.high %v10034_v32, %v10033_v3  ;;  %v8206_v54 = vcombine.high %v10039_v42, %v10037_v33  ;;  %v8222_v57 = vcombine.low %v10039_v42, %v10038_v39  ;;  %v10048_v33 = vld [vmem:[#allocation78_spill] sm:$0xff]  ;;  %v10056_v39 = vld [vmem:[#allocation67_spill] sm:$0xff] }
 0x217   : >> { %2560 = vmatpush1.bf16.msra.mxu1 %v8168_v36  ;;  %10032 = vst [vmem:[#allocation161_spill] sm:$0xff] %v8189_v20  ;;  %2158 = vmatprep.mubr.bf16.mxu1 %v9975_v30  ;;  %v8227_v3 = vcombine.high %v10050_v10, %v10048_v33 }
 0x218   : >> { %2509 = vmatpush1.bf16.msra.mxu0 %v8157_v48  ;;  %2561 = vmatprep.subr.bf16.mxu1 %v8173_v6  ;;  %10035 = vst [vmem:[#allocation162_spill] sm:$0xff] %v8195_v17  ;;  %10040 = vst [vmem:[#allocation164_spill] sm:$0xff] %v8206_v54  ;;  %v10043_v6 = vmov %v10042_v52 }
 0x219   : >> { %2510 = vmatprep.subr.bf16.mxu0 %v8163_v40  ;;  %v10045_v40 = vmov %v10044_v0  ;;  %10047 = vst [vmem:[#allocation167_spill] sm:$0xff] %v8222_v57  ;;  %10052 = vst [vmem:[#allocation168_spill] sm:$0xff] %v8227_v3  ;;  %v10054_v0 = vld [vmem:[#allocation71_spill] sm:$0xff] }
 0x21a   : >> { %v8232_v52 = vcombine.low %v10045_v40, %v10043_v6  ;;  %v10055_v32 = vmov %v10054_v0  ;;  %v8238_v42 = vcombine.high %v10056_v39, %v10054_v0 }
 0x21b   : >> { %2086 = vmatmul.mubr.bf16.gmra.mrb[24].mxu0 %v5847_v34  ;;  %2562 = vmatpush1.bf16.msra.mxu1 %v8189_v20  ;;  %v8254_v0 = vcombine.low %v10056_v39, %v10055_v32  ;;  %v10071_v32 = vld [vmem:[#allocation32_spill] sm:$0xff] }
 0x21c   : >> { %2511 = vmatpush1.bf16.msra.mxu0 %v8179_v37  ;;  %2095 = vmatprep.mubr.bf16.mxu0 %v9975_v30  ;;  %10053 = vst [vmem:[#allocation169_spill] sm:$0xff] %v8232_v52  ;;  %10057 = vst [vmem:[#allocation170_spill] sm:$0xff] %v8238_v42  ;;  %v10072_v39 = vld [vmem:[#allocation28_spill] sm:$0xff] }
 0x21d   : >> { %2512 = vmatprep.subr.bf16.mxu0 %v8184_v2  ;;  %2563 = vmatprep.subr.bf16.mxu1 %v8195_v17  ;;  %v10049_v2 = vmov %v10048_v33  ;;  %v10060_v33 = vld [vmem:[#allocation20_spill] sm:$0xff]  ;;  %10063 = vst [vmem:[#allocation173_spill] sm:$0xff] %v8254_v0  ;;  %v8273_v21 = vcombine.high %v10072_v39, %v10071_v32 }
 0x21e   : >> { %2159 = vmatmul.mubr.bf16.gmra.mrb[24].mxu1 %v5847_v34  ;;  %v8243_v10 = vcombine.low %v10051_v11, %v10049_v2  ;;  %v10059_v34 = vld [vmem:[#allocation24_spill] sm:$0xff]  ;;  %v10061_v6 = vmov %v10060_v33  ;;  %v8259_v2 = vcombine.high %v10066_v55, %v10064_v7  ;;  %v10069_v11 = vld [vmem:[#allocation94_spill] sm:$0xff] }
 0x21f   : >> { %2564 = vmatpush1.bf16.msra.mxu1 %v8211_v45  ;;  %2168 = vmatprep.mubr.bf16.mxu1 %v9975_v30  ;;  %v8249_v40 = vcombine.high %v10060_v33, %v10059_v34  ;;  %v8263_v24 = vpack.c.bf16 %v10070_v43, %v10069_v11  ;;  %v8268_v33 = vcombine.low %v10061_v6, %v10059_v34  ;;  %v10076_v6 = vld [vmem:[#allocation21_spill] sm:$0xff] }
 0x220   : >> { %2513 = vmatpush1.bf16.msra.mxu0 %v8200_v44  ;;  %2565 = vmatprep.subr.bf16.mxu1 %v8216_v5  ;;  %10058 = vst [vmem:[#allocation171_spill] sm:$0xff] %v8243_v10  ;;  %v10065_v5 = vmov %v10064_v7  ;;  %10068 = vst [vmem:[#allocation174_spill] sm:$0xff] %v8259_v2 }
 0x221   : >> { %2514 = vmatprep.subr.bf16.mxu0 %v8206_v54  ;;  %10062 = vst [vmem:[#allocation172_spill] sm:$0xff] %v8249_v40  ;;  %v10067_v54 = vmov %v10066_v55  ;;  %v10074_v55 = vld [vmem:[#allocation25_spill] sm:$0xff] }
 0x222   : >> { %v8278_v7 = vcombine.low %v10067_v54, %v10065_v5  ;;  %v10075_v11 = vmov %v10074_v55  ;;  %v8284_v34 = vcombine.high %v10076_v6, %v10074_v55  ;;  %v10079_v5 = vld [vmem:[#allocation40_spill] sm:$0xff] }
 0x223   : >> { %2096 = vmatmul.mubr.bf16.gmra.mrb[28].mxu0 %v5848_v14  ;;  %2566 = vmatpush1.bf16.msra.mxu1 %v8232_v52  ;;  %v10080_v54 = vld [vmem:[#allocation36_spill] sm:$0xff]  ;;  %v8301_v55 = vcombine.low %v10076_v6, %v10075_v11 }
 0x224   : >> { %2515 = vmatpush1.bf16.msra.mxu0 %v8222_v57  ;;  %2534 = vmatprep.mubr.bf16.mxu0 %v9975_v30  ;;  %10073 = vst [vmem:[#allocation96_spill] sm:$0xff] %v8278_v7  ;;  %10077 = vst [vmem:[#allocation175_spill] sm:$0xff] %v8284_v34  ;;  %v8296_v51 = vcombine.high %v10080_v54, %v10079_v5  ;;  %v8315_v60 = vcombine.low %v10080_v54, %v10079_v5  ;;  %v10090_v6 = vld [vmem:[#allocation48_spill] sm:$0xff] }
 0x225   : >> { %2516 = vmatprep.subr.bf16.mxu0 %v8227_v3  ;;  %2567 = vmatprep.subr.bf16.mxu1 %v8238_v42  ;;  %v10091_v11 = vld [vmem:[#allocation44_spill] sm:$0xff] }
 0x226   : >> { %2169 = vmatmul.mubr.bf16.gmra.mrb[28].mxu1 %v5848_v14  ;;  %v8290_v14 = vcombine.low %v10072_v39, %v10071_v32  ;;  %10081 = vst [vmem:[#allocation177_spill] sm:$0xff] %v8296_v51  ;;  %v8306_v32 = vcombine.high %v10084_v50, %v10082_v15  ;;  %v10087_v39 = vld [vmem:[#allocation95_spill] sm:$0xff]  ;;  %10089 = vst [vmem:[#allocation179_spill] sm:$0xff] %v8315_v60  ;;  %v8321_v18 = vcombine.high %v10091_v11, %v10090_v6 }
 0x227   : >> { %2568 = vmatpush1.bf16.msra.mxu1 %v8254_v0  ;;  %2587 = vmatprep.mubr.bf16.mxu1 %v9975_v30  ;;  %v8310_v53 = vpack.c.bf16 %v10088_v46, %v10087_v39  ;;  %v10096_v46 = vld [vmem:[#allocation37_spill] sm:$0xff]  ;;  %v8338_v54 = vcombine.low %v10091_v11, %v10090_v6 }
 0x228   : >> { %2517 = vmatpush1.bf16.msra.mxu0 %v8243_v10  ;;  %2569 = vmatprep.subr.bf16.mxu1 %v8259_v2  ;;  %10078 = vst [vmem:[#allocation176_spill] sm:$0xff] %v8290_v14  ;;  %v10083_v2 = vmov %v10082_v15  ;;  %10086 = vst [vmem:[#allocation178_spill] sm:$0xff] %v8306_v32 }
 0x229   : >> { %2608 = vmatprep.subr.bf16.mxu0 %v8249_v40  ;;  %v10085_v40 = vmov %v10084_v50  ;;  %10092 = vst [vmem:[#allocation180_spill] sm:$0xff] %v8321_v18  ;;  %v10094_v50 = vld [vmem:[#allocation41_spill] sm:$0xff]  ;;  %10099 = vst [vmem:[#allocation183_spill] sm:$0xff] %v8338_v54 }
 0x22a   : >> { %v8326_v15 = vcombine.low %v10085_v40, %v10083_v2  ;;  %v10095_v39 = vmov %v10094_v50  ;;  %v8331_v5 = vcombine.high %v10096_v46, %v10094_v50  ;;  %v10100_v2 = vld [vmem:[#allocation56_spill] sm:$0xff]  ;;  %v10103_v50 = vld [vmem:[#allocation49_spill] sm:$0xff] }
 0x22b   : >> { %2535 = vmatmul.mubr.bf16.vlgmr.msra.gmra.mrb[32].mxu0 %v8263_v24  ;;  %2570 = vmatpush1.bf16.msra.mxu1 %v8278_v7  ;;  %v10101_v40 = vld [vmem:[#allocation52_spill] sm:$0xff] }
 0x22c   : >> { %2609 = vmatpush1.bf16.msra.mxu0 %v8268_v33  ;;  %2544 = vmatprep.mubr.bf16.mxu0 %v9975_v30  ;;  %10093 = vst [vmem:[#allocation181_spill] sm:$0xff] %v8326_v15  ;;  %10098 = vst [vmem:[#allocation182_spill] sm:$0xff] %v8331_v5  ;;  %v8359_v11 = vcombine.low %v10101_v40, %v10100_v2 }
 0x22d   : >> { %2610 = vmatprep.subr.bf16.mxu0 %v8273_v21  ;;  %2661 = vmatprep.subr.bf16.mxu1 %v8284_v34 }
 0x22e   : >> { %2588 = vmatmul.mubr.bf16.vlgmr.msra.gmra.mrb[32].mxu1 %v8263_v24  ;;  %10108 = vst [vmem:[#allocation186_spill] sm:$0xff] %v8359_v11 }
 0x22f   : >> { %2662 = vmatpush1.bf16.msra.mxu1 %v8301_v55  ;;  %2597 = vmatprep.mubr.bf16.mxu1 %v9975_v30 }
 0x230   : >> { %2611 = vmatpush1.bf16.msra.mxu0 %v8290_v14  ;;  %2663 = vmatprep.subr.bf16.mxu1 %v8306_v32  ;;  %v10097_v14 = vmov %v10096_v46  ;;  %v10104_v32 = vmov %v10103_v50 }
 0x231   : >> { %2612 = vmatprep.subr.bf16.mxu0 %v8296_v51  ;;  %v8344_v51 = vcombine.high %v10101_v40, %v10100_v2  ;;  %v8349_v46 = vcombine.low %v10097_v14, %v10095_v39  ;;  %v10116_v2 = vld [vmem:[#allocation53_spill] sm:$0xff] }
 0x233   : >> { %2545 = vmatmul.mubr.bf16.gmra.mrb[36].mxu0 %v8310_v53  ;;  %10102 = vst [vmem:[#allocation184_spill] sm:$0xff] %v8344_v51  ;;  %2664 = vmatpush1.bf16.msra.mxu1 %v8326_v15  ;;  %v10111_v15 = vld [vmem:[#allocation60_spill] sm:$0xff] }
 0x234   : >> { %2613 = vmatpush1.bf16.msra.mxu0 %v8315_v60  ;;  %2640 = vmatprep.mubr.bf16.mxu0 %v9975_v30  ;;  %v10105_v60 = vld [vmem:[#allocation45_spill] sm:$0xff]  ;;  %v10112_v3 = vmov %v10111_v15 }
 0x235   : >> { %2614 = vmatprep.subr.bf16.mxu0 %v8321_v18  ;;  %2665 = vmatprep.subr.bf16.mxu1 %v8331_v5  ;;  %v10106_v34 = vmov %v10105_v60  ;;  %v8354_v6 = vcombine.high %v10105_v60, %v10103_v50  ;;  %v10109_v18 = vld [vmem:[#allocation64_spill] sm:$0xff]  ;;  %v10114_v50 = vld [vmem:[#allocation57_spill] sm:$0xff] }
 0x236   : >> { %2598 = vmatmul.mubr.bf16.gmra.mrb[36].mxu1 %v8310_v53  ;;  %v10110_v42 = vmov %v10109_v18  ;;  %v8365_v14 = vcombine.high %v10111_v15, %v10109_v18  ;;  %v8370_v60 = vcombine.low %v10106_v34, %v10104_v32  ;;  %v10115_v39 = vmov %v10114_v50  ;;  %v10119_v15 = vld [vmem:[#allocation72_spill] sm:$0xff]  ;;  %v10125_v34 = vld [vmem:[#allocation65_spill] sm:$0xff] }
 0x237   : >> { %10107 = vst [vmem:[#allocation185_spill] sm:$0xff] %v8354_v6  ;;  %2666 = vmatpush1.bf16.msra.mxu1 %v8349_v46  ;;  %v8375_v40 = vcombine.high %v10116_v2, %v10114_v50  ;;  %2693 = vmatprep.mubr.bf16.mxu1 %v9975_v30  ;;  %v8381_v18 = vcombine.low %v10112_v3, %v10110_v42 }
 0x238   : >> { %2615 = vmatpush1.bf16.msra.mxu0 %v8338_v54  ;;  %10113 = vst [vmem:[#allocation187_spill] sm:$0xff] %v8365_v14  ;;  %2667 = vmatprep.subr.bf16.mxu1 %v8354_v6  ;;  %v10120_v54 = vmov %v10119_v15  ;;  %v8391_v50 = vcombine.low %v10116_v2, %v10115_v39  ;;  %v10132_v2 = vld [vmem:[#allocation76_spill] sm:$0xff] }
 0x239   : >> { %2616 = vmatprep.subr.bf16.mxu0 %v8344_v51  ;;  %10117 = vst [vmem:[#allocation188_spill] sm:$0xff] %v8375_v40  ;;  %10118 = vst [vmem:[#allocation189_spill] sm:$0xff] %v8381_v18  ;;  %v10121_v51 = vld [vmem:[#allocation68_spill] sm:$0xff] }
 0x23a   : >> { %v10122_v5 = vmov %v10121_v51  ;;  %v8386_v32 = vcombine.high %v10121_v51, %v10119_v15  ;;  %10124 = vst [vmem:[#allocation191_spill] sm:$0xff] %v8391_v50  ;;  %v10128_v51 = vld [vmem:[#allocation17_spill] sm:$0xff]  ;;  %v10130_v15 = vstv %s7999_s21  ;;  %s2907_s21 = scalar_lea.vmem %s6992_s12, %s4866_s28  ;;  %s3338_s28 = sshra.s32 %s4887_s2, 3 }
 0x23b   : >> { %2668 = vmatpush1.bf16.msra.mxu1 %v8370_v60  ;;  %v8401_v3 = vcombine.low %v10122_v5, %v10120_v54  ;;  %v10129_v42 = vmov %v10128_v51  ;;  %vm3280_vm11 = vcmp.lt.s32.totalorder %v10130_v15, %v10128_v51  ;;  %v10134_v5 = vld [vmem:[#allocation73_spill] sm:$0xff]  ;;  %v10136_v15 = vstv %s8020_s5  ;;  %s2911_s5 = ssub.s32 7, %s7957_s19  ;;  %s4955_s2 = sadd.s32 48, %s8719_s4 }
 0x23c   : >> { %2617 = vmatpush1.bf16.msra.mxu0 %v8359_v11  ;;  %10123 = vst [vmem:[#allocation190_spill] sm:$0xff] %v8386_v32  ;;  %2669 = vmatprep.subr.bf16.mxu1 %v8375_v40  ;;  %v10126_v11 = vld [vmem:[#allocation61_spill] sm:$0xff]  ;;  %vm3696_vm12 = vcmp.lt.s32.totalorder %v10136_v15, %v10129_v42 }
 0x23d   : >> { %2618 = vmatprep.subr.bf16.mxu0 %v8365_v14  ;;  %v8396_v6 = vcombine.high %v10126_v11, %v10125_v34  ;;  %v10131_v14 = vld [vmem:[#allocation80_spill] sm:$0xff]  ;;  %v8414_v40 = vcombine.low %v10126_v11, %v10125_v34  ;;  %v10135_v54 = vld [vmem:[#allocation69_spill] sm:$0xff] }
 0x23e   : >> { %v8409_v39 = vcombine.high %v10132_v2, %v10131_v14  ;;  %v8420_v51 = vcombine.high %v10135_v54, %v10134_v5  ;;  %v8429_v11 = vcombine.low %v10132_v2, %v10131_v14  ;;  %v8435_v34 = vcombine.low %v10135_v54, %v10134_v5  ;;  %v10140_v15 = vld [vmem:[#allocation77_spill] sm:$0xff]  ;;  %v10156_v54 = vld [vmem:[#allocation174_spill] sm:$0xff] }
 0x23f   : >> { %10127 = vst [vmem:[#allocation192_spill] sm:$0xff] %v8396_v6  ;;  %2670 = vmatpush1.bf16.msra.mxu1 %v8391_v50  ;;  %v10141_v17 = vmov %v10140_v15  ;;  %v10142_v2 = vstv %s8042_s1  ;;  %s4867_s1 = sshll.u32 %s2911_s5, 4 }
 0x240   : >> { %2619 = vmatpush1.bf16.msra.mxu0 %v8381_v18  ;;  %10133 = vst [vmem:[#allocation193_spill] sm:$0xff] %v8409_v39  ;;  %v3284_v18 = vsel %vm3280_vm11, 1, %v9975_v30  ;;  %2671 = vmatprep.subr.bf16.mxu1 %v8396_v6  ;;  %10137 = vst [vmem:[#allocation194_spill] sm:$0xff] %v8429_v11  ;;  %vm3698_vm13 = vcmp.lt.s32.totalorder %v10142_v2, %v10129_v42  ;;  %s2920_s14 = sshra.s32 %s4867_s1, 3  ;;  %s4949_s1 = sadd.s32 32, %s8719_s4 }
 0x241   : >> { %2620 = vmatprep.subr.bf16.mxu0 %v8386_v32  ;;  %3295 = vperm.xlu1 %5744, %v3284_v18   ;;  %v3700_v32 = vsel %vm3696_vm12, 1, %v9975_v30  ;;  %v10138_v18 = vld [vmem:[#allocation81_spill] sm:$0xff]  ;;  %v3702_v5 = vsel %vm3698_vm13, 1, %v9975_v30  ;;  %s4870_s16 = sshll.u32 %s2920_s14, 2  ;;  %s3740_s14 = sshra.s32 %s4949_s1, 3 }
 0x242   : >> { %v10139_v6 = vmov %v10138_v18  ;;  %v8440_v50 = vcombine.high %v10140_v15, %v10138_v18  ;;  %v10146_v15 = vld [vmem:[#allocation84_spill] sm:$0xff]  ;;  %s2923_s30 = scalar_lea.vmem %s6997_s15, %s4870_s16  ;;  %s4906_s16 = sshll.u32 %s3740_s14, 2 }
 0x243   : >> { %2672 = vmatpush1.bf16.msra.mxu1 %v8414_v40  ;;  %v8449_v14 = vcombine.low %v10141_v17, %v10139_v6  ;;  %v10153_v6 = vld [vmem:[#allocation168_spill] sm:$0xff]  ;;  %v10154_v17 = vld [vmem:[#allocation170_spill] sm:$0xff] }
 0x244   : >> { %2621 = vmatpush1.bf16.msra.mxu0 %v8401_v3  ;;  %2673 = vmatprep.subr.bf16.mxu1 %v8420_v51 }
 0x245   : >> { %2622 = vmatprep.subr.bf16.mxu0 %v8409_v39  ;;  %3707 = vperm.xlu1 %5744, %v3700_v32   ;;  %10143 = vst [vmem:[#allocation195_spill] sm:$0xff] %v8449_v14  ;;  %v10144_v32 = vstv %s8057_s26  ;;  %s4943_s26 = sadd.s32 16, %s8719_s4  ;;  %s4165_s4 = ssub.s32 4, %s7957_s19 }
 0x246   : >> { %vm4114_vm14 = vcmp.lt.s32.totalorder %v10144_v32, %v10129_v42  ;;  %v10148_v32 = vld [vmem:[#allocation158_spill] sm:$0xff]  ;;  %s3322_s0 = sshra.s32 %s4943_s26, 3  ;;  %s3747_s26 = ssub.s32 5, %s7957_s19 }
 0x247   : >> { %2674 = vmatpush1.bf16.msra.mxu1 %v8435_v34  ;;  %v4118_v2 = vsel %vm4114_vm14, 1, %v9975_v30  ;;  %s4886_s18 = sshll.u32 %s3322_s0, 2  ;;  %s4907_s0 = sshll.u32 %s3747_s26, 4 }
 0x248   : >> { %2623 = vmatpush1.bf16.msra.mxu0 %v8429_v11  ;;  %2675 = vmatprep.subr.bf16.mxu1 %v8440_v50  ;;  %s4927_s1 = sshll.u32 %s4165_s4, 4 }
 0x249   : >> { %2929 = vmatprep.subr.bf16.mxu0 %v8095_v16  ;;  %3713 = vperm.xlu1 %5744, %v3702_v5   ;;  %v10145_v5 = vstv %s8070_s13  ;;  %s3325_s13 = scalar_lea.vmem %s6992_s12, %s4886_s18  ;;  %s3756_s18 = sshra.s32 %s4907_s0, 3 }
 0x24a   : >> { %vm4116_vm15 = vcmp.lt.s32.totalorder %v10145_v5, %v10129_v42  ;;  %v10150_v5 = vld [vmem:[#allocation162_spill] sm:$0xff]  ;;  %v10155_v42 = vld [vmem:[#allocation172_spill] sm:$0xff]  ;;  %s4174_s14 = sshra.s32 %s4927_s1, 3 }
 0x24b   : >> { %2641 = vmatmul.mubr.bf16.vlgmr.msra.gmra.mrb[40].mxu0 %v8263_v24  ;;  %2676 = vmatpush1.bf16.msra.mxu1 %v8449_v14  ;;  %v4120_v18 = vsel %vm4116_vm15, 1, %v9975_v30 }
 0x24c   : >> { %2650 = vmatprep.mubr.bf16.mxu0 %v9975_v30  ;;  %2930 = vmatpush1.bf16.msra.mxu0 %v8100_v59 }
 0x24d   : >> { %2931 = vmatprep.subr.bf16.mxu0 %v8105_v1  ;;  %4125 = vperm.xlu1 %5744, %v4118_v2   ;;  %v10149_v2 = vld [vmem:[#allocation160_spill] sm:$0xff] }
 0x24e   : >> { %2982 = vmatprep.subr.bf16.mxu1 %v8110_v12  ;;  %2694 = vmatmul.mubr.bf16.vlgmr.msra.gmra.mrb[40].mxu1 %v8263_v24  ;;  %v10147_v24 = vld [vmem:[#allocation156_spill] sm:$0xff] }
 0x24f   : >> { %2703 = vmatprep.mubr.bf16.mxu1 %v9975_v30  ;;  %2983 = vmatpush1.bf16.msra.mxu1 %v8125_v56 }
 0x250   : >> { %2932 = vmatpush1.bf16.msra.mxu0 %v8115_v29  ;;  %2984 = vmatprep.subr.bf16.mxu1 %v8130_v27 }
 0x251   : >> { %4131 = vperm.xlu1 %5744, %v4120_v18   ;;  %2933 = vmatprep.subr.bf16.mxu0 %v8121_v8  ;;  %v10152_v18 = vld [vmem:[#allocation166_spill] sm:$0xff] }
 0x253   : >> { %2651 = vmatmul.mubr.bf16.gmra.mrb[44].mxu0 %v8310_v53  ;;  %2985 = vmatpush1.bf16.msra.mxu1 %v8146_v49 }
 0x254   : >> { %2934 = vmatpush1.bf16.msra.mxu0 %v10146_v15  ;;  %2961 = vmatprep.mubr.bf16.mxu0 %v9975_v30 }
 0x255   : >> { %2935 = vmatprep.subr.bf16.mxu0 %v8141_v4  ;;  %2986 = vmatprep.subr.bf16.mxu1 %v8152_v19 }
 0x256   : >> { %2704 = vmatmul.mubr.bf16.gmra.mrb[44].mxu1 %v8310_v53  ;;  %v10151_v53 = vld [vmem:[#allocation164_spill] sm:$0xff] }
 0x257   : >> { %2987 = vmatpush1.bf16.msra.mxu1 %v8168_v36  ;;  %3014 = vmatprep.mubr.bf16.mxu1 %v9975_v30 }
 0x258   : >> { %2936 = vmatpush1.bf16.msra.mxu0 %v8157_v48  ;;  %2988 = vmatprep.subr.bf16.mxu1 %v10148_v32 }
 0x259   : >> { %2937 = vmatprep.subr.bf16.mxu0 %v10147_v24 }
 0x25b   : >> { %2989 = vmatpush1.bf16.msra.mxu1 %v8189_v20  ;;  %v10168_v20 = vld [vmem:[#allocation93_spill] sm:$0xff] }
 0x25c   : >> { %2938 = vmatpush1.bf16.msra.mxu0 %v8179_v37  ;;  %2990 = vmatprep.subr.bf16.mxu1 %v10150_v5  ;;  %v10169_v39 = vmov %v10168_v20 }
 0x25d   : >> { %2939 = vmatprep.subr.bf16.mxu0 %v10149_v2 }
 0x25f   : >> { %2991 = vmatpush1.bf16.msra.mxu1 %v8211_v45 }
 0x260   : >> { %2940 = vmatpush1.bf16.msra.mxu0 %v8200_v44  ;;  %2992 = vmatprep.subr.bf16.mxu1 %v10152_v18 }
 0x261   : >> { %2941 = vmatprep.subr.bf16.mxu0 %v10151_v53  ;;  %v10157_v53 = vld [vmem:[#allocation175_spill] sm:$0xff] }
 0x263   : >> { %2993 = vmatpush1.bf16.msra.mxu1 %v8232_v52 }
 0x264   : >> { %2942 = vmatpush1.bf16.msra.mxu0 %v8222_v57  ;;  %2994 = vmatprep.subr.bf16.mxu1 %v10154_v17  ;;  %v10158_v57 = vld [vmem:[#allocation90_spill] sm:$0xff] }
 0x265   : >> { %2943 = vmatprep.subr.bf16.mxu0 %v10153_v6  ;;  %v10159_v2 = vmov %v10158_v57  ;;  %v10161_v6 = vld [vmem:[#allocation92_spill] sm:$0xff] }
 0x267   : >> { %2995 = vmatpush1.bf16.msra.mxu1 %v8254_v0 }
 0x268   : >> { %2944 = vmatpush1.bf16.msra.mxu0 %v8243_v10  ;;  %2996 = vmatprep.subr.bf16.mxu1 %v10156_v54 }
 0x269   : >> { %3035 = vmatprep.subr.bf16.mxu0 %v10155_v42 }
 0x26b   : >> { %2997 = vmatpush1.bf16.msra.mxu1 %v8278_v7  ;;  %v10165_v7 = vld [vmem:[#allocation91_spill] sm:$0xff] }
 0x26c   : >> { %3088 = vmatprep.subr.bf16.mxu1 %v10157_v53  ;;  %v10166_v14 = vmov %v10165_v7 }
 0x2be   : >> { %v1737_v44 = vpop.f32.mrb[0].mxu0 }
 0x2bf   : >> { %v8505_v18 = vadd.f32 %v1737_v44, %v10158_v57   ;;  %v1739_v52 = vpop.f32.mrb[1].mxu0 }
 0x2c0   : >> { %v8508_v45 = vadd.f32 %v1739_v52, %v10161_v6   ;;  %v1741_v37 = vpop.f32.mrb[2].mxu0 }
 0x2c1   : >> { %10160 = vst [vmem:[#allocation196_spill] sm:$0xff] %v8505_v18  ;;  %v8511_v10 = vadd.f32 %v1741_v37, %v10159_v2   ;;  %v1743_v0 = vpop.f32.mrb[3].mxu0  ;;  %v1810_v54 = vpop.f32.mrb[0].mxu1 }
 0x2c2   : >> { %10162 = vst [vmem:[#allocation197_spill] sm:$0xff] %v8508_v45  ;;  %v8514_v42 = vadd.f32 %v1743_v0, %v10161_v6   ;;  %v8517_v24 = vadd.f32 %v1810_v54, %v10165_v7   ;;  %v1812_v53 = vpop.f32.mrb[1].mxu1 }
 0x2c3   : >> { %10163 = vst [vmem:[#allocation198_spill] sm:$0xff] %v8511_v10  ;;  %v8520_v57 = vadd.f32 %v1812_v53, %v10168_v20   ;;  %v1814_v44 = vpop.f32.mrb[2].mxu1 }
 0x2c4   : >> { %10164 = vst [vmem:[#allocation199_spill] sm:$0xff] %v8514_v42  ;;  %10167 = vst [vmem:[#allocation200_spill] sm:$0xff] %v8517_v24  ;;  %v8523_v45 = vadd.f32 %v1814_v44, %v10166_v14   ;;  %v1816_v52 = vpop.f32.mrb[3].mxu1 }
 0x2c5   : >> { %10170 = vst [vmem:[#allocation201_spill] sm:$0xff] %v8520_v57  ;;  %v8529_v0 = vadd.f32 %v1816_v52, %v10169_v39  }
 0x2c6   : >> { %v1747_v18 = vpop.f32.mrb[4].mxu0  ;;  %10171 = vst [vmem:[#allocation202_spill] sm:$0xff] %v8523_v45 }
 0x2c7   : >> { %v8526_v37 = vadd.f32 %v1747_v18, %v10159_v2   ;;  %v1749_v10 = vpop.f32.mrb[5].mxu0  ;;  %10173 = vst [vmem:[#allocation204_spill] sm:$0xff] %v8529_v0 }
 0x2c8   : >> { %v8532_v54 = vadd.f32 %v1749_v10, %v10161_v6   ;;  %v1751_v7 = vpop.f32.mrb[6].mxu0 }
 0x2c9   : >> { %10172 = vst [vmem:[#allocation203_spill] sm:$0xff] %v8526_v37  ;;  %v8535_v20 = vadd.f32 %v1751_v7, %v10159_v2   ;;  %v1753_v24 = vpop.f32.mrb[7].mxu0  ;;  %v1820_v53 = vpop.f32.mrb[4].mxu1 }
 0x2ca   : >> { %10174 = vst [vmem:[#allocation205_spill] sm:$0xff] %v8532_v54  ;;  %v8538_v18 = vadd.f32 %v1753_v24, %v10161_v6   ;;  %v8541_v57 = vadd.f32 %v1820_v53, %v10166_v14   ;;  %v1822_v44 = vpop.f32.mrb[5].mxu1 }
 0x2cb   : >> { %10175 = vst [vmem:[#allocation206_spill] sm:$0xff] %v8535_v20  ;;  %v8544_v45 = vadd.f32 %v1822_v44, %v10169_v39   ;;  %v1824_v52 = vpop.f32.mrb[6].mxu1 }
 0x2cc   : >> { %10176 = vst [vmem:[#allocation207_spill] sm:$0xff] %v8538_v18  ;;  %10177 = vst [vmem:[#allocation208_spill] sm:$0xff] %v8541_v57  ;;  %v8547_v53 = vadd.f32 %v1824_v52, %v10166_v14   ;;  %v1826_v10 = vpop.f32.mrb[7].mxu1 }
 0x2cd   : >> { %10178 = vst [vmem:[#allocation209_spill] sm:$0xff] %v8544_v45  ;;  %v8553_v20 = vadd.f32 %v1826_v10, %v10169_v39  }
 0x2ce   : >> { %v1757_v37 = vpop.f32.mrb[8].mxu0  ;;  %10179 = vst [vmem:[#allocation210_spill] sm:$0xff] %v8547_v53 }
 0x2cf   : >> { %v8550_v7 = vadd.f32 %v1757_v37, %v10159_v2   ;;  %v1759_v0 = vpop.f32.mrb[9].mxu0  ;;  %10181 = vst [vmem:[#allocation212_spill] sm:$0xff] %v8553_v20 }
 0x2d0   : >> { %v8556_v10 = vadd.f32 %v1759_v0, %v10161_v6   ;;  %v1761_v24 = vpop.f32.mrb[10].mxu0 }
 0x2d1   : >> { %10180 = vst [vmem:[#allocation211_spill] sm:$0xff] %v8550_v7  ;;  %v8559_v57 = vadd.f32 %v1761_v24, %v10159_v2   ;;  %v1763_v44 = vpop.f32.mrb[11].mxu0  ;;  %v1830_v45 = vpop.f32.mrb[8].mxu1 }
 0x2d2   : >> { %10182 = vst [vmem:[#allocation213_spill] sm:$0xff] %v8556_v10  ;;  %v8562_v0 = vadd.f32 %v1763_v44, %v10161_v6   ;;  %v8565_v45 = vadd.f32 %v1830_v45, %v10166_v14   ;;  %v1832_v52 = vpop.f32.mrb[9].mxu1 }
 0x2d3   : >> { %10183 = vst [vmem:[#allocation214_spill] sm:$0xff] %v8559_v57  ;;  %v8568_v52 = vadd.f32 %v1832_v52, %v10169_v39   ;;  %v1834_v37 = vpop.f32.mrb[10].mxu1 }
 0x2d4   : >> { %10184 = vst [vmem:[#allocation215_spill] sm:$0xff] %v8562_v0  ;;  %10185 = vst [vmem:[#allocation216_spill] sm:$0xff] %v8565_v45  ;;  %v8571_v37 = vadd.f32 %v1834_v37, %v10166_v14   ;;  %v1836_v32 = vpop.f32.mrb[11].mxu1 }
 0x2d5   : >> { %10186 = vst [vmem:[#allocation217_spill] sm:$0xff] %v8568_v52  ;;  %v8577_v44 = vadd.f32 %v1836_v32, %v10169_v39  }
 0x2d6   : >> { %v1767_v20 = vpop.f32.mrb[12].mxu0  ;;  %10187 = vst [vmem:[#allocation218_spill] sm:$0xff] %v8571_v37 }
 0x2d7   : >> { %v8574_v24 = vadd.f32 %v1767_v20, %v10159_v2   ;;  %v1769_v5 = vpop.f32.mrb[13].mxu0  ;;  %10189 = vst [vmem:[#allocation220_spill] sm:$0xff] %v8577_v44 }
 0x2d8   : >> { %v8580_v17 = vadd.f32 %v1769_v5, %v10161_v6   ;;  %v1771_v11 = vpop.f32.mrb[14].mxu0 }
 0x2d9   : >> { %10188 = vst [vmem:[#allocation219_spill] sm:$0xff] %v8574_v24  ;;  %v8583_v18 = vadd.f32 %v1771_v11, %v10159_v2   ;;  %v1773_v53 = vpop.f32.mrb[15].mxu0  ;;  %v1840_v7 = vpop.f32.mrb[12].mxu1  ;;  %v10196_v11 = vld [vmem:[#allocation105_spill] sm:$0xff] }
 0x2da   : >> { %10190 = vst [vmem:[#allocation221_spill] sm:$0xff] %v8580_v17  ;;  %v8586_v42 = vadd.f32 %v1773_v53, %v10161_v6   ;;  %v8589_v10 = vadd.f32 %v1840_v7, %v10166_v14   ;;  %v1842_v20 = vpop.f32.mrb[13].mxu1  ;;  %v10199_v6 = vld [vmem:[#allocation107_spill] sm:$0xff] }
 0x2db   : >> { %10191 = vst [vmem:[#allocation222_spill] sm:$0xff] %v8583_v18  ;;  %v8592_v24 = vadd.f32 %v1842_v20, %v10169_v39   ;;  %v1844_v45 = vpop.f32.mrb[14].mxu1 }
 0x2dc   : >> { %10192 = vst [vmem:[#allocation223_spill] sm:$0xff] %v8586_v42  ;;  %10193 = vst [vmem:[#allocation224_spill] sm:$0xff] %v8589_v10  ;;  %v8595_v5 = vadd.f32 %v1844_v45, %v10166_v14   ;;  %v1846_v57 = vpop.f32.mrb[15].mxu1  ;;  %v10203_v14 = vld [vmem:[#allocation106_spill] sm:$0xff]  ;;  %v10205_v10 = vld [vmem:[#allocation108_spill] sm:$0xff] }
 0x2dd   : >> { %10194 = vst [vmem:[#allocation225_spill] sm:$0xff] %v8592_v24  ;;  %v8601_v53 = vadd.f32 %v1846_v57, %v10169_v39   ;;  %v10206_v32 = vmov %v10205_v10 }
 0x2de   : >> { %v2067_v52 = vpop.f32.mrb[16].mxu0  ;;  %10195 = vst [vmem:[#allocation226_spill] sm:$0xff] %v8595_v5 }
 0x2df   : >> { %v8598_v2 = vadd.f32 %v2067_v52, %v10196_v11   ;;  %v2069_v0 = vpop.f32.mrb[17].mxu0  ;;  %10198 = vst [vmem:[#allocation228_spill] sm:$0xff] %v8601_v53 }
 0x2e0   : >> { %v8604_v7 = vadd.f32 %v2069_v0, %v10199_v6   ;;  %v2071_v37 = vpop.f32.mrb[18].mxu0 }
 0x2e1   : >> { %10197 = vst [vmem:[#allocation227_spill] sm:$0xff] %v8598_v2  ;;  %v8607_v20 = vadd.f32 %v2071_v37, %v10196_v11   ;;  %v2073_v24 = vpop.f32.mrb[19].mxu0  ;;  %v2140_v45 = vpop.f32.mrb[16].mxu1 }
 0x2e2   : >> { %10200 = vst [vmem:[#allocation229_spill] sm:$0xff] %v8604_v7  ;;  %v8610_v54 = vadd.f32 %v2073_v24, %v10199_v6   ;;  %v8613_v17 = vadd.f32 %v2140_v45, %v10203_v14   ;;  %v2142_v52 = vpop.f32.mrb[17].mxu1 }
 0x2e3   : >> { %10201 = vst [vmem:[#allocation230_spill] sm:$0xff] %v8607_v20  ;;  %v8616_v18 = vadd.f32 %v2142_v52, %v10205_v10   ;;  %v2144_v57 = vpop.f32.mrb[18].mxu1 }
 0x2e4   : >> { %10202 = vst [vmem:[#allocation231_spill] sm:$0xff] %v8610_v54  ;;  %10204 = vst [vmem:[#allocation232_spill] sm:$0xff] %v8613_v17  ;;  %v8619_v0 = vadd.f32 %v2144_v57, %v10203_v14   ;;  %v2146_v42 = vpop.f32.mrb[19].mxu1 }
 0x2e5   : >> { %10207 = vst [vmem:[#allocation233_spill] sm:$0xff] %v8616_v18  ;;  %v8625_v24 = vadd.f32 %v2146_v42, %v10206_v32  }
 0x2e6   : >> { %v2077_v39 = vpop.f32.mrb[20].mxu0  ;;  %10208 = vst [vmem:[#allocation234_spill] sm:$0xff] %v8619_v0 }
 0x2e7   : >> { %v8622_v20 = vadd.f32 %v2077_v39, %v10196_v11   ;;  %v2079_v37 = vpop.f32.mrb[21].mxu0  ;;  %10210 = vst [vmem:[#allocation236_spill] sm:$0xff] %v8625_v24 }
 0x2e8   : >> { %v8628_v45 = vadd.f32 %v2079_v37, %v10199_v6   ;;  %v2081_v53 = vpop.f32.mrb[22].mxu0 }
 0x2e9   : >> { %10209 = vst [vmem:[#allocation235_spill] sm:$0xff] %v8622_v20  ;;  %v8631_v10 = vadd.f32 %v2081_v53, %v10196_v11   ;;  %v2083_v52 = vpop.f32.mrb[23].mxu0  ;;  %v2150_v57 = vpop.f32.mrb[20].mxu1 }
 0x2ea   : >> { %10211 = vst [vmem:[#allocation237_spill] sm:$0xff] %v8628_v45  ;;  %v8634_v2 = vadd.f32 %v2083_v52, %v10199_v6   ;;  %v8637_v7 = vadd.f32 %v2150_v57, %v10203_v14   ;;  %v2152_v39 = vpop.f32.mrb[21].mxu1 }
 0x2eb   : >> { %10212 = vst [vmem:[#allocation238_spill] sm:$0xff] %v8631_v10  ;;  %v8640_v17 = vadd.f32 %v2152_v39, %v10206_v32   ;;  %v2154_v42 = vpop.f32.mrb[22].mxu1 }
 0x2ec   : >> { %10213 = vst [vmem:[#allocation239_spill] sm:$0xff] %v8634_v2  ;;  %10214 = vst [vmem:[#allocation240_spill] sm:$0xff] %v8637_v7  ;;  %v8643_v37 = vadd.f32 %v2154_v42, %v10203_v14   ;;  %v2156_v18 = vpop.f32.mrb[23].mxu1 }
 0x2ed   : >> { %10215 = vst [vmem:[#allocation241_spill] sm:$0xff] %v8640_v17  ;;  %v8649_v52 = vadd.f32 %v2156_v18, %v10206_v32  }
 0x2ee   : >> { %v2087_v24 = vpop.f32.mrb[24].mxu0  ;;  %10216 = vst [vmem:[#allocation242_spill] sm:$0xff] %v8643_v37 }
 0x2ef   : >> { %v8646_v53 = vadd.f32 %v2087_v24, %v10196_v11   ;;  %v2089_v44 = vpop.f32.mrb[25].mxu0  ;;  %10218 = vst [vmem:[#allocation244_spill] sm:$0xff] %v8649_v52 }
 0x2f0   : >> { %v8652_v57 = vadd.f32 %v2089_v44, %v10199_v6   ;;  %v2091_v54 = vpop.f32.mrb[26].mxu0 }
 0x2f1   : >> { %10217 = vst [vmem:[#allocation243_spill] sm:$0xff] %v8646_v53  ;;  %v8655_v39 = vadd.f32 %v2091_v54, %v10196_v11   ;;  %v2093_v0 = vpop.f32.mrb[27].mxu0  ;;  %v2160_v42 = vpop.f32.mrb[24].mxu1 }
 0x2f2   : >> { %10219 = vst [vmem:[#allocation245_spill] sm:$0xff] %v8652_v57  ;;  %v8658_v5 = vadd.f32 %v2093_v0, %v10199_v6   ;;  %v8661_v24 = vadd.f32 %v2160_v42, %v10203_v14   ;;  %v2162_v20 = vpop.f32.mrb[25].mxu1 }
 0x2f3   : >> { %10220 = vst [vmem:[#allocation246_spill] sm:$0xff] %v8655_v39  ;;  %v8664_v45 = vadd.f32 %v2162_v20, %v10206_v32   ;;  %v2164_v18 = vpop.f32.mrb[26].mxu1 }
 0x2f4   : >> { %10221 = vst [vmem:[#allocation247_spill] sm:$0xff] %v8658_v5  ;;  %10222 = vst [vmem:[#allocation248_spill] sm:$0xff] %v8661_v24  ;;  %v8667_v44 = vadd.f32 %v2164_v18, %v10203_v14   ;;  %v2166_v17 = vpop.f32.mrb[27].mxu1 }
 0x2f5   : >> { %10223 = vst [vmem:[#allocation249_spill] sm:$0xff] %v8664_v45  ;;  %v8673_v0 = vadd.f32 %v2166_v17, %v10206_v32  }
 0x2f6   : >> { %v2097_v7 = vpop.f32.mrb[28].mxu0  ;;  %10224 = vst [vmem:[#allocation250_spill] sm:$0xff] %v8667_v44 }
 0x2f7   : >> { %v8670_v54 = vadd.f32 %v2097_v7, %v10196_v11   ;;  %v2099_v10 = vpop.f32.mrb[29].mxu0  ;;  %10226 = vst [vmem:[#allocation252_spill] sm:$0xff] %v8673_v0 }
 0x2f8   : >> { %v8676_v42 = vadd.f32 %v2099_v10, %v10199_v6   ;;  %v2101_v2 = vpop.f32.mrb[30].mxu0 }
 0x2f9   : >> { %10225 = vst [vmem:[#allocation251_spill] sm:$0xff] %v8670_v54  ;;  %v8679_v20 = vadd.f32 %v2101_v2, %v10196_v11   ;;  %v2103_v37 = vpop.f32.mrb[31].mxu0  ;;  %v2170_v18 = vpop.f32.mrb[28].mxu1 }
 0x2fa   : >> { %10227 = vst [vmem:[#allocation253_spill] sm:$0xff] %v8676_v42  ;;  %v8682_v52 = vadd.f32 %v2103_v37, %v10199_v6   ;;  %v8685_v53 = vadd.f32 %v2170_v18, %v10203_v14   ;;  %v2172_v7 = vpop.f32.mrb[29].mxu1 }
 0x2fb   : >> { %10228 = vst [vmem:[#allocation254_spill] sm:$0xff] %v8679_v20  ;;  %v8688_v57 = vadd.f32 %v2172_v7, %v10206_v32   ;;  %v2174_v17 = vpop.f32.mrb[30].mxu1 }
 0x2fc   : >> { %10229 = vst [vmem:[#allocation255_spill] sm:$0xff] %v8682_v52  ;;  %10230 = vst [vmem:[#allocation256_spill] sm:$0xff] %v8685_v53  ;;  %v8691_v10 = vadd.f32 %v2174_v17, %v10203_v14   ;;  %v2176_v45 = vpop.f32.mrb[31].mxu1  ;;  %v10254_v52 = vld [vmem:[#allocation189_spill] sm:$0xff] }
 0x2fd   : >> { %10231 = vst [vmem:[#allocation257_spill] sm:$0xff] %v8688_v57  ;;  %v8695_v37 = vadd.f32 %v2176_v45, %v10206_v32   ;;  %v10252_v32 = vld [vmem:[#allocation192_spill] sm:$0xff] }
 0x2fe   : >> { %v2536_v24 = vpop.f32.mrb[32].mxu0  ;;  %10232 = vst [vmem:[#allocation258_spill] sm:$0xff] %v8691_v10 }
 0x2ff   : >> { %v2738_v2 = vadd.f32 %v9958_v25, %v2536_v24  ;;  %v2538_v11 = vpop.f32.mrb[33].mxu0  ;;  %10233 = vst [vmem:[#allocation259_spill] sm:$0xff] %v8695_v37  ;;  %v10256_v37 = vld [vmem:[#allocation190_spill] sm:$0xff] }
 0x300   : >> { %v2739_v6 = vadd.f32 %v9957_v13, %v2538_v11  ;;  %v2540_v18 = vpop.f32.mrb[34].mxu0 }
 0x301   : >> { %v4851_v39 = vmul.f32 -1.442695, %v2738_v2  ;;  %v2742_v5 = vadd.f32 %v9954_v26, %v2540_v18  ;;  %v2542_v7 = vpop.f32.mrb[35].mxu0  ;;  %v2589_v14 = vpop.f32.mrb[32].mxu1 }
 0x302   : >> { %v4855_v44 = vmul.f32 -1.442695, %v2739_v6  ;;  %v2743_v0 = vadd.f32 %v9953_v28, %v2542_v7  ;;  %v2591_v25 = vpop.f32.mrb[33].mxu1  ;;  %v2740_v6 = vadd.f32 %v9956_v35, %v2589_v14 }
 0x303   : >> { %5849 = vpow2.f32 %v4851_v39  ;;  %v4852_v17 = vmul.f32 -1.442695, %v2742_v5  ;;  %v2741_v45 = vadd.f32 %v9955_v23, %v2591_v25  ;;  %v2593_v24 = vpop.f32.mrb[34].mxu1 }
 0x304   : >> { %5851 = vpow2.f32 %v4855_v44  ;;  %v4856_v54 = vmul.f32 -1.442695, %v2743_v0  ;;  %v2595_v13 = vpop.f32.mrb[35].mxu1  ;;  %v2744_v5 = vadd.f32 %v9952_v9, %v2593_v24  ;;  %v8704_v24 = vpop.permute.xlu0 %2868 }
 0x305   : >> { %5853 = vpow2.f32 %v4852_v17  ;;  %v2745_v2 = vadd.f32 %v9951_v41, %v2595_v13  ;;  %v4859_v28 = vmul.f32 -1.442695, %v2741_v45  ;;  %vm2879_vm0 = vcmp.eq.s32.totalorder %v8704_v24, 1 }
 0x306   : >> { %5855 = vpow2.f32 %v4856_v54  ;;  %v2546_v11 = vpop.f32.mrb[36].mxu0 }
 0x307   : >> { %v2548_v26 = vpop.f32.mrb[37].mxu0  ;;  %v4860_v44 = vmul.f32 -1.442695, %v2745_v2  ;;  %5857 = vtanh.f32 %v2740_v6 }
 0x308   : >> { %v2550_v18 = vpop.f32.mrb[38].mxu0  ;;  %5859 = vpow2.f32 %v4859_v28 }
 0x309   : >> { %v2552_v39 = vpop.f32.mrb[39].mxu0  ;;  %v2599_v0 = vpop.f32.mrb[36].mxu1  ;;  %5861 = vtanh.f32 %v2744_v5 }
 0x30a   : >> { %v2601_v7 = vpop.f32.mrb[37].mxu1  ;;  %5863 = vpow2.f32 %v4860_v44 }
 0x30b   : >> { %v2603_v23 = vpop.f32.mrb[38].mxu1  ;;  %v10234_v7 = vld [vmem:[#allocation98_spill] sm:$0xff] }
 0x30c   : >> { %v2605_v11 = vpop.f32.mrb[39].mxu1 }
 0x30d   : >> { %v5850_v17 = vpop.eup %5849 }
 0x30e   : >> { %v5852_v54 = vpop.eup %5851  ;;  %v2766_v25 = vadd.f32 1.0, %v5850_v17  ;;  %v2872_v17 = vpop.permute.xlu0 %2871 }
 0x30f   : >> { %v5854_v41 = vpop.eup %5853  ;;  %v2790_v13 = vadd.f32 1.0, %v5852_v54  ;;  %vm2880_vm1 = vcmp.eq.s32.totalorder %v2872_v17, 1 }
 0x310   : >> { %v5856_v35 = vpop.eup %5855  ;;  %5865 = vrcp.f32 %v2766_v25  ;;  %v2767_v14 = vadd.f32 1.0, %v5854_v41 }
 0x311   : >> { %5867 = vrcp.f32 %v2790_v13  ;;  %v2791_v45 = vadd.f32 1.0, %v5856_v35  ;;  %v5858_v9 = vpop.eup %5857  ;;  %v10235_v13 = vld [vmem:[#allocation100_spill] sm:$0xff] }
 0x312   : >> { %5869 = vrcp.f32 %v2767_v14  ;;  %v5860_v2 = vpop.eup %5859 }
 0x313   : >> { %5871 = vrcp.f32 %v2791_v45  ;;  %v5862_v26 = vpop.eup %5861  ;;  %v2818_v28 = vadd.f32 1.0, %v5860_v2 }
 0x314   : >> { %v5864_v6 = vpop.eup %5863 }
 0x315   : >> { %v2819_v54 = vadd.f32 1.0, %v5864_v6  ;;  %5873 = vrcp.f32 %v2818_v28 }
 0x31a   : >> { %v5866_v18 = vpop.eup %5865 }
 0x31b   : >> { %v5868_v39 = vpop.eup %5867  ;;  %v2834_v5 = vmul.f32 %v5866_v18, %v5858_v9 }
 0x31c   : >> { %v5870_v0 = vpop.eup %5869  ;;  %v2830_v44 = vmul.f32 %v10234_v7, %v5868_v39 }
 0x31d   : >> { %v5872_v23 = vpop.eup %5871  ;;  %v2835_v25 = vmul.f32 %v5870_v0, %v5862_v26 }
 0x31e   : >> { %v2838_v11 = vadd.f32 %v2834_v5, %v2830_v44  ;;  %v2642_v41 = vpop.f32.mrb[40].mxu0  ;;  %v2831_v35 = vmul.f32 %v10235_v13, %v5872_v23 }
 0x31f   : >> { %v2644_v14 = vpop.f32.mrb[41].mxu0  ;;  %v5874_v23 = vpop.eup %5873 }
 0x320   : >> { %5875 = vtanh.f32 %v2838_v11  ;;  %v8712_v45 = vsel %vm2879_vm0, %v2838_v11, %v10234_v7  ;;  %v2839_v9 = vadd.f32 %v2835_v25, %v2831_v35  ;;  %v2646_v2 = vpop.f32.mrb[42].mxu0 }
 0x321   : >> { %5877 = vrcp.f32 %v2819_v54  ;;  %v2648_v6 = vpop.f32.mrb[43].mxu0  ;;  %v2695_v18 = vpop.f32.mrb[40].mxu1 }
 0x322   : >> { %5879 = vtanh.f32 %v2839_v9  ;;  %v8716_v26 = vsel %vm2880_vm1, %v2839_v9, %v10235_v13  ;;  %v2697_v28 = vpop.f32.mrb[41].mxu1 }
 0x323   : >> { %v2699_v39 = vpop.f32.mrb[42].mxu1 }
 0x324   : >> { %v2701_v0 = vpop.f32.mrb[43].mxu1 }
 0x326   : >> { %v2652_v5 = vpop.f32.mrb[44].mxu0 }
 0x327   : >> { %v2746_v7 = vadd.f32 %v6559_v63, %v2652_v5  ;;  %v2654_v44 = vpop.f32.mrb[45].mxu0 }
 0x328   : >> { %v2747_v54 = vadd.f32 %v6555_v58, %v2654_v44  ;;  %v2656_v25 = vpop.f32.mrb[46].mxu0 }
 0x329   : >> { %v4853_v11 = vmul.f32 -1.442695, %v2746_v7  ;;  %v2750_v41 = vadd.f32 %v6543_v22, %v2656_v25  ;;  %v2658_v13 = vpop.f32.mrb[47].mxu0  ;;  %v2705_v63 = vpop.f32.mrb[44].mxu1  ;;  %v10236_v22 = vld [vmem:[#allocation94_spill] sm:$0xff] }
 0x32a   : >> { %v5876_v35 = vpop.eup %5875  ;;  %v4857_v14 = vmul.f32 -1.442695, %v2747_v54  ;;  %v2751_v9 = vadd.f32 %v6539_v61, %v2658_v13  ;;  %v2707_v39 = vpop.f32.mrb[45].mxu1 }
 0x32b   : >> { %v5878_v2 = vpop.eup %5877  ;;  %v2846_v6 = vmul.f32 %v5876_v35, %v5874_v23  ;;  %5881 = vpow2.f32 %v4853_v11  ;;  %v4854_v18 = vmul.f32 -1.442695, %v2750_v41  ;;  %v2709_v0 = vpop.f32.mrb[46].mxu1  ;;  %v2749_v61 = vadd.f32 %v6547_v38, %v2707_v39 }
 0x32c   : >> { %v5880_v28 = vpop.eup %5879  ;;  %5883 = vpow2.f32 %v4857_v14  ;;  %v4858_v58 = vmul.f32 -1.442695, %v2751_v9  ;;  %v2711_v44 = vpop.f32.mrb[47].mxu1  ;;  %v2748_v38 = vadd.f32 %v6551_v31, %v2705_v63 }
 0x32d   : >> { %v2847_v5 = vmul.f32 %v5880_v28, %v5878_v2  ;;  %5885 = vpow2.f32 %v4854_v18  ;;  %v8729_v7 = vsel %vm2879_vm0, %v2846_v6, %v10236_v22  ;;  %v2891_v23 = vsel %vm2879_vm0, %v2846_v6, 0.0  ;;  %v10238_v2 = vld [vmem:[#allocation176_spill] sm:$0xff]  ;;  %v10239_v6 = vld [vmem:[#allocation181_spill] sm:$0xff] }
 0x32e   : >> { %5887 = vpow2.f32 %v4858_v58  ;;  %v2753_v11 = vadd.f32 %v6531_v47, %v2711_v44  ;;  %v4861_v35 = vmul.f32 -1.442695, %v2749_v61  ;;  %v10237_v47 = vld [vmem:[#allocation178_spill] sm:$0xff]  ;;  %v10240_v28 = vld [vmem:[#allocation177_spill] sm:$0xff] }
 0x32f   : >> { %v8737_v54 = vsel %vm2880_vm1, %v2847_v5, %v10070_v43  ;;  %v2892_v25 = vsel %vm2880_vm1, %v2847_v5, 0.0  ;;  %v2752_v43 = vadd.f32 %v6535_v62, %v2709_v0  ;;  %5889 = vtanh.f32 %v2748_v38  ;;  %v10241_v58 = vld [vmem:[#allocation182_spill] sm:$0xff]  ;;  %v10242_v5 = vld [vmem:[#allocation179_spill] sm:$0xff]  ;;  %v10243_v0 = vld [vmem:[#allocation180_spill] sm:$0xff] }
 0x330   : >> { %v4963_v41 = vpack.c.bf16 %v2892_v25, %v2891_v23  ;;  %v8743_v13 = vpack.c.bf16 %v8737_v54, %v8729_v7  ;;  %v4862_v24 = vmul.f32 -1.442695, %v2753_v11  ;;  %5891 = vpow2.f32 %v4861_v35  ;;  %v10244_v22 = vld [vmem:[#allocation185_spill] sm:$0xff]  ;;  %v10245_v23 = vld [vmem:[#allocation183_spill] sm:$0xff]  ;;  %v2875_v11 = vpop.permute.xlu1 %2874  ;;  %v10247_v38 = vld [vmem:[#allocation188_spill] sm:$0xff] }
 0x331   : >> { %5893 = vtanh.f32 %v2752_v43  ;;  %vm2881_vm2 = vcmp.eq.s32.totalorder %v2875_v11, 1  ;;  %v10266_v11 = vld [vmem:[#allocation162_spill] sm:$0xff] }
 0x332   : >> { %4964 = vst [vmem:[%s2907_s21] sm:$0xff] %v4963_v41   ;;  %2962 = vmatmul.mubr.bf16.vlgmr.msra.gmra.mrb[48].mxu0 %v8743_v13  ;;  %3015 = vmatmul.mubr.bf16.vlgmr.msra.gmra.mrb[48].mxu1 %v8743_v13  ;;  %5895 = vpow2.f32 %v4862_v24  ;;  %v10246_v41 = vld [vmem:[#allocation184_spill] sm:$0xff]  ;;  %s4890_s21 = sshll.u32 %s3338_s28, 2  ;;  %s4158_s28 = sshra.s32 %s4955_s2, 3 }
 0x333   : >> { %3036 = vmatpush1.bf16.msra.mxu0 %v8268_v33  ;;  %3089 = vmatpush1.bf16.msra.mxu1 %v8301_v55  ;;  %s3341_s5 = scalar_lea.vmem %s6997_s15, %s4890_s21  ;;  %s4926_s21 = sshll.u32 %s4158_s28, 2 }
 0x334   : >> { %3037 = vmatprep.subr.bf16.mxu0 %v8273_v21  ;;  %3090 = vmatprep.subr.bf16.mxu1 %v10237_v47  ;;  %v2878_v20 = vpop.permute.xlu1 %2877  ;;  %s10453_s28 = smov %s7902_s22 }
 0x335   : >> { %v5882_v17 = vpop.eup %5881  ;;  %2971 = vmatprep.mubr.bf16.mxu0 %v9975_v30  ;;  %3024 = vmatprep.mubr.bf16.mxu1 %v9975_v30  ;;  %vm2882_vm3 = vcmp.eq.s32.totalorder %v2878_v20, 1  ;;  %v10264_v20 = vld [vmem:[#allocation161_spill] sm:$0xff] }
 0x336   : >> { %v5884_v31 = vpop.eup %5883  ;;  %v2768_v14 = vadd.f32 1.0, %v5882_v17 }
 0x337   : >> { %v5886_v62 = vpop.eup %5885  ;;  %v2792_v9 = vadd.f32 1.0, %v5884_v31  ;;  %3038 = vmatpush1.bf16.msra.mxu0 %v10238_v2  ;;  %3091 = vmatpush1.bf16.msra.mxu1 %v10239_v6 }
 0x338   : >> { %v5888_v18 = vpop.eup %5887  ;;  %5897 = vrcp.f32 %v2768_v14  ;;  %v2769_v63 = vadd.f32 1.0, %v5886_v62  ;;  %3039 = vmatprep.subr.bf16.mxu0 %v10240_v28  ;;  %3092 = vmatprep.subr.bf16.mxu1 %v10241_v58  ;;  %v10248_v14 = vld [vmem:[#allocation186_spill] sm:$0xff]  ;;  %v10249_v62 = vld [vmem:[#allocation191_spill] sm:$0xff] }
 0x339   : >> { %5899 = vrcp.f32 %v2792_v9  ;;  %v2793_v39 = vadd.f32 1.0, %v5888_v18  ;;  %v5890_v61 = vpop.eup %5889  ;;  %v10250_v18 = vld [vmem:[#allocation99_spill] sm:$0xff] }
 0x33a   : >> { %5901 = vrcp.f32 %v2769_v63  ;;  %v5892_v44 = vpop.eup %5891 }
 0x33b   : >> { %5903 = vrcp.f32 %v2793_v39  ;;  %3040 = vmatpush1.bf16.msra.mxu0 %v10242_v5  ;;  %3093 = vmatpush1.bf16.msra.mxu1 %v8349_v46  ;;  %v5894_v25 = vpop.eup %5893  ;;  %v2820_v24 = vadd.f32 1.0, %v5892_v44  ;;  %v10251_v39 = vld [vmem:[#allocation187_spill] sm:$0xff] }
 0x33c   : >> { %3041 = vmatprep.subr.bf16.mxu0 %v10243_v0  ;;  %3094 = vmatprep.subr.bf16.mxu1 %v10244_v22  ;;  %v5896_v35 = vpop.eup %5895 }
 0x33d   : >> { %v2821_v53 = vadd.f32 1.0, %v5896_v35  ;;  %5905 = vrcp.f32 %v2820_v24  ;;  %v10260_v35 = vld [vmem:[#allocation195_spill] sm:$0xff] }
 0x33f   : >> { %3042 = vmatpush1.bf16.msra.mxu0 %v10245_v23  ;;  %3095 = vmatpush1.bf16.msra.mxu1 %v8370_v60 }
 0x340   : >> { %3043 = vmatprep.subr.bf16.mxu0 %v10246_v41  ;;  %3096 = vmatprep.subr.bf16.mxu1 %v10247_v38 }
 0x342   : >> { %v5898_v43 = vpop.eup %5897 }
 0x343   : >> { %v5900_v17 = vpop.eup %5899  ;;  %v2836_v31 = vmul.f32 %v5898_v43, %v5890_v61  ;;  %3044 = vmatpush1.bf16.msra.mxu0 %v10248_v14  ;;  %3097 = vmatpush1.bf16.msra.mxu1 %v10249_v62  ;;  %v10253_v61 = vld [vmem:[#allocation101_spill] sm:$0xff] }
 0x344   : >> { %v5902_v9 = vpop.eup %5901  ;;  %v2832_v63 = vmul.f32 %v10250_v18, %v5900_v17  ;;  %3045 = vmatprep.subr.bf16.mxu0 %v10251_v39  ;;  %3098 = vmatprep.subr.bf16.mxu1 %v10252_v32 }
 0x345   : >> { %v5904_v42 = vpop.eup %5903  ;;  %v2837_v57 = vmul.f32 %v5902_v9, %v5894_v25  ;;  %v10258_v25 = vld [vmem:[#allocation193_spill] sm:$0xff] }
 0x346   : >> { %v2840_v44 = vadd.f32 %v2836_v31, %v2832_v63  ;;  %v2833_v43 = vmul.f32 %v10253_v61, %v5904_v42  ;;  %v10261_v63 = vld [vmem:[#allocation95_spill] sm:$0xff] }
 0x347   : >> { %3046 = vmatpush1.bf16.msra.mxu0 %v10254_v52  ;;  %3099 = vmatpush1.bf16.msra.mxu1 %v8414_v40 }
 0x348   : >> { %5907 = vtanh.f32 %v2840_v44  ;;  %v8777_v17 = vsel %vm2881_vm2, %v2840_v44, %v10250_v18  ;;  %v2841_v10 = vadd.f32 %v2837_v57, %v2833_v43  ;;  %3047 = vmatprep.subr.bf16.mxu0 %v10256_v37  ;;  %3100 = vmatprep.subr.bf16.mxu1 %v8420_v51  ;;  %v10259_v57 = vld [vmem:[#allocation194_spill] sm:$0xff]  ;;  %v10262_v43 = vld [vmem:[#allocation97_spill] sm:$0xff] }
 0x349   : >> { %10255 = vst [vmem:[#allocation101_spill] sm:$0xff] %v8777_v17  ;;  %5909 = vrcp.f32 %v2821_v53  ;;  %v5906_v53 = vpop.eup %5905 }
 0x34a   : >> { %5911 = vtanh.f32 %v2841_v10  ;;  %v8783_v42 = vsel %vm2882_vm3, %v2841_v10, %v10253_v61 }
 0x34b   : >> { %10257 = vst [vmem:[#allocation99_spill] sm:$0xff] %v8783_v42  ;;  %3048 = vmatpush1.bf16.msra.mxu0 %v8401_v3  ;;  %3101 = vmatpush1.bf16.msra.mxu1 %v8435_v34 }
 0x34c   : >> { %3049 = vmatprep.subr.bf16.mxu0 %v10258_v25  ;;  %3102 = vmatprep.subr.bf16.mxu1 %v8440_v50 }
 0x34f   : >> { %3050 = vmatpush1.bf16.msra.mxu0 %v10259_v57  ;;  %3103 = vmatpush1.bf16.msra.mxu1 %v10260_v35 }
 0x350   : >> { %3347 = vmatprep.subr.bf16.mxu0 %v8095_v16  ;;  %3400 = vmatprep.subr.bf16.mxu1 %v8110_v12 }
 0x352   : >> { %v5908_v10 = vpop.eup %5907 }
 0x353   : >> { %v5910_v24 = vpop.eup %5909  ;;  %v2848_v31 = vmul.f32 %v5908_v10, %v5906_v53  ;;  %v10268_v10 = vld [vmem:[#allocation165_spill] sm:$0xff] }
 0x354   : >> { %v5912_v9 = vpop.eup %5911 }
 0x355   : >> { %v2849_v18 = vmul.f32 %v5912_v9, %v5910_v24  ;;  %v8796_v44 = vsel %vm2881_vm2, %v2848_v31, %v10261_v63  ;;  %v2893_v61 = vsel %vm2881_vm2, %v2848_v31, 0.0  ;;  %v10269_v24 = vld [vmem:[#allocation160_spill] sm:$0xff]  ;;  %v10270_v31 = vld [vmem:[#allocation166_spill] sm:$0xff]  ;;  %v10271_v9 = vld [vmem:[#allocation163_spill] sm:$0xff] }
 0x356   : >> { %v10273_v63 = vld [vmem:[#allocation164_spill] sm:$0xff] }
 0x357   : >> { %v8802_v42 = vsel %vm2882_vm3, %v2849_v18, %v10262_v43  ;;  %v2894_v17 = vsel %vm2882_vm3, %v2849_v18, 0.0  ;;  %v10272_v18 = vld [vmem:[#allocation169_spill] sm:$0xff]  ;;  %v10275_v43 = vld [vmem:[#allocation167_spill] sm:$0xff] }
 0x358   : >> { %v4968_v12 = vpack.c.bf16 %v2894_v17, %v2893_v61  ;;  %v2928_v53 = vpack.c.bf16 %v8802_v42, %v8796_v44  ;;  %v10267_v17 = vld [vmem:[#allocation159_spill] sm:$0xff]  ;;  %v10274_v61 = vld [vmem:[#allocation170_spill] sm:$0xff] }
 0x35a   : >> { %4969 = vst [vmem:[%s2923_s30] sm:$0xff] %v4968_v12   ;;  %2972 = vmatmul.mubr.bf16.gmra.mrb[52].mxu0 %v2928_v53  ;;  %3025 = vmatmul.mubr.bf16.gmra.mrb[52].mxu1 %v2928_v53  ;;  %v10263_v12 = vld [vmem:[#allocation158_spill] sm:$0xff]  ;;  %s3743_s30 = scalar_lea.vmem %s6992_s12, %s4906_s16  ;;  %s4930_s16 = sshll.u32 %s4174_s14, 2 }
 0x35b   : >> { %3067 = vmatprep.mubr.bf16.mxu0 %v9975_v30  ;;  %3120 = vmatprep.mubr.bf16.mxu1 %v9975_v30  ;;  %s4177_s19 = scalar_lea.vmem %s6997_s15, %s4930_s16 }
 0x362   : >> { %3068 = vmatmul.mubr.bf16.vlgmr.msra.gmra.mrb[56].mxu0 %v8743_v13  ;;  %3121 = vmatmul.mubr.bf16.vlgmr.msra.gmra.mrb[56].mxu1 %v8743_v13  ;;  %v10265_v13 = vld [vmem:[#allocation156_spill] sm:$0xff] }
 0x363   : >> { %3077 = vmatprep.mubr.bf16.mxu0 %v9975_v30  ;;  %3130 = vmatprep.mubr.bf16.mxu1 %v9975_v30 }
 0x364   : >> { %3348 = vmatpush1.bf16.msra.mxu0 %v8100_v59  ;;  %3401 = vmatpush1.bf16.msra.mxu1 %v8125_v56 }
 0x365   : >> { %3349 = vmatprep.subr.bf16.mxu0 %v8105_v1  ;;  %3402 = vmatprep.subr.bf16.mxu1 %v8130_v27  ;;  %v10290_v27 = vld [vmem:[#allocation152_spill] sm:$0xff] }
 0x368   : >> { %3350 = vmatpush1.bf16.msra.mxu0 %v8115_v29  ;;  %3403 = vmatpush1.bf16.msra.mxu1 %v8146_v49  ;;  %v10287_v49 = vld [vmem:[#allocation110_spill] sm:$0xff]  ;;  %v10289_v29 = vld [vmem:[#allocation151_spill] sm:$0xff] }
 0x369   : >> { %3351 = vmatprep.subr.bf16.mxu0 %v8121_v8  ;;  %3404 = vmatprep.subr.bf16.mxu1 %v8152_v19  ;;  %v10286_v19 = vld [vmem:[#allocation153_spill] sm:$0xff] }
 0x36a   : >> { %3078 = vmatmul.mubr.bf16.gmra.mrb[60].mxu0 %v2928_v53  ;;  %3131 = vmatmul.mubr.bf16.gmra.mrb[60].mxu1 %v2928_v53  ;;  %v10276_v53 = vld [vmem:[#allocation173_spill] sm:$0xff] }
 0x36b   : >> { %3379 = vmatprep.mubr.bf16.mxu0 %v9975_v30  ;;  %3432 = vmatprep.mubr.bf16.mxu1 %v9975_v30 }
 0x36c   : >> { %3352 = vmatpush1.bf16.msra.mxu0 %v10146_v15  ;;  %3405 = vmatpush1.bf16.msra.mxu1 %v8168_v36 }
 0x36d   : >> { %3353 = vmatprep.subr.bf16.mxu0 %v8141_v4  ;;  %3406 = vmatprep.subr.bf16.mxu1 %v10263_v12 }
 0x370   : >> { %3354 = vmatpush1.bf16.msra.mxu0 %v8157_v48  ;;  %3407 = vmatpush1.bf16.msra.mxu1 %v10264_v20  ;;  %v10284_v48 = vld [vmem:[#allocation104_spill] sm:$0xff] }
 0x371   : >> { %3355 = vmatprep.subr.bf16.mxu0 %v10265_v13  ;;  %3408 = vmatprep.subr.bf16.mxu1 %v10266_v11  ;;  %v10277_v11 = vld [vmem:[#allocation168_spill] sm:$0xff] }
 0x372   : >> { %v10283_v13 = vld [vmem:[#allocation102_spill] sm:$0xff] }
 0x374   : >> { %3356 = vmatpush1.bf16.msra.mxu0 %v10267_v17  ;;  %3409 = vmatpush1.bf16.msra.mxu1 %v10268_v10  ;;  %v10278_v17 = vld [vmem:[#allocation174_spill] sm:$0xff]  ;;  %v10279_v10 = vld [vmem:[#allocation171_spill] sm:$0xff] }
 0x375   : >> { %3357 = vmatprep.subr.bf16.mxu0 %v10269_v24  ;;  %3410 = vmatprep.subr.bf16.mxu1 %v10270_v31  ;;  %v10280_v24 = vld [vmem:[#allocation96_spill] sm:$0xff]  ;;  %v10281_v31 = vld [vmem:[#allocation172_spill] sm:$0xff] }
 0x378   : >> { %3358 = vmatpush1.bf16.msra.mxu0 %v10271_v9  ;;  %3411 = vmatpush1.bf16.msra.mxu1 %v10272_v18  ;;  %v10282_v9 = vld [vmem:[#allocation175_spill] sm:$0xff] }
 0x379   : >> { %3359 = vmatprep.subr.bf16.mxu0 %v10273_v63  ;;  %3412 = vmatprep.subr.bf16.mxu1 %v10274_v61 }
 0x37c   : >> { %3360 = vmatpush1.bf16.msra.mxu0 %v10275_v43  ;;  %3413 = vmatpush1.bf16.msra.mxu1 %v10276_v53 }
 0x37d   : >> { %3361 = vmatprep.subr.bf16.mxu0 %v10277_v11  ;;  %3414 = vmatprep.subr.bf16.mxu1 %v10278_v17  ;;  %v10285_v17 = vld [vmem:[#allocation109_spill] sm:$0xff] }
 0x380   : >> { %3362 = vmatpush1.bf16.msra.mxu0 %v10279_v10  ;;  %3415 = vmatpush1.bf16.msra.mxu1 %v10280_v24 }
 0x381   : >> { %3453 = vmatprep.subr.bf16.mxu0 %v10281_v31  ;;  %3506 = vmatprep.subr.bf16.mxu1 %v10282_v9 }
 0x405   : >> { %v2963_v18 = vpop.f32.mrb[48].mxu0  ;;  %v3016_v63 = vpop.f32.mrb[48].mxu1 }
 0x406   : >> { %v3157_v61 = vadd.f32 %v10283_v13, %v2963_v18  ;;  %v2965_v20 = vpop.f32.mrb[49].mxu0  ;;  %v3018_v43 = vpop.f32.mrb[49].mxu1  ;;  %v10288_v18 = vld [vmem:[#allocation103_spill] sm:$0xff] }
 0x407   : >> { %v3158_v53 = vadd.f32 %v10284_v48, %v2965_v20  ;;  %v2967_v12 = vpop.f32.mrb[50].mxu0  ;;  %v3020_v11 = vpop.f32.mrb[50].mxu1  ;;  %v3160_v13 = vadd.f32 %v10287_v49, %v3018_v43  ;;  %v3159_v48 = vadd.f32 %v10288_v18, %v3016_v63 }
 0x408   : >> { %v4871_v4 = vmul.f32 -1.442695, %v3157_v61  ;;  %v3161_v36 = vadd.f32 %v10285_v17, %v2967_v12  ;;  %v2969_v10 = vpop.f32.mrb[51].mxu0  ;;  %v3022_v15 = vpop.f32.mrb[51].mxu1  ;;  %v3163_v12 = vadd.f32 %v10290_v27, %v3020_v11 }
 0x409   : >> { %v4875_v24 = vmul.f32 -1.442695, %v3158_v53  ;;  %v3162_v31 = vadd.f32 %v10286_v19, %v2969_v10  ;;  %v4879_v20 = vmul.f32 -1.442695, %v3160_v13  ;;  %v3164_v61 = vadd.f32 %v10289_v29, %v3022_v15  ;;  %v3287_v18 = vpop.permute.xlu0 %3286 }
 0x40a   : >> { %5913 = vpow2.f32 %v4871_v4  ;;  %v4872_v9 = vmul.f32 -1.442695, %v3161_v36  ;;  %vm3297_vm4 = vcmp.eq.s32.totalorder %v3287_v18, 1 }
 0x40b   : >> { %5915 = vpow2.f32 %v4875_v24  ;;  %v4876_v8 = vmul.f32 -1.442695, %v3162_v31  ;;  %v4880_v4 = vmul.f32 -1.442695, %v3164_v61 }
 0x40c   : >> { %5917 = vpow2.f32 %v4872_v9 }
 0x40d   : >> { %5919 = vpow2.f32 %v4876_v8 }
 0x40e   : >> { %5921 = vtanh.f32 %v3159_v48 }
 0x40f   : >> { %5923 = vpow2.f32 %v4879_v20 }
 0x410   : >> { %5925 = vtanh.f32 %v3163_v12 }
 0x414   : >> { %v5914_v17 = vpop.eup %5913 }
 0x415   : >> { %v5916_v53 = vpop.eup %5915  ;;  %v3185_v1 = vadd.f32 1.0, %v5914_v17 }
 0x416   : >> { %v3209_v19 = vadd.f32 1.0, %v5916_v53  ;;  %v5918_v36 = vpop.eup %5917  ;;  %v3290_v53 = vpop.permute.xlu1 %3289 }
 0x417   : >> { %5927 = vrcp.f32 %v3185_v1  ;;  %v3186_v49 = vadd.f32 1.0, %v5918_v36  ;;  %v5920_v8 = vpop.eup %5919  ;;  %vm3298_vm5 = vcmp.eq.s32.totalorder %v3290_v53, 1 }
 0x418   : >> { %5929 = vrcp.f32 %v3209_v19  ;;  %v3210_v10 = vadd.f32 1.0, %v5920_v8  ;;  %v5922_v29 = vpop.eup %5921 }
 0x419   : >> { %5931 = vpow2.f32 %v4880_v4  ;;  %v5924_v15 = vpop.eup %5923 }
 0x41a   : >> { %5933 = vrcp.f32 %v3186_v49  ;;  %v5926_v27 = vpop.eup %5925  ;;  %v3237_v9 = vadd.f32 1.0, %v5924_v15 }
 0x41b   : >> { %5935 = vrcp.f32 %v3210_v10 }
 0x41c   : >> { %5937 = vrcp.f32 %v3237_v9 }
 0x421   : >> { %v5928_v11 = vpop.eup %5927 }
 0x422   : >> { %v5930_v24 = vpop.eup %5929  ;;  %v3253_v31 = vmul.f32 %v5928_v11, %v5922_v29 }
 0x423   : >> { %v5932_v63 = vpop.eup %5931  ;;  %v3249_v43 = vmul.f32 %v5930_v24, %v8712_v45 }
 0x424   : >> { %v5934_v13 = vpop.eup %5933  ;;  %v3238_v61 = vadd.f32 1.0, %v5932_v63 }
 0x425   : >> { %v3257_v1 = vadd.f32 %v3253_v31, %v3249_v43  ;;  %v3254_v48 = vmul.f32 %v5934_v13, %v5926_v27  ;;  %v5936_v20 = vpop.eup %5935 }
 0x426   : >> { %v3250_v12 = vmul.f32 %v5936_v20, %v8716_v26  ;;  %v5938_v27 = vpop.eup %5937 }
 0x427   : >> { %5939 = vtanh.f32 %v3257_v1  ;;  %v8859_v17 = vsel %vm3297_vm4, %v3257_v1, %v8712_v45 }
 0x428   : >> { %v3258_v4 = vadd.f32 %v3254_v48, %v3250_v12  ;;  %5941 = vrcp.f32 %v3238_v61 }
 0x42a   : >> { %5943 = vtanh.f32 %v3258_v4  ;;  %v8863_v19 = vsel %vm3298_vm5, %v3258_v4, %v8716_v26 }
 0x42d   : >> { %v2973_v36 = vpop.f32.mrb[52].mxu0  ;;  %v3026_v49 = vpop.f32.mrb[52].mxu1 }
 0x42e   : >> { %v2975_v8 = vpop.f32.mrb[53].mxu0  ;;  %v3028_v10 = vpop.f32.mrb[53].mxu1 }
 0x42f   : >> { %v2977_v29 = vpop.f32.mrb[54].mxu0  ;;  %v3030_v15 = vpop.f32.mrb[54].mxu1 }
 0x430   : >> { %v2979_v45 = vpop.f32.mrb[55].mxu0  ;;  %v3032_v11 = vpop.f32.mrb[55].mxu1 }
 0x431   : >> { %v5940_v24 = vpop.eup %5939  ;;  %v10292_v11 = vld [vmem:[#allocation117_spill] sm:$0xff] }
 0x432   : >> { %v3265_v31 = vmul.f32 %v5940_v24, %v5938_v27  ;;  %v5942_v9 = vpop.eup %5941 }
 0x434   : >> { %v5944_v63 = vpop.eup %5943  ;;  %v3309_v12 = vsel %vm3297_vm4, %v3265_v31, 0.0  ;;  %v8871_v8 = vsel %vm3297_vm4, %v3265_v31, %v8729_v7 }
 0x435   : >> { %v3069_v43 = vpop.f32.mrb[56].mxu0  ;;  %v3122_v26 = vpop.f32.mrb[56].mxu1  ;;  %v3266_v13 = vmul.f32 %v5944_v63, %v5942_v9 }
 0x436   : >> { %v3071_v1 = vpop.f32.mrb[57].mxu0  ;;  %v3124_v48 = vpop.f32.mrb[57].mxu1  ;;  %v10293_v43 = vld [vmem:[#allocation114_spill] sm:$0xff] }
 0x437   : >> { %v3073_v20 = vpop.f32.mrb[58].mxu0  ;;  %v3126_v61 = vpop.f32.mrb[58].mxu1  ;;  %v3310_v4 = vsel %vm3298_vm5, %v3266_v13, 0.0  ;;  %v8875_v10 = vsel %vm3298_vm5, %v3266_v13, %v8737_v54  ;;  %v10291_v54 = vld [vmem:[#allocation118_spill] sm:$0xff] }
 0x438   : >> { %v3075_v36 = vpop.f32.mrb[59].mxu0  ;;  %v3128_v49 = vpop.f32.mrb[59].mxu1  ;;  %v4973_v29 = vpack.c.bf16 %v3310_v4, %v3309_v12  ;;  %v8879_v15 = vpack.c.bf16 %v8875_v10, %v8871_v8  ;;  %v10294_v20 = vld [vmem:[#allocation113_spill] sm:$0xff] }
 0x439   : >> { %v10295_v36 = vld [vmem:[#allocation115_spill] sm:$0xff] }
 0x43a   : >> { %4974 = vst [vmem:[%s3325_s13] sm:$0xff] %v4973_v29   ;;  %3380 = vmatmul.mubr.bf16.vlgmr.msra.gmra.mrb[64].mxu0 %v8879_v15  ;;  %3433 = vmatmul.mubr.bf16.vlgmr.msra.gmra.mrb[64].mxu1 %v8879_v15  ;;  %v10296_v29 = vld [vmem:[#allocation116_spill] sm:$0xff]  ;;  %s4910_s13 = sshll.u32 %s3756_s18, 2 }
 0x43b   : >> { %3454 = vmatpush1.bf16.msra.mxu0 %v8268_v33  ;;  %3507 = vmatpush1.bf16.msra.mxu1 %v8301_v55  ;;  %s3759_s27 = scalar_lea.vmem %s6997_s15, %s4910_s13 }
 0x43c   : >> { %3455 = vmatprep.subr.bf16.mxu0 %v8273_v21  ;;  %3508 = vmatprep.subr.bf16.mxu1 %v10237_v47 }
 0x43d   : >> { %v3079_v7 = vpop.f32.mrb[60].mxu0  ;;  %v3132_v18 = vpop.f32.mrb[60].mxu1  ;;  %3389 = vmatprep.mubr.bf16.mxu0 %v9975_v30  ;;  %3442 = vmatprep.mubr.bf16.mxu1 %v9975_v30 }
 0x43e   : >> { %v3165_v53 = vadd.f32 %v10291_v54, %v3079_v7  ;;  %v3081_v27 = vpop.f32.mrb[61].mxu0  ;;  %v3134_v45 = vpop.f32.mrb[61].mxu1  ;;  %v3167_v7 = vadd.f32 %v10296_v29, %v3132_v18 }
 0x43f   : >> { %v3166_v24 = vadd.f32 %v10292_v11, %v3081_v27  ;;  %v3083_v31 = vpop.f32.mrb[62].mxu0  ;;  %v3136_v9 = vpop.f32.mrb[62].mxu1  ;;  %3456 = vmatpush1.bf16.msra.mxu0 %v10238_v2  ;;  %3509 = vmatpush1.bf16.msra.mxu1 %v10239_v6  ;;  %v3168_v49 = vadd.f32 %v10295_v36, %v3134_v45  ;;  %v10298_v45 = vld [vmem:[#allocation112_spill] sm:$0xff] }
 0x440   : >> { %v4873_v63 = vmul.f32 -1.442695, %v3165_v53  ;;  %v3169_v26 = vadd.f32 %v10293_v43, %v3083_v31  ;;  %v3085_v13 = vpop.f32.mrb[63].mxu0  ;;  %v3138_v1 = vpop.f32.mrb[63].mxu1  ;;  %3457 = vmatprep.subr.bf16.mxu0 %v10240_v28  ;;  %3510 = vmatprep.subr.bf16.mxu1 %v10241_v58  ;;  %v10297_v53 = vld [vmem:[#allocation111_spill] sm:$0xff]  ;;  %v3171_v11 = vadd.f32 %v10298_v45, %v3136_v9 }
 0x441   : >> { %v4877_v48 = vmul.f32 -1.442695, %v3166_v24  ;;  %v3170_v61 = vadd.f32 %v10294_v20, %v3085_v13  ;;  %v4881_v54 = vmul.f32 -1.442695, %v3168_v49  ;;  %v3172_v27 = vadd.f32 %v10297_v53, %v3138_v1  ;;  %v3293_v45 = vpop.permute.xlu0 %3292 }
 0x442   : >> { %5945 = vpow2.f32 %v4873_v63  ;;  %v4874_v12 = vmul.f32 -1.442695, %v3169_v26  ;;  %vm3299_vm6 = vcmp.eq.s32.totalorder %v3293_v45, 1  ;;  %v10305_v45 = vld [vmem:[#allocation82_spill] sm:$0xff] }
 0x443   : >> { %5947 = vpow2.f32 %v4877_v48  ;;  %v4878_v4 = vmul.f32 -1.442695, %v3170_v61  ;;  %3458 = vmatpush1.bf16.msra.mxu0 %v10242_v5  ;;  %3511 = vmatpush1.bf16.msra.mxu1 %v8349_v46  ;;  %v4882_v63 = vmul.f32 -1.442695, %v3172_v27 }
 0x444   : >> { %5949 = vpow2.f32 %v4874_v12  ;;  %3459 = vmatprep.subr.bf16.mxu0 %v10243_v0  ;;  %3512 = vmatprep.subr.bf16.mxu1 %v10244_v22 }
 0x445   : >> { %5951 = vpow2.f32 %v4878_v4  ;;  %v10299_v4 = vld [vmem:[#allocation88_spill] sm:$0xff] }
 0x446   : >> { %5953 = vtanh.f32 %v3167_v7 }
 0x447   : >> { %3460 = vmatpush1.bf16.msra.mxu0 %v10245_v23  ;;  %3513 = vmatpush1.bf16.msra.mxu1 %v8370_v60  ;;  %5955 = vpow2.f32 %v4881_v54  ;;  %v10300_v54 = vld [vmem:[#allocation101_spill] sm:$0xff] }
 0x448   : >> { %3461 = vmatprep.subr.bf16.mxu0 %v10246_v41  ;;  %3514 = vmatprep.subr.bf16.mxu1 %v10247_v38  ;;  %5957 = vtanh.f32 %v3171_v11 }
 0x44b   : >> { %3462 = vmatpush1.bf16.msra.mxu0 %v10248_v14  ;;  %3515 = vmatpush1.bf16.msra.mxu1 %v10249_v62 }
 0x44c   : >> { %v5946_v24 = vpop.eup %5945  ;;  %3463 = vmatprep.subr.bf16.mxu0 %v10251_v39  ;;  %3516 = vmatprep.subr.bf16.mxu1 %v10252_v32 }
 0x44d   : >> { %v5948_v18 = vpop.eup %5947  ;;  %v3187_v31 = vadd.f32 1.0, %v5946_v24 }
 0x44e   : >> { %v3211_v43 = vadd.f32 1.0, %v5948_v18  ;;  %v5950_v26 = vpop.eup %5949 }
 0x44f   : >> { %5959 = vrcp.f32 %v3187_v31  ;;  %v3188_v9 = vadd.f32 1.0, %v5950_v26  ;;  %3464 = vmatpush1.bf16.msra.mxu0 %v10254_v52  ;;  %3517 = vmatpush1.bf16.msra.mxu1 %v8414_v40  ;;  %v5952_v13 = vpop.eup %5951  ;;  %v3296_v26 = vpop.permute.xlu1 %3295 }
 0x450   : >> { %5961 = vrcp.f32 %v3211_v43  ;;  %3465 = vmatprep.subr.bf16.mxu0 %v10256_v37  ;;  %3518 = vmatprep.subr.bf16.mxu1 %v8420_v51  ;;  %v3212_v1 = vadd.f32 1.0, %v5952_v13  ;;  %v5954_v48 = vpop.eup %5953  ;;  %vm3300_vm7 = vcmp.eq.s32.totalorder %v3296_v26, 1  ;;  %v10315_v26 = vld [vmem:[#allocation162_spill] sm:$0xff] }
 0x451   : >> { %5963 = vpow2.f32 %v4882_v63  ;;  %v5956_v20 = vpop.eup %5955  ;;  %v10301_v63 = vld [vmem:[#allocation99_spill] sm:$0xff] }
 0x452   : >> { %5965 = vrcp.f32 %v3188_v9  ;;  %v5958_v61 = vpop.eup %5957  ;;  %v3239_v29 = vadd.f32 1.0, %v5956_v20 }
 0x453   : >> { %5967 = vrcp.f32 %v3212_v1  ;;  %3466 = vmatpush1.bf16.msra.mxu0 %v8401_v3  ;;  %3519 = vmatpush1.bf16.msra.mxu1 %v8435_v34 }
 0x454   : >> { %3467 = vmatprep.subr.bf16.mxu0 %v10258_v25  ;;  %3520 = vmatprep.subr.bf16.mxu1 %v8440_v50  ;;  %5969 = vrcp.f32 %v3239_v29 }
 0x457   : >> { %3468 = vmatpush1.bf16.msra.mxu0 %v10259_v57  ;;  %3521 = vmatpush1.bf16.msra.mxu1 %v10260_v35 }
 0x458   : >> { %3765 = vmatprep.subr.bf16.mxu0 %v8095_v16  ;;  %3818 = vmatprep.subr.bf16.mxu1 %v10299_v4 }
 0x459   : >> { %v5960_v12 = vpop.eup %5959 }
 0x45a   : >> { %v5962_v36 = vpop.eup %5961  ;;  %v3255_v49 = vmul.f32 %v5960_v12, %v5954_v48 }
 0x45b   : >> { %v5964_v7 = vpop.eup %5963  ;;  %v3251_v53 = vmul.f32 %v5962_v36, %v10300_v54 }
 0x45c   : >> { %v5966_v27 = vpop.eup %5965  ;;  %v3240_v31 = vadd.f32 1.0, %v5964_v7 }
 0x45d   : >> { %v3259_v11 = vadd.f32 %v3255_v49, %v3251_v53  ;;  %v3256_v24 = vmul.f32 %v5966_v27, %v5958_v61  ;;  %v5968_v18 = vpop.eup %5967  ;;  %v10304_v27 = vld [vmem:[#allocation87_spill] sm:$0xff] }
 0x45e   : >> { %v3252_v16 = vmul.f32 %v5968_v18, %v10301_v63  ;;  %v5970_v1 = vpop.eup %5969  ;;  %v10311_v18 = vld [vmem:[#allocation158_spill] sm:$0xff] }
 0x45f   : >> { %5971 = vtanh.f32 %v3259_v11  ;;  %v8929_v43 = vsel %vm3299_vm6, %v3259_v11, %v10300_v54  ;;  %v10306_v11 = vld [vmem:[#allocation86_spill] sm:$0xff] }
 0x460   : >> { %v3260_v9 = vadd.f32 %v3256_v24, %v3252_v16  ;;  %5973 = vrcp.f32 %v3240_v31  ;;  %v10307_v24 = vld [vmem:[#allocation154_spill] sm:$0xff]  ;;  %v10312_v31 = vld [vmem:[#allocation155_spill] sm:$0xff]  ;;  %v10314_v16 = vld [vmem:[#allocation156_spill] sm:$0xff] }
 0x462   : >> { %5975 = vtanh.f32 %v3260_v9  ;;  %v8933_v13 = vsel %vm3300_vm7, %v3260_v9, %v10301_v63  ;;  %v10313_v63 = vld [vmem:[#allocation161_spill] sm:$0xff]  ;;  %v10316_v9 = vld [vmem:[#allocation159_spill] sm:$0xff] }
 0x469   : >> { %v5972_v48 = vpop.eup %5971 }
 0x46a   : >> { %v3267_v20 = vmul.f32 %v5972_v48, %v5970_v1  ;;  %v5974_v61 = vpop.eup %5973  ;;  %v10317_v1 = vld [vmem:[#allocation165_spill] sm:$0xff]  ;;  %v10318_v48 = vld [vmem:[#allocation160_spill] sm:$0xff] }
 0x46c   : >> { %v5976_v12 = vpop.eup %5975  ;;  %v8938_v36 = vsel %vm3299_vm6, %v3267_v20, %v8796_v44  ;;  %v3311_v29 = vsel %vm3299_vm6, %v3267_v20, 0.0  ;;  %v10303_v44 = vld [vmem:[#allocation85_spill] sm:$0xff]  ;;  %v10319_v20 = vld [vmem:[#allocation166_spill] sm:$0xff] }
 0x46d   : >> { %v3268_v4 = vmul.f32 %v5976_v12, %v5974_v61  ;;  %v10320_v61 = vld [vmem:[#allocation163_spill] sm:$0xff]  ;;  %v10321_v12 = vld [vmem:[#allocation169_spill] sm:$0xff] }
 0x46f   : >> { %v8942_v49 = vsel %vm3300_vm7, %v3268_v4, %v8802_v42  ;;  %v3312_v7 = vsel %vm3300_vm7, %v3268_v4, 0.0  ;;  %v10302_v42 = vld [vmem:[#allocation89_spill] sm:$0xff]  ;;  %v10322_v4 = vld [vmem:[#allocation164_spill] sm:$0xff] }
 0x470   : >> { %v4978_v54 = vpack.c.bf16 %v3312_v7, %v3311_v29  ;;  %v3346_v53 = vpack.c.bf16 %v8942_v49, %v8938_v36  ;;  %v10323_v29 = vld [vmem:[#allocation170_spill] sm:$0xff]  ;;  %v10324_v7 = vld [vmem:[#allocation167_spill] sm:$0xff] }
 0x472   : >> { %4979 = vst [vmem:[%s3341_s5] sm:$0xff] %v4978_v54   ;;  %3390 = vmatmul.mubr.bf16.gmra.mrb[68].mxu0 %v3346_v53  ;;  %3443 = vmatmul.mubr.bf16.gmra.mrb[68].mxu1 %v3346_v53  ;;  %v10325_v54 = vld [vmem:[#allocation173_spill] sm:$0xff]  ;;  %s4161_s5 = scalar_lea.vmem %s6992_s12, %s4926_s21 }
 0x473   : >> { %3485 = vmatprep.mubr.bf16.mxu0 %v9975_v30  ;;  %3538 = vmatprep.mubr.bf16.mxu1 %v9975_v30 }
 0x47a   : >> { %3486 = vmatmul.mubr.bf16.vlgmr.msra.gmra.mrb[72].mxu0 %v8879_v15  ;;  %3539 = vmatmul.mubr.bf16.vlgmr.msra.gmra.mrb[72].mxu1 %v8879_v15  ;;  %v10310_v15 = vld [vmem:[#allocation83_spill] sm:$0xff] }
 0x47b   : >> { %3495 = vmatprep.mubr.bf16.mxu0 %v9975_v30  ;;  %3548 = vmatprep.mubr.bf16.mxu1 %v9975_v30 }
 0x47c   : >> { %3766 = vmatpush1.bf16.msra.mxu0 %v8100_v59  ;;  %3819 = vmatpush1.bf16.msra.mxu1 %v8125_v56  ;;  %v10308_v59 = vld [vmem:[#allocation84_spill] sm:$0xff]  ;;  %v10309_v56 = vld [vmem:[#allocation157_spill] sm:$0xff] }
 0x47d   : >> { %3767 = vmatprep.subr.bf16.mxu0 %v10302_v42  ;;  %3820 = vmatprep.subr.bf16.mxu1 %v10303_v44  ;;  %v10327_v42 = vld [vmem:[#allocation174_spill] sm:$0xff]  ;;  %v10328_v44 = vld [vmem:[#allocation171_spill] sm:$0xff] }
 0x480   : >> { %3768 = vmatpush1.bf16.msra.mxu0 %v10304_v27  ;;  %3821 = vmatpush1.bf16.msra.mxu1 %v10305_v45  ;;  %v10329_v27 = vld [vmem:[#allocation96_spill] sm:$0xff]  ;;  %v10330_v45 = vld [vmem:[#allocation172_spill] sm:$0xff] }
 0x481   : >> { %3769 = vmatprep.subr.bf16.mxu0 %v10306_v11  ;;  %3822 = vmatprep.subr.bf16.mxu1 %v10307_v24  ;;  %v10331_v11 = vld [vmem:[#allocation175_spill] sm:$0xff] }
 0x482   : >> { %3496 = vmatmul.mubr.bf16.gmra.mrb[76].mxu0 %v3346_v53  ;;  %3549 = vmatmul.mubr.bf16.gmra.mrb[76].mxu1 %v3346_v53  ;;  %v10326_v53 = vld [vmem:[#allocation168_spill] sm:$0xff] }
 0x483   : >> { %3797 = vmatprep.mubr.bf16.mxu0 %v9975_v30  ;;  %3850 = vmatprep.mubr.bf16.mxu1 %v9975_v30 }
 0x484   : >> { %3770 = vmatpush1.bf16.msra.mxu0 %v10308_v59  ;;  %3823 = vmatpush1.bf16.msra.mxu1 %v10309_v56  ;;  %v10332_v56 = vld [vmem:[#allocation150_spill] sm:$0xff] }
 0x485   : >> { %3771 = vmatprep.subr.bf16.mxu0 %v10310_v15  ;;  %3824 = vmatprep.subr.bf16.mxu1 %v10311_v18 }
 0x488   : >> { %3772 = vmatpush1.bf16.msra.mxu0 %v10312_v31  ;;  %3825 = vmatpush1.bf16.msra.mxu1 %v10313_v63  ;;  %v10333_v63 = vld [vmem:[#allocation149_spill] sm:$0xff] }
 0x489   : >> { %3773 = vmatprep.subr.bf16.mxu0 %v10314_v16  ;;  %3826 = vmatprep.subr.bf16.mxu1 %v10315_v26 }
 0x48c   : >> { %3774 = vmatpush1.bf16.msra.mxu0 %v10316_v9  ;;  %3827 = vmatpush1.bf16.msra.mxu1 %v10317_v1 }
 0x48d   : >> { %3775 = vmatprep.subr.bf16.mxu0 %v10318_v48  ;;  %3828 = vmatprep.subr.bf16.mxu1 %v10319_v20  ;;  %v10334_v48 = vld [vmem:[#allocation146_spill] sm:$0xff] }
 0x490   : >> { %3776 = vmatpush1.bf16.msra.mxu0 %v10320_v61  ;;  %3829 = vmatpush1.bf16.msra.mxu1 %v10321_v12 }
 0x491   : >> { %3777 = vmatprep.subr.bf16.mxu0 %v10322_v4  ;;  %3830 = vmatprep.subr.bf16.mxu1 %v10323_v29  ;;  %v10335_v29 = vld [vmem:[#allocation145_spill] sm:$0xff] }
 0x494   : >> { %3778 = vmatpush1.bf16.msra.mxu0 %v10324_v7  ;;  %3831 = vmatpush1.bf16.msra.mxu1 %v10325_v54 }
 0x495   : >> { %3779 = vmatprep.subr.bf16.mxu0 %v10326_v53  ;;  %3832 = vmatprep.subr.bf16.mxu1 %v10327_v42  ;;  %v10336_v42 = vld [vmem:[#allocation147_spill] sm:$0xff] }
 0x498   : >> { %3780 = vmatpush1.bf16.msra.mxu0 %v10328_v44  ;;  %3833 = vmatpush1.bf16.msra.mxu1 %v10329_v27  ;;  %v10337_v27 = vld [vmem:[#allocation148_spill] sm:$0xff] }
 0x499   : >> { %3871 = vmatprep.subr.bf16.mxu0 %v10330_v45  ;;  %3924 = vmatprep.subr.bf16.mxu1 %v10331_v11 }
 0x50d   : >> { %v3381_v24 = vpop.f32.mrb[64].mxu0  ;;  %v3434_v59 = vpop.f32.mrb[64].mxu1 }
 0x50e   : >> { %v3575_v15 = vadd.f32 %v10332_v56, %v3381_v24  ;;  %v3383_v18 = vpop.f32.mrb[65].mxu0  ;;  %v3436_v31 = vpop.f32.mrb[65].mxu1  ;;  %v3577_v45 = vadd.f32 %v10337_v27, %v3434_v59  ;;  %v10338_v24 = vld [vmem:[#allocation143_spill] sm:$0xff] }
 0x50f   : >> { %v3576_v16 = vadd.f32 %v10333_v63, %v3383_v18  ;;  %v3385_v26 = vpop.f32.mrb[66].mxu0  ;;  %v3438_v9 = vpop.f32.mrb[66].mxu1  ;;  %v3578_v44 = vadd.f32 %v10336_v42, %v3436_v31 }
 0x510   : >> { %v4891_v1 = vmul.f32 -1.442695, %v3575_v15  ;;  %v3579_v20 = vadd.f32 %v10334_v48, %v3385_v26  ;;  %v3387_v61 = vpop.f32.mrb[67].mxu0  ;;  %v3440_v12 = vpop.f32.mrb[67].mxu1  ;;  %v10339_v15 = vld [vmem:[#allocation144_spill] sm:$0xff] }
 0x511   : >> { %v4895_v4 = vmul.f32 -1.442695, %v3576_v16  ;;  %v3580_v7 = vadd.f32 %v10335_v29, %v3387_v61  ;;  %v4899_v11 = vmul.f32 -1.442695, %v3578_v44  ;;  %v3582_v56 = vadd.f32 %v10338_v24, %v3440_v12 }
 0x512   : >> { %5977 = vpow2.f32 %v4891_v1  ;;  %v4892_v54 = vmul.f32 -1.442695, %v3579_v20  ;;  %v3581_v18 = vadd.f32 %v10339_v15, %v3438_v9 }
 0x513   : >> { %5979 = vpow2.f32 %v4895_v4  ;;  %v4896_v53 = vmul.f32 -1.442695, %v3580_v7  ;;  %v4900_v1 = vmul.f32 -1.442695, %v3582_v56 }
 0x514   : >> { %5981 = vpow2.f32 %v4892_v54 }
 0x515   : >> { %5983 = vpow2.f32 %v4896_v53 }
 0x516   : >> { %5985 = vtanh.f32 %v3577_v45  ;;  %v3705_v45 = vpop.permute.xlu0 %3704 }
 0x517   : >> { %5987 = vpow2.f32 %v4899_v11  ;;  %vm3715_vm8 = vcmp.eq.s32.totalorder %v3705_v45, 1 }
 0x518   : >> { %5989 = vtanh.f32 %v3581_v18 }
 0x51c   : >> { %v5978_v63 = vpop.eup %5977 }
 0x51d   : >> { %v5980_v16 = vpop.eup %5979  ;;  %v3603_v26 = vadd.f32 1.0, %v5978_v63 }
 0x51e   : >> { %v3627_v48 = vadd.f32 1.0, %v5980_v16  ;;  %v5982_v20 = vpop.eup %5981  ;;  %v3708_v16 = vpop.permute.xlu1 %3707 }
 0x51f   : >> { %5991 = vrcp.f32 %v3603_v26  ;;  %v3604_v31 = vadd.f32 1.0, %v5982_v20  ;;  %v5984_v61 = vpop.eup %5983  ;;  %vm3716_vm9 = vcmp.eq.s32.totalorder %v3708_v16, 1 }
 0x520   : >> { %5993 = vrcp.f32 %v3627_v48  ;;  %v3628_v59 = vadd.f32 1.0, %v5984_v61  ;;  %v5986_v12 = vpop.eup %5985 }
 0x521   : >> { %5995 = vpow2.f32 %v4900_v1  ;;  %v5988_v4 = vpop.eup %5987 }
 0x522   : >> { %5997 = vrcp.f32 %v3604_v31  ;;  %v5990_v9 = vpop.eup %5989  ;;  %v3655_v53 = vadd.f32 1.0, %v5988_v4 }
 0x523   : >> { %5999 = vrcp.f32 %v3628_v59 }
 0x524   : >> { %6001 = vrcp.f32 %v3655_v53 }
 0x529   : >> { %v5992_v29 = vpop.eup %5991 }
 0x52a   : >> { %v5994_v7 = vpop.eup %5993  ;;  %v3671_v54 = vmul.f32 %v5992_v29, %v5986_v12 }
 0x52b   : >> { %v5996_v42 = vpop.eup %5995  ;;  %v3667_v44 = vmul.f32 %v5994_v7, %v8859_v17 }
 0x52c   : >> { %v5998_v27 = vpop.eup %5997  ;;  %v3656_v15 = vadd.f32 1.0, %v5996_v42 }
 0x52d   : >> { %v3675_v11 = vadd.f32 %v3671_v54, %v3667_v44  ;;  %v3672_v24 = vmul.f32 %v5998_v27, %v5990_v9  ;;  %v6000_v56 = vpop.eup %5999 }
 0x52e   : >> { %v3668_v18 = vmul.f32 %v6000_v56, %v8863_v19  ;;  %v6002_v48 = vpop.eup %6001 }
 0x52f   : >> { %6003 = vtanh.f32 %v3675_v11  ;;  %v9001_v63 = vsel %vm3715_vm8, %v3675_v11, %v8859_v17 }
 0x530   : >> { %v3676_v26 = vadd.f32 %v3672_v24, %v3668_v18  ;;  %6005 = vrcp.f32 %v3656_v15 }
 0x532   : >> { %6007 = vtanh.f32 %v3676_v26  ;;  %v9005_v1 = vsel %vm3716_vm9, %v3676_v26, %v8863_v19 }
 0x539   : >> { %v6004_v20 = vpop.eup %6003 }
 0x53a   : >> { %v3683_v31 = vmul.f32 %v6004_v20, %v6002_v48  ;;  %v6006_v61 = vpop.eup %6005  ;;  %v10344_v20 = vld [vmem:[#allocation123_spill] sm:$0xff] }
 0x53c   : >> { %v6008_v59 = vpop.eup %6007  ;;  %v3727_v12 = vsel %vm3715_vm8, %v3683_v31, 0.0  ;;  %v9013_v9 = vsel %vm3715_vm8, %v3683_v31, %v8871_v8 }
 0x53d   : >> { %v3684_v17 = vmul.f32 %v6008_v59, %v6006_v61 }
 0x53f   : >> { %v3728_v4 = vsel %vm3716_vm9, %v3684_v17, 0.0  ;;  %v9017_v19 = vsel %vm3716_vm9, %v3684_v17, %v8875_v10 }
 0x540   : >> { %v4983_v29 = vpack.c.bf16 %v3728_v4, %v3727_v12  ;;  %v9021_v7 = vpack.c.bf16 %v9017_v19, %v9013_v9 }
 0x542   : >> { %4984 = vst [vmem:[%s3743_s30] sm:$0xff] %v4983_v29   ;;  %3798 = vmatmul.mubr.bf16.vlgmr.msra.gmra.mrb[80].mxu0 %v9021_v7  ;;  %3851 = vmatmul.mubr.bf16.vlgmr.msra.gmra.mrb[80].mxu1 %v9021_v7 }
 0x543   : >> { %3872 = vmatpush1.bf16.msra.mxu0 %v8268_v33  ;;  %3925 = vmatpush1.bf16.msra.mxu1 %v8301_v55 }
 0x544   : >> { %3873 = vmatprep.subr.bf16.mxu0 %v8273_v21  ;;  %3926 = vmatprep.subr.bf16.mxu1 %v10237_v47 }
 0x545   : >> { %v3391_v8 = vpop.f32.mrb[68].mxu0  ;;  %v3444_v54 = vpop.f32.mrb[68].mxu1  ;;  %3807 = vmatprep.mubr.bf16.mxu0 %v9975_v30  ;;  %3860 = vmatprep.mubr.bf16.mxu1 %v9975_v30 }
 0x546   : >> { %v3393_v10 = vpop.f32.mrb[69].mxu0  ;;  %v3446_v53 = vpop.f32.mrb[69].mxu1 }
 0x547   : >> { %v3395_v42 = vpop.f32.mrb[70].mxu0  ;;  %v3448_v44 = vpop.f32.mrb[70].mxu1  ;;  %3874 = vmatpush1.bf16.msra.mxu0 %v10238_v2  ;;  %3927 = vmatpush1.bf16.msra.mxu1 %v10239_v6 }
 0x548   : >> { %v3397_v27 = vpop.f32.mrb[71].mxu0  ;;  %v3450_v45 = vpop.f32.mrb[71].mxu1  ;;  %3875 = vmatprep.subr.bf16.mxu0 %v10240_v28  ;;  %3928 = vmatprep.subr.bf16.mxu1 %v10241_v58  ;;  %v10340_v58 = vld [vmem:[#allocation126_spill] sm:$0xff] }
 0x54b   : >> { %3876 = vmatpush1.bf16.msra.mxu0 %v10242_v5  ;;  %3929 = vmatpush1.bf16.msra.mxu1 %v8349_v46 }
 0x54c   : >> { %3877 = vmatprep.subr.bf16.mxu0 %v10243_v0  ;;  %3930 = vmatprep.subr.bf16.mxu1 %v10244_v22 }
 0x54d   : >> { %v3487_v21 = vpop.f32.mrb[72].mxu0  ;;  %v3540_v33 = vpop.f32.mrb[72].mxu1 }
 0x54e   : >> { %v3489_v55 = vpop.f32.mrb[73].mxu0  ;;  %v3542_v47 = vpop.f32.mrb[73].mxu1 }
 0x54f   : >> { %v3491_v11 = vpop.f32.mrb[74].mxu0  ;;  %v3544_v2 = vpop.f32.mrb[74].mxu1  ;;  %3878 = vmatpush1.bf16.msra.mxu0 %v10245_v23  ;;  %3931 = vmatpush1.bf16.msra.mxu1 %v8370_v60  ;;  %v10341_v23 = vld [vmem:[#allocation125_spill] sm:$0xff] }
 0x550   : >> { %v3493_v24 = vpop.f32.mrb[75].mxu0  ;;  %v3546_v6 = vpop.f32.mrb[75].mxu1  ;;  %3879 = vmatprep.subr.bf16.mxu0 %v10246_v41  ;;  %3932 = vmatprep.subr.bf16.mxu1 %v10247_v38  ;;  %v10342_v38 = vld [vmem:[#allocation122_spill] sm:$0xff] }
 0x551   : >> { %v3711_v55 = vpop.permute.xlu0 %3710 }
 0x552   : >> { %vm3717_vm10 = vcmp.eq.s32.totalorder %v3711_v55, 1 }
 0x553   : >> { %3880 = vmatpush1.bf16.msra.mxu0 %v10248_v14  ;;  %3933 = vmatpush1.bf16.msra.mxu1 %v10249_v62 }
 0x554   : >> { %3881 = vmatprep.subr.bf16.mxu0 %v10251_v39  ;;  %3934 = vmatprep.subr.bf16.mxu1 %v10252_v32  ;;  %v10343_v39 = vld [vmem:[#allocation121_spill] sm:$0xff] }
 0x555   : >> { %v3497_v46 = vpop.f32.mrb[76].mxu0  ;;  %v3550_v28 = vpop.f32.mrb[76].mxu1 }
 0x556   : >> { %v3583_v5 = vadd.f32 %v10340_v58, %v3497_v46  ;;  %v3499_v0 = vpop.f32.mrb[77].mxu0  ;;  %v3552_v22 = vpop.f32.mrb[77].mxu1 }
 0x557   : >> { %v3584_v60 = vadd.f32 %v10341_v23, %v3499_v0  ;;  %v3501_v56 = vpop.f32.mrb[78].mxu0  ;;  %v3554_v41 = vpop.f32.mrb[78].mxu1  ;;  %3882 = vmatpush1.bf16.msra.mxu0 %v10254_v52  ;;  %3935 = vmatpush1.bf16.msra.mxu1 %v8414_v40  ;;  %v3586_v31 = vadd.f32 %v10344_v20, %v3552_v22  ;;  %v10345_v40 = vld [vmem:[#allocation124_spill] sm:$0xff] }
 0x558   : >> { %v4893_v15 = vmul.f32 -1.442695, %v3583_v5  ;;  %v3587_v18 = vadd.f32 %v10342_v38, %v3501_v56  ;;  %v3503_v14 = vpop.f32.mrb[79].mxu0  ;;  %v3556_v16 = vpop.f32.mrb[79].mxu1  ;;  %3883 = vmatprep.subr.bf16.mxu0 %v10256_v37  ;;  %3936 = vmatprep.subr.bf16.mxu1 %v8420_v51  ;;  %v3585_v52 = vadd.f32 %v10345_v40, %v3550_v28  ;;  %v10346_v37 = vld [vmem:[#allocation119_spill] sm:$0xff] }
 0x559   : >> { %v4897_v62 = vmul.f32 -1.442695, %v3584_v60  ;;  %v3588_v32 = vadd.f32 %v10343_v39, %v3503_v14  ;;  %v4901_v51 = vmul.f32 -1.442695, %v3586_v31  ;;  %v3590_v61 = vadd.f32 %v10346_v37, %v3556_v16  ;;  %v3714_v28 = vpop.permute.xlu1 %3713  ;;  %v10348_v16 = vld [vmem:[#allocation142_spill] sm:$0xff] }
 0x55a   : >> { %6009 = vpow2.f32 %v4893_v15  ;;  %v4894_v26 = vmul.f32 -1.442695, %v3587_v18  ;;  %vm3718_vm11 = vcmp.eq.s32.totalorder %v3714_v28, 1 }
 0x55b   : >> { %6011 = vpow2.f32 %v4897_v62  ;;  %v4898_v48 = vmul.f32 -1.442695, %v3588_v32  ;;  %3884 = vmatpush1.bf16.msra.mxu0 %v8401_v3  ;;  %3937 = vmatpush1.bf16.msra.mxu1 %v8435_v34  ;;  %v10347_v3 = vld [vmem:[#allocation120_spill] sm:$0xff] }
 0x55c   : >> { %6013 = vpow2.f32 %v4894_v26  ;;  %3885 = vmatprep.subr.bf16.mxu0 %v10258_v25  ;;  %3938 = vmatprep.subr.bf16.mxu1 %v8440_v50  ;;  %v3589_v59 = vadd.f32 %v10347_v3, %v3554_v41  ;;  %v4902_v25 = vmul.f32 -1.442695, %v3590_v61  ;;  %v10349_v26 = vld [vmem:[#allocation141_spill] sm:$0xff] }
 0x55d   : >> { %6015 = vpow2.f32 %v4898_v48  ;;  %v10351_v3 = vld [vmem:[#allocation137_spill] sm:$0xff] }
 0x55e   : >> { %6017 = vtanh.f32 %v3585_v52  ;;  %v10350_v52 = vld [vmem:[#allocation138_spill] sm:$0xff] }
 0x55f   : >> { %3886 = vmatpush1.bf16.msra.mxu0 %v10259_v57  ;;  %3939 = vmatpush1.bf16.msra.mxu1 %v10260_v35  ;;  %6019 = vpow2.f32 %v4901_v51 }
 0x560   : >> { %6021 = vtanh.f32 %v3589_v59 }
 0x564   : >> { %v6010_v34 = vpop.eup %6009 }
 0x565   : >> { %v6012_v17 = vpop.eup %6011  ;;  %v3605_v12 = vadd.f32 1.0, %v6010_v34 }
 0x566   : >> { %v3629_v4 = vadd.f32 1.0, %v6012_v17  ;;  %v6014_v50 = vpop.eup %6013  ;;  %v10352_v17 = vld [vmem:[#allocation139_spill] sm:$0xff] }
 0x567   : >> { %6023 = vrcp.f32 %v3605_v12  ;;  %v3606_v29 = vadd.f32 1.0, %v6014_v50  ;;  %v6016_v57 = vpop.eup %6015 }
 0x568   : >> { %6025 = vrcp.f32 %v3629_v4  ;;  %v3630_v35 = vadd.f32 1.0, %v6016_v57  ;;  %v6018_v8 = vpop.eup %6017 }
 0x569   : >> { %6027 = vpow2.f32 %v4902_v25  ;;  %v6020_v54 = vpop.eup %6019  ;;  %v10353_v25 = vld [vmem:[#allocation140_spill] sm:$0xff] }
 0x56a   : >> { %6029 = vrcp.f32 %v3606_v29  ;;  %v6022_v10 = vpop.eup %6021  ;;  %v3657_v27 = vadd.f32 1.0, %v6020_v54  ;;  %v10354_v29 = vld [vmem:[#allocation135_spill] sm:$0xff] }
 0x56b   : >> { %6031 = vrcp.f32 %v3630_v35  ;;  %v10355_v35 = vld [vmem:[#allocation136_spill] sm:$0xff] }
 0x56c   : >> { %6033 = vrcp.f32 %v3657_v27 }
 0x571   : >> { %v6024_v53 = vpop.eup %6023 }
 0x572   : >> { %v6026_v42 = vpop.eup %6025  ;;  %v3673_v44 = vmul.f32 %v6024_v53, %v6018_v8 }
 0x573   : >> { %v6028_v45 = vpop.eup %6027  ;;  %v3669_v21 = vmul.f32 %v6026_v42, %v8929_v43 }
 0x574   : >> { %v6030_v33 = vpop.eup %6029  ;;  %v3658_v24 = vadd.f32 1.0, %v6028_v45 }
 0x575   : >> { %v3677_v47 = vadd.f32 %v3673_v44, %v3669_v21  ;;  %v3674_v11 = vmul.f32 %v6030_v33, %v6022_v10  ;;  %v6032_v2 = vpop.eup %6031 }
 0x576   : >> { %v3670_v6 = vmul.f32 %v6032_v2, %v8933_v13  ;;  %v6034_v0 = vpop.eup %6033 }
 0x577   : >> { %6035 = vtanh.f32 %v3677_v47  ;;  %v9069_v46 = vsel %vm3717_vm10, %v3677_v47, %v8929_v43 }
 0x578   : >> { %v3678_v58 = vadd.f32 %v3674_v11, %v3670_v6  ;;  %6037 = vrcp.f32 %v3658_v24 }
 0x57a   : >> { %6039 = vtanh.f32 %v3678_v58  ;;  %v9073_v5 = vsel %vm3718_vm11, %v3678_v58, %v8933_v13 }
 0x581   : >> { %v6036_v22 = vpop.eup %6035 }
 0x582   : >> { %v3685_v23 = vmul.f32 %v6036_v22, %v6034_v0  ;;  %v6038_v60 = vpop.eup %6037 }
 0x584   : >> { %v6040_v56 = vpop.eup %6039  ;;  %v9078_v41 = vsel %vm3717_vm10, %v3685_v23, %v8938_v36  ;;  %v3729_v13 = vsel %vm3717_vm10, %v3685_v23, 0.0  ;;  %v4123_v23 = vpop.permute.xlu0 %4122 }
 0x585   : >> { %v3686_v43 = vmul.f32 %v6040_v56, %v6038_v60  ;;  %vm4133_vm12 = vcmp.eq.s32.totalorder %v4123_v23, 1 }
 0x587   : >> { %v9082_v15 = vsel %vm3718_vm11, %v3686_v43, %v8942_v49  ;;  %v3730_v38 = vsel %vm3718_vm11, %v3686_v43, 0.0 }
 0x588   : >> { %v4988_v18 = vpack.c.bf16 %v3730_v38, %v3729_v13  ;;  %v3764_v14 = vpack.c.bf16 %v9082_v15, %v9078_v41 }
 0x58a   : >> { %4989 = vst [vmem:[%s3759_s27] sm:$0xff] %v4988_v18   ;;  %3808 = vmatmul.mubr.bf16.gmra.mrb[84].mxu0 %v3764_v14  ;;  %3861 = vmatmul.mubr.bf16.gmra.mrb[84].mxu1 %v3764_v14  ;;  %v4126_v18 = vpop.permute.xlu1 %4125 }
 0x58b   : >> { %3903 = vmatprep.mubr.bf16.mxu0 %v9975_v30  ;;  %3956 = vmatprep.mubr.bf16.mxu1 %v9975_v30  ;;  %vm4134_vm13 = vcmp.eq.s32.totalorder %v4126_v18, 1 }
 0x592   : >> { %3904 = vmatmul.mubr.bf16.vlgmr.msra.gmra.mrb[88].mxu0 %v9021_v7  ;;  %3957 = vmatmul.mubr.bf16.vlgmr.msra.gmra.mrb[88].mxu1 %v9021_v7 }
 0x593   : >> { %3913 = vmatprep.mubr.bf16.mxu0 %v9975_v30  ;;  %3966 = vmatprep.mubr.bf16.mxu1 %v9975_v30 }
 0x59a   : >> { %3914 = vmatmul.mubr.bf16.gmra.mrb[92].mxu0 %v3764_v14  ;;  %3967 = vmatmul.mubr.bf16.gmra.mrb[92].mxu1 %v3764_v14 }
 0x615   : >> { %v3799_v36 = vpop.f32.mrb[80].mxu0  ;;  %v3852_v49 = vpop.f32.mrb[80].mxu1 }
 0x616   : >> { %v3993_v62 = vadd.f32 %v10348_v16, %v3799_v36  ;;  %v3801_v39 = vpop.f32.mrb[81].mxu0  ;;  %v3854_v32 = vpop.f32.mrb[81].mxu1  ;;  %v3995_v4 = vadd.f32 %v10353_v25, %v3852_v49 }
 0x617   : >> { %v3994_v48 = vadd.f32 %v10349_v26, %v3801_v39  ;;  %v3803_v20 = vpop.f32.mrb[82].mxu0  ;;  %v3856_v31 = vpop.f32.mrb[82].mxu1  ;;  %v3996_v12 = vadd.f32 %v10352_v17, %v3854_v32 }
 0x618   : >> { %v4911_v40 = vmul.f32 -1.442695, %v3993_v62  ;;  %v3997_v51 = vadd.f32 %v10350_v52, %v3803_v20  ;;  %v3805_v7 = vpop.f32.mrb[83].mxu0  ;;  %v3858_v37 = vpop.f32.mrb[83].mxu1  ;;  %v3999_v8 = vadd.f32 %v10355_v35, %v3856_v31 }
 0x619   : >> { %v4915_v61 = vmul.f32 -1.442695, %v3994_v48  ;;  %v3998_v30 = vadd.f32 %v10351_v3, %v3805_v7  ;;  %v4919_v50 = vmul.f32 -1.442695, %v3996_v12  ;;  %v4000_v57 = vadd.f32 %v10354_v29, %v3858_v37 }
 0x61a   : >> { %6041 = vpow2.f32 %v4911_v40  ;;  %v4912_v59 = vmul.f32 -1.442695, %v3997_v51 }
 0x61b   : >> { %6043 = vpow2.f32 %v4915_v61  ;;  %v4916_v34 = vmul.f32 -1.442695, %v3998_v30  ;;  %v4920_v42 = vmul.f32 -1.442695, %v4000_v57  ;;  %v10358_v57 = vld [vmem:[#allocation134_spill] sm:$0xff] }
 0x61c   : >> { %6045 = vpow2.f32 %v4912_v59 }
 0x61d   : >> { %6047 = vpow2.f32 %v4916_v34 }
 0x61e   : >> { %6049 = vtanh.f32 %v3995_v4 }
 0x61f   : >> { %6051 = vpow2.f32 %v4919_v50 }
 0x620   : >> { %6053 = vtanh.f32 %v3999_v8 }
 0x624   : >> { %v6042_v54 = vpop.eup %6041 }
 0x625   : >> { %v6044_v10 = vpop.eup %6043  ;;  %v4021_v53 = vadd.f32 1.0, %v6042_v54 }
 0x626   : >> { %v4045_v44 = vadd.f32 1.0, %v6044_v10  ;;  %v6046_v27 = vpop.eup %6045  ;;  %v10359_v10 = vld [vmem:[#allocation133_spill] sm:$0xff] }
 0x627   : >> { %6055 = vrcp.f32 %v4021_v53  ;;  %v4022_v45 = vadd.f32 1.0, %v6046_v27  ;;  %v6048_v21 = vpop.eup %6047 }
 0x628   : >> { %6057 = vrcp.f32 %v4045_v44  ;;  %v4046_v33 = vadd.f32 1.0, %v6048_v21  ;;  %v6050_v55 = vpop.eup %6049 }
 0x629   : >> { %6059 = vpow2.f32 %v4920_v42  ;;  %v6052_v47 = vpop.eup %6051 }
 0x62a   : >> { %6061 = vrcp.f32 %v4022_v45  ;;  %v6054_v11 = vpop.eup %6053  ;;  %v4073_v28 = vadd.f32 1.0, %v6052_v47  ;;  %v10360_v45 = vld [vmem:[#allocation130_spill] sm:$0xff] }
 0x62b   : >> { %6063 = vrcp.f32 %v4046_v33 }
 0x62c   : >> { %6065 = vrcp.f32 %v4073_v28 }
 0x631   : >> { %v6056_v2 = vpop.eup %6055 }
 0x632   : >> { %v6058_v24 = vpop.eup %6057  ;;  %v4089_v6 = vmul.f32 %v6056_v2, %v6050_v55 }
 0x633   : >> { %v6060_v58 = vpop.eup %6059  ;;  %v4085_v0 = vmul.f32 %v6058_v24, %v9001_v63 }
 0x634   : >> { %v6062_v22 = vpop.eup %6061  ;;  %v4074_v13 = vadd.f32 1.0, %v6060_v58  ;;  %v10362_v58 = vld [vmem:[#allocation131_spill] sm:$0xff] }
 0x635   : >> { %v4093_v60 = vadd.f32 %v4089_v6, %v4085_v0  ;;  %v4090_v56 = vmul.f32 %v6062_v22, %v6054_v11  ;;  %v6064_v43 = vpop.eup %6063  ;;  %v10361_v11 = vld [vmem:[#allocation129_spill] sm:$0xff]  ;;  %v10363_v22 = vld [vmem:[#allocation132_spill] sm:$0xff] }
 0x636   : >> { %v4086_v38 = vmul.f32 %v6064_v43, %v9005_v1  ;;  %v6066_v36 = vpop.eup %6065 }
 0x637   : >> { %6067 = vtanh.f32 %v4093_v60  ;;  %v9106_v39 = vsel %vm4133_vm12, %v4093_v60, %v9001_v63  }
 0x638   : >> { %v4094_v14 = vadd.f32 %v4090_v56, %v4086_v38  ;;  %6069 = vrcp.f32 %v4074_v13  ;;  %v10364_v56 = vld [vmem:[#allocation127_spill] sm:$0xff]  ;;  %v10365_v13 = vld [vmem:[#allocation128_spill] sm:$0xff]  ;;  %10446 = vst [vmem:[#allocation86_spill] sm:$0xff] %v9106_v39  ;;  %4184 = vst [vmem:[#allocation3] sm:$0xff] (%p1349_p12), %v9106_v39 }
 0x63a   : >> { %6071 = vtanh.f32 %v4094_v14  ;;  %v9111_v2 = vsel %vm4134_vm13, %v4094_v14, %v9005_v1  }
 0x63b   : >> { %10445 = vst [vmem:[#allocation87_spill] sm:$0xff] %v9111_v2  ;;  %4185 = vst [vmem:[#allocation3 + $0x8] sm:$0xff] (%p1349_p12), %v9111_v2 }
 0x641   : >> { %v6068_v49 = vpop.eup %6067 }
 0x642   : >> { %v4101_v16 = vmul.f32 %v6068_v49, %v6066_v36  ;;  %v6070_v62 = vpop.eup %6069 }
 0x644   : >> { %v9116_v32 = vsel %vm4133_vm12, %v4101_v16, %v9013_v9   ;;  %v6072_v63 = vpop.eup %6071  ;;  %v4145_v48 = vsel %vm4133_vm12, %v4101_v16, 0.0 }
 0x645   : >> { %10356 = vst [vmem:[#allocation260_spill] sm:$0xff] %v9116_v32  ;;  %v4102_v26 = vmul.f32 %v6072_v63, %v6070_v62  ;;  %v10427_v32 = vld [vmem:[#allocation204_spill] sm:$0xff] }
 0x646   : >> { %10428 = vst [vmem:[#allocation101_spill] sm:$0xff] %v10427_v32  ;;  %v10441_v32 = vld [vmem:[#allocation196_spill] sm:$0xff] }
 0x647   : >> { %v9122_v40 = vsel %vm4134_vm13, %v4102_v26, %v9017_v19   ;;  %v4146_v1 = vsel %vm4134_vm13, %v4102_v26, 0.0  ;;  %10442 = vst [vmem:[#allocation94_spill] sm:$0xff] %v10441_v32 }
 0x648   : >> { %10357 = vst [vmem:[#allocation261_spill] sm:$0xff] %v9122_v40  ;;  %v4993_v20 = vpack.c.bf16 %v4146_v1, %v4145_v48  ;;  %v10429_v40 = vld [vmem:[#allocation202_spill] sm:$0xff] }
 0x649   : >> { %10430 = vst [vmem:[#allocation99_spill] sm:$0xff] %v10429_v40 }
 0x64a   : >> { %4994 = vst [vmem:[%s4161_s5] sm:$0xff] %v4993_v20  }
 0x64c   : >> { %v10451_v32 = vld [vmem:[#allocation260_spill] sm:$0xff] }
 0x64d   : >> { %10452 = vst [vmem:[#allocation82_spill] sm:$0xff] %v10451_v32 }
 0x64f   : >> { %v10449_v40 = vld [vmem:[#allocation261_spill] sm:$0xff] }
 0x650   : >> { %10450 = vst [vmem:[#allocation83_spill] sm:$0xff] %v10449_v40 }
 0x65d   : >> { %v3809_v31 = vpop.f32.mrb[84].mxu0  ;;  %v3862_v52 = vpop.f32.mrb[84].mxu1 }
 0x65e   : >> { %v3811_v51 = vpop.f32.mrb[85].mxu0  ;;  %v3864_v7 = vpop.f32.mrb[85].mxu1 }
 0x65f   : >> { %v3813_v9 = vpop.f32.mrb[86].mxu0  ;;  %v3866_v37 = vpop.f32.mrb[86].mxu1 }
 0x660   : >> { %v3815_v61 = vpop.f32.mrb[87].mxu0  ;;  %v3868_v3 = vpop.f32.mrb[87].mxu1 }
 0x661   : >> { %v4129_v61 = vpop.permute.xlu0 %4128 }
 0x662   : >> { %vm4135_vm14 = vcmp.eq.s32.totalorder %v4129_v61, 1  ;;  %v10368_v61 = vld [vmem:[#allocation255_spill] sm:$0xff] }
 0x665   : >> { %v3905_v30 = vpop.f32.mrb[88].mxu0  ;;  %v3958_v59 = vpop.f32.mrb[88].mxu1 }
 0x666   : >> { %v3907_v34 = vpop.f32.mrb[89].mxu0  ;;  %v3960_v17 = vpop.f32.mrb[89].mxu1 }
 0x667   : >> { %v3909_v12 = vpop.f32.mrb[90].mxu0  ;;  %v3962_v25 = vpop.f32.mrb[90].mxu1 }
 0x668   : >> { %v3911_v19 = vpop.f32.mrb[91].mxu0  ;;  %v3964_v4 = vpop.f32.mrb[91].mxu1 }
 0x669   : >> { %v4132_v25 = vpop.permute.xlu1 %4131 }
 0x66a   : >> { %vm4136_vm15 = vcmp.eq.s32.totalorder %v4132_v25, 1  ;;  %v10397_v25 = vld [vmem:[#allocation227_spill] sm:$0xff] }
 0x66d   : >> { %v3915_v50 = vpop.f32.mrb[92].mxu0  ;;  %v3968_v29 = vpop.f32.mrb[92].mxu1 }
 0x66e   : >> { %v4001_v35 = vadd.f32 %v10358_v57, %v3915_v50  ;;  %v3917_v8 = vpop.f32.mrb[93].mxu0  ;;  %v3970_v54 = vpop.f32.mrb[93].mxu1  ;;  %v4003_v23 = vadd.f32 %v10363_v22, %v3968_v29  ;;  %v10369_v22 = vld [vmem:[#allocation254_spill] sm:$0xff] }
 0x66f   : >> { %v4002_v53 = vadd.f32 %v10359_v10, %v3917_v8  ;;  %v3919_v42 = vpop.f32.mrb[94].mxu0  ;;  %v3972_v44 = vpop.f32.mrb[94].mxu1  ;;  %v4004_v0 = vadd.f32 %v10362_v58, %v3970_v54  ;;  %v10372_v58 = vld [vmem:[#allocation253_spill] sm:$0xff] }
 0x670   : >> { %v4913_v27 = vmul.f32 -1.442695, %v4001_v35  ;;  %v4005_v21 = vadd.f32 %v10360_v45, %v3919_v42  ;;  %v3921_v33 = vpop.f32.mrb[95].mxu0  ;;  %v3974_v55 = vpop.f32.mrb[95].mxu1  ;;  %v4007_v38 = vadd.f32 %v10365_v13, %v3972_v44  ;;  %v10396_v13 = vld [vmem:[#allocation229_spill] sm:$0xff]  ;;  %v10406_v44 = vld [vmem:[#allocation220_spill] sm:$0xff] }
 0x671   : >> { %v4917_v47 = vmul.f32 -1.442695, %v4002_v53  ;;  %v4006_v24 = vadd.f32 %v10361_v11, %v3921_v33  ;;  %v4921_v60 = vmul.f32 -1.442695, %v4004_v0  ;;  %v4008_v43 = vadd.f32 %v10364_v56, %v3974_v55  ;;  %v10375_v55 = vld [vmem:[#allocation250_spill] sm:$0xff]  ;;  %v10398_v33 = vld [vmem:[#allocation228_spill] sm:$0xff] }
 0x672   : >> { %6073 = vpow2.f32 %v4913_v27  ;;  %v4914_v6 = vmul.f32 -1.442695, %v4005_v21  ;;  %v10378_v21 = vld [vmem:[#allocation249_spill] sm:$0xff]  ;;  %v10384_v27 = vld [vmem:[#allocation239_spill] sm:$0xff]  ;;  %v10411_v45 = vld [vmem:[#allocation216_spill] sm:$0xff] }
 0x673   : >> { %6075 = vpow2.f32 %v4917_v47  ;;  %v4918_v28 = vmul.f32 -1.442695, %v4006_v24  ;;  %v4922_v49 = vmul.f32 -1.442695, %v4008_v43  ;;  %v10366_v47 = vld [vmem:[#allocation259_spill] sm:$0xff]  ;;  %v10374_v43 = vld [vmem:[#allocation252_spill] sm:$0xff] }
 0x674   : >> { %6077 = vpow2.f32 %v4914_v6  ;;  %v10379_v24 = vld [vmem:[#allocation248_spill] sm:$0xff]  ;;  %v10404_v56 = vld [vmem:[#allocation221_spill] sm:$0xff]  ;;  %v10408_v0 = vld [vmem:[#allocation215_spill] sm:$0xff] }
 0x675   : >> { %6079 = vpow2.f32 %v4918_v28  ;;  %v10395_v28 = vld [vmem:[#allocation232_spill] sm:$0xff]  ;;  %v10417_v11 = vld [vmem:[#allocation206_spill] sm:$0xff]  ;;  %v10425_v6 = vld [vmem:[#allocation203_spill] sm:$0xff] }
 0x676   : >> { %6081 = vtanh.f32 %v4003_v23  ;;  %v10392_v23 = vld [vmem:[#allocation231_spill] sm:$0xff]  ;;  %10418 = vst [vmem:[#allocation109_spill] sm:$0xff] %v10417_v11  ;;  %10426 = vst [vmem:[#allocation102_spill] sm:$0xff] %v10425_v6  ;;  %v10439_v6 = vld [vmem:[#allocation197_spill] sm:$0xff] }
 0x677   : >> { %6083 = vpow2.f32 %v4921_v60  ;;  %v10414_v60 = vld [vmem:[#allocation212_spill] sm:$0xff]  ;;  %v10431_v11 = vld [vmem:[#allocation199_spill] sm:$0xff]  ;;  %10440 = vst [vmem:[#allocation96_spill] sm:$0xff] %v10439_v6 }
 0x678   : >> { %6085 = vtanh.f32 %v4007_v38  ;;  %v10370_v38 = vld [vmem:[#allocation257_spill] sm:$0xff]  ;;  %10432 = vst [vmem:[#allocation100_spill] sm:$0xff] %v10431_v11  ;;  %v10454_v11 = vld [vmem:[#allocation260_spill] sm:$0xff] (%p1349_p12) }
 0x679   : > { %4180 = vst [vmem:[#allocation2] sm:$0xff] (%p1349_p12), %v10454_v11 }
 0x67c   : >> { %v6074_v18 = vpop.eup %6073 }
 0x67d   : >> { %v6076_v14 = vpop.eup %6075  ;;  %v4023_v36 = vadd.f32 1.0, %v6074_v18  ;;  %v10416_v18 = vld [vmem:[#allocation207_spill] sm:$0xff] }
 0x67e   : >> { %v4047_v16 = vadd.f32 1.0, %v6076_v14  ;;  %v6078_v62 = vpop.eup %6077  ;;  %v10421_v14 = vld [vmem:[#allocation208_spill] sm:$0xff] }
 0x67f   : >> { %6087 = vrcp.f32 %v4023_v36  ;;  %v4024_v63 = vadd.f32 1.0, %v6078_v62  ;;  %v6080_v26 = vpop.eup %6079  ;;  %v10367_v62 = vld [vmem:[#allocation258_spill] sm:$0xff]  ;;  %v10402_v36 = vld [vmem:[#allocation225_spill] sm:$0xff]  ;;  %10422 = vst [vmem:[#allocation103_spill] sm:$0xff] %v10421_v14 }
 0x680   : >> { %6089 = vrcp.f32 %v4047_v16  ;;  %v4048_v48 = vadd.f32 1.0, %v6080_v26  ;;  %v6082_v1 = vpop.eup %6081  ;;  %v10387_v16 = vld [vmem:[#allocation240_spill] sm:$0xff]  ;;  %v10394_v26 = vld [vmem:[#allocation233_spill] sm:$0xff] }
 0x681   : >> { %6091 = vpow2.f32 %v4922_v49  ;;  %v6084_v20 = vpop.eup %6083  ;;  %v10405_v49 = vld [vmem:[#allocation219_spill] sm:$0xff]  ;;  %v10435_v14 = vld [vmem:[#allocation201_spill] sm:$0xff] }
 0x682   : >> { %6093 = vrcp.f32 %v4024_v63  ;;  %v6086_v31 = vpop.eup %6085  ;;  %v4075_v9 = vadd.f32 1.0, %v6084_v20  ;;  %v10373_v63 = vld [vmem:[#allocation251_spill] sm:$0xff]  ;;  %10436 = vst [vmem:[#allocation97_spill] sm:$0xff] %v10435_v14 }
 0x683   : >> { %6095 = vrcp.f32 %v4048_v48  ;;  %v10389_v20 = vld [vmem:[#allocation235_spill] sm:$0xff]  ;;  %v10399_v48 = vld [vmem:[#allocation226_spill] sm:$0xff] }
 0x684   : >> { %6097 = vrcp.f32 %v4075_v9  ;;  %v10390_v9 = vld [vmem:[#allocation236_spill] sm:$0xff] }
 0x689   : >> { %v6088_v52 = vpop.eup %6087 }
 0x68a   : >> { %v6090_v51 = vpop.eup %6089  ;;  %v4091_v7 = vmul.f32 %v6088_v52, %v6082_v1  ;;  %v10383_v1 = vld [vmem:[#allocation242_spill] sm:$0xff]  ;;  %v10410_v52 = vld [vmem:[#allocation217_spill] sm:$0xff] }
 0x68b   : >> { %v6092_v37 = vpop.eup %6091  ;;  %v4087_v3 = vmul.f32 %v6090_v51, %v9069_v46  ;;  %v10376_v51 = vld [vmem:[#allocation247_spill] sm:$0xff] }
 0x68c   : >> { %v6094_v30 = vpop.eup %6093  ;;  %v4076_v12 = vadd.f32 1.0, %v6092_v37  ;;  %v10407_v37 = vld [vmem:[#allocation218_spill] sm:$0xff] }
 0x68d   : >> { %v4095_v59 = vadd.f32 %v4091_v7, %v4087_v3  ;;  %v4092_v34 = vmul.f32 %v6094_v30, %v6086_v31  ;;  %v6096_v17 = vpop.eup %6095  ;;  %v10371_v31 = vld [vmem:[#allocation256_spill] sm:$0xff]  ;;  %v10401_v30 = vld [vmem:[#allocation222_spill] sm:$0xff]  ;;  %v10413_v7 = vld [vmem:[#allocation211_spill] sm:$0xff] }
 0x68e   : >> { %v4088_v19 = vmul.f32 %v6096_v17, %v9073_v5  ;;  %v6098_v50 = vpop.eup %6097 }
 0x68f   : >> { %6099 = vtanh.f32 %v4095_v59  ;;  %v9136_v3 = vsel %vm4135_vm14, %v4095_v59, %v9069_v46   ;;  %v10388_v59 = vld [vmem:[#allocation237_spill] sm:$0xff] }
 0x690   : >> { %v4096_v4 = vadd.f32 %v4092_v34, %v4088_v19  ;;  %6101 = vrcp.f32 %v4076_v12  ;;  %v10382_v12 = vld [vmem:[#allocation244_spill] sm:$0xff]  ;;  %v10400_v19 = vld [vmem:[#allocation223_spill] sm:$0xff]  ;;  %v10423_v34 = vld [vmem:[#allocation205_spill] sm:$0xff]  ;;  %10444 = vst [vmem:[#allocation88_spill] sm:$0xff] %v9136_v3 }
 0x691   : >> { %10424 = vst [vmem:[#allocation104_spill] sm:$0xff] %v10423_v34  ;;  %v10437_v34 = vld [vmem:[#allocation200_spill] sm:$0xff]  ;;  %4186 = vst [vmem:[#allocation3 + $0x10] sm:$0xff] (%p1349_p12), %v9136_v3 }
 0x692   : >> { %6103 = vtanh.f32 %v4096_v4  ;;  %v9141_v54 = vsel %vm4136_vm15, %v4096_v4, %v9073_v5   ;;  %v10385_v4 = vld [vmem:[#allocation238_spill] sm:$0xff]  ;;  %10438 = vst [vmem:[#allocation95_spill] sm:$0xff] %v10437_v34 }
 0x693   : >> { %10443 = vst [vmem:[#allocation89_spill] sm:$0xff] %v9141_v54  ;;  %4187 = vst [vmem:[#allocation3 + $0x18] sm:$0xff] (%p1349_p12), %v9141_v54 }
 0x699   : >> { %v6100_v29 = vpop.eup %6099 }
 0x69a   : >> { %v4103_v57 = vmul.f32 %v6100_v29, %v6098_v50  ;;  %v6102_v35 = vpop.eup %6101  ;;  %v10380_v50 = vld [vmem:[#allocation245_spill] sm:$0xff]  ;;  %v10403_v29 = vld [vmem:[#allocation224_spill] sm:$0xff] }
 0x69c   : >> { %v9146_v17 = vsel %vm4135_vm14, %v4103_v57, %v9078_v41   ;;  %v6104_v46 = vpop.eup %6103  ;;  %v4147_v10 = vsel %vm4135_vm14, %v4103_v57, 0.0  ;;  %v10391_v41 = vld [vmem:[#allocation234_spill] sm:$0xff] }
 0x69d   : >> { %v4104_v8 = vmul.f32 %v6104_v46, %v6102_v35  ;;  %v10381_v46 = vld [vmem:[#allocation243_spill] sm:$0xff]  ;;  %v10393_v35 = vld [vmem:[#allocation230_spill] sm:$0xff]  ;;  %10448 = vst [vmem:[#allocation84_spill] sm:$0xff] %v9146_v17  ;;  %4182 = vst [vmem:[#allocation2 + $0x10] sm:$0xff] (%p1349_p12), %v9146_v17 }
 0x69e   : >> { %v10409_v57 = vld [vmem:[#allocation214_spill] sm:$0xff]  ;;  %1351 = sbr.rel (!%p1349_p12) target bundleno = 446 (0x1be), region = 148 }
 0x69f   : >> { %v9151_v42 = vsel %vm4136_vm15, %v4104_v8, %v9082_v15   ;;  %v4148_v5 = vsel %vm4136_vm15, %v4104_v8, 0.0  ;;  %v10377_v15 = vld [vmem:[#allocation246_spill] sm:$0xff]  ;;  %v10386_v8 = vld [vmem:[#allocation241_spill] sm:$0xff] }
 0x6a0   : >> { %v4998_v53 = vpack.c.bf16 %v4148_v5, %v4147_v10  ;;  %v10412_v10 = vld [vmem:[#allocation213_spill] sm:$0xff]  ;;  %10447 = vst [vmem:[#allocation85_spill] sm:$0xff] %v9151_v42  ;;  %4183 = vst [vmem:[#allocation2 + $0x18] sm:$0xff] (%p1349_p12), %v9151_v42 }
 0x6a1   : >> { %v10419_v5 = vld [vmem:[#allocation209_spill] sm:$0xff] }
 0x6a2   : >> { %4999 = vst [vmem:[%s4177_s19] sm:$0xff] %v4998_v53   ;;  %v10415_v53 = vld [vmem:[#allocation210_spill] sm:$0xff]  ;;  %10420 = vst [vmem:[#allocation110_spill] sm:$0xff] %v10419_v5 }
 0x6a3   : >> { %v10433_v5 = vld [vmem:[#allocation198_spill] sm:$0xff] }
 0x6a4   : >> { %10434 = vst [vmem:[#allocation98_spill] sm:$0xff] %v10433_v5  ;;  %v10455_v5 = vld [vmem:[#allocation261_spill] sm:$0xff] (%p1349_p12) }
 0x6a5   : > { %4181 = vst [vmem:[#allocation2 + $0x8] sm:$0xff] %v10455_v5  ;;  %4191 = sbr.rel (%p4931_p13) target bundleno = 1710 (0x6ae), region = 75  ;;  %v4192_v40 = vld [vmem:[#allocation2] sm:$0xff] (!%p4931_p13)  ;;  %v4196_v15 = vld [vmem:[#allocation2 + $0x10] sm:$0xff] (!%p4931_p13) }
 0x6a6   : > { %4194 = vst [vmem:[#allocation9] sm:$0xff] (!%p4931_p13), %v4192_v40  ;;  %4198 = vst [vmem:[#allocation10] sm:$0xff] (!%p4931_p13), %v4196_v15 }
 0x6a7   : > { %v4197_v44 = vld [vmem:[#allocation2 + $0x18] sm:$0xff] (!%p4931_p13) }
 0x6a8   : > { %4199 = vst [vmem:[#allocation10 + $0x8] sm:$0xff] (!%p4931_p13), %v4197_v44 }
 0x6ac   : > { %v4193_v41 = vld [vmem:[#allocation2 + $0x8] sm:$0xff] }
 0x6ad   : > { %4195 = vst [vmem:[#allocation9 + $0x8] sm:$0xff] %v4193_v41 }
 0x6ae PF: > { %p5030_p0 = scmp.eq.s32.totalorder %s6900_s20, 1  ;;  %s6830_s25 = smov [#allocation9]  }
 0x6af   : > { %s4226_s29 = sshll.u32 %s6830_s25, 4  ;;  %s4227_s29 = int_to_ptr.vmem [resolvable:$true] %s4226_s29 }
 0x6b0   : > { %s6161_s12 = scalar_lea.vmem %s4227_s29, 256  ;;  %p6168_p8 = scmp.lt.s32.totalorder %s4227_s29, %s4227_s29 }
 0x6b1   : > { %p6162_p1 = scmp.ne.s32.totalorder %s4227_s29, %s6161_s12  ;;  %p6169_p2 = scmp.lt.s32.totalorder %s6161_s12, %s6161_s12 }
 0x6b3   : > { %p6163_p5 = pnand %p6162_p1, %p5030_p0  ;;  %p6170_p3 = por %p6169_p2, %p6168_p8 }
 0x6b5   : > { %p6164_p7 = pneg %p6163_p5 }
 0x6b7   : > { %p6171_p4 = pnand %p6170_p3, %p6164_p7 }
 0x6b9   : > { %6174 = shalt.err (!%p6171_p4)
}
 0x6ba   : > { %s6175_s23 = scalar_lea.hbm %s9444_s10, 256 }
 0x6bb   : > { %p6176_p6 = scmp.ne.s32.totalorder %s9444_s10, %s6175_s23  ;;  %p6181_p11 = scmp.lt.u32.totalorder %s6175_s23, %s9444_s10 }
 0x6bd   : > { %p6177_p9 = pnand %p6176_p6, %p5030_p0 }
 0x6bf   : > { %p6178_p10 = pneg %p6177_p9 }
 0x6c1   : > { %p6183_p12 = pnand %p6181_p11, %p6178_p10 }
 0x6c3   : > { %6186 = shalt.err (!%p6183_p12)
}
 0x6c4   : > { %s6831_s18 = smov 128   ;;  %s6832_s13 = smov 8  }
 0x6c5   : > { %5012 = dma.vmem_to_hbm [thread:$0]  (%p5030_p0), %s4227_s29, 256, %s9444_s10, [#allocation6], %s6831_s18, %s6831_s18, %s6832_s13  }
 0x6c6   : > { %s6833_s28 = smov [#allocation10]  }
 0x6c7   : > { %s4239_s21 = sshll.u32 %s6833_s28, 4  ;;  %s4240_s21 = int_to_ptr.vmem [resolvable:$true] %s4239_s21 }
 0x6c8   : > { %s6187_s5 = scalar_lea.vmem %s4240_s21, 256  ;;  %p6194_p7 = scmp.lt.s32.totalorder %s4240_s21, %s4240_s21 }
 0x6c9   : > { %p6188_p13 = scmp.ne.s32.totalorder %s4240_s21, %s6187_s5  ;;  %p6195_p8 = scmp.lt.s32.totalorder %s6187_s5, %s6187_s5 }
 0x6cb   : > { %p6189_p1 = pnand %p6188_p13, %p5030_p0  ;;  %p6196_p2 = por %p6195_p8, %p6194_p7 }
 0x6cd   : > { %p6190_p5 = pneg %p6189_p1 }
 0x6cf   : > { %p6197_p3 = pnand %p6196_p2, %p6190_p5 }
 0x6d1   : > { %6200 = shalt.err (!%p6197_p3)
}
 0x6d2   : > { %s6201_s14 = scalar_lea.hbm %s9445_s11, 256 }
 0x6d3   : > { %p6202_p4 = scmp.ne.s32.totalorder %s9445_s11, %s6201_s14  ;;  %p6207_p10 = scmp.lt.u32.totalorder %s6201_s14, %s9445_s11 }
 0x6d5   : > { %p6203_p6 = pnand %p6202_p4, %p5030_p0 }
 0x6d7   : > { %p6204_p9 = pneg %p6203_p6 }
 0x6d9   : > { %p6209_p11 = pnand %p6207_p10, %p6204_p9 }
 0x6db   : > { %6212 = shalt.err (!%p6209_p11)
}
 0x6dc   : > { %5014 = dma.vmem_to_hbm [thread:$0]  (%p5030_p0), %s4240_s21, 256, %s9445_s11, [#allocation11], %s6831_s18, %s6831_s18, %s6832_s13  }
 0x6dd   : > { %6518 = dma.done.wait (%p5030_p0), [#allocation6], 256  }
 0x6de   : > { %6520 = vsyncadd (%p5030_p0), [#allocation6], 4294967040 }
 0x6df   : > { %6522 = dma.done.wait (%p5030_p0), [#allocation11], 256  }
 0x6e0   : > { %6524 = vsyncadd (%p5030_p0), [#allocation11], 4294967040 }
 0x6e1 PF: > { %s26_s17 = sadd.s32 1, %s6527_s17  }
 0x6e2   : > { %p23_p12 = scmp.ge.s32.totalorder %s26_s17, 4  }
 0x6e4   :  { %25 = sbr.rel (!%p23_p12) target bundleno = 10 (0xa), region = 159 }
 0x6eb   :  { %4276 = vsyncpa [#allocation5], 1 }
 0x6ec   :  { %4278 = vsyncpa [#allocation5 + $0x1], 1 }
 0x6ed   :  { %4279 = vsyncpa [#allocation8], 1 }
 0x6ee   :  { %4280 = vsyncpa [#allocation6], 1 }
 0x6ef   :  { %4282 = vsyncpa [#allocation6 + $0x1], 1 }
 0x6f0   :  { %4283 = vsyncpa [#allocation11], 1 }

// kernel: rnn_forward.3
= control target key start
LH: loop header
LB: loop body
LE: loop exit
PB: predicated region body
PF: predicated region fallthrough
CT: control target
= control target key end

     0   :  { %s12599_s0 = inlined_call_operand.vmem [shape: s32[16,1], index: 0, kind: input, shape index: {}]   ;;  %s12600_s1 = inlined_call_operand.vmem [shape: bf16[256,128], index: 1, kind: input, shape index: {}, may-alias: {1,2}]   ;;  %s12601_s2 = inlined_call_operand.vmem [shape: bf16[256,128], index: 2, kind: input, shape index: {}, may-alias: {1,2}]   ;;  %s12602_s3 = inlined_call_operand.vmem [shape: bf16[256,128], index: 3, kind: input, shape index: {}, may-alias: {3,4}]   ;;  %s12603_s4 = inlined_call_operand.vmem [shape: bf16[256,128], index: 4, kind: input, shape index: {}, may-alias: {3,4}]   ;;  %s12604_s5 = inlined_call_operand.vmem [shape: bf16[128,512], index: 5, kind: input, shape index: {}]   ;;  %s12605_s6 = inlined_call_operand.vmem [shape: bf16[128,512], index: 6, kind: input, shape index: {}]   ;;  %s12606_s7 = inlined_call_operand.vmem [shape: bf16[128,512], index: 7, kind: input, shape index: {}]   ;;  %s12607_s8 = inlined_call_operand.vmem [shape: bf16[128,512], index: 8, kind: input, shape index: {}]   ;;  %s12608_s9 = inlined_call_operand.vmem [shape: bf16[128,1024], index: 9, kind: input, shape index: {}]   ;;  %s12609_s10 = inlined_call_operand.vmem [shape: f32[1,512], index: 10, kind: input, shape index: {}]   ;;  %s12610_s11 = inlined_call_operand.vmem [shape: f32[1,512], index: 11, kind: input, shape index: {}]   ;;  %s12611_s12 = inlined_call_operand.hbm [shape: bf16[256,128], index: 12, kind: output, shape index: {0}]   ;;  %s12612_s13 = inlined_call_operand.hbm [shape: bf16[256,128], index: 13, kind: output, shape index: {1}]   ;;  %s12613_s14 = inlined_call_operand.vmem [shape: f32[16,128], index: 14, kind: output, shape index: {2}]   ;;  %s12614_s15 = inlined_call_operand.vmem [shape: f32[16,128], index: 15, kind: output, shape index: {3}]  }
   0x1   :  { %12917 = sst [smem:[#allocation275_spill]] %s12599_s0 }
   0x2   :  { %12918 = sst [smem:[#allocation276_spill]] %s12600_s1 }
   0x3   :  { %12919 = sst [smem:[#allocation277_spill]] %s12601_s2 }
   0x4   :  { %12920 = sst [smem:[#allocation278_spill]] %s12602_s3 }
   0x5   :  { %12921 = sst [smem:[#allocation279_spill]] %s12603_s4 }
   0x6   :  { %12922 = sst [smem:[#allocation280_spill]] %s12604_s5 }
   0x7   :  { %12923 = sst [smem:[#allocation281_spill]] %s12610_s11 }
   0x8   :  { %12924 = sst [smem:[#allocation282_spill]] %s12611_s12 }
   0x9   :  { %12925 = sst [smem:[#allocation283_spill]] %s12612_s13 }
   0xa   :  { %12926 = sst [smem:[#allocation284_spill]] %s12613_s14 }
   0xb   :  { %12927 = sst [smem:[#allocation285_spill]] %s12614_s15 }
   0xc   :  { %21 = vsyncpa [#allocation5], 0 }
   0xd   :  { %23 = vsyncpa [#allocation5 + $0x1], 0 }
   0xe   :  { %24 = vsyncpa [#allocation7], 0 }
   0xf   :  { %26 = vsyncpa [#allocation7 + $0x1], 0  ;;  %s9138_s18 = smov 0   ;;  %s9140_s19 = smov 0  }
  0x10   :  { %s9142_s20 = smov 0   ;;  %s9144_s21 = smov 0  }
  0x11   :  { %s9146_s22 = smov 0   ;;  %s9148_s23 = smov 0  }
  0x12   :  { %s9150_s24 = smov 0  }
  0x13 LB: > { %12928 = sst [smem:[#allocation10_spill]] %s8733_s18  ;;  %s9174_s25 = sadd.s32 4294967295, %s8757_s24   ;;  %s8757_s24 = sphi %s9150_s24, %s13709_s24   ;;  %s8753_s23 = sphi %s9148_s23, %s13715_s23   ;;  %s8749_s22 = sphi %s9146_s22, %s13714_s22   ;;  %s8745_s21 = sphi %s9144_s21, %s13713_s21   ;;  %s8741_s20 = sphi %s9142_s20, %s13712_s20   ;;  %s8737_s19 = sphi %s9140_s19, %s13711_s19   ;;  %s8733_s18 = sphi %s9138_s18, %s13710_s18  }
  0x14   : > { %12929 = sst [smem:[#allocation11_spill]] %s8737_s19  ;;  %s6356_s26 = sadd.s32 4294967294, %s8757_s24  }
  0x15   : > { %12930 = sst [smem:[#allocation12_spill]] %s8741_s20  ;;  %s9178_s27 = sadd.s32 1, %s8757_s24  }
  0x16   : > { %12931 = sst [smem:[#allocation13_spill]] %s8745_s21  ;;  %s315_s28 = sadd.s32 1, %s8753_s23 }
  0x17   : > { %12932 = sst [smem:[#allocation14_spill]] %s8749_s22  ;;  %s312_s29 = ssub.s32 %s8757_s24, %s9178_s27 }
  0x18   : > { %12933 = sst [smem:[#allocation15_spill]] %s8753_s23  ;;  %p325_p0 = scmp.ne.s32.totalorder %s8753_s23, %s8749_s22 }
  0x19   : > { %12934 = sst [smem:[#allocation16_spill]] %s8757_s24  ;;  %p313_p1 = scmp.eq.s32.totalorder %s312_s29, 0 }
  0x1a   : > { %12935 = sst [smem:[#allocation17_spill]] %s9178_s27  ;;  %p326_p2 = scmp.eq.s32.totalorder %s9174_s25, 1 }
  0x1b   : > { %p331_p3 = scmp.ne.s32.totalorder %s8749_s22, %s8745_s21  ;;  %p9188_p4 = scmp.eq.s32.totalorder %s6356_s26, 1 }
  0x1c   : > { %s9193_s16 = scalar_select %p313_p1, %s8753_s23, %s315_s28  }
  0x1d   : > { %p9197_p5 = por %p326_p2, %p325_p0  ;;  %p9203_p6 = por %p9188_p4, %p331_p3 }
  0x1e   : > { %12937 = sst [smem:[#allocation18_spill]] %s9193_s16  ;;  %s338_s21 = ssub.s32 1, %s8757_s24 }
  0x1f   : > { %s12938_s17 = scalar_select %p9197_p5, 1, 0 }
  0x20   : > { %s12940_s29 = scalar_select %p9203_p6, 1, 0 }
  0x21   : > { %12939 = sst [smem:[#allocation19_spill]] %s12938_s17  ;;  %s339_s13 = ssub.s32 1, %s9178_s27 }
  0x22   : > { %12941 = sst [smem:[#allocation20_spill]] %s12940_s29  ;;  %s340_s26 = ssub.s32 %s338_s21, %s339_s13 }
  0x23   : > { %s343_s12 = sadd.s32 1, %s8741_s20  ;;  %p341_p7 = scmp.eq.s32.totalorder %s340_s26, 0 }
  0x24   : > { %p353_p8 = scmp.ne.s32.totalorder %s8741_s20, %s8737_s19  ;;  %p359_p9 = scmp.ne.s32.totalorder %s8737_s19, %s8733_s18 }
  0x25   : > { %p6359_p10 = scmp.ge.s32.totalorder %s8757_s24, 1  ;;  %p484_p13 = scmp.lt.s32.totalorder %s8757_s24, 3 }
  0x26   : > { %s9216_s28 = scalar_select %p341_p7, %s8741_s20, %s343_s12  }
  0x27   : > { %p9220_p11 = por %p353_p8, %p326_p2  ;;  %p9226_p12 = por %p359_p9, %p9188_p4 }
  0x28   : > { %12942 = sst [smem:[#allocation21_spill]] %s9216_s28  ;;  %p485_p0 = pnand %p6359_p10, %p484_p13 }
  0x29   : > { %s12943_s16 = scalar_select %p9220_p11, 1, 0 }
  0x2a   : > { %s12945_s23 = scalar_select %p9226_p12, 1, 0 }
  0x2b   : > { %12944 = sst [smem:[#allocation22_spill]] %s12943_s16  ;;  %488 = sbr.rel (%p485_p0) target bundleno = 1865 (0x749), region = 68 }
  0x2c   : > { %12946 = sst [smem:[#allocation23_spill]] %s12945_s23 }
  0x32   : > { %s12628_s12 = sand.u32 1, %s8749_s22   ;;  %s12629_s13 = sand.u32 1, %s8737_s19  }
  0x33   : > { %s6360_s21 = sshll.u32 %s12628_s12, 6  ;;  %s6361_s26 = sshll.u32 %s12629_s13, 6 }
  0x34   : > { %s6362_s30 = sshll.u32 %s9174_s25, 4  ;;  %s9239_s28 = ssub.s32 1, %s9174_s25 }
  0x35   : > { %p555_p1 = scmp.lt.s32.totalorder %s6362_s30, 31  ;;  %s6364_s20 = sshll.u32 %s9239_s28, 4 }
  0x36   : > { %p562_p2 = scmp.lt.s32.totalorder %s6364_s20, 31  ;;  %s12947_s1 = sld [smem:[#allocation276_spill]] }
  0x37   : > { %s13717_s30 = smov (!%p555_p1, %s6362_s30), 31  ;;  %s12948_s2 = sld [smem:[#allocation277_spill]] }
  0x38   : > { %s13719_s20 = smov (!%p562_p2, %s6364_s20), 31  ;;  %s6363_s27 = sshll.u32 %s13717_s30, 2 }
  0x39   : > { %s6365_s24 = sshll.u32 %s13719_s20, 2  ;;  %s12949_s3 = sld [smem:[#allocation278_spill]] }
  0x3a   : > { %s12950_s4 = sld [smem:[#allocation279_spill]]  ;;  %s9262_s11 = scalar_lea.vmem [#allocation4], %s6360_s21 }
  0x3b   : > { %s9264_s18 = scalar_lea.vmem [#allocation6], %s6361_s26  ;;  %p6370_p3 = scmp.ne.s32.totalorder %s9174_s25, 0 }
  0x3c   : > { %s9245_s29 = scalar_lea.vmem %s12947_s1, %s6363_s27  ;;  %v9051_v0 = vmov (!%p6370_p3), 0.0  }
  0x3d   : > { %s9250_s13 = scalar_lea.vmem %s12948_s2, %s6365_s24  ;;  %589 = sbr.rel (%p6370_p3) target bundleno = 68 (0x44), region = 72  ;;  %590 = vst [vmem:[#allocation2] sm:$0xff] (!%p6370_p3), %v9051_v0  ;;  %591 = vst [vmem:[#allocation2 + $0x8] sm:$0xff] (!%p6370_p3), %v9051_v0 }
  0x3e   : > { %592 = vst [vmem:[#allocation2 + $0x10] sm:$0xff] (!%p6370_p3), %v9051_v0  ;;  %593 = vst [vmem:[#allocation2 + $0x18] sm:$0xff] (!%p6370_p3), %v9051_v0 }
  0x3f   : > { %s9255_s22 = scalar_lea.vmem %s12949_s3, %s6363_s27  ;;  %594 = vst [vmem:[#allocation3] sm:$0xff] (!%p6370_p3), %v9051_v0  ;;  %595 = vst [vmem:[#allocation3 + $0x8] sm:$0xff] (!%p6370_p3), %v9051_v0 }
  0x40   : > { %s9260_s30 = scalar_lea.vmem %s12950_s4, %s6365_s24  ;;  %596 = vst [vmem:[#allocation3 + $0x10] sm:$0xff] (!%p6370_p3), %v9051_v0  ;;  %597 = vst [vmem:[#allocation3 + $0x18] sm:$0xff] (!%p6370_p3), %v9051_v0 }
  0x44 PF: > { %s9268_s14 = sshll.u32 %s9174_s25, 3  ;;  %s12951_s0 = sld [smem:[#allocation275_spill]]  ;;  %v9284_v3 = vld [vmem:[%s12608_s9] sm:$0xff]  ;;  %v9289_v4 = vld [vmem:[%s12608_s9 + $0x8] sm:$0xff]  ;;  %v9294_v5 = vld [vmem:[%s12608_s9 + $0x10] sm:$0xff]  ;;  %v12636_v7 = vmov 0  }
  0x45   : > { %12954 = vst [vmem:[#allocation26_spill] sm:$0xff] %v9284_v3  ;;  %12955 = vst [vmem:[#allocation27_spill] sm:$0xff] %v9289_v4  ;;  %v9299_v6 = vld [vmem:[%s12608_s9 + $0x18] sm:$0xff]  ;;  %1014 = vmatprep.mubr.bf16.mxu0 %v12636_v7  ;;  %1087 = vmatprep.mubr.bf16.mxu1 %v12636_v7  ;;  %v9306_v8 = vld [vmem:[%s12608_s9 + $0x20] sm:$0xff]  ;;  %s13019_s5 = sld [smem:[#allocation280_spill]]  ;;  %s13043_s23 = sld [smem:[#allocation281_spill]] }
  0x46   : > { %12956 = vst [vmem:[#allocation28_spill] sm:$0xff] %v9294_v5  ;;  %12957 = vst [vmem:[#allocation29_spill] sm:$0xff] %v9299_v6  ;;  %v9311_v9 = vld [vmem:[%s12608_s9 + $0x28] sm:$0xff]  ;;  %v9316_v10 = vld [vmem:[%s12608_s9 + $0x30] sm:$0xff]  ;;  %s10438_s24 = smov 0  }
  0x47   : > { %12958 = vst [vmem:[#allocation30_spill] sm:$0xff] %v9306_v8  ;;  %12959 = vst [vmem:[#allocation31_spill] sm:$0xff] %v9311_v9  ;;  %v9321_v11 = vld [vmem:[%s12608_s9 + $0x38] sm:$0xff]  ;;  %v9326_v12 = vld [vmem:[%s12608_s9 + $0x40] sm:$0xff] }
  0x48   : > { %12960 = vst [vmem:[#allocation32_spill] sm:$0xff] %v9316_v10  ;;  %12961 = vst [vmem:[#allocation33_spill] sm:$0xff] %v9321_v11  ;;  %v9331_v13 = vld [vmem:[%s12608_s9 + $0x48] sm:$0xff]  ;;  %v9336_v14 = vld [vmem:[%s12608_s9 + $0x50] sm:$0xff] }
  0x49   : > { %12962 = vst [vmem:[#allocation34_spill] sm:$0xff] %v9326_v12  ;;  %12963 = vst [vmem:[#allocation35_spill] sm:$0xff] %v9331_v13  ;;  %v9341_v15 = vld [vmem:[%s12608_s9 + $0x58] sm:$0xff]  ;;  %v9346_v16 = vld [vmem:[%s12608_s9 + $0x60] sm:$0xff] }
  0x4a   : > { %v9274_v1 = vld [vmem:[%s12951_s0] sm:$0xff]  ;;  %v9279_v2 = vld [vmem:[%s12951_s0 + $0x8] sm:$0xff]  ;;  %12964 = vst [vmem:[#allocation36_spill] sm:$0xff] %v9336_v14  ;;  %12965 = vst [vmem:[#allocation37_spill] sm:$0xff] %v9341_v15 }
  0x4b   : > { %12952 = vst [vmem:[#allocation24_spill] sm:$0xff] %v9274_v1  ;;  %12953 = vst [vmem:[#allocation25_spill] sm:$0xff] %v9279_v2  ;;  %v9351_v17 = vld [vmem:[%s12608_s9 + $0x68] sm:$0xff]  ;;  %v9356_v18 = vld [vmem:[%s12608_s9 + $0x70] sm:$0xff] }
  0x4c   : > { %12966 = vst [vmem:[#allocation38_spill] sm:$0xff] %v9346_v16  ;;  %12967 = vst [vmem:[#allocation39_spill] sm:$0xff] %v9351_v17  ;;  %v9361_v19 = vld [vmem:[%s12608_s9 + $0x78] sm:$0xff]  ;;  %v9366_v20 = vld [vmem:[%s12608_s9 + $0x80] sm:$0xff] }
  0x4d   : > { %12968 = vst [vmem:[#allocation40_spill] sm:$0xff] %v9356_v18  ;;  %12969 = vst [vmem:[#allocation41_spill] sm:$0xff] %v9361_v19  ;;  %v9371_v21 = vld [vmem:[%s12608_s9 + $0x88] sm:$0xff]  ;;  %v9376_v22 = vld [vmem:[%s12608_s9 + $0x90] sm:$0xff] }
  0x4e   : > { %12970 = vst [vmem:[#allocation42_spill] sm:$0xff] %v9366_v20  ;;  %12971 = vst [vmem:[#allocation43_spill] sm:$0xff] %v9371_v21  ;;  %v9381_v23 = vld [vmem:[%s12608_s9 + $0x98] sm:$0xff]  ;;  %v9386_v24 = vld [vmem:[%s12608_s9 + $0xa0] sm:$0xff] }
  0x4f   : > { %12972 = vst [vmem:[#allocation44_spill] sm:$0xff] %v9376_v22  ;;  %12973 = vst [vmem:[#allocation45_spill] sm:$0xff] %v9381_v23  ;;  %v9391_v25 = vld [vmem:[%s12608_s9 + $0xa8] sm:$0xff]  ;;  %v9396_v26 = vld [vmem:[%s12608_s9 + $0xb0] sm:$0xff] }
  0x50   : > { %12974 = vst [vmem:[#allocation46_spill] sm:$0xff] %v9386_v24  ;;  %12975 = vst [vmem:[#allocation47_spill] sm:$0xff] %v9391_v25  ;;  %v9401_v27 = vld [vmem:[%s12608_s9 + $0xb8] sm:$0xff]  ;;  %v9406_v28 = vld [vmem:[%s12608_s9 + $0xc0] sm:$0xff] }
  0x51   : > { %12976 = vst [vmem:[#allocation48_spill] sm:$0xff] %v9396_v26  ;;  %12977 = vst [vmem:[#allocation49_spill] sm:$0xff] %v9401_v27  ;;  %v9411_v29 = vld [vmem:[%s12608_s9 + $0xc8] sm:$0xff]  ;;  %v9416_v30 = vld [vmem:[%s12608_s9 + $0xd0] sm:$0xff] }
  0x52   : > { %12978 = vst [vmem:[#allocation50_spill] sm:$0xff] %v9406_v28  ;;  %12979 = vst [vmem:[#allocation51_spill] sm:$0xff] %v9411_v29  ;;  %v9421_v31 = vld [vmem:[%s12608_s9 + $0xd8] sm:$0xff]  ;;  %v9426_v32 = vld [vmem:[%s12608_s9 + $0xe0] sm:$0xff] }
  0x53   : > { %12980 = vst [vmem:[#allocation52_spill] sm:$0xff] %v9416_v30  ;;  %12981 = vst [vmem:[#allocation53_spill] sm:$0xff] %v9421_v31  ;;  %v9431_v33 = vld [vmem:[%s12608_s9 + $0xe8] sm:$0xff]  ;;  %v9436_v34 = vld [vmem:[%s12608_s9 + $0xf0] sm:$0xff] }
  0x54   : > { %12982 = vst [vmem:[#allocation54_spill] sm:$0xff] %v9426_v32  ;;  %12983 = vst [vmem:[#allocation55_spill] sm:$0xff] %v9431_v33  ;;  %v9441_v35 = vld [vmem:[%s12608_s9 + $0xf8] sm:$0xff]  ;;  %v9446_v36 = vld [vmem:[%s12608_s9 + $0x100] sm:$0xff] }
  0x55   : > { %12984 = vst [vmem:[#allocation56_spill] sm:$0xff] %v9436_v34  ;;  %12985 = vst [vmem:[#allocation57_spill] sm:$0xff] %v9441_v35  ;;  %v9451_v37 = vld [vmem:[%s12608_s9 + $0x108] sm:$0xff]  ;;  %v9456_v38 = vld [vmem:[%s12608_s9 + $0x110] sm:$0xff] }
  0x56   : > { %12986 = vst [vmem:[#allocation58_spill] sm:$0xff] %v9446_v36  ;;  %12987 = vst [vmem:[#allocation59_spill] sm:$0xff] %v9451_v37  ;;  %v9461_v39 = vld [vmem:[%s12608_s9 + $0x118] sm:$0xff]  ;;  %v9466_v40 = vld [vmem:[%s12608_s9 + $0x120] sm:$0xff] }
  0x57   : > { %12988 = vst [vmem:[#allocation60_spill] sm:$0xff] %v9456_v38  ;;  %12989 = vst [vmem:[#allocation61_spill] sm:$0xff] %v9461_v39  ;;  %v9471_v41 = vld [vmem:[%s12608_s9 + $0x128] sm:$0xff]  ;;  %v9476_v42 = vld [vmem:[%s12608_s9 + $0x130] sm:$0xff] }
  0x58   : > { %12990 = vst [vmem:[#allocation62_spill] sm:$0xff] %v9466_v40  ;;  %12991 = vst [vmem:[#allocation63_spill] sm:$0xff] %v9471_v41  ;;  %v9481_v43 = vld [vmem:[%s12608_s9 + $0x138] sm:$0xff]  ;;  %v9486_v44 = vld [vmem:[%s12608_s9 + $0x140] sm:$0xff] }
  0x59   : > { %12992 = vst [vmem:[#allocation64_spill] sm:$0xff] %v9476_v42  ;;  %12993 = vst [vmem:[#allocation65_spill] sm:$0xff] %v9481_v43  ;;  %v9491_v45 = vld [vmem:[%s12608_s9 + $0x148] sm:$0xff]  ;;  %v9496_v46 = vld [vmem:[%s12608_s9 + $0x150] sm:$0xff] }
  0x5a   : > { %12994 = vst [vmem:[#allocation66_spill] sm:$0xff] %v9486_v44  ;;  %12995 = vst [vmem:[#allocation67_spill] sm:$0xff] %v9491_v45  ;;  %v9501_v47 = vld [vmem:[%s12608_s9 + $0x158] sm:$0xff]  ;;  %v9506_v48 = vld [vmem:[%s12608_s9 + $0x160] sm:$0xff] }
  0x5b   : > { %12996 = vst [vmem:[#allocation68_spill] sm:$0xff] %v9496_v46  ;;  %12997 = vst [vmem:[#allocation69_spill] sm:$0xff] %v9501_v47  ;;  %v9511_v49 = vld [vmem:[%s12608_s9 + $0x168] sm:$0xff]  ;;  %v9516_v50 = vld [vmem:[%s12608_s9 + $0x170] sm:$0xff] }
  0x5c   : > { %12998 = vst [vmem:[#allocation70_spill] sm:$0xff] %v9506_v48  ;;  %12999 = vst [vmem:[#allocation71_spill] sm:$0xff] %v9511_v49  ;;  %v9521_v51 = vld [vmem:[%s12608_s9 + $0x178] sm:$0xff]  ;;  %v9526_v52 = vld [vmem:[%s12608_s9 + $0x180] sm:$0xff] }
  0x5d   : > { %13000 = vst [vmem:[#allocation72_spill] sm:$0xff] %v9516_v50  ;;  %13001 = vst [vmem:[#allocation73_spill] sm:$0xff] %v9521_v51  ;;  %v9531_v53 = vld [vmem:[%s12608_s9 + $0x188] sm:$0xff]  ;;  %v9536_v54 = vld [vmem:[%s12608_s9 + $0x190] sm:$0xff] }
  0x5e   : > { %13002 = vst [vmem:[#allocation74_spill] sm:$0xff] %v9526_v52  ;;  %13003 = vst [vmem:[#allocation75_spill] sm:$0xff] %v9531_v53  ;;  %v9541_v55 = vld [vmem:[%s12608_s9 + $0x198] sm:$0xff]  ;;  %v9546_v56 = vld [vmem:[%s12608_s9 + $0x1a0] sm:$0xff] }
  0x5f   : > { %13004 = vst [vmem:[#allocation76_spill] sm:$0xff] %v9536_v54  ;;  %13005 = vst [vmem:[#allocation77_spill] sm:$0xff] %v9541_v55  ;;  %v9551_v57 = vld [vmem:[%s12608_s9 + $0x1a8] sm:$0xff]  ;;  %v9556_v58 = vld [vmem:[%s12608_s9 + $0x1b0] sm:$0xff] }
  0x60   : > { %13006 = vst [vmem:[#allocation78_spill] sm:$0xff] %v9546_v56  ;;  %13007 = vst [vmem:[#allocation79_spill] sm:$0xff] %v9551_v57  ;;  %v9561_v59 = vld [vmem:[%s12608_s9 + $0x1b8] sm:$0xff]  ;;  %v9566_v60 = vld [vmem:[%s12608_s9 + $0x1c0] sm:$0xff] }
  0x61   : > { %13008 = vst [vmem:[#allocation80_spill] sm:$0xff] %v9556_v58  ;;  %13009 = vst [vmem:[#allocation81_spill] sm:$0xff] %v9561_v59  ;;  %v9571_v61 = vld [vmem:[%s12608_s9 + $0x1c8] sm:$0xff]  ;;  %v9576_v62 = vld [vmem:[%s12608_s9 + $0x1d0] sm:$0xff] }
  0x62   : > { %13010 = vst [vmem:[#allocation82_spill] sm:$0xff] %v9566_v60  ;;  %13011 = vst [vmem:[#allocation83_spill] sm:$0xff] %v9571_v61  ;;  %v9581_v63 = vld [vmem:[%s12608_s9 + $0x1d8] sm:$0xff]  ;;  %v9586_v0 = vld [vmem:[%s12608_s9 + $0x1e0] sm:$0xff] }
  0x63   : > { %13012 = vst [vmem:[#allocation84_spill] sm:$0xff] %v9576_v62  ;;  %13013 = vst [vmem:[#allocation85_spill] sm:$0xff] %v9581_v63  ;;  %v9591_v7 = vld [vmem:[%s12608_s9 + $0x1e8] sm:$0xff]  ;;  %v9596_v55 = vld [vmem:[%s12608_s9 + $0x1f0] sm:$0xff] }
  0x64   : > { %13014 = vst [vmem:[#allocation86_spill] sm:$0xff] %v9586_v0  ;;  %13015 = vst [vmem:[#allocation87_spill] sm:$0xff] %v9591_v7  ;;  %v9601_v59 = vld [vmem:[%s12608_s9 + $0x1f8] sm:$0xff]  ;;  %v7673_v63 = vld [vmem:[%s12605_s6 + $0x4] ss:$16 sps:$4 sm:$0xff]  }
  0x65   : > { %13016 = vst [vmem:[#allocation88_spill] sm:$0xff] %v9596_v55  ;;  %13017 = vst [vmem:[#allocation89_spill] sm:$0xff] %v9601_v59  ;;  %v7675_v62 = vld [vmem:[%s12605_s6 + $0xc] ss:$16 sps:$4 sm:$0xff]   ;;  %982 = vmatprep.subr.bf16.mxu0 %v7673_v63  ;;  %v7677_v47 = vld [vmem:[%s12605_s6] ss:$16 sps:$4 sm:$0xff]  }
  0x66   : > { %v7678_v55 = vld [vmem:[%s12605_s6 + $0x8] ss:$16 sps:$4 sm:$0xff]   ;;  %1055 = vmatprep.subr.bf16.mxu1 %v7675_v62  ;;  %v7679_v59 = vld [vmem:[%s12605_s6 + $0x24] ss:$16 sps:$4 sm:$0xff]   ;;  %983 = vmatpush1.bf16.msra.mxu0 %v7677_v47  ;;  %v7681_v51 = vld [vmem:[%s12605_s6 + $0x2c] ss:$16 sps:$4 sm:$0xff]  }
  0x67   : > { %1056 = vmatpush1.bf16.msra.mxu1 %v7678_v55  ;;  %v7683_v63 = vld [vmem:[%s12605_s6 + $0x20] ss:$16 sps:$4 sm:$0xff]   ;;  %984 = vmatprep.subr.bf16.mxu0 %v7679_v59  ;;  %v7684_v54 = vld [vmem:[%s12605_s6 + $0x28] ss:$16 sps:$4 sm:$0xff]   ;;  %v7685_v62 = vld [vmem:[%s12605_s6 + $0x44] ss:$16 sps:$4 sm:$0xff]  }
  0x68   : > { %1057 = vmatprep.subr.bf16.mxu1 %v7681_v51  ;;  %v7687_v47 = vld [vmem:[%s12605_s6 + $0x4c] ss:$16 sps:$4 sm:$0xff]   ;;  %v7689_v55 = vld [vmem:[%s12605_s6 + $0x40] ss:$16 sps:$4 sm:$0xff]   ;;  %v7690_v59 = vld [vmem:[%s12605_s6 + $0x48] ss:$16 sps:$4 sm:$0xff]  }
  0x69   : > { %v7691_v51 = vld [vmem:[%s12605_s6 + $0x64] ss:$16 sps:$4 sm:$0xff]   ;;  %v7693_v58 = vld [vmem:[%s12605_s6 + $0x6c] ss:$16 sps:$4 sm:$0xff]   ;;  %v7695_v39 = vld [vmem:[%s12605_s6 + $0x60] ss:$16 sps:$4 sm:$0xff]  }
  0x6a   : > { %985 = vmatpush1.bf16.msra.mxu0 %v7683_v63  ;;  %v7697_v63 = vld [vmem:[%s12605_s6 + $0x84] ss:$16 sps:$4 sm:$0xff]   ;;  %v7746_v43 = vld [vmem:[%s12607_s8 + $0x6c] ss:$16 sps:$4 sm:$0xff]   ;;  %v7741_v46 = vld [vmem:[%s12607_s8 + $0x60] ss:$16 sps:$4 sm:$0xff]  }
  0x6b   : > { %1058 = vmatpush1.bf16.msra.mxu1 %v7684_v54  ;;  %986 = vmatprep.subr.bf16.mxu0 %v7685_v62  ;;  %v7696_v54 = vld [vmem:[%s12605_s6 + $0x68] ss:$16 sps:$4 sm:$0xff]   ;;  %v7699_v62 = vld [vmem:[%s12605_s6 + $0x8c] ss:$16 sps:$4 sm:$0xff]   ;;  %v676_v31 = vld [vmem:[%s12609_s10] sm:$0xf] }
  0x6c   : > { %1059 = vmatprep.subr.bf16.mxu1 %v7687_v47  ;;  %v7701_v47 = vld [vmem:[%s12605_s6 + $0x80] ss:$16 sps:$4 sm:$0xff]  }
  0x6e   : > { %987 = vmatpush1.bf16.msra.mxu0 %v7689_v55  ;;  %v7702_v55 = vld [vmem:[%s12605_s6 + $0x88] ss:$16 sps:$4 sm:$0xff]  }
  0x6f   : > { %1060 = vmatpush1.bf16.msra.mxu1 %v7690_v59  ;;  %988 = vmatprep.subr.bf16.mxu0 %v7691_v51  ;;  %v7703_v59 = vld [vmem:[%s12605_s6 + $0xa4] ss:$16 sps:$4 sm:$0xff]   ;;  %v7707_v51 = vld [vmem:[%s12605_s6 + $0xa0] ss:$16 sps:$4 sm:$0xff]  }
  0x70   : > { %1061 = vmatprep.subr.bf16.mxu1 %v7693_v58  ;;  %v7705_v58 = vld [vmem:[%s12605_s6 + $0xac] ss:$16 sps:$4 sm:$0xff]  }
  0x72   : > { %989 = vmatpush1.bf16.msra.mxu0 %v7695_v39  ;;  %v7708_v39 = vld [vmem:[%s12605_s6 + $0xa8] ss:$16 sps:$4 sm:$0xff]  }
  0x73   : > { %1062 = vmatpush1.bf16.msra.mxu1 %v7696_v54  ;;  %990 = vmatprep.subr.bf16.mxu0 %v7697_v63  ;;  %v7709_v54 = vld [vmem:[%s12605_s6 + $0xc4] ss:$16 sps:$4 sm:$0xff]   ;;  %v7711_v63 = vld [vmem:[%s12605_s6 + $0xcc] ss:$16 sps:$4 sm:$0xff]  }
  0x74   : > { %1063 = vmatprep.subr.bf16.mxu1 %v7699_v62  ;;  %v7713_v62 = vld [vmem:[%s12605_s6 + $0xc0] ss:$16 sps:$4 sm:$0xff]  }
  0x76   : > { %991 = vmatpush1.bf16.msra.mxu0 %v7701_v47  ;;  %v7714_v47 = vld [vmem:[%s12605_s6 + $0xc8] ss:$16 sps:$4 sm:$0xff]  }
  0x77   : > { %1064 = vmatpush1.bf16.msra.mxu1 %v7702_v55  ;;  %992 = vmatprep.subr.bf16.mxu0 %v7703_v59  ;;  %v7715_v55 = vld [vmem:[%s12605_s6 + $0xe4] ss:$16 sps:$4 sm:$0xff]   ;;  %v7717_v59 = vld [vmem:[%s12605_s6 + $0xec] ss:$16 sps:$4 sm:$0xff]  }
  0x78   : > { %1065 = vmatprep.subr.bf16.mxu1 %v7705_v58  ;;  %v7719_v58 = vld [vmem:[%s12605_s6 + $0xe0] ss:$16 sps:$4 sm:$0xff]  }
  0x7a   : > { %993 = vmatpush1.bf16.msra.mxu0 %v7707_v51  ;;  %v7720_v51 = vld [vmem:[%s12605_s6 + $0xe8] ss:$16 sps:$4 sm:$0xff]  }
  0x7b   : > { %1066 = vmatpush1.bf16.msra.mxu1 %v7708_v39  ;;  %994 = vmatprep.subr.bf16.mxu0 %v7709_v54  ;;  %v7724_v39 = vld [vmem:[%s12607_s8 + $0x4] ss:$16 sps:$4 sm:$0xff]   ;;  %v7727_v54 = vld [vmem:[%s12607_s8 + $0xc] ss:$16 sps:$4 sm:$0xff]  }
  0x7c   : > { %1067 = vmatprep.subr.bf16.mxu1 %v7711_v63  ;;  %v7721_v63 = vld [vmem:[%s9255_s22] sm:$0xff]  }
  0x7e   : > { %995 = vmatpush1.bf16.msra.mxu0 %v7713_v62  ;;  %v7722_v62 = vld [vmem:[%s12607_s8] ss:$16 sps:$4 sm:$0xff]  }
  0x7f   : > { %1068 = vmatpush1.bf16.msra.mxu1 %v7714_v47  ;;  %996 = vmatprep.subr.bf16.mxu0 %v7715_v55  ;;  %v7725_v47 = vld [vmem:[%s12607_s8 + $0x8] ss:$16 sps:$4 sm:$0xff]   ;;  %v7730_v55 = vld [vmem:[%s12607_s8 + $0x24] ss:$16 sps:$4 sm:$0xff]  }
  0x80   : > { %1069 = vmatprep.subr.bf16.mxu1 %v7717_v59  ;;  %v7733_v59 = vld [vmem:[%s12607_s8 + $0x2c] ss:$16 sps:$4 sm:$0xff]  }
  0x82   : > { %997 = vmatpush1.bf16.msra.mxu0 %v7719_v58  ;;  %v7728_v58 = vld [vmem:[%s12607_s8 + $0x20] ss:$16 sps:$4 sm:$0xff]  }
  0x83   : > { %1070 = vmatpush1.bf16.msra.mxu1 %v7720_v51  ;;  %1352 = vmatprep.subr.bf16.mxu0 %v7724_v39  ;;  %v7731_v51 = vld [vmem:[%s12607_s8 + $0x28] ss:$16 sps:$4 sm:$0xff]   ;;  %v7737_v39 = vld [vmem:[%s12607_s8 + $0x44] ss:$16 sps:$4 sm:$0xff]  }
  0x84   : > { %1425 = vmatprep.subr.bf16.mxu1 %v7727_v54  ;;  %v7740_v54 = vld [vmem:[%s12607_s8 + $0x4c] ss:$16 sps:$4 sm:$0xff]  }
  0x85   : > { %1015 = vmatmul.mubr.bf16.vlgmr.msra.gmra.mrb[0].mxu0 %v7721_v63 }
  0x86   : > { %1088 = vmatmul.mubr.bf16.vlgmr.msra.gmra.mrb[0].mxu1 %v7721_v63  ;;  %1353 = vmatpush1.bf16.msra.mxu0 %v7722_v62  ;;  %v13018_v63 = vmov 0   ;;  %v7734_v62 = vld [vmem:[%s9255_s22 + $0x8] sm:$0xff]  }
  0x87   : > { %1426 = vmatpush1.bf16.msra.mxu1 %v7725_v47  ;;  %1354 = vmatprep.subr.bf16.mxu0 %v7730_v55  ;;  %v7735_v47 = vld [vmem:[%s12607_s8 + $0x40] ss:$16 sps:$4 sm:$0xff]   ;;  %v7738_v55 = vld [vmem:[%s12607_s8 + $0x48] ss:$16 sps:$4 sm:$0xff]  }
  0x88   : > { %1427 = vmatprep.subr.bf16.mxu1 %v7733_v59  ;;  %1024 = vmatprep.mubr.bf16.mxu0 %v13018_v63  ;;  %v7743_v59 = vld [vmem:[%s12607_s8 + $0x64] ss:$16 sps:$4 sm:$0xff]  }
  0x89   : > { %1097 = vmatprep.mubr.bf16.mxu1 %v13018_v63 }
  0x8a   : > { %1355 = vmatpush1.bf16.msra.mxu0 %v7728_v58  ;;  %v7744_v58 = vld [vmem:[%s12607_s8 + $0x68] ss:$16 sps:$4 sm:$0xff]  }
  0x8b   : > { %1428 = vmatpush1.bf16.msra.mxu1 %v7731_v51  ;;  %1356 = vmatprep.subr.bf16.mxu0 %v7737_v39  ;;  %v7750_v51 = vld [vmem:[%s12607_s8 + $0x84] ss:$16 sps:$4 sm:$0xff]   ;;  %v7753_v39 = vld [vmem:[%s12607_s8 + $0x8c] ss:$16 sps:$4 sm:$0xff]  }
  0x8c   : > { %1429 = vmatprep.subr.bf16.mxu1 %v7740_v54  ;;  %v7747_v54 = vld [vmem:[%s9255_s22 + $0x10] sm:$0xff]  }
  0x8d   : > { %1025 = vmatmul.mubr.bf16.gmra.mrb[4].mxu0 %v7734_v62 }
  0x8e   : > { %1098 = vmatmul.mubr.bf16.gmra.mrb[4].mxu1 %v7734_v62  ;;  %1357 = vmatpush1.bf16.msra.mxu0 %v7735_v47  ;;  %v7748_v62 = vld [vmem:[%s12607_s8 + $0x80] ss:$16 sps:$4 sm:$0xff]   ;;  %v7751_v47 = vld [vmem:[%s12607_s8 + $0x88] ss:$16 sps:$4 sm:$0xff]  }
  0x8f   : > { %1430 = vmatpush1.bf16.msra.mxu1 %v7738_v55  ;;  %1358 = vmatprep.subr.bf16.mxu0 %v7743_v59  ;;  %v7759_v55 = vld [vmem:[%s12607_s8 + $0xac] ss:$16 sps:$4 sm:$0xff]   ;;  %v7757_v59 = vld [vmem:[%s12607_s8 + $0xa8] ss:$16 sps:$4 sm:$0xff]  }
  0x90   : > { %1431 = vmatprep.subr.bf16.mxu1 %v7746_v43  ;;  %1034 = vmatprep.mubr.bf16.mxu0 %v13018_v63  ;;  %v7756_v43 = vld [vmem:[%s12607_s8 + $0xa4] ss:$16 sps:$4 sm:$0xff]  }
  0x91   : > { %1107 = vmatprep.mubr.bf16.mxu1 %v13018_v63 }
  0x92   : > { %1359 = vmatpush1.bf16.msra.mxu0 %v7741_v46  ;;  %v7754_v46 = vld [vmem:[%s12607_s8 + $0xa0] ss:$16 sps:$4 sm:$0xff]  }
  0x93   : > { %1432 = vmatpush1.bf16.msra.mxu1 %v7744_v58  ;;  %1360 = vmatprep.subr.bf16.mxu0 %v7750_v51  ;;  %v7763_v58 = vld [vmem:[%s12607_s8 + $0xc4] ss:$16 sps:$4 sm:$0xff]   ;;  %v7766_v51 = vld [vmem:[%s12607_s8 + $0xcc] ss:$16 sps:$4 sm:$0xff]  }
  0x94   : > { %1433 = vmatprep.subr.bf16.mxu1 %v7753_v39  ;;  %v7760_v39 = vld [vmem:[%s9255_s22 + $0x18] sm:$0xff]  }
  0x95   : > { %1035 = vmatmul.mubr.bf16.gmra.mrb[8].mxu0 %v7747_v54 }
  0x96   : > { %1108 = vmatmul.mubr.bf16.gmra.mrb[8].mxu1 %v7747_v54  ;;  %1361 = vmatpush1.bf16.msra.mxu0 %v7748_v62  ;;  %v7761_v54 = vld [vmem:[%s12607_s8 + $0xc0] ss:$16 sps:$4 sm:$0xff]   ;;  %v7764_v62 = vld [vmem:[%s12607_s8 + $0xc8] ss:$16 sps:$4 sm:$0xff]  }
  0x97   : > { %1434 = vmatpush1.bf16.msra.mxu1 %v7751_v47  ;;  %1362 = vmatprep.subr.bf16.mxu0 %v7756_v43  ;;  %v7769_v47 = vld [vmem:[%s12607_s8 + $0xe4] ss:$16 sps:$4 sm:$0xff]   ;;  %v7772_v43 = vld [vmem:[%s12607_s8 + $0xec] ss:$16 sps:$4 sm:$0xff]  }
  0x98   : > { %1435 = vmatprep.subr.bf16.mxu1 %v7759_v55  ;;  %1044 = vmatprep.mubr.bf16.mxu0 %v13018_v63  ;;  %v7767_v55 = vld [vmem:[%s12607_s8 + $0xe0] ss:$16 sps:$4 sm:$0xff]  }
  0x99   : > { %1117 = vmatprep.mubr.bf16.mxu1 %v13018_v63 }
  0x9a   : > { %1363 = vmatpush1.bf16.msra.mxu0 %v7754_v46  ;;  %v7770_v46 = vld [vmem:[%s12607_s8 + $0xe8] ss:$16 sps:$4 sm:$0xff]  }
  0x9b   : > { %1436 = vmatpush1.bf16.msra.mxu1 %v7757_v59  ;;  %1364 = vmatprep.subr.bf16.mxu0 %v7763_v58  ;;  %v7776_v59 = vld [vmem:[%s13019_s5 + $0x4] ss:$16 sps:$4 sm:$0xff]   ;;  %v7779_v58 = vld [vmem:[%s13019_s5 + $0xc] ss:$16 sps:$4 sm:$0xff]  }
  0x9c   : > { %1437 = vmatprep.subr.bf16.mxu1 %v7766_v51  ;;  %v7773_v51 = vld [vmem:[%s9260_s30 + $0x20] sm:$0xff]  }
  0x9d   : > { %1045 = vmatmul.mubr.bf16.gmra.mrb[12].mxu0 %v7760_v39 }
  0x9e   : > { %1118 = vmatmul.mubr.bf16.gmra.mrb[12].mxu1 %v7760_v39  ;;  %1365 = vmatpush1.bf16.msra.mxu0 %v7761_v54  ;;  %v7774_v39 = vld [vmem:[%s13019_s5] ss:$16 sps:$4 sm:$0xff]   ;;  %v7777_v54 = vld [vmem:[%s13019_s5 + $0x8] ss:$16 sps:$4 sm:$0xff]  }
  0x9f   : > { %1438 = vmatpush1.bf16.msra.mxu1 %v7764_v62  ;;  %1366 = vmatprep.subr.bf16.mxu0 %v7769_v47  ;;  %v7782_v62 = vld [vmem:[%s13019_s5 + $0x24] ss:$16 sps:$4 sm:$0xff]   ;;  %v7785_v47 = vld [vmem:[%s13019_s5 + $0x2c] ss:$16 sps:$4 sm:$0xff]  }
  0xa0   : > { %1439 = vmatprep.subr.bf16.mxu1 %v7772_v43  ;;  %1384 = vmatprep.mubr.bf16.mxu0 %v13018_v63  ;;  %v7780_v43 = vld [vmem:[%s13019_s5 + $0x20] ss:$16 sps:$4 sm:$0xff]  }
  0xa1   : > { %1457 = vmatprep.mubr.bf16.mxu1 %v13018_v63 }
  0xa2   : > { %1367 = vmatpush1.bf16.msra.mxu0 %v7767_v55  ;;  %v7783_v55 = vld [vmem:[%s13019_s5 + $0x28] ss:$16 sps:$4 sm:$0xff]  }
  0xa3   : > { %1440 = vmatpush1.bf16.msra.mxu1 %v7770_v46  ;;  %1682 = vmatprep.subr.bf16.mxu0 %v7776_v59  ;;  %v7789_v46 = vld [vmem:[%s13019_s5 + $0x44] ss:$16 sps:$4 sm:$0xff]   ;;  %v7792_v59 = vld [vmem:[%s13019_s5 + $0x4c] ss:$16 sps:$4 sm:$0xff]  }
  0xa4   : > { %1755 = vmatprep.subr.bf16.mxu1 %v7779_v58  ;;  %v7786_v58 = vld [vmem:[%s9260_s30 + $0x28] sm:$0xff]  }
  0xa5   : > { %1385 = vmatmul.mubr.bf16.vlgmr.msra.gmra.mrb[16].mxu0 %v7773_v51 }
  0xa6   : > { %1458 = vmatmul.mubr.bf16.vlgmr.msra.gmra.mrb[16].mxu1 %v7773_v51  ;;  %1683 = vmatpush1.bf16.msra.mxu0 %v7774_v39  ;;  %v7787_v51 = vld [vmem:[%s13019_s5 + $0x40] ss:$16 sps:$4 sm:$0xff]   ;;  %v7790_v39 = vld [vmem:[%s13019_s5 + $0x48] ss:$16 sps:$4 sm:$0xff]  }
  0xa7   : > { %1756 = vmatpush1.bf16.msra.mxu1 %v7777_v54  ;;  %1684 = vmatprep.subr.bf16.mxu0 %v7782_v62  ;;  %v7795_v54 = vld [vmem:[%s13019_s5 + $0x64] ss:$16 sps:$4 sm:$0xff]   ;;  %v7798_v62 = vld [vmem:[%s13019_s5 + $0x6c] ss:$16 sps:$4 sm:$0xff]  }
  0xa8   : > { %1757 = vmatprep.subr.bf16.mxu1 %v7785_v47  ;;  %1394 = vmatprep.mubr.bf16.mxu0 %v13018_v63  ;;  %v7793_v47 = vld [vmem:[%s13019_s5 + $0x60] ss:$16 sps:$4 sm:$0xff]  }
  0xa9   : > { %1467 = vmatprep.mubr.bf16.mxu1 %v13018_v63 }
  0xaa   : > { %1685 = vmatpush1.bf16.msra.mxu0 %v7780_v43  ;;  %v7796_v43 = vld [vmem:[%s13019_s5 + $0x68] ss:$16 sps:$4 sm:$0xff]  }
  0xab   : > { %1758 = vmatpush1.bf16.msra.mxu1 %v7783_v55  ;;  %1686 = vmatprep.subr.bf16.mxu0 %v7789_v46  ;;  %v7802_v55 = vld [vmem:[%s13019_s5 + $0x84] ss:$16 sps:$4 sm:$0xff]   ;;  %v7805_v46 = vld [vmem:[%s13019_s5 + $0x8c] ss:$16 sps:$4 sm:$0xff]  }
  0xac   : > { %1759 = vmatprep.subr.bf16.mxu1 %v7792_v59  ;;  %v7799_v59 = vld [vmem:[%s9260_s30 + $0x30] sm:$0xff]  }
  0xad   : > { %1395 = vmatmul.mubr.bf16.gmra.mrb[20].mxu0 %v7786_v58 }
  0xae   : > { %1468 = vmatmul.mubr.bf16.gmra.mrb[20].mxu1 %v7786_v58  ;;  %1687 = vmatpush1.bf16.msra.mxu0 %v7787_v51  ;;  %v7800_v58 = vld [vmem:[%s13019_s5 + $0x80] ss:$16 sps:$4 sm:$0xff]   ;;  %v7803_v51 = vld [vmem:[%s13019_s5 + $0x88] ss:$16 sps:$4 sm:$0xff]  }
  0xaf   : > { %1760 = vmatpush1.bf16.msra.mxu1 %v7790_v39  ;;  %1688 = vmatprep.subr.bf16.mxu0 %v7795_v54  ;;  %v7808_v39 = vld [vmem:[%s13019_s5 + $0xa4] ss:$16 sps:$4 sm:$0xff]   ;;  %v7811_v54 = vld [vmem:[%s13019_s5 + $0xac] ss:$16 sps:$4 sm:$0xff]  }
  0xb0   : > { %1761 = vmatprep.subr.bf16.mxu1 %v7798_v62  ;;  %1404 = vmatprep.mubr.bf16.mxu0 %v13018_v63  ;;  %v7806_v62 = vld [vmem:[%s13019_s5 + $0xa0] ss:$16 sps:$4 sm:$0xff]  }
  0xb1   : > { %1477 = vmatprep.mubr.bf16.mxu1 %v13018_v63 }
  0xb2   : > { %1689 = vmatpush1.bf16.msra.mxu0 %v7793_v47  ;;  %v7809_v47 = vld [vmem:[%s13019_s5 + $0xa8] ss:$16 sps:$4 sm:$0xff]  }
  0xb3   : > { %1762 = vmatpush1.bf16.msra.mxu1 %v7796_v43  ;;  %1690 = vmatprep.subr.bf16.mxu0 %v7802_v55  ;;  %v7815_v43 = vld [vmem:[%s13019_s5 + $0xc4] ss:$16 sps:$4 sm:$0xff]   ;;  %v7818_v55 = vld [vmem:[%s13019_s5 + $0xcc] ss:$16 sps:$4 sm:$0xff]  }
  0xb4   : > { %1763 = vmatprep.subr.bf16.mxu1 %v7805_v46  ;;  %v7812_v46 = vld [vmem:[%s9260_s30 + $0x38] sm:$0xff]  }
  0xb5   : > { %1405 = vmatmul.mubr.bf16.gmra.mrb[24].mxu0 %v7799_v59 }
  0xb6   : > { %1478 = vmatmul.mubr.bf16.gmra.mrb[24].mxu1 %v7799_v59  ;;  %1691 = vmatpush1.bf16.msra.mxu0 %v7800_v58  ;;  %v7813_v59 = vld [vmem:[%s13019_s5 + $0xc0] ss:$16 sps:$4 sm:$0xff]   ;;  %v7816_v58 = vld [vmem:[%s13019_s5 + $0xc8] ss:$16 sps:$4 sm:$0xff]  }
  0xb7   : > { %1764 = vmatpush1.bf16.msra.mxu1 %v7803_v51  ;;  %1692 = vmatprep.subr.bf16.mxu0 %v7808_v39  ;;  %v7821_v51 = vld [vmem:[%s13019_s5 + $0xe4] ss:$16 sps:$4 sm:$0xff]   ;;  %v7824_v39 = vld [vmem:[%s13019_s5 + $0xec] ss:$16 sps:$4 sm:$0xff]  }
  0xb8   : > { %1765 = vmatprep.subr.bf16.mxu1 %v7811_v54  ;;  %1414 = vmatprep.mubr.bf16.mxu0 %v13018_v63  ;;  %v7819_v54 = vld [vmem:[%s13019_s5 + $0xe0] ss:$16 sps:$4 sm:$0xff]  }
  0xb9   : > { %1487 = vmatprep.mubr.bf16.mxu1 %v13018_v63 }
  0xba   : > { %1693 = vmatpush1.bf16.msra.mxu0 %v7806_v62  ;;  %v7822_v62 = vld [vmem:[%s13019_s5 + $0xe8] ss:$16 sps:$4 sm:$0xff]  }
  0xbb   : > { %1766 = vmatpush1.bf16.msra.mxu1 %v7809_v47  ;;  %1694 = vmatprep.subr.bf16.mxu0 %v7815_v43  ;;  %v7828_v47 = vld [vmem:[%s12606_s7 + $0x4] ss:$16 sps:$4 sm:$0xff]   ;;  %v7831_v43 = vld [vmem:[%s12606_s7 + $0xc] ss:$16 sps:$4 sm:$0xff]  }
  0xbc   : > { %1767 = vmatprep.subr.bf16.mxu1 %v7818_v55  ;;  %v7825_v55 = vld [vmem:[%s9245_s29] sm:$0xff]  }
  0xbd   : > { %1415 = vmatmul.mubr.bf16.gmra.mrb[28].mxu0 %v7812_v46 }
  0xbe   : > { %1488 = vmatmul.mubr.bf16.gmra.mrb[28].mxu1 %v7812_v46  ;;  %1695 = vmatpush1.bf16.msra.mxu0 %v7813_v59  ;;  %v7826_v46 = vld [vmem:[%s12606_s7] ss:$16 sps:$4 sm:$0xff]   ;;  %v7829_v59 = vld [vmem:[%s12606_s7 + $0x8] ss:$16 sps:$4 sm:$0xff]  }
  0xbf   : > { %1768 = vmatpush1.bf16.msra.mxu1 %v7816_v58  ;;  %1696 = vmatprep.subr.bf16.mxu0 %v7821_v51  ;;  %v7834_v58 = vld [vmem:[%s12606_s7 + $0x24] ss:$16 sps:$4 sm:$0xff]   ;;  %v7837_v51 = vld [vmem:[%s12606_s7 + $0x2c] ss:$16 sps:$4 sm:$0xff]  }
  0xc0   : > { %1769 = vmatprep.subr.bf16.mxu1 %v7824_v39  ;;  %1714 = vmatprep.mubr.bf16.mxu0 %v13018_v63  ;;  %v7832_v39 = vld [vmem:[%s12606_s7 + $0x20] ss:$16 sps:$4 sm:$0xff]  }
  0xc1   : > { %1787 = vmatprep.mubr.bf16.mxu1 %v13018_v63 }
  0xc2   : > { %1697 = vmatpush1.bf16.msra.mxu0 %v7819_v54  ;;  %v7835_v54 = vld [vmem:[%s12606_s7 + $0x28] ss:$16 sps:$4 sm:$0xff]  }
  0xc3   : > { %1770 = vmatpush1.bf16.msra.mxu1 %v7822_v62  ;;  %2012 = vmatprep.subr.bf16.mxu0 %v7828_v47  ;;  %v7841_v62 = vld [vmem:[%s12606_s7 + $0x44] ss:$16 sps:$4 sm:$0xff]   ;;  %v7844_v47 = vld [vmem:[%s12606_s7 + $0x4c] ss:$16 sps:$4 sm:$0xff]  }
  0xc4   : > { %2085 = vmatprep.subr.bf16.mxu1 %v7831_v43  ;;  %v7838_v43 = vld [vmem:[%s9245_s29 + $0x8] sm:$0xff]  }
  0xc5   : > { %1715 = vmatmul.mubr.bf16.vlgmr.msra.gmra.mrb[0].mxu0 %v7825_v55 }
  0xc6   : > { %1788 = vmatmul.mubr.bf16.vlgmr.msra.gmra.mrb[0].mxu1 %v7825_v55  ;;  %2013 = vmatpush1.bf16.msra.mxu0 %v7826_v46  ;;  %v7839_v55 = vld [vmem:[%s12606_s7 + $0x40] ss:$16 sps:$4 sm:$0xff]   ;;  %v7842_v46 = vld [vmem:[%s12606_s7 + $0x48] ss:$16 sps:$4 sm:$0xff]  }
  0xc7   : > { %2086 = vmatpush1.bf16.msra.mxu1 %v7829_v59  ;;  %2014 = vmatprep.subr.bf16.mxu0 %v7834_v58  ;;  %v7847_v59 = vld [vmem:[%s12606_s7 + $0x64] ss:$16 sps:$4 sm:$0xff]   ;;  %v7850_v58 = vld [vmem:[%s12606_s7 + $0x6c] ss:$16 sps:$4 sm:$0xff]  }
  0xc8   : > { %2087 = vmatprep.subr.bf16.mxu1 %v7837_v51  ;;  %1724 = vmatprep.mubr.bf16.mxu0 %v13018_v63  ;;  %v7845_v51 = vld [vmem:[%s12606_s7 + $0x60] ss:$16 sps:$4 sm:$0xff]  }
  0xc9   : > { %1797 = vmatprep.mubr.bf16.mxu1 %v13018_v63 }
  0xca   : > { %2015 = vmatpush1.bf16.msra.mxu0 %v7832_v39  ;;  %v7848_v39 = vld [vmem:[%s12606_s7 + $0x68] ss:$16 sps:$4 sm:$0xff]  }
  0xcb   : > { %2088 = vmatpush1.bf16.msra.mxu1 %v7835_v54  ;;  %2016 = vmatprep.subr.bf16.mxu0 %v7841_v62  ;;  %v7854_v54 = vld [vmem:[%s12606_s7 + $0x84] ss:$16 sps:$4 sm:$0xff]   ;;  %v7857_v62 = vld [vmem:[%s12606_s7 + $0x8c] ss:$16 sps:$4 sm:$0xff]  }
  0xcc   : > { %2089 = vmatprep.subr.bf16.mxu1 %v7844_v47  ;;  %v7851_v47 = vld [vmem:[%s9245_s29 + $0x10] sm:$0xff]  }
  0xcd   : > { %1725 = vmatmul.mubr.bf16.gmra.mrb[4].mxu0 %v7838_v43 }
  0xce   : > { %1798 = vmatmul.mubr.bf16.gmra.mrb[4].mxu1 %v7838_v43  ;;  %2017 = vmatpush1.bf16.msra.mxu0 %v7839_v55  ;;  %v7852_v43 = vld [vmem:[%s12606_s7 + $0x80] ss:$16 sps:$4 sm:$0xff]   ;;  %v7855_v55 = vld [vmem:[%s12606_s7 + $0x88] ss:$16 sps:$4 sm:$0xff]  }
  0xcf   : > { %2090 = vmatpush1.bf16.msra.mxu1 %v7842_v46  ;;  %2018 = vmatprep.subr.bf16.mxu0 %v7847_v59  ;;  %v7860_v46 = vld [vmem:[%s12606_s7 + $0xa4] ss:$16 sps:$4 sm:$0xff]   ;;  %v7863_v59 = vld [vmem:[%s12606_s7 + $0xac] ss:$16 sps:$4 sm:$0xff]  }
  0xd0   : > { %2091 = vmatprep.subr.bf16.mxu1 %v7850_v58  ;;  %1734 = vmatprep.mubr.bf16.mxu0 %v13018_v63  ;;  %v7858_v58 = vld [vmem:[%s12606_s7 + $0xa0] ss:$16 sps:$4 sm:$0xff]  }
  0xd1   : > { %1807 = vmatprep.mubr.bf16.mxu1 %v13018_v63 }
  0xd2   : > { %2019 = vmatpush1.bf16.msra.mxu0 %v7845_v51  ;;  %v7861_v51 = vld [vmem:[%s12606_s7 + $0xa8] ss:$16 sps:$4 sm:$0xff]  }
  0xd3   : > { %2092 = vmatpush1.bf16.msra.mxu1 %v7848_v39  ;;  %2020 = vmatprep.subr.bf16.mxu0 %v7854_v54  ;;  %v7867_v39 = vld [vmem:[%s12606_s7 + $0xc4] ss:$16 sps:$4 sm:$0xff]   ;;  %v7870_v54 = vld [vmem:[%s12606_s7 + $0xcc] ss:$16 sps:$4 sm:$0xff]  }
  0xd4   : > { %2093 = vmatprep.subr.bf16.mxu1 %v7857_v62  ;;  %v7864_v62 = vld [vmem:[%s9245_s29 + $0x18] sm:$0xff]  }
  0xd5   : > { %1735 = vmatmul.mubr.bf16.gmra.mrb[8].mxu0 %v7851_v47 }
  0xd6   : > { %1808 = vmatmul.mubr.bf16.gmra.mrb[8].mxu1 %v7851_v47  ;;  %2021 = vmatpush1.bf16.msra.mxu0 %v7852_v43  ;;  %v7865_v47 = vld [vmem:[%s12606_s7 + $0xc0] ss:$16 sps:$4 sm:$0xff]   ;;  %v7868_v43 = vld [vmem:[%s12606_s7 + $0xc8] ss:$16 sps:$4 sm:$0xff]  }
  0xd7   : > { %2094 = vmatpush1.bf16.msra.mxu1 %v7855_v55  ;;  %2022 = vmatprep.subr.bf16.mxu0 %v7860_v46  ;;  %v7873_v55 = vld [vmem:[%s12606_s7 + $0xe4] ss:$16 sps:$4 sm:$0xff]   ;;  %v7876_v46 = vld [vmem:[%s12606_s7 + $0xec] ss:$16 sps:$4 sm:$0xff]  }
  0xd8   : > { %2095 = vmatprep.subr.bf16.mxu1 %v7863_v59  ;;  %1744 = vmatprep.mubr.bf16.mxu0 %v13018_v63  ;;  %v7871_v59 = vld [vmem:[%s12606_s7 + $0xe0] ss:$16 sps:$4 sm:$0xff]  }
  0xd9   : > { %1817 = vmatprep.mubr.bf16.mxu1 %v13018_v63 }
  0xda   : > { %2023 = vmatpush1.bf16.msra.mxu0 %v7858_v58  ;;  %v7874_v58 = vld [vmem:[%s12606_s7 + $0xe8] ss:$16 sps:$4 sm:$0xff]  }
  0xdb   : > { %2096 = vmatpush1.bf16.msra.mxu1 %v7861_v51  ;;  %2024 = vmatprep.subr.bf16.mxu0 %v7867_v39  ;;  %v7877_v51 = vld [vmem:[%s9250_s13 + $0x20] sm:$0xff]   ;;  %v7878_v39 = vld [vmem:[%s9250_s13 + $0x28] sm:$0xff]  }
  0xdc   : > { %2097 = vmatprep.subr.bf16.mxu1 %v7870_v54  ;;  %v7879_v54 = vld [vmem:[%s9250_s13 + $0x30] sm:$0xff]  }
  0xdd   : > { %1745 = vmatmul.mubr.bf16.gmra.mrb[12].mxu0 %v7864_v62 }
  0xde   : > { %1818 = vmatmul.mubr.bf16.gmra.mrb[12].mxu1 %v7864_v62  ;;  %2025 = vmatpush1.bf16.msra.mxu0 %v7865_v47  ;;  %v7880_v62 = vld [vmem:[%s9250_s13 + $0x38] sm:$0xff]   ;;  %v10033_v47 = vld [vmem:[#allocation2] sm:$0xff]  }
  0xdf   : > { %2098 = vmatpush1.bf16.msra.mxu1 %v7868_v43  ;;  %2026 = vmatprep.subr.bf16.mxu0 %v7873_v55  ;;  %13020 = vst [vmem:[#allocation90_spill] sm:$0xff] %v10033_v47  ;;  %v10035_v43 = vld [vmem:[#allocation2 + $0x8] sm:$0xff]   ;;  %v10037_v55 = vld [vmem:[#allocation2 + $0x10] sm:$0xff]  }
  0xe0   : > { %2099 = vmatprep.subr.bf16.mxu1 %v7876_v46  ;;  %2044 = vmatprep.mubr.bf16.mxu0 %v13018_v63  ;;  %13021 = vst [vmem:[#allocation91_spill] sm:$0xff] %v10035_v43  ;;  %13022 = vst [vmem:[#allocation92_spill] sm:$0xff] %v10037_v55  ;;  %v10039_v46 = vld [vmem:[#allocation2 + $0x18] sm:$0xff]  }
  0xe1   : > { %2117 = vmatprep.mubr.bf16.mxu1 %v13018_v63  ;;  %13023 = vst [vmem:[#allocation93_spill] sm:$0xff] %v10039_v46 }
  0xe2   : > { %2027 = vmatpush1.bf16.msra.mxu0 %v7871_v59  ;;  %v10041_v59 = vld [vmem:[#allocation3] sm:$0xff]  }
  0xe3   : > { %2100 = vmatpush1.bf16.msra.mxu1 %v7874_v58  ;;  %13024 = vst [vmem:[#allocation94_spill] sm:$0xff] %v10041_v59  ;;  %v10043_v58 = vld [vmem:[#allocation3 + $0x8] sm:$0xff]  }
  0xe4   : > { %13025 = vst [vmem:[#allocation95_spill] sm:$0xff] %v10043_v58 }
  0xe5   : > { %2045 = vmatmul.mubr.bf16.vlgmr.msra.gmra.mrb[16].mxu0 %v7877_v51 }
  0xe6   : > { %2118 = vmatmul.mubr.bf16.vlgmr.msra.gmra.mrb[16].mxu1 %v7877_v51  ;;  %2054 = vmatprep.mubr.bf16.mxu0 %v13018_v63  ;;  %v10045_v51 = vld [vmem:[#allocation3 + $0x10] sm:$0xff]  }
  0xe7   : > { %2127 = vmatprep.mubr.bf16.mxu1 %v13018_v63  ;;  %13026 = vst [vmem:[#allocation96_spill] sm:$0xff] %v10045_v51 }
  0xed   : > { %2055 = vmatmul.mubr.bf16.gmra.mrb[20].mxu0 %v7878_v39 }
  0xee   : > { %2128 = vmatmul.mubr.bf16.gmra.mrb[20].mxu1 %v7878_v39  ;;  %2064 = vmatprep.mubr.bf16.mxu0 %v13018_v63  ;;  %v10047_v39 = vld [vmem:[#allocation3 + $0x18] sm:$0xff]  }
  0xef   : > { %2137 = vmatprep.mubr.bf16.mxu1 %v13018_v63  ;;  %13027 = vst [vmem:[#allocation97_spill] sm:$0xff] %v10047_v39 }
  0xf5   : > { %2065 = vmatmul.mubr.bf16.gmra.mrb[24].mxu0 %v7879_v54 }
  0xf6   : > { %2138 = vmatmul.mubr.bf16.gmra.mrb[24].mxu1 %v7879_v54  ;;  %2074 = vmatprep.mubr.bf16.mxu0 %v13018_v63 }
  0xf7   : > { %2147 = vmatprep.mubr.bf16.mxu1 %v13018_v63  ;;  %v2159_v63 = vlaneseq }
  0xf9   : > { %v10049_v54 = vshrl.u32 %v2159_v63, 7 }
  0xfb   : > { %v12664_v50 = vsub.s32 2, %v10049_v54  ;;  %v12665_v35 = vsub.s32 1, %v10049_v54  ;;  %v12668_v38 = vsub.s32 3, %v10049_v54  ;;  %v13044_v28 = vsub.s32 0, %v10049_v54 }
  0xfc   : > { %v13046_v20 = vsub.s32 2, %v10049_v54 }
  0xfd   : > { %2075 = vmatmul.mubr.bf16.gmra.mrb[28].mxu0 %v7880_v62  ;;  %v10064_v63 = vrot.slane %v676_v31, %v12664_v50  ;;  %v10068_v23 = vrot.slane %v676_v31, %v12665_v35  ;;  %v10072_v27 = vrot.slane %v676_v31, %v12668_v38 }
  0xfe   : > { %2148 = vmatmul.mubr.bf16.gmra.mrb[28].mxu1 %v7880_v62  ;;  %v12661_v62 = vsub.s32 0, %v10049_v54 }
  0xff   : > { %13029 = vst [vmem:[#allocation99_spill] sm:$0xff] %v10064_v63  ;;  %13030 = vst [vmem:[#allocation100_spill] sm:$0xff] %v10068_v23 }
 0x100   : > { %v10060_v42 = vrot.slane %v676_v31, %v12661_v62  ;;  %13031 = vst [vmem:[#allocation101_spill] sm:$0xff] %v10072_v27 }
 0x102   : > { %13028 = vst [vmem:[#allocation98_spill] sm:$0xff] %v10060_v42 }
 0x198   : > { %v1716_v30 = vpop.f32.mrb[0].mxu0 }
 0x199   : > { %v1789_v34 = vpop.f32.mrb[0].mxu1  ;;  %v10075_v15 = vadd.f32 %v10060_v42, %v1716_v30   ;;  %v1718_v19 = vpop.f32.mrb[1].mxu0 }
 0x19a   : > { %v10078_v62 = vadd.f32 %v10064_v63, %v1789_v34   ;;  %v1791_v22 = vpop.f32.mrb[1].mxu1  ;;  %v10081_v50 = vadd.f32 %v10068_v23, %v1718_v19   ;;  %v1720_v26 = vpop.f32.mrb[2].mxu0 }
 0x19b   : > { %13032 = vst [vmem:[#allocation102_spill] sm:$0xff] %v10075_v15  ;;  %v10084_v35 = vadd.f32 %v10072_v27, %v1791_v22   ;;  %v1793_v6 = vpop.f32.mrb[2].mxu1  ;;  %v10087_v31 = vadd.f32 %v10060_v42, %v1720_v26   ;;  %v1722_v30 = vpop.f32.mrb[3].mxu0 }
 0x19c   : > { %13033 = vst [vmem:[#allocation103_spill] sm:$0xff] %v10078_v62  ;;  %13034 = vst [vmem:[#allocation104_spill] sm:$0xff] %v10081_v50  ;;  %v10090_v38 = vadd.f32 %v10064_v63, %v1793_v6   ;;  %v1795_v11 = vpop.f32.mrb[3].mxu1  ;;  %v10093_v34 = vadd.f32 %v10068_v23, %v1722_v30  }
 0x19d   : > { %13035 = vst [vmem:[#allocation105_spill] sm:$0xff] %v10084_v35  ;;  %13036 = vst [vmem:[#allocation106_spill] sm:$0xff] %v10087_v31  ;;  %v10096_v14 = vadd.f32 %v10072_v27, %v1795_v11  }
 0x19e   : > { %13037 = vst [vmem:[#allocation107_spill] sm:$0xff] %v10090_v38  ;;  %13038 = vst [vmem:[#allocation108_spill] sm:$0xff] %v10093_v34 }
 0x19f   : > { %13039 = vst [vmem:[#allocation109_spill] sm:$0xff] %v10096_v14 }
 0x1a0   : > { %v1726_v19 = vpop.f32.mrb[4].mxu0 }
 0x1a1   : > { %v1799_v18 = vpop.f32.mrb[4].mxu1  ;;  %v10099_v22 = vadd.f32 %v10060_v42, %v1726_v19   ;;  %v1728_v26 = vpop.f32.mrb[5].mxu0 }
 0x1a2   : > { %v10102_v61 = vadd.f32 %v10064_v63, %v1799_v18   ;;  %v1801_v7 = vpop.f32.mrb[5].mxu1  ;;  %v10105_v6 = vadd.f32 %v10068_v23, %v1728_v26   ;;  %v1730_v30 = vpop.f32.mrb[6].mxu0 }
 0x1a3   : > { %13040 = vst [vmem:[#allocation110_spill] sm:$0xff] %v10099_v22  ;;  %v10108_v5 = vadd.f32 %v10072_v27, %v1801_v7   ;;  %v1803_v10 = vpop.f32.mrb[6].mxu1  ;;  %v10111_v11 = vadd.f32 %v10060_v42, %v1730_v30   ;;  %v1732_v19 = vpop.f32.mrb[7].mxu0 }
 0x1a4   : > { %13041 = vst [vmem:[#allocation111_spill] sm:$0xff] %v10102_v61  ;;  %13042 = vst [vmem:[#allocation112_spill] sm:$0xff] %v10105_v6  ;;  %v10114_v53 = vadd.f32 %v10064_v63, %v1803_v10   ;;  %v1805_v57 = vpop.f32.mrb[7].mxu1  ;;  %v10117_v18 = vadd.f32 %v10068_v23, %v1732_v19  }
 0x1a5   : > { %v10120_v45 = vadd.f32 %v10072_v27, %v1805_v57  }
 0x1a8   : > { %v1736_v26 = vpop.f32.mrb[8].mxu0 }
 0x1a9   : > { %v1809_v49 = vpop.f32.mrb[8].mxu1  ;;  %v10123_v7 = vadd.f32 %v10060_v42, %v1736_v26   ;;  %v1738_v30 = vpop.f32.mrb[9].mxu0 }
 0x1aa   : > { %v10126_v60 = vadd.f32 %v10064_v63, %v1809_v49   ;;  %v1811_v0 = vpop.f32.mrb[9].mxu1  ;;  %v10129_v10 = vadd.f32 %v10068_v23, %v1738_v30   ;;  %v1740_v19 = vpop.f32.mrb[10].mxu0 }
 0x1ab   : > { %v10132_v52 = vadd.f32 %v10072_v27, %v1811_v0   ;;  %v1813_v56 = vpop.f32.mrb[10].mxu1  ;;  %v10135_v57 = vadd.f32 %v10060_v42, %v1740_v19   ;;  %v1742_v26 = vpop.f32.mrb[11].mxu0 }
 0x1ac   : > { %v10138_v37 = vadd.f32 %v10064_v63, %v1813_v56   ;;  %v1815_v41 = vpop.f32.mrb[11].mxu1  ;;  %v10141_v49 = vadd.f32 %v10068_v23, %v1742_v26  }
 0x1ad   : > { %v10144_v44 = vadd.f32 %v10072_v27, %v1815_v41   ;;  %v677_v41 = vld [vmem:[%s13043_s23] sm:$0xf] }
 0x1ae   : > { %v10175_v32 = vrot.slane %v677_v41, %v13044_v28  ;;  %v10179_v24 = vrot.slane %v677_v41, %v13046_v20 }
 0x1b0   : > { %v1746_v30 = vpop.f32.mrb[12].mxu0  ;;  %13045 = vst [vmem:[#allocation113_spill] sm:$0xff] %v10175_v32  ;;  %13047 = vst [vmem:[#allocation114_spill] sm:$0xff] %v10179_v24 }
 0x1b1   : > { %v1819_v48 = vpop.f32.mrb[12].mxu1  ;;  %v10147_v0 = vadd.f32 %v10060_v42, %v1746_v30   ;;  %v1748_v19 = vpop.f32.mrb[13].mxu0 }
 0x1b2   : > { %v10150_v36 = vadd.f32 %v10064_v63, %v1819_v48   ;;  %v1821_v40 = vpop.f32.mrb[13].mxu1  ;;  %v10153_v56 = vadd.f32 %v10068_v23, %v1748_v19   ;;  %v1750_v26 = vpop.f32.mrb[14].mxu0 }
 0x1b3   : > { %v10156_v29 = vadd.f32 %v10072_v27, %v1821_v40   ;;  %v1823_v33 = vpop.f32.mrb[14].mxu1  ;;  %v10162_v30 = vadd.f32 %v10060_v42, %v1750_v26   ;;  %v1752_v21 = vpop.f32.mrb[15].mxu0  ;;  %v13048_v26 = vsub.s32 1, %v10049_v54 }
 0x1b4   : > { %v10165_v48 = vadd.f32 %v10064_v63, %v1823_v33   ;;  %v1825_v25 = vpop.f32.mrb[15].mxu1  ;;  %v10168_v19 = vadd.f32 %v10068_v23, %v1752_v21   ;;  %v13050_v63 = vsub.s32 3, %v10049_v54  ;;  %13054 = vst [vmem:[#allocation119_spill] sm:$0xff] %v10153_v56 }
 0x1b5   : > { %v10171_v40 = vadd.f32 %v10072_v27, %v1825_v25   ;;  %v10183_v33 = vrot.slane %v677_v41, %v13048_v26 }
 0x1b6   : > { %v10187_v42 = vrot.slane %v677_v41, %v13050_v63  ;;  %13053 = vst [vmem:[#allocation118_spill] sm:$0xff] %v10168_v19 }
 0x1b7   : > { %13049 = vst [vmem:[#allocation115_spill] sm:$0xff] %v10183_v33 }
 0x1b8   : > { %13051 = vst [vmem:[#allocation116_spill] sm:$0xff] %v10187_v42  ;;  %v2046_v21 = vpop.f32.mrb[16].mxu0 }
 0x1b9   : > { %v2119_v23 = vpop.f32.mrb[16].mxu1  ;;  %v10190_v25 = vadd.f32 %v10175_v32, %v2046_v21   ;;  %v2048_v27 = vpop.f32.mrb[17].mxu0 }
 0x1ba   : > { %v10193_v28 = vadd.f32 %v10179_v24, %v2119_v23   ;;  %v2121_v13 = vpop.f32.mrb[17].mxu1  ;;  %v10196_v20 = vadd.f32 %v10183_v33, %v2048_v27   ;;  %v2050_v17 = vpop.f32.mrb[18].mxu0 }
 0x1bb   : > { %v10199_v26 = vadd.f32 %v10187_v42, %v2121_v13   ;;  %v2123_v54 = vpop.f32.mrb[18].mxu1  ;;  %v10202_v63 = vadd.f32 %v10175_v32, %v2050_v17   ;;  %v2052_v21 = vpop.f32.mrb[19].mxu0 }
 0x1bc   : > { %v10205_v41 = vadd.f32 %v10179_v24, %v2123_v54   ;;  %v2125_v12 = vpop.f32.mrb[19].mxu1  ;;  %v10208_v23 = vadd.f32 %v10183_v33, %v2052_v21  }
 0x1bd   : > { %v10211_v16 = vadd.f32 %v10187_v42, %v2125_v12  }
 0x1c0   : > { %v2056_v27 = vpop.f32.mrb[20].mxu0 }
 0x1c1   : > { %v2129_v4 = vpop.f32.mrb[20].mxu1  ;;  %v10214_v13 = vadd.f32 %v10175_v32, %v2056_v27   ;;  %v2058_v17 = vpop.f32.mrb[21].mxu0 }
 0x1c2   : > { %v10217_v9 = vadd.f32 %v10179_v24, %v2129_v4   ;;  %v2131_v3 = vpop.f32.mrb[21].mxu1  ;;  %v10220_v54 = vadd.f32 %v10183_v33, %v2058_v17   ;;  %v2060_v21 = vpop.f32.mrb[22].mxu0 }
 0x1c3   : > { %v2243_v8 = vadd.f32 %v10187_v42, %v2131_v3   ;;  %v2133_v2 = vpop.f32.mrb[22].mxu1  ;;  %v2244_v12 = vadd.f32 %v10175_v32, %v2060_v21   ;;  %v2062_v47 = vpop.f32.mrb[23].mxu0 }
 0x1c4   : > { %v2246_v1 = vadd.f32 %v10179_v24, %v2133_v2   ;;  %v2135_v43 = vpop.f32.mrb[23].mxu1  ;;  %v2245_v27 = vadd.f32 %v10183_v33, %v2062_v47   ;;  %13052 = vst [vmem:[#allocation117_spill] sm:$0xff] %v10220_v54 }
 0x1c5   : > { %v2247_v4 = vadd.f32 %v10187_v42, %v2135_v43  }
 0x1c8   : > { %v2066_v55 = vpop.f32.mrb[24].mxu0 }
 0x1c9   : > { %v2139_v46 = vpop.f32.mrb[24].mxu1  ;;  %v2248_v59 = vadd.f32 %v10175_v32, %v2066_v55   ;;  %v2068_v58 = vpop.f32.mrb[25].mxu0 }
 0x1ca   : > { %v2250_v17 = vadd.f32 %v10179_v24, %v2139_v46   ;;  %v2141_v3 = vpop.f32.mrb[25].mxu1  ;;  %v2249_v51 = vadd.f32 %v10183_v33, %v2068_v58   ;;  %v2070_v39 = vpop.f32.mrb[26].mxu0 }
 0x1cb   : > { %v2251_v21 = vadd.f32 %v10187_v42, %v2141_v3   ;;  %v2143_v2 = vpop.f32.mrb[26].mxu1  ;;  %v2252_v15 = vadd.f32 %v10175_v32, %v2070_v39   ;;  %v2072_v50 = vpop.f32.mrb[27].mxu0 }
 0x1cc   : > { %v2254_v47 = vadd.f32 %v10179_v24, %v2143_v2   ;;  %v2145_v43 = vpop.f32.mrb[27].mxu1  ;;  %v2253_v62 = vadd.f32 %v10183_v33, %v2072_v50  }
 0x1cd   : > { %v2255_v55 = vadd.f32 %v10187_v42, %v2145_v43  }
 0x1d0   : > { %v2076_v35 = vpop.f32.mrb[28].mxu0 }
 0x1d1   : > { %v2149_v46 = vpop.f32.mrb[28].mxu1  ;;  %v2256_v31 = vadd.f32 %v10175_v32, %v2076_v35   ;;  %v2078_v34 = vpop.f32.mrb[29].mxu0 }
 0x1d2   : > { %v2258_v58 = vadd.f32 %v10179_v24, %v2149_v46   ;;  %v2151_v3 = vpop.f32.mrb[29].mxu1  ;;  %v2257_v38 = vadd.f32 %v10183_v33, %v2078_v34   ;;  %v2080_v14 = vpop.f32.mrb[30].mxu0  ;;  %v13056_v34 = vld [vmem:[#allocation112_spill] sm:$0xff]  ;;  %v13059_v46 = vld [vmem:[#allocation109_spill] sm:$0xff] }
 0x1d3   : > { %v2259_v39 = vadd.f32 %v10187_v42, %v2151_v3   ;;  %v2153_v2 = vpop.f32.mrb[30].mxu1  ;;  %v2260_v22 = vadd.f32 %v10175_v32, %v2080_v14   ;;  %v2082_v6 = vpop.f32.mrb[31].mxu0  ;;  %v13055_v14 = vld [vmem:[#allocation111_spill] sm:$0xff]  ;;  %13060 = vst [vmem:[#allocation112_spill] sm:$0xff] %v13059_v46  ;;  %v13073_v32 = vld [vmem:[#allocation102_spill] sm:$0xff]  ;;  %v13075_v46 = vld [vmem:[#allocation97_spill] sm:$0xff] }
 0x1d4   : > { %v2262_v50 = vadd.f32 %v10179_v24, %v2153_v2   ;;  %v2155_v43 = vpop.f32.mrb[31].mxu1  ;;  %v2261_v61 = vadd.f32 %v10183_v33, %v2082_v6   ;;  %v13057_v6 = vld [vmem:[#allocation110_spill] sm:$0xff]  ;;  %v13061_v3 = vld [vmem:[#allocation107_spill] sm:$0xff]  ;;  %v13063_v2 = vld [vmem:[#allocation108_spill] sm:$0xff] }
 0x1d5   : > { %v2263_v35 = vadd.f32 %v10187_v42, %v2155_v43   ;;  %13058 = vst [vmem:[#allocation111_spill] sm:$0xff] %v13057_v6  ;;  %13062 = vst [vmem:[#allocation110_spill] sm:$0xff] %v13061_v3  ;;  %v13065_v43 = vld [vmem:[#allocation106_spill] sm:$0xff]  ;;  %v13067_v42 = vld [vmem:[#allocation105_spill] sm:$0xff] }
 0x1d6   : > { %13064 = vst [vmem:[#allocation109_spill] sm:$0xff] %v13063_v2  ;;  %13066 = vst [vmem:[#allocation107_spill] sm:$0xff] %v13065_v43  ;;  %v13069_v33 = vld [vmem:[#allocation103_spill] sm:$0xff]  ;;  %v13071_v24 = vld [vmem:[#allocation104_spill] sm:$0xff] }
 0x1d7   : > { %13068 = vst [vmem:[#allocation108_spill] sm:$0xff] %v13067_v42  ;;  %13070 = vst [vmem:[#allocation106_spill] sm:$0xff] %v13069_v33  ;;  %v13077_v3 = vld [vmem:[#allocation96_spill] sm:$0xff]  ;;  %v13079_v2 = vld [vmem:[#allocation95_spill] sm:$0xff] }
 0x1d8   : > { %13072 = vst [vmem:[#allocation105_spill] sm:$0xff] %v13071_v24  ;;  %13074 = vst [vmem:[#allocation103_spill] sm:$0xff] %v13073_v32  ;;  %v13081_v43 = vld [vmem:[#allocation94_spill] sm:$0xff]  ;;  %v13083_v42 = vld [vmem:[#allocation93_spill] sm:$0xff] }
 0x1d9   : > { %13076 = vst [vmem:[#allocation104_spill] sm:$0xff] %v13075_v46  ;;  %13078 = vst [vmem:[#allocation102_spill] sm:$0xff] %v13077_v3  ;;  %v13085_v33 = vld [vmem:[#allocation92_spill] sm:$0xff]  ;;  %v13087_v24 = vld [vmem:[#allocation91_spill] sm:$0xff] }
 0x1da   : > { %13080 = vst [vmem:[#allocation97_spill] sm:$0xff] %v13079_v2  ;;  %13082 = vst [vmem:[#allocation96_spill] sm:$0xff] %v13081_v43  ;;  %v13089_v32 = vld [vmem:[#allocation90_spill] sm:$0xff] }
 0x1db   : > { %13084 = vst [vmem:[#allocation95_spill] sm:$0xff] %v13083_v42  ;;  %13086 = vst [vmem:[#allocation94_spill] sm:$0xff] %v13085_v33 }
 0x1dc   : > { %13088 = vst [vmem:[#allocation93_spill] sm:$0xff] %v13087_v24  ;;  %13090 = vst [vmem:[#allocation92_spill] sm:$0xff] %v13089_v32 }
 0x1dd LB: >> { %13111 = vst [vmem:[#allocation120_spill] sm:$0xff] %v8793_v55  ;;  %13112 = vst [vmem:[#allocation121_spill] sm:$0xff] %v8797_v47  ;;  %v13125_v54 = vld [vmem:[#allocation117_spill] sm:$0xff]  ;;  %v13138_v19 = vld [vmem:[#allocation118_spill] sm:$0xff]  ;;  %s10674_s23 = sadd.s32 1, %s9049_s24   ;;  %s13188_s5 = sld [smem:[#allocation280_spill]]  ;;  %s9049_s24 = sphi %s10438_s24, %s13690_s24   ;;  %v8977_v34 = vphi %v13056_v34, %v13660_v34   ;;  %v8973_v14 = vphi %v13055_v14, %v13659_v14   ;;  %v8969_v5 = vphi %v10108_v5, %v13658_v5   ;;  %v8965_v11 = vphi %v10111_v11, %v13657_v11   ;;  %v8961_v18 = vphi %v10117_v18, %v13656_v18   ;;  %v8957_v53 = vphi %v10114_v53, %v13655_v53   ;;  %v8953_v45 = vphi %v10120_v45, %v13654_v45   ;;  %v8949_v7 = vphi %v10123_v7, %v13653_v7   ;;  %v8945_v10 = vphi %v10129_v10, %v13652_v10   ;;  %v8941_v60 = vphi %v10126_v60, %v13651_v60   ;;  %v8937_v52 = vphi %v10132_v52, %v13650_v52   ;;  %v8933_v57 = vphi %v10135_v57, %v13649_v57   ;;  %v8929_v49 = vphi %v10141_v49, %v13648_v49   ;;  %v8925_v37 = vphi %v10138_v37, %v13647_v37   ;;  %v8921_v44 = vphi %v10144_v44, %v13646_v44   ;;  %v8917_v0 = vphi %v10147_v0, %v13645_v0   ;;  %v8909_v36 = vphi %v10150_v36, %v13642_v36   ;;  %v8905_v29 = vphi %v10156_v29, %v13641_v29   ;;  %v8901_v30 = vphi %v10162_v30, %v13640_v30   ;;  %v8893_v48 = vphi %v10165_v48, %v13637_v48   ;;  %v8889_v40 = vphi %v10171_v40, %v13636_v40   ;;  %v8885_v25 = vphi %v10190_v25, %v13635_v25   ;;  %v8881_v20 = vphi %v10196_v20, %v13634_v20   ;;  %v8877_v28 = vphi %v10193_v28, %v13633_v28   ;;  %v8873_v26 = vphi %v10199_v26, %v13632_v26   ;;  %v8869_v63 = vphi %v10202_v63, %v13631_v63   ;;  %v8865_v23 = vphi %v10208_v23, %v13630_v23   ;;  %v8861_v41 = vphi %v10205_v41, %v13629_v41   ;;  %v8857_v16 = vphi %v10211_v16, %v13628_v16   ;;  %v8853_v13 = vphi %v10214_v13, %v13627_v13   ;;  %v8845_v9 = vphi %v10217_v9, %v13624_v9   ;;  %v8841_v8 = vphi %v2243_v8, %v13623_v8   ;;  %v8837_v12 = vphi %v2244_v12, %v13622_v12   ;;  %v8833_v27 = vphi %v2245_v27, %v13621_v27   ;;  %v8829_v1 = vphi %v2246_v1, %v13620_v1   ;;  %v8825_v4 = vphi %v2247_v4, %v13619_v4   ;;  %v8821_v59 = vphi %v2248_v59, %v13618_v59   ;;  %v8817_v51 = vphi %v2249_v51, %v13617_v51   ;;  %v8813_v17 = vphi %v2250_v17, %v13616_v17   ;;  %v8809_v21 = vphi %v2251_v21, %v13615_v21   ;;  %v8805_v15 = vphi %v2252_v15, %v13614_v15   ;;  %v8801_v62 = vphi %v2253_v62, %v13613_v62   ;;  %v8797_v47 = vphi %v2254_v47, %v13612_v47   ;;  %v8793_v55 = vphi %v2255_v55, %v13611_v55   ;;  %v8789_v31 = vphi %v2256_v31, %v13610_v31   ;;  %v8785_v38 = vphi %v2257_v38, %v13609_v38   ;;  %v8781_v58 = vphi %v2258_v58, %v13608_v58   ;;  %v8777_v39 = vphi %v2259_v39, %v13607_v39   ;;  %v8773_v22 = vphi %v2260_v22, %v13606_v22   ;;  %v8769_v61 = vphi %v2261_v61, %v13605_v61   ;;  %v8765_v50 = vphi %v2262_v50, %v13604_v50   ;;  %v8761_v35 = vphi %v2263_v35, %v13603_v35  }
 0x1de   : >> { %13113 = vst [vmem:[#allocation122_spill] sm:$0xff] %v8801_v62  ;;  %13114 = vst [vmem:[#allocation123_spill] sm:$0xff] %v8805_v15  ;;  %v13143_v56 = vld [vmem:[#allocation119_spill] sm:$0xff]  ;;  %p2351_p4 = scmp.lt.s32.totalorder %s10674_s23, 1  ;;  %s13190_s12 = sshll.u32 %s9239_s28, 3 }
 0x1df   : >> { %13115 = vst [vmem:[#allocation124_spill] sm:$0xff] %v8809_v21  ;;  %13116 = vst [vmem:[#allocation125_spill] sm:$0xff] %v8813_v17  ;;  %v13161_v6 = vld [vmem:[#allocation111_spill] sm:$0xff]  ;;  %p2274_p7 = scmp.ge.s32.totalorder %s10674_s23, 2  }
 0x1e0   : >> { %13117 = vst [vmem:[#allocation126_spill] sm:$0xff] %v8817_v51  ;;  %13118 = vst [vmem:[#allocation127_spill] sm:$0xff] %v8821_v59  ;;  %v13171_v46 = vld [vmem:[#allocation104_spill] sm:$0xff]  ;;  %v13173_v3 = vld [vmem:[#allocation102_spill] sm:$0xff]  ;;  %s10695_s15 = scalar_select %p2351_p4, %s10674_s23, 1 }
 0x1e1   : >> { %13119 = vst [vmem:[#allocation128_spill] sm:$0xff] %v8825_v4  ;;  %13120 = vst [vmem:[#allocation129_spill] sm:$0xff] %v8829_v1  ;;  %v13175_v2 = vld [vmem:[#allocation97_spill] sm:$0xff]  ;;  %v13177_v43 = vld [vmem:[#allocation96_spill] sm:$0xff]  ;;  %p6812_p8 = scmp.ne.s32.totalorder (%p2274_p7), %s9174_s25, 1 }
 0x1e2   : >> { %13121 = vst [vmem:[#allocation130_spill] sm:$0xff] %v8833_v27  ;;  %13122 = vst [vmem:[#allocation131_spill] sm:$0xff] %v8837_v12  ;;  %v13179_v42 = vld [vmem:[#allocation95_spill] sm:$0xff]  ;;  %v13181_v33 = vld [vmem:[#allocation94_spill] sm:$0xff]  ;;  %s6517_s17 = sshll.u32 %s10695_s15, 6  ;;  %s2354_s16 = ssub.s32 1, %s10695_s15 }
 0x1e3   : >> { %13123 = vst [vmem:[#allocation132_spill] sm:$0xff] %v8841_v8  ;;  %13124 = vst [vmem:[#allocation133_spill] sm:$0xff] %v8845_v9  ;;  %v13183_v24 = vld [vmem:[#allocation93_spill] sm:$0xff]  ;;  %v13185_v32 = vld [vmem:[#allocation92_spill] sm:$0xff]  ;;  %s10725_s0 = sshra.s32 %s6517_s17, 3  ;;  %s6518_s20 = sshll.u32 %s2354_s16, 6 }
 0x1e4   : >> { %13126 = vst [vmem:[#allocation117_spill] sm:$0xff] %v13125_v54  ;;  %13127 = vst [vmem:[#allocation134_spill] sm:$0xff] %v8853_v13  ;;  %v7905_v1 = vld [vmem:[%s12605_s6 + $0x60] ss:$16 sps:$4 sm:$0xff]   ;;  %s12726_s27 = sshll.u32 %s10725_s0, 2  ;;  %s2400_s26 = sshra.s32 %s6518_s20, 3 }
 0x1e5   : >> { %13128 = vst [vmem:[#allocation135_spill] sm:$0xff] %v8857_v16  ;;  %13129 = vst [vmem:[#allocation136_spill] sm:$0xff] %v8861_v41  ;;  %v13163_v41 = vld [vmem:[#allocation112_spill] sm:$0xff]  ;;  %v13164_v16 = vld [vmem:[#allocation110_spill] sm:$0xff]  ;;  %s10752_s19 = scalar_lea.vmem %s9255_s22, %s12726_s27  ;;  %s10822_s3 = sshll.u32 %s2400_s26, 2 }
 0x1e6   : >> { %13130 = vst [vmem:[#allocation137_spill] sm:$0xff] %v8865_v23  ;;  %13131 = vst [vmem:[#allocation138_spill] sm:$0xff] %v8869_v63  ;;  %v13167_v23 = vld [vmem:[#allocation108_spill] sm:$0xff]  ;;  %v13168_v63 = vld [vmem:[#allocation106_spill] sm:$0xff]  ;;  %s10835_s27 = scalar_lea.vmem %s9260_s30, %s10822_s3  ;;  %s13189_s21 = sshll.u32 %s10725_s0, 2 }
 0x1e7   : >> { %13132 = vst [vmem:[#allocation139_spill] sm:$0xff] %v8873_v26  ;;  %13133 = vst [vmem:[#allocation140_spill] sm:$0xff] %v8877_v28  ;;  %v13165_v28 = vld [vmem:[#allocation109_spill] sm:$0xff]  ;;  %v13166_v26 = vld [vmem:[#allocation107_spill] sm:$0xff]  ;;  %s10927_s20 = scalar_lea.vmem %s9245_s29, %s13189_s21  ;;  %s10978_s21 = sadd.s32 7, %s13190_s12 }
 0x1e8   : >> { %13134 = vst [vmem:[#allocation141_spill] sm:$0xff] %v8881_v20  ;;  %13135 = vst [vmem:[#allocation142_spill] sm:$0xff] %v8885_v25  ;;  %v13169_v20 = vld [vmem:[#allocation105_spill] sm:$0xff]  ;;  %v13170_v25 = vld [vmem:[#allocation103_spill] sm:$0xff] }
 0x1e9   : >> { %13136 = vst [vmem:[#allocation143_spill] sm:$0xff] %v8889_v40  ;;  %13137 = vst [vmem:[#allocation144_spill] sm:$0xff] %v8893_v48  ;;  %v7883_v48 = vld [vmem:[%s12605_s6 + $0x4] ss:$16 sps:$4 sm:$0xff]   ;;  %v7885_v40 = vld [vmem:[%s12605_s6 + $0xc] ss:$16 sps:$4 sm:$0xff]  }
 0x1ea   : >> { %13139 = vst [vmem:[#allocation118_spill] sm:$0xff] %v13138_v19  ;;  %13140 = vst [vmem:[#allocation145_spill] sm:$0xff] %v8901_v30  ;;  %2670 = vmatprep.subr.bf16.mxu0 %v7883_v48  ;;  %v7888_v19 = vld [vmem:[%s12605_s6 + $0x8] ss:$16 sps:$4 sm:$0xff]   ;;  %2743 = vmatprep.subr.bf16.mxu1 %v7885_v40  ;;  %v7889_v30 = vld [vmem:[%s12605_s6 + $0x24] ss:$16 sps:$4 sm:$0xff]  }
 0x1eb   : >> { %13141 = vst [vmem:[#allocation146_spill] sm:$0xff] %v8905_v29  ;;  %13142 = vst [vmem:[#allocation147_spill] sm:$0xff] %v8909_v36  ;;  %v12724_v36 = vmov 0   ;;  %v7887_v29 = vld [vmem:[%s12605_s6] ss:$16 sps:$4 sm:$0xff]   ;;  %2744 = vmatpush1.bf16.msra.mxu1 %v7888_v19  ;;  %v13197_v54 = vld [vmem:[#allocation25_spill] sm:$0xff] }
 0x1ec   : >> { %13144 = vst [vmem:[#allocation119_spill] sm:$0xff] %v13143_v56  ;;  %13145 = vst [vmem:[#allocation148_spill] sm:$0xff] %v8917_v0  ;;  %2702 = vmatprep.mubr.bf16.mxu0 %v12724_v36  ;;  %2775 = vmatprep.mubr.bf16.mxu1 %v12724_v36  ;;  %v7891_v48 = vld [vmem:[%s12605_s6 + $0x2c] ss:$16 sps:$4 sm:$0xff]   ;;  %v7893_v56 = vld [vmem:[%s12605_s6 + $0x20] ss:$16 sps:$4 sm:$0xff]  }
 0x1ed   : >> { %13146 = vst [vmem:[#allocation149_spill] sm:$0xff] %v8921_v44  ;;  %13147 = vst [vmem:[#allocation150_spill] sm:$0xff] %v8925_v37  ;;  %7881 = vset.pattern.permute.xlu0 %v12724_v36  ;;  %7882 = vset.pattern.permute.xlu1 %v12724_v36  ;;  %v7894_v40 = vld [vmem:[%s12605_s6 + $0x28] ss:$16 sps:$4 sm:$0xff]   ;;  %v7895_v36 = vld [vmem:[%s12605_s6 + $0x44] ss:$16 sps:$4 sm:$0xff]  }
 0x1ee   : >> { %13148 = vst [vmem:[#allocation151_spill] sm:$0xff] %v8929_v49  ;;  %13149 = vst [vmem:[#allocation152_spill] sm:$0xff] %v8933_v57  ;;  %2671 = vmatpush1.bf16.msra.mxu0 %v7887_v29  ;;  %2745 = vmatprep.subr.bf16.mxu1 %v7891_v48  ;;  %v7897_v29 = vld [vmem:[%s12605_s6 + $0x4c] ss:$16 sps:$4 sm:$0xff]   ;;  %v7900_v19 = vld [vmem:[%s12605_s6 + $0x48] ss:$16 sps:$4 sm:$0xff]  }
 0x1ef   : >> { %13150 = vst [vmem:[#allocation153_spill] sm:$0xff] %v8937_v52  ;;  %13151 = vst [vmem:[#allocation154_spill] sm:$0xff] %v8941_v60  ;;  %2672 = vmatprep.subr.bf16.mxu0 %v7889_v30  ;;  %v7899_v30 = vld [vmem:[%s12605_s6 + $0x40] ss:$16 sps:$4 sm:$0xff]   ;;  %2746 = vmatpush1.bf16.msra.mxu1 %v7894_v40  ;;  %v7901_v48 = vld [vmem:[%s12605_s6 + $0x64] ss:$16 sps:$4 sm:$0xff]  }
 0x1f0   : >> { %13152 = vst [vmem:[#allocation155_spill] sm:$0xff] %v8945_v10  ;;  %13153 = vst [vmem:[#allocation156_spill] sm:$0xff] %v8949_v7  ;;  %2747 = vmatprep.subr.bf16.mxu1 %v7897_v29  ;;  %v7903_v0 = vld [vmem:[%s12605_s6 + $0x6c] ss:$16 sps:$4 sm:$0xff]   ;;  %v7911_v29 = vld [vmem:[%s12605_s6 + $0x80] ss:$16 sps:$4 sm:$0xff]  }
 0x1f1   : >> { %13154 = vst [vmem:[#allocation157_spill] sm:$0xff] %v8953_v45  ;;  %13155 = vst [vmem:[#allocation158_spill] sm:$0xff] %v8957_v53  ;;  %v7909_v40 = vld [vmem:[%s12605_s6 + $0x8c] ss:$16 sps:$4 sm:$0xff]   ;;  %v8003_v9 = vld [vmem:[%s13188_s5 + $0x60] ss:$16 sps:$4 sm:$0xff]  }
 0x1f2   : >> { %13156 = vst [vmem:[#allocation159_spill] sm:$0xff] %v8961_v18  ;;  %13157 = vst [vmem:[#allocation160_spill] sm:$0xff] %v8965_v11  ;;  %2673 = vmatpush1.bf16.msra.mxu0 %v7893_v56  ;;  %v7906_v56 = vld [vmem:[%s12605_s6 + $0x68] ss:$16 sps:$4 sm:$0xff]   ;;  %v7956_v4 = vld [vmem:[%s12607_s8 + $0x6c] ss:$16 sps:$4 sm:$0xff]  }
 0x1f3   : >> { %13158 = vst [vmem:[#allocation161_spill] sm:$0xff] %v8969_v5  ;;  %13159 = vst [vmem:[#allocation162_spill] sm:$0xff] %v8973_v14  ;;  %2674 = vmatprep.subr.bf16.mxu0 %v7895_v36  ;;  %2748 = vmatpush1.bf16.msra.mxu1 %v7900_v19  ;;  %v7907_v36 = vld [vmem:[%s12605_s6 + $0x84] ss:$16 sps:$4 sm:$0xff]   ;;  %v7915_v19 = vld [vmem:[%s12605_s6 + $0xac] ss:$16 sps:$4 sm:$0xff]  }
 0x1f4   : >> { %13160 = vst [vmem:[#allocation163_spill] sm:$0xff] %v8977_v34  ;;  %13162 = vst [vmem:[#allocation111_spill] sm:$0xff] %v13161_v6  ;;  %2749 = vmatprep.subr.bf16.mxu1 %v7903_v0  ;;  %v7913_v0 = vld [vmem:[%s12605_s6 + $0xa4] ss:$16 sps:$4 sm:$0xff]   ;;  %v13254_v57 = vld [vmem:[#allocation63_spill] sm:$0xff] }
 0x1f5   : >> { %13172 = vst [vmem:[#allocation112_spill] sm:$0xff] %v13171_v46  ;;  %13174 = vst [vmem:[#allocation110_spill] sm:$0xff] %v13173_v3  ;;  %v8031_v27 = vld [vmem:[%s13188_s5 + $0xe4] ss:$16 sps:$4 sm:$0xff]   ;;  %v13256_v10 = vld [vmem:[#allocation59_spill] sm:$0xff] }
 0x1f6   : >> { %13176 = vst [vmem:[#allocation109_spill] sm:$0xff] %v13175_v2  ;;  %13178 = vst [vmem:[#allocation107_spill] sm:$0xff] %v13177_v43  ;;  %2675 = vmatpush1.bf16.msra.mxu0 %v7899_v30  ;;  %v7912_v30 = vld [vmem:[%s12605_s6 + $0x88] ss:$16 sps:$4 sm:$0xff]   ;;  %v13195_v12 = vld [vmem:[#allocation24_spill] sm:$0xff]  ;;  %v11291_v7 = vcombine.high %v13256_v10, %v13254_v57 }
 0x1f7   : >> { %13180 = vst [vmem:[#allocation108_spill] sm:$0xff] %v13179_v42  ;;  %13182 = vst [vmem:[#allocation106_spill] sm:$0xff] %v13181_v33  ;;  %2676 = vmatprep.subr.bf16.mxu0 %v7901_v48  ;;  %2750 = vmatpush1.bf16.msra.mxu1 %v7906_v56  ;;  %v7917_v48 = vld [vmem:[%s12605_s6 + $0xa0] ss:$16 sps:$4 sm:$0xff]   ;;  %v7919_v56 = vld [vmem:[%s12605_s6 + $0xc4] ss:$16 sps:$4 sm:$0xff]  }
 0x1f8   : >> { %13184 = vst [vmem:[#allocation105_spill] sm:$0xff] %v13183_v24  ;;  %13186 = vst [vmem:[#allocation103_spill] sm:$0xff] %v13185_v32  ;;  %2751 = vmatprep.subr.bf16.mxu1 %v7909_v40  ;;  %v7923_v40 = vld [vmem:[%s12605_s6 + $0xc0] ss:$16 sps:$4 sm:$0xff]   ;;  %v13271_v47 = vld [vmem:[#allocation71_spill] sm:$0xff] }
 0x1f9   : >> { %13258 = vst [vmem:[#allocation172_spill] sm:$0xff] %v11291_v7  ;;  %v13273_v55 = vld [vmem:[#allocation67_spill] sm:$0xff]  ;;  %v13310_v14 = vld [vmem:[#allocation37_spill] sm:$0xff] }
 0x1fa   : >> { %2677 = vmatpush1.bf16.msra.mxu0 %v7905_v1  ;;  %v7918_v1 = vld [vmem:[%s12605_s6 + $0xa8] ss:$16 sps:$4 sm:$0xff]   ;;  %v11324_v17 = vcombine.high %v13273_v55, %v13271_v47 }
 0x1fb   : >> { %2678 = vmatprep.subr.bf16.mxu0 %v7907_v36  ;;  %2752 = vmatpush1.bf16.msra.mxu1 %v7912_v30  ;;  %v7921_v36 = vld [vmem:[%s12605_s6 + $0xcc] ss:$16 sps:$4 sm:$0xff]   ;;  %v7925_v30 = vld [vmem:[%s12605_s6 + $0xe4] ss:$16 sps:$4 sm:$0xff]  }
 0x1fc   : >> { %2753 = vmatprep.subr.bf16.mxu1 %v7915_v19  ;;  %v7929_v19 = vld [vmem:[%s12605_s6 + $0xe0] ss:$16 sps:$4 sm:$0xff]   ;;  %13275 = vst [vmem:[#allocation178_spill] sm:$0xff] %v11324_v17  ;;  %v13289_v15 = vld [vmem:[#allocation87_spill] sm:$0xff] }
 0x1fd   : >> { %v13291_v51 = vld [vmem:[#allocation83_spill] sm:$0xff] }
 0x1fe   : >> { %2679 = vmatpush1.bf16.msra.mxu0 %v7911_v29  ;;  %v7924_v29 = vld [vmem:[%s12605_s6 + $0xc8] ss:$16 sps:$4 sm:$0xff]   ;;  %v11360_v59 = vcombine.high %v13291_v51, %v13289_v15  ;;  %v13314_v5 = vld [vmem:[#allocation108_spill] sm:$0xff] }
 0x1ff   : >> { %2680 = vmatprep.subr.bf16.mxu0 %v7913_v0  ;;  %2754 = vmatpush1.bf16.msra.mxu1 %v7918_v1  ;;  %v7927_v0 = vld [vmem:[%s12605_s6 + $0xec] ss:$16 sps:$4 sm:$0xff]   ;;  %v7934_v1 = vld [vmem:[%s12607_s8 + $0x4] ss:$16 sps:$4 sm:$0xff]  }
 0x200   : >> { %2755 = vmatprep.subr.bf16.mxu1 %v7921_v36  ;;  %v7931_v36 = vld [vmem:[%s10752_s19] sm:$0xff]   ;;  %13293 = vst [vmem:[#allocation184_spill] sm:$0xff] %v11360_v59 }
 0x202   : >> { %2681 = vmatpush1.bf16.msra.mxu0 %v7917_v48  ;;  %v7930_v48 = vld [vmem:[%s12605_s6 + $0xe8] ss:$16 sps:$4 sm:$0xff]  }
 0x203   : >> { %2682 = vmatprep.subr.bf16.mxu0 %v7919_v56  ;;  %2756 = vmatpush1.bf16.msra.mxu1 %v7924_v29  ;;  %v7937_v56 = vld [vmem:[%s12607_s8 + $0xc] ss:$16 sps:$4 sm:$0xff]   ;;  %v7935_v29 = vld [vmem:[%s12607_s8 + $0x8] ss:$16 sps:$4 sm:$0xff]  }
 0x204   : >> { %2757 = vmatprep.subr.bf16.mxu1 %v7927_v0  ;;  %v7943_v0 = vld [vmem:[%s12607_s8 + $0x2c] ss:$16 sps:$4 sm:$0xff]  }
 0x206   : >> { %2683 = vmatpush1.bf16.msra.mxu0 %v7923_v40  ;;  %v7932_v40 = vld [vmem:[%s12607_s8] ss:$16 sps:$4 sm:$0xff]  }
 0x207   : >> { %2684 = vmatprep.subr.bf16.mxu0 %v7925_v30  ;;  %2758 = vmatpush1.bf16.msra.mxu1 %v7930_v48  ;;  %v7940_v30 = vld [vmem:[%s12607_s8 + $0x24] ss:$16 sps:$4 sm:$0xff]   ;;  %v7941_v48 = vld [vmem:[%s12607_s8 + $0x28] ss:$16 sps:$4 sm:$0xff]  }
 0x208   : >> { %3115 = vmatprep.subr.bf16.mxu1 %v7937_v56  ;;  %v7950_v56 = vld [vmem:[%s12607_s8 + $0x4c] ss:$16 sps:$4 sm:$0xff]  }
 0x20a   : >> { %2685 = vmatpush1.bf16.msra.mxu0 %v7929_v19  ;;  %2776 = vmatmul.mubr.bf16.vlgmr.msra.gmra.mrb[0].mxu1 %v7931_v36  ;;  %v7938_v19 = vld [vmem:[%s12607_s8 + $0x20] ss:$16 sps:$4 sm:$0xff]  }
 0x20b   : >> { %3042 = vmatprep.subr.bf16.mxu0 %v7934_v1  ;;  %3116 = vmatpush1.bf16.msra.mxu1 %v7935_v29  ;;  %v7947_v1 = vld [vmem:[%s12607_s8 + $0x44] ss:$16 sps:$4 sm:$0xff]   ;;  %v7945_v29 = vld [vmem:[%s12607_s8 + $0x40] ss:$16 sps:$4 sm:$0xff]  }
 0x20c   : >> { %3117 = vmatprep.subr.bf16.mxu1 %v7943_v0  ;;  %v7953_v0 = vld [vmem:[%s12607_s8 + $0x64] ss:$16 sps:$4 sm:$0xff]  }
 0x20d   : >> { %2703 = vmatmul.mubr.bf16.vlgmr.msra.gmra.mrb[0].mxu0 %v7931_v36  ;;  %v13187_v36 = vmov 0  }
 0x20e   : >> { %3043 = vmatpush1.bf16.msra.mxu0 %v7932_v40  ;;  %2712 = vmatprep.mubr.bf16.mxu0 %v13187_v36  ;;  %v7944_v40 = vld [vmem:[%s10752_s19 + $0x8] sm:$0xff]  }
 0x20f   : >> { %3044 = vmatprep.subr.bf16.mxu0 %v7940_v30  ;;  %2785 = vmatprep.mubr.bf16.mxu1 %v13187_v36  ;;  %v7948_v30 = vld [vmem:[%s12607_s8 + $0x48] ss:$16 sps:$4 sm:$0xff]  }
 0x210   : >> { %3118 = vmatpush1.bf16.msra.mxu1 %v7941_v48  ;;  %v7954_v48 = vld [vmem:[%s12607_s8 + $0x68] ss:$16 sps:$4 sm:$0xff]  }
 0x211   : >> { %3119 = vmatprep.subr.bf16.mxu1 %v7950_v56  ;;  %v7963_v56 = vld [vmem:[%s12607_s8 + $0x8c] ss:$16 sps:$4 sm:$0xff]  }
 0x212   : >> { %3045 = vmatpush1.bf16.msra.mxu0 %v7938_v19  ;;  %2786 = vmatmul.mubr.bf16.gmra.mrb[4].mxu1 %v7944_v40  ;;  %v7951_v19 = vld [vmem:[%s12607_s8 + $0x60] ss:$16 sps:$4 sm:$0xff]  }
 0x213   : >> { %3046 = vmatprep.subr.bf16.mxu0 %v7947_v1  ;;  %v7960_v1 = vld [vmem:[%s12607_s8 + $0x84] ss:$16 sps:$4 sm:$0xff]   ;;  %2795 = vmatprep.mubr.bf16.mxu1 %v13187_v36 }
 0x214   : >> { %3120 = vmatpush1.bf16.msra.mxu1 %v7948_v30  ;;  %v7961_v30 = vld [vmem:[%s12607_s8 + $0x88] ss:$16 sps:$4 sm:$0xff]  }
 0x215   : >> { %2713 = vmatmul.mubr.bf16.gmra.mrb[4].mxu0 %v7944_v40  ;;  %3121 = vmatprep.subr.bf16.mxu1 %v7956_v4  ;;  %v7957_v40 = vld [vmem:[%s10752_s19 + $0x10] sm:$0xff]  }
 0x216   : >> { %3047 = vmatpush1.bf16.msra.mxu0 %v7945_v29  ;;  %2722 = vmatprep.mubr.bf16.mxu0 %v13187_v36  ;;  %v7958_v29 = vld [vmem:[%s12607_s8 + $0x80] ss:$16 sps:$4 sm:$0xff]   ;;  %v7966_v4 = vld [vmem:[%s12607_s8 + $0xa4] ss:$16 sps:$4 sm:$0xff]  }
 0x217   : >> { %3048 = vmatprep.subr.bf16.mxu0 %v7953_v0  ;;  %v7969_v0 = vld [vmem:[%s12607_s8 + $0xac] ss:$16 sps:$4 sm:$0xff]  }
 0x218   : >> { %3122 = vmatpush1.bf16.msra.mxu1 %v7954_v48  ;;  %v7967_v48 = vld [vmem:[%s12607_s8 + $0xa8] ss:$16 sps:$4 sm:$0xff]  }
 0x219   : >> { %3123 = vmatprep.subr.bf16.mxu1 %v7963_v56  ;;  %v7976_v56 = vld [vmem:[%s12607_s8 + $0xcc] ss:$16 sps:$4 sm:$0xff]  }
 0x21a   : >> { %3049 = vmatpush1.bf16.msra.mxu0 %v7951_v19  ;;  %2796 = vmatmul.mubr.bf16.gmra.mrb[8].mxu1 %v7957_v40  ;;  %v7964_v19 = vld [vmem:[%s12607_s8 + $0xa0] ss:$16 sps:$4 sm:$0xff]  }
 0x21b   : >> { %3050 = vmatprep.subr.bf16.mxu0 %v7960_v1  ;;  %v7973_v1 = vld [vmem:[%s12607_s8 + $0xc4] ss:$16 sps:$4 sm:$0xff]   ;;  %2805 = vmatprep.mubr.bf16.mxu1 %v13187_v36 }
 0x21c   : >> { %3124 = vmatpush1.bf16.msra.mxu1 %v7961_v30  ;;  %v7974_v30 = vld [vmem:[%s12607_s8 + $0xc8] ss:$16 sps:$4 sm:$0xff]  }
 0x21d   : >> { %2723 = vmatmul.mubr.bf16.gmra.mrb[8].mxu0 %v7957_v40  ;;  %3125 = vmatprep.subr.bf16.mxu1 %v7969_v0  ;;  %v7970_v40 = vld [vmem:[%s10752_s19 + $0x18] sm:$0xff]   ;;  %s10969_s19 = sshll.u32 %s9049_s24, 2 }
 0x21e   : >> { %3051 = vmatpush1.bf16.msra.mxu0 %v7958_v29  ;;  %2732 = vmatprep.mubr.bf16.mxu0 %v13187_v36  ;;  %v7971_v29 = vld [vmem:[%s12607_s8 + $0xc0] ss:$16 sps:$4 sm:$0xff]   ;;  %v7982_v0 = vld [vmem:[%s12607_s8 + $0xec] ss:$16 sps:$4 sm:$0xff]   ;;  %s4583_s1 = sadd.s32 %s10969_s19, %s9268_s14  ;;  %s4585_s0 = ssub.s32 %s10978_s21, %s10969_s19 }
 0x21f   : >> { %3052 = vmatprep.subr.bf16.mxu0 %v7966_v4  ;;  %v7979_v4 = vld [vmem:[%s12607_s8 + $0xe4] ss:$16 sps:$4 sm:$0xff]   ;;  %v4587_v8 = vstv %s4585_s0  ;;  %s4659_s15 = sadd.s32 1, %s10969_s19  ;;  %s12731_s12 = sadd.s32 2, %s10969_s19 }
 0x220   : >> { %3126 = vmatpush1.bf16.msra.mxu1 %v7967_v48  ;;  %v7980_v48 = vld [vmem:[%s12607_s8 + $0xe8] ss:$16 sps:$4 sm:$0xff]   ;;  %s11060_s26 = ssub.s32 %s10978_s21, %s4659_s15  ;;  %s13198_s17 = sadd.s32 2, %s10969_s19 }
 0x221   : >> { %3127 = vmatprep.subr.bf16.mxu1 %v7976_v56  ;;  %v7989_v56 = vld [vmem:[%s13188_s5 + $0xc] ss:$16 sps:$4 sm:$0xff]   ;;  %s5495_s0 = sadd.s32 3, %s10969_s19 }
 0x222   : >> { %3053 = vmatpush1.bf16.msra.mxu0 %v7964_v19  ;;  %2806 = vmatmul.mubr.bf16.gmra.mrb[12].mxu1 %v7970_v40  ;;  %v7977_v19 = vld [vmem:[%s12607_s8 + $0xe0] ss:$16 sps:$4 sm:$0xff]   ;;  %s11187_s2 = ssub.s32 %s10978_s21, %s5495_s0 }
 0x223   : >> { %3054 = vmatprep.subr.bf16.mxu0 %v7973_v1  ;;  %v7986_v1 = vld [vmem:[%s13188_s5 + $0x4] ss:$16 sps:$4 sm:$0xff]   ;;  %3147 = vmatprep.mubr.bf16.mxu1 %v13187_v36 }
 0x224   : >> { %3128 = vmatpush1.bf16.msra.mxu1 %v7974_v30  ;;  %v7987_v30 = vld [vmem:[%s13188_s5 + $0x8] ss:$16 sps:$4 sm:$0xff]  }
 0x225   : >> { %2733 = vmatmul.mubr.bf16.gmra.mrb[12].mxu0 %v7970_v40  ;;  %3129 = vmatprep.subr.bf16.mxu1 %v7982_v0  ;;  %v7983_v40 = vld [vmem:[%s10835_s27] sm:$0xff]   ;;  %v7995_v0 = vld [vmem:[%s13188_s5 + $0x2c] ss:$16 sps:$4 sm:$0xff]  }
 0x226   : >> { %3055 = vmatpush1.bf16.msra.mxu0 %v7971_v29  ;;  %3074 = vmatprep.mubr.bf16.mxu0 %v13187_v36  ;;  %v7984_v29 = vld [vmem:[%s13188_s5] ss:$16 sps:$4 sm:$0xff]  }
 0x227   : >> { %3056 = vmatprep.subr.bf16.mxu0 %v7979_v4  ;;  %v7992_v4 = vld [vmem:[%s13188_s5 + $0x24] ss:$16 sps:$4 sm:$0xff]  }
 0x228   : >> { %3130 = vmatpush1.bf16.msra.mxu1 %v7980_v48  ;;  %v7993_v48 = vld [vmem:[%s13188_s5 + $0x28] ss:$16 sps:$4 sm:$0xff]  }
 0x229   : >> { %3445 = vmatprep.subr.bf16.mxu1 %v7989_v56  ;;  %v8002_v56 = vld [vmem:[%s13188_s5 + $0x4c] ss:$16 sps:$4 sm:$0xff]  }
 0x22a   : >> { %3057 = vmatpush1.bf16.msra.mxu0 %v7977_v19  ;;  %v7990_v19 = vld [vmem:[%s13188_s5 + $0x20] ss:$16 sps:$4 sm:$0xff]  }
 0x22b   : >> { %3372 = vmatprep.subr.bf16.mxu0 %v7986_v1  ;;  %3148 = vmatmul.mubr.bf16.vlgmr.msra.gmra.mrb[16].mxu1 %v7983_v40  ;;  %v7999_v1 = vld [vmem:[%s13188_s5 + $0x44] ss:$16 sps:$4 sm:$0xff]  }
 0x22c   : >> { %3446 = vmatpush1.bf16.msra.mxu1 %v7987_v30  ;;  %3157 = vmatprep.mubr.bf16.mxu1 %v13187_v36  ;;  %v8000_v30 = vld [vmem:[%s13188_s5 + $0x48] ss:$16 sps:$4 sm:$0xff]  }
 0x22d   : >> { %3075 = vmatmul.mubr.bf16.vlgmr.msra.gmra.mrb[16].mxu0 %v7983_v40  ;;  %3447 = vmatprep.subr.bf16.mxu1 %v7995_v0  ;;  %v7996_v40 = vld [vmem:[%s10835_s27 + $0x8] sm:$0xff]  }
 0x22e   : >> { %3373 = vmatpush1.bf16.msra.mxu0 %v7984_v29  ;;  %3084 = vmatprep.mubr.bf16.mxu0 %v13187_v36  ;;  %v7997_v29 = vld [vmem:[%s13188_s5 + $0x40] ss:$16 sps:$4 sm:$0xff]   ;;  %v8008_v0 = vld [vmem:[%s13188_s5 + $0x6c] ss:$16 sps:$4 sm:$0xff]  }
 0x22f   : >> { %3374 = vmatprep.subr.bf16.mxu0 %v7992_v4  ;;  %v8005_v4 = vld [vmem:[%s13188_s5 + $0x64] ss:$16 sps:$4 sm:$0xff]  }
 0x230   : >> { %3448 = vmatpush1.bf16.msra.mxu1 %v7993_v48  ;;  %v8012_v48 = vld [vmem:[%s13188_s5 + $0x84] ss:$16 sps:$4 sm:$0xff]  }
 0x231   : >> { %3449 = vmatprep.subr.bf16.mxu1 %v8002_v56  ;;  %v8009_v56 = vld [vmem:[%s10835_s27 + $0x10] sm:$0xff]  }
 0x232   : >> { %3375 = vmatpush1.bf16.msra.mxu0 %v7990_v19  ;;  %v8006_v19 = vld [vmem:[%s13188_s5 + $0x68] ss:$16 sps:$4 sm:$0xff]  }
 0x233   : >> { %3376 = vmatprep.subr.bf16.mxu0 %v7999_v1  ;;  %3158 = vmatmul.mubr.bf16.gmra.mrb[20].mxu1 %v7996_v40  ;;  %v8015_v1 = vld [vmem:[%s13188_s5 + $0x8c] ss:$16 sps:$4 sm:$0xff]  }
 0x234   : >> { %3450 = vmatpush1.bf16.msra.mxu1 %v8000_v30  ;;  %3167 = vmatprep.mubr.bf16.mxu1 %v13187_v36  ;;  %v8018_v30 = vld [vmem:[%s13188_s5 + $0xa4] ss:$16 sps:$4 sm:$0xff]  }
 0x235   : >> { %3085 = vmatmul.mubr.bf16.gmra.mrb[20].mxu0 %v7996_v40  ;;  %3451 = vmatprep.subr.bf16.mxu1 %v8008_v0  ;;  %v8010_v40 = vld [vmem:[%s13188_s5 + $0x80] ss:$16 sps:$4 sm:$0xff]   ;;  %v4586_v0 = vstv %s4583_s1  ;;  %s11041_s1 = scalar_lea.vmem %s9250_s13, %s10822_s3  ;;  %s11130_s3 = ssub.s32 %s10978_s21, %s13198_s17 }
 0x236   : >> { %3377 = vmatpush1.bf16.msra.mxu0 %v7997_v29  ;;  %3094 = vmatprep.mubr.bf16.mxu0 %v13187_v36  ;;  %v8013_v29 = vld [vmem:[%s13188_s5 + $0x88] ss:$16 sps:$4 sm:$0xff]   ;;  %v8087_v37 = vld [vmem:[%s11041_s1] sm:$0xff]   ;;  %s11815_s21 = sshll.u32 %s9049_s24, 6 }
 0x237   : >> { %3378 = vmatprep.subr.bf16.mxu0 %v8005_v4  ;;  %v8021_v4 = vld [vmem:[%s13188_s5 + $0xac] ss:$16 sps:$4 sm:$0xff]  }
 0x238   : >> { %3452 = vmatpush1.bf16.msra.mxu1 %v8006_v19  ;;  %v8019_v19 = vld [vmem:[%s13188_s5 + $0xa8] ss:$16 sps:$4 sm:$0xff]  }
 0x239   : >> { %3453 = vmatprep.subr.bf16.mxu1 %v8015_v1  ;;  %v13191_v1 = vld [vmem:[#allocation24_spill] sm:$0xff] }
 0x23a   : >> { %3379 = vmatpush1.bf16.msra.mxu0 %v8003_v9  ;;  %v8016_v9 = vld [vmem:[%s13188_s5 + $0xa0] ss:$16 sps:$4 sm:$0xff]   ;;  %v13192_v32 = vmov %v13191_v1  ;;  %vm4592_vm0 = vcmp.lt.s32.totalorder %v4586_v0, %v13191_v1 }
 0x23b   : >> { %3380 = vmatprep.subr.bf16.mxu0 %v8012_v48  ;;  %3168 = vmatmul.mubr.bf16.gmra.mrb[24].mxu1 %v8009_v56  ;;  %v8025_v48 = vld [vmem:[%s13188_s5 + $0xc4] ss:$16 sps:$4 sm:$0xff]   ;;  %v8023_v1 = vld [vmem:[%s13188_s5 + $0xc0] ss:$16 sps:$4 sm:$0xff]   ;;  %vm4594_vm1 = vcmp.lt.s32.totalorder %v4587_v8, %v13192_v32 }
 0x23c   : >> { %3454 = vmatpush1.bf16.msra.mxu1 %v8013_v29  ;;  %3177 = vmatprep.mubr.bf16.mxu1 %v13187_v36  ;;  %v8022_v29 = vld [vmem:[%s10835_s27 + $0x18] sm:$0xff]   ;;  %s5002_s27 = sadd.s32 %s9268_s14, %s4659_s15  ;;  %s11093_s15 = sadd.s32 %s9268_s14, %s12731_s12 }
 0x23d   : >> { %3095 = vmatmul.mubr.bf16.gmra.mrb[24].mxu0 %v8009_v56  ;;  %3455 = vmatprep.subr.bf16.mxu1 %v8021_v4  ;;  %v8028_v56 = vld [vmem:[%s13188_s5 + $0xcc] ss:$16 sps:$4 sm:$0xff]   ;;  %v4598_v4 = vsel %vm4594_vm1, 1, %v13187_v36 }
 0x23e   : >> { %3381 = vmatpush1.bf16.msra.mxu0 %v8010_v40  ;;  %v4596_v40 = vsel %vm4592_vm0, 1, %v13187_v36  ;;  %3104 = vmatprep.mubr.bf16.mxu0 %v13187_v36 }
 0x23f   : >> { %3382 = vmatprep.subr.bf16.mxu0 %v8018_v30  ;;  %4601 = vperm.xlu0 %7881, %v4596_v40   ;;  %v8026_v30 = vld [vmem:[%s13188_s5 + $0xc8] ss:$16 sps:$4 sm:$0xff]  }
 0x240   : >> { %3456 = vmatpush1.bf16.msra.mxu1 %v8019_v19  ;;  %v13193_v40 = vld [vmem:[#allocation25_spill] sm:$0xff]  ;;  %v8029_v19 = vld [vmem:[%s13188_s5 + $0xe0] ss:$16 sps:$4 sm:$0xff]   ;;  %4607 = vperm.xlu1 %7882, %v4598_v4  }
 0x241   : >> { %3457 = vmatprep.subr.bf16.mxu1 %v8028_v56  ;;  %v13194_v32 = vmov %v13193_v40  ;;  %vm4593_vm2 = vcmp.lt.s32.totalorder %v4586_v0, %v13193_v40  ;;  %v8036_v4 = vld [vmem:[%s12606_s7] ss:$16 sps:$4 sm:$0xff]   ;;  %v8039_v40 = vld [vmem:[%s12606_s7 + $0x8] ss:$16 sps:$4 sm:$0xff]  }
 0x242   : >> { %3383 = vmatpush1.bf16.msra.mxu0 %v8016_v9  ;;  %v8034_v9 = vld [vmem:[%s13188_s5 + $0xec] ss:$16 sps:$4 sm:$0xff]   ;;  %vm4595_vm3 = vcmp.lt.s32.totalorder %v4587_v8, %v13194_v32  ;;  %v8038_v8 = vld [vmem:[%s12606_s7 + $0x4] ss:$16 sps:$4 sm:$0xff]   ;;  %v4597_v0 = vsel %vm4593_vm2, 1, %v13187_v36  ;;  %v13196_v32 = vmov %v13195_v12 }
 0x243   : >> { %3384 = vmatprep.subr.bf16.mxu0 %v8025_v48  ;;  %3178 = vmatmul.mubr.bf16.gmra.mrb[28].mxu1 %v8022_v29  ;;  %v8032_v48 = vld [vmem:[%s13188_s5 + $0xe8] ss:$16 sps:$4 sm:$0xff]   ;;  %v4599_v56 = vsel %vm4595_vm3, 1, %v13187_v36  ;;  %s5062_s5 = ssub.s32 6, %s10969_s19 }
 0x244   : >> { %3458 = vmatpush1.bf16.msra.mxu1 %v8026_v30  ;;  %3477 = vmatprep.mubr.bf16.mxu1 %v13187_v36  ;;  %v5004_v30 = vstv %s5002_s27  ;;  %s11166_s27 = sadd.s32 %s9268_s14, %s5495_s0 }
 0x245   : >> { %3105 = vmatmul.mubr.bf16.gmra.mrb[28].mxu0 %v8022_v29  ;;  %3459 = vmatprep.subr.bf16.mxu1 %v8034_v9  ;;  %v8041_v29 = vld [vmem:[%s12606_s7 + $0xc] ss:$16 sps:$4 sm:$0xff]   ;;  %vm5010_vm4 = vcmp.lt.s32.totalorder %v5004_v30, %v13195_v12  ;;  %vm5011_vm5 = vcmp.lt.s32.totalorder %v5004_v30, %v13197_v54  ;;  %v8052_v30 = vld [vmem:[%s12606_s7 + $0x48] ss:$16 sps:$4 sm:$0xff]   ;;  %v12737_v13 = vstv %s11166_s27 }
 0x246   : >> { %3385 = vmatpush1.bf16.msra.mxu0 %v8023_v1  ;;  %3404 = vmatprep.mubr.bf16.mxu0 %v13187_v36  ;;  %v8035_v1 = vld [vmem:[%s10927_s20] sm:$0xff]   ;;  %v8047_v9 = vld [vmem:[%s12606_s7 + $0x2c] ss:$16 sps:$4 sm:$0xff]   ;;  %v5014_v12 = vsel %vm5010_vm4, 1, %v13187_v36  ;;  %v5015_v54 = vsel %vm5011_vm5, 1, %v13187_v36  ;;  %vm5846_vm9 = vcmp.lt.s32.totalorder %v12737_v13, %v13196_v32 }
 0x247   : >> { %3386 = vmatprep.subr.bf16.mxu0 %v8031_v27  ;;  %4604 = vperm.xlu0 %7881, %v4597_v0   ;;  %v8044_v27 = vld [vmem:[%s12606_s7 + $0x24] ss:$16 sps:$4 sm:$0xff]   ;;  %v8042_v0 = vld [vmem:[%s12606_s7 + $0x20] ss:$16 sps:$4 sm:$0xff]   ;;  %v5850_v13 = vsel %vm5846_vm9, 1, %v13187_v36 }
 0x248   : >> { %4610 = vperm.xlu1 %7882, %v4599_v56   ;;  %3460 = vmatpush1.bf16.msra.mxu1 %v8032_v48  ;;  %v8051_v48 = vld [vmem:[%s12606_s7 + $0x44] ss:$16 sps:$4 sm:$0xff]   ;;  %v12732_v56 = vstv %s11060_s26 }
 0x249   : >> { %3775 = vmatprep.subr.bf16.mxu1 %v8041_v29  ;;  %v8048_v29 = vld [vmem:[%s10927_s20 + $0x8] sm:$0xff]   ;;  %vm5012_vm6 = vcmp.lt.s32.totalorder %v12732_v56, %v13196_v32 }
 0x24a   : >> { %3387 = vmatpush1.bf16.msra.mxu0 %v8029_v19  ;;  %v8045_v19 = vld [vmem:[%s12606_s7 + $0x28] ss:$16 sps:$4 sm:$0xff]  }
 0x24b   : >> { %3702 = vmatprep.subr.bf16.mxu0 %v8038_v8  ;;  %3478 = vmatmul.mubr.bf16.vlgmr.msra.gmra.mrb[0].mxu1 %v8035_v1  ;;  %v8054_v8 = vld [vmem:[%s12606_s7 + $0x4c] ss:$16 sps:$4 sm:$0xff]  }
 0x24c   : >> { %3776 = vmatpush1.bf16.msra.mxu1 %v8039_v40  ;;  %3487 = vmatprep.mubr.bf16.mxu1 %v13187_v36  ;;  %v8060_v40 = vld [vmem:[%s12606_s7 + $0x6c] ss:$16 sps:$4 sm:$0xff]  }
 0x24d   : >> { %3405 = vmatmul.mubr.bf16.vlgmr.msra.gmra.mrb[0].mxu0 %v8035_v1  ;;  %3777 = vmatprep.subr.bf16.mxu1 %v8047_v9  ;;  %v8049_v1 = vld [vmem:[%s12606_s7 + $0x40] ss:$16 sps:$4 sm:$0xff]   ;;  %v8058_v9 = vld [vmem:[%s12606_s7 + $0x68] ss:$16 sps:$4 sm:$0xff]  }
 0x24e   : >> { %3703 = vmatpush1.bf16.msra.mxu0 %v8036_v4  ;;  %3414 = vmatprep.mubr.bf16.mxu0 %v13187_v36  ;;  %v8057_v4 = vld [vmem:[%s12606_s7 + $0x64] ss:$16 sps:$4 sm:$0xff]  }
 0x24f   : >> { %3704 = vmatprep.subr.bf16.mxu0 %v8044_v27  ;;  %5019 = vperm.xlu0 %7881, %v5014_v12   ;;  %v8055_v27 = vld [vmem:[%s12606_s7 + $0x60] ss:$16 sps:$4 sm:$0xff]   ;;  %v8067_v12 = vld [vmem:[%s12606_s7 + $0x8c] ss:$16 sps:$4 sm:$0xff]  }
 0x250   : >> { %5022 = vperm.xlu1 %7882, %v5015_v54   ;;  %3778 = vmatpush1.bf16.msra.mxu1 %v8045_v19  ;;  %v8064_v19 = vld [vmem:[%s12606_s7 + $0x84] ss:$16 sps:$4 sm:$0xff]   ;;  %v12734_v54 = vstv %s11093_s15 }
 0x251   : >> { %3779 = vmatprep.subr.bf16.mxu1 %v8054_v8  ;;  %v8062_v8 = vld [vmem:[%s12606_s7 + $0x80] ss:$16 sps:$4 sm:$0xff]   ;;  %vm5428_vm7 = vcmp.lt.s32.totalorder %v12734_v54, %v13196_v32 }
 0x252   : >> { %3705 = vmatpush1.bf16.msra.mxu0 %v8042_v0  ;;  %v5016_v0 = vsel %vm5012_vm6, 1, %v13187_v36 }
 0x253   : >> { %3706 = vmatprep.subr.bf16.mxu0 %v8051_v48  ;;  %3488 = vmatmul.mubr.bf16.gmra.mrb[4].mxu1 %v8048_v29  ;;  %v8061_v48 = vld [vmem:[%s10927_s20 + $0x10] sm:$0xff]  }
 0x254   : >> { %3780 = vmatpush1.bf16.msra.mxu1 %v8052_v30  ;;  %3497 = vmatprep.mubr.bf16.mxu1 %v13187_v36  ;;  %v8073_v30 = vld [vmem:[%s12606_s7 + $0xac] ss:$16 sps:$4 sm:$0xff]  }
 0x255   : >> { %3415 = vmatmul.mubr.bf16.gmra.mrb[4].mxu0 %v8048_v29  ;;  %3781 = vmatprep.subr.bf16.mxu1 %v8060_v40  ;;  %v8065_v29 = vld [vmem:[%s12606_s7 + $0x88] ss:$16 sps:$4 sm:$0xff]  }
 0x256   : >> { %3707 = vmatpush1.bf16.msra.mxu0 %v8049_v1  ;;  %3424 = vmatprep.mubr.bf16.mxu0 %v13187_v36  ;;  %v8070_v1 = vld [vmem:[%s12606_s7 + $0xa4] ss:$16 sps:$4 sm:$0xff]   ;;  %v8071_v40 = vld [vmem:[%s12606_s7 + $0xa8] ss:$16 sps:$4 sm:$0xff]  }
 0x257   : >> { %3708 = vmatprep.subr.bf16.mxu0 %v8057_v4  ;;  %5025 = vperm.xlu0 %7881, %v5016_v0   ;;  %v8068_v4 = vld [vmem:[%s12606_s7 + $0xa0] ss:$16 sps:$4 sm:$0xff]   ;;  %v8080_v0 = vld [vmem:[%s12606_s7 + $0xcc] ss:$16 sps:$4 sm:$0xff]  }
 0x258   : >> { %3782 = vmatpush1.bf16.msra.mxu1 %v8058_v9  ;;  %v8077_v9 = vld [vmem:[%s12606_s7 + $0xc4] ss:$16 sps:$4 sm:$0xff]  }
 0x259   : >> { %3783 = vmatprep.subr.bf16.mxu1 %v8067_v12  ;;  %v8074_v12 = vld [vmem:[%s10927_s20 + $0x18] sm:$0xff]  }
 0x25a   : >> { %3709 = vmatpush1.bf16.msra.mxu0 %v8055_v27  ;;  %v5432_v27 = vsel %vm5428_vm7, 1, %v13187_v36 }
 0x25b   : >> { %3710 = vmatprep.subr.bf16.mxu0 %v8064_v19  ;;  %3498 = vmatmul.mubr.bf16.gmra.mrb[8].mxu1 %v8061_v48  ;;  %v12733_v19 = vstv %s11130_s3 }
 0x25c   : >> { %3784 = vmatpush1.bf16.msra.mxu1 %v8065_v29  ;;  %3507 = vmatprep.mubr.bf16.mxu1 %v13187_v36  ;;  %v8083_v29 = vld [vmem:[%s12606_s7 + $0xe4] ss:$16 sps:$4 sm:$0xff]   ;;  %vm5430_vm8 = vcmp.lt.s32.totalorder %v12733_v19, %v13196_v32 }
 0x25d   : >> { %3425 = vmatmul.mubr.bf16.gmra.mrb[8].mxu0 %v8061_v48  ;;  %3785 = vmatprep.subr.bf16.mxu1 %v8073_v30  ;;  %v8075_v48 = vld [vmem:[%s12606_s7 + $0xc0] ss:$16 sps:$4 sm:$0xff]  }
 0x25e   : >> { %3711 = vmatpush1.bf16.msra.mxu0 %v8062_v8  ;;  %3434 = vmatprep.mubr.bf16.mxu0 %v13187_v36  ;;  %v8078_v8 = vld [vmem:[%s12606_s7 + $0xc8] ss:$16 sps:$4 sm:$0xff]   ;;  %v8081_v30 = vld [vmem:[%s12606_s7 + $0xe0] ss:$16 sps:$4 sm:$0xff]  }
 0x25f   : >> { %3712 = vmatprep.subr.bf16.mxu0 %v8070_v1  ;;  %5437 = vperm.xlu0 %7881, %v5432_v27   ;;  %v8086_v1 = vld [vmem:[%s12606_s7 + $0xec] ss:$16 sps:$4 sm:$0xff]   ;;  %v13199_v27 = vld [vmem:[#allocation30_spill] sm:$0xff] }
 0x260   : >> { %3786 = vmatpush1.bf16.msra.mxu1 %v8071_v40  ;;  %v5434_v40 = vsel %vm5430_vm8, 1, %v13187_v36  ;;  %v13200_v56 = vmov %v13199_v27 }
 0x261   : >> { %3787 = vmatprep.subr.bf16.mxu1 %v8080_v0 }
 0x262   : >> { %3713 = vmatpush1.bf16.msra.mxu0 %v8068_v4  ;;  %v8084_v4 = vld [vmem:[%s12606_s7 + $0xe8] ss:$16 sps:$4 sm:$0xff]  }
 0x263   : >> { %3714 = vmatprep.subr.bf16.mxu0 %v8077_v9  ;;  %3508 = vmatmul.mubr.bf16.gmra.mrb[12].mxu1 %v8074_v12  ;;  %v13201_v9 = vld [vmem:[#allocation26_spill] sm:$0xff] }
 0x264   : >> { %3788 = vmatpush1.bf16.msra.mxu1 %v8078_v8  ;;  %v13202_v19 = vmov %v13201_v9  ;;  %v11177_v0 = vcombine.high %v13201_v9, %v13199_v27  ;;  %3807 = vmatprep.mubr.bf16.mxu1 %v13187_v36  ;;  %v13209_v27 = vld [vmem:[#allocation34_spill] sm:$0xff] }
 0x265   : >> { %3435 = vmatmul.mubr.bf16.gmra.mrb[12].mxu0 %v8074_v12  ;;  %3789 = vmatprep.subr.bf16.mxu1 %v8086_v1  ;;  %v13204_v12 = vld [vmem:[#allocation31_spill] sm:$0xff]  ;;  %v13207_v1 = vld [vmem:[#allocation38_spill] sm:$0xff]  ;;  %v13210_v54 = vmov %v13209_v27 }
 0x266   : >> { %3715 = vmatpush1.bf16.msra.mxu0 %v8075_v48  ;;  %13203 = vst [vmem:[#allocation104_spill] sm:$0xff] %v11177_v0  ;;  %v13205_v48 = vld [vmem:[#allocation27_spill] sm:$0xff]  ;;  %3734 = vmatprep.mubr.bf16.mxu0 %v13187_v36  ;;  %v13208_v24 = vmov %v13207_v1  ;;  %v11200_v9 = vcombine.high %v13209_v27, %v13207_v1  ;;  %v13219_v27 = vld [vmem:[#allocation42_spill] sm:$0xff] }
 0x267   : >> { %3716 = vmatprep.subr.bf16.mxu0 %v8083_v29  ;;  %v11181_v8 = vcombine.high %v13205_v48, %v13204_v12  ;;  %5443 = vperm.xlu0 %7881, %v5434_v40   ;;  %v11192_v29 = vcombine.low %v13202_v19, %v13200_v56  ;;  %v12739_v12 = vstv %s11187_s2  ;;  %v13211_v40 = vld [vmem:[#allocation31_spill] sm:$0xff]  ;;  %v11216_v1 = vcombine.low %v13210_v54, %v13208_v24  ;;  %v8088_v24 = vld [vmem:[%s11041_s1 + $0x8] sm:$0xff]  }
 0x268   : >> { %3790 = vmatpush1.bf16.msra.mxu1 %v8084_v4  ;;  %v13214_v56 = vld [vmem:[#allocation35_spill] sm:$0xff]  ;;  %vm5848_vm10 = vcmp.lt.s32.totalorder %v12739_v12, %v13196_v32 }
 0x269   : >> { %13206 = vst [vmem:[#allocation102_spill] sm:$0xff] %v11181_v8  ;;  %4288 = vmatprep.subr.bf16.mxu1 %v11181_v8  ;;  %13216 = vst [vmem:[#allocation96_spill] sm:$0xff] %v11216_v1  ;;  %v5852_v12 = vsel %vm5848_vm10, 1, %v13187_v36 }
 0x26a   : >> { %3717 = vmatpush1.bf16.msra.mxu0 %v8081_v30  ;;  %v13212_v30 = vmov %v13205_v48  ;;  %v13213_v48 = vld [vmem:[#allocation39_spill] sm:$0xff] }
 0x26b   : >> { %4235 = vmatprep.subr.bf16.mxu0 %v11177_v0  ;;  %v11206_v4 = vcombine.low %v13212_v30, %v13211_v40  ;;  %3808 = vmatmul.mubr.bf16.vlgmr.msra.gmra.mrb[16].mxu1 %v8087_v37  ;;  %v11210_v44 = vcombine.high %v13214_v56, %v13213_v48  ;;  %v13220_v56 = vmov %v13219_v27  ;;  %v13222_v30 = vmov %v13213_v48  ;;  %v13223_v48 = vld [vmem:[#allocation35_spill] sm:$0xff] }
 0x26c   : >> { %3817 = vmatprep.mubr.bf16.mxu1 %v13187_v36  ;;  %v11231_v60 = vcombine.low %v13223_v48, %v13222_v30  ;;  %5855 = vperm.xlu0 %7881, %v5850_v13   ;;  %v13231_v13 = vld [vmem:[#allocation47_spill] sm:$0xff] }
 0x26d   : >> { %3735 = vmatmul.mubr.bf16.vlgmr.msra.gmra.mrb[16].mxu0 %v8087_v37  ;;  %13215 = vst [vmem:[#allocation97_spill] sm:$0xff] %v11210_v44  ;;  %v13217_v37 = vld [vmem:[#allocation46_spill] sm:$0xff]  ;;  %4289 = vmatpush1.bf16.msra.mxu1 %v11206_v4  ;;  %v13232_v42 = vmov %v13231_v13  ;;  %v13233_v30 = vld [vmem:[#allocation43_spill] sm:$0xff] }
 0x26e   : >> { %4236 = vmatpush1.bf16.msra.mxu0 %v11192_v29  ;;  %3744 = vmatprep.mubr.bf16.mxu0 %v13187_v36  ;;  %v13218_v19 = vmov %v13217_v37  ;;  %v11226_v40 = vcombine.high %v13219_v27, %v13217_v37  ;;  %13224 = vst [vmem:[#allocation94_spill] sm:$0xff] %v11231_v60  ;;  %v13226_v37 = vld [vmem:[#allocation54_spill] sm:$0xff]  ;;  %v13234_v43 = vmov %v13233_v30  ;;  %v11249_v48 = vcombine.high %v13233_v30, %v13231_v13 }
 0x26f   : >> { %4237 = vmatprep.subr.bf16.mxu0 %v11200_v9  ;;  %4290 = vmatprep.subr.bf16.mxu1 %v11210_v44  ;;  %v11239_v32 = vcombine.low %v13220_v56, %v13218_v19  ;;  %v13227_v54 = vmov %v13226_v37  ;;  %v13228_v27 = vld [vmem:[#allocation50_spill] sm:$0xff]  ;;  %v11253_v19 = vcombine.low %v13234_v43, %v13232_v42 }
 0x270   : >> { %13221 = vst [vmem:[#allocation95_spill] sm:$0xff] %v11226_v40  ;;  %v13229_v33 = vmov %v13228_v27  ;;  %v11244_v52 = vcombine.high %v13228_v27, %v13226_v37  ;;  %13235 = vst [vmem:[#allocation164_spill] sm:$0xff] %v11249_v48  ;;  %5861 = vperm.xlu0 %7881, %v5852_v12   ;;  %v13238_v37 = vld [vmem:[#allocation55_spill] sm:$0xff]  ;;  %v13244_v12 = vld [vmem:[#allocation58_spill] sm:$0xff] }
 0x271   : >> { %13225 = vst [vmem:[#allocation93_spill] sm:$0xff] %v11239_v32  ;;  %4291 = vmatpush1.bf16.msra.mxu1 %v11231_v60  ;;  %13236 = vst [vmem:[#allocation165_spill] sm:$0xff] %v11253_v19  ;;  %v11258_v56 = vcombine.low %v13229_v33, %v13227_v54  ;;  %v13239_v2 = vmov %v13238_v37  ;;  %v13240_v27 = vld [vmem:[#allocation51_spill] sm:$0xff]  ;;  %v13245_v46 = vmov %v13244_v12  ;;  %v8089_v30 = vld [vmem:[%s11041_s1 + $0x10] sm:$0xff]  }
 0x272   : >> { %4238 = vmatpush1.bf16.msra.mxu0 %v11216_v1  ;;  %13230 = vst [vmem:[#allocation92_spill] sm:$0xff] %v11244_v52  ;;  %v13241_v3 = vmov %v13240_v27  ;;  %v11263_v49 = vcombine.high %v13240_v27, %v13238_v37  ;;  %4292 = vmatprep.subr.bf16.mxu1 %v11249_v48  ;;  %v13248_v37 = vld [vmem:[#allocation70_spill] sm:$0xff] }
 0x273   : >> { %4239 = vmatprep.subr.bf16.mxu0 %v11226_v40  ;;  %3818 = vmatmul.mubr.bf16.gmra.mrb[20].mxu1 %v8088_v24  ;;  %13237 = vst [vmem:[#allocation166_spill] sm:$0xff] %v11258_v56  ;;  %v13249_v42 = vmov %v13248_v37  ;;  %v13250_v27 = vld [vmem:[#allocation66_spill] sm:$0xff]  ;;  %v11287_v54 = vcombine.low %v13241_v3, %v13239_v2 }
 0x274   : >> { %13242 = vst [vmem:[#allocation167_spill] sm:$0xff] %v11263_v49  ;;  %3827 = vmatprep.mubr.bf16.mxu1 %v13187_v36  ;;  %v13251_v43 = vmov %v13250_v27 }
 0x275   : >> { %3745 = vmatmul.mubr.bf16.gmra.mrb[20].mxu0 %v8088_v24  ;;  %v13243_v24 = vld [vmem:[#allocation62_spill] sm:$0xff]  ;;  %4293 = vmatpush1.bf16.msra.mxu1 %v11253_v19  ;;  %13253 = vst [vmem:[#allocation171_spill] sm:$0xff] %v11287_v54  ;;  %v13255_v19 = vmov %v13254_v57  ;;  %v8090_v57 = vld [vmem:[%s11041_s1 + $0x18] sm:$0xff]   ;;  %s4637_s1 = sshra.s32 %s11815_s21, 3 }
 0x276   : >> { %4240 = vmatpush1.bf16.msra.mxu0 %v11239_v32  ;;  %3754 = vmatprep.mubr.bf16.mxu0 %v13187_v36  ;;  %v11269_v13 = vcombine.high %v13244_v12, %v13243_v24  ;;  %v11277_v33 = vcombine.low %v13245_v46, %v13243_v24  ;;  %v11283_v12 = vcombine.high %v13250_v27, %v13248_v37  ;;  %v13260_v37 = vld [vmem:[#allocation78_spill] sm:$0xff]  ;;  %s6747_s24 = sshll.u32 %s4637_s1, 2 }
 0x277   : >> { %4241 = vmatprep.subr.bf16.mxu0 %v11244_v52  ;;  %4294 = vmatprep.subr.bf16.mxu1 %v11263_v49  ;;  %v11296_v24 = vcombine.low %v13251_v43, %v13249_v42  ;;  %v13261_v2 = vmov %v13260_v37  ;;  %v13262_v27 = vld [vmem:[#allocation74_spill] sm:$0xff] }
 0x278   : >> { %13246 = vst [vmem:[#allocation168_spill] sm:$0xff] %v11269_v13  ;;  %13247 = vst [vmem:[#allocation169_spill] sm:$0xff] %v11277_v33  ;;  %v13263_v3 = vmov %v13262_v27  ;;  %v11303_v46 = vcombine.high %v13262_v27, %v13260_v37  ;;  %v13267_v42 = vld [vmem:[#allocation86_spill] sm:$0xff] }
 0x279   : >> { %13252 = vst [vmem:[#allocation170_spill] sm:$0xff] %v11283_v12  ;;  %13259 = vst [vmem:[#allocation173_spill] sm:$0xff] %v11296_v24  ;;  %4295 = vmatpush1.bf16.msra.mxu1 %v11287_v54  ;;  %v13268_v37 = vld [vmem:[#allocation82_spill] sm:$0xff]  ;;  %v13272_v54 = vmov %v13271_v47  ;;  %v13281_v47 = vld [vmem:[#allocation32_spill] sm:$0xff] }
 0x27a   : >> { %4242 = vmatpush1.bf16.msra.mxu0 %v11258_v56  ;;  %v13257_v56 = vmov %v13256_v10  ;;  %13264 = vst [vmem:[#allocation174_spill] sm:$0xff] %v11303_v46  ;;  %4296 = vmatprep.subr.bf16.mxu1 %v11291_v7  ;;  %v13269_v43 = vmov %v13268_v37  ;;  %v11320_v27 = vcombine.high %v13268_v37, %v13267_v42 }
 0x27b   : >> { %4243 = vmatprep.subr.bf16.mxu0 %v11269_v13  ;;  %3828 = vmatmul.mubr.bf16.gmra.mrb[24].mxu1 %v8089_v30  ;;  %v11308_v10 = vcombine.low %v13257_v56, %v13255_v19  ;;  %v11338_v37 = vcombine.low %v13269_v43, %v13267_v42  ;;  %v13287_v42 = vld [vmem:[#allocation103_spill] sm:$0xff]  ;;  %v13288_v43 = vld [vmem:[#allocation105_spill] sm:$0xff] }
 0x27c   : >> { %3837 = vmatprep.mubr.bf16.mxu1 %v13187_v36  ;;  %13270 = vst [vmem:[#allocation177_spill] sm:$0xff] %v11320_v27  ;;  %v11355_v62 = vpack.c.bf16 %v13288_v43, %v13287_v42 }
 0x27d   : >> { %3755 = vmatmul.mubr.bf16.gmra.mrb[24].mxu0 %v8089_v30  ;;  %13265 = vst [vmem:[#allocation175_spill] sm:$0xff] %v11308_v10  ;;  %v11315_v30 = vcombine.low %v13263_v3, %v13261_v2  ;;  %4297 = vmatpush1.bf16.msra.mxu1 %v11308_v10  ;;  %v13277_v2 = vld [vmem:[#allocation79_spill] sm:$0xff]  ;;  %13280 = vst [vmem:[#allocation181_spill] sm:$0xff] %v11338_v37 }
 0x27e   : >> { %4244 = vmatpush1.bf16.msra.mxu0 %v11277_v33  ;;  %3764 = vmatprep.mubr.bf16.mxu0 %v13187_v36  ;;  %v13274_v33 = vmov %v13273_v55  ;;  %v13278_v3 = vld [vmem:[#allocation75_spill] sm:$0xff]  ;;  %v13283_v55 = vld [vmem:[#allocation28_spill] sm:$0xff] }
 0x27f   : >> { %4245 = vmatprep.subr.bf16.mxu0 %v11283_v12  ;;  %13266 = vst [vmem:[#allocation176_spill] sm:$0xff] %v11315_v30  ;;  %v11329_v19 = vcombine.low %v13274_v33, %v13272_v54  ;;  %v11333_v56 = vcombine.high %v13278_v3, %v13277_v2  ;;  %4298 = vmatprep.subr.bf16.mxu1 %v11324_v17  ;;  %v13282_v33 = vmov %v13281_v47 }
 0x280   : >> { %v13284_v54 = vmov %v13283_v55  ;;  %v11345_v21 = vcombine.high %v13283_v55, %v13281_v47  ;;  %v13294_v55 = vld [vmem:[#allocation40_spill] sm:$0xff] }
 0x281   : >> { %13276 = vst [vmem:[#allocation179_spill] sm:$0xff] %v11329_v19  ;;  %13279 = vst [vmem:[#allocation180_spill] sm:$0xff] %v11333_v56  ;;  %4299 = vmatpush1.bf16.msra.mxu1 %v11329_v19  ;;  %v11365_v47 = vcombine.low %v13284_v54, %v13282_v33  ;;  %v13311_v19 = vmov %v13310_v14 }
 0x282   : >> { %4246 = vmatpush1.bf16.msra.mxu0 %v11296_v24  ;;  %13285 = vst [vmem:[#allocation182_spill] sm:$0xff] %v11345_v21  ;;  %4300 = vmatprep.subr.bf16.mxu1 %v11333_v56  ;;  %v13292_v24 = vmov %v13291_v51  ;;  %v13301_v51 = vld [vmem:[#allocation29_spill] sm:$0xff] }
 0x283   : >> { %4247 = vmatprep.subr.bf16.mxu0 %v11303_v46  ;;  %3838 = vmatmul.mubr.bf16.gmra.mrb[28].mxu1 %v8090_v57  ;;  %v13290_v46 = vmov %v13289_v15  ;;  %v13299_v15 = vld [vmem:[#allocation33_spill] sm:$0xff]  ;;  %v13302_v42 = vmov %v13301_v51 }
 0x284   : >> { %4320 = vmatprep.mubr.bf16.mxu1 %v13187_v36  ;;  %v11375_v45 = vcombine.low %v13292_v24, %v13290_v46  ;;  %v13300_v43 = vmov %v13299_v15  ;;  %v11381_v33 = vcombine.high %v13301_v51, %v13299_v15  ;;  %v13305_v24 = vld [vmem:[#allocation48_spill] sm:$0xff]  ;;  %v13308_v51 = vld [vmem:[#allocation41_spill] sm:$0xff] }
 0x285   : >> { %3765 = vmatmul.mubr.bf16.gmra.mrb[28].mxu0 %v8090_v57  ;;  %v11350_v57 = vcombine.low %v13278_v3, %v13277_v2  ;;  %v13295_v2 = vmov %v13294_v55  ;;  %v13296_v3 = vld [vmem:[#allocation36_spill] sm:$0xff]  ;;  %v11397_v15 = vcombine.low %v13302_v42, %v13300_v43  ;;  %v13309_v56 = vmov %v13308_v51 }
 0x286   : >> { %4248 = vmatpush1.bf16.msra.mxu0 %v11315_v30  ;;  %4267 = vmatprep.mubr.bf16.mxu0 %v13187_v36  ;;  %v11370_v53 = vcombine.high %v13296_v3, %v13294_v55  ;;  %13298 = vst [vmem:[#allocation186_spill] sm:$0xff] %v11375_v45  ;;  %13303 = vst [vmem:[#allocation187_spill] sm:$0xff] %v11381_v33  ;;  %v11386_v55 = vcombine.low %v13296_v3, %v13295_v2  ;;  %v13306_v46 = vld [vmem:[#allocation44_spill] sm:$0xff]  ;;  %v13313_v3 = vld [vmem:[#allocation106_spill] sm:$0xff] }
 0x287   : >> { %4249 = vmatprep.subr.bf16.mxu0 %v11320_v27  ;;  %13286 = vst [vmem:[#allocation183_spill] sm:$0xff] %v11350_v57  ;;  %4301 = vmatpush1.bf16.msra.mxu1 %v11350_v57  ;;  %v11392_v54 = vcombine.high %v13306_v46, %v13305_v24  ;;  %v11402_v2 = vcombine.high %v13310_v14, %v13308_v51  ;;  %v13316_v42 = vld [vmem:[#allocation56_spill] sm:$0xff]  ;;  %v13320_v51 = vld [vmem:[#allocation49_spill] sm:$0xff] }
 0x288   : >> { %13297 = vst [vmem:[#allocation185_spill] sm:$0xff] %v11370_v53  ;;  %4302 = vmatprep.subr.bf16.mxu1 %v11360_v59  ;;  %13304 = vst [vmem:[#allocation188_spill] sm:$0xff] %v11386_v55  ;;  %v11406_v18 = vpack.c.bf16 %v13314_v5, %v13313_v3  ;;  %v11411_v11 = vcombine.low %v13306_v46, %v13305_v24  ;;  %v13317_v43 = vld [vmem:[#allocation52_spill] sm:$0xff]  ;;  %v11422_v14 = vcombine.low %v13311_v19, %v13309_v56  ;;  %v13322_v46 = vld [vmem:[#allocation45_spill] sm:$0xff] }
 0x289   : >> { %13307 = vst [vmem:[#allocation189_spill] sm:$0xff] %v11392_v54  ;;  %13312 = vst [vmem:[#allocation190_spill] sm:$0xff] %v11402_v2  ;;  %v11416_v34 = vcombine.high %v13317_v43, %v13316_v42  ;;  %v13321_v24 = vmov %v13320_v51  ;;  %v11428_v6 = vcombine.high %v13322_v46, %v13320_v51  ;;  %v11434_v5 = vcombine.low %v13317_v43, %v13316_v42  ;;  %v13325_v19 = vld [vmem:[#allocation64_spill] sm:$0xff] }
 0x28a   : >> { %4250 = vmatpush1.bf16.msra.mxu0 %v11338_v37  ;;  %13315 = vst [vmem:[#allocation191_spill] sm:$0xff] %v11411_v11  ;;  %13319 = vst [vmem:[#allocation193_spill] sm:$0xff] %v11422_v14  ;;  %v13326_v56 = vld [vmem:[#allocation60_spill] sm:$0xff]  ;;  %v11445_v51 = vcombine.low %v13322_v46, %v13321_v24  ;;  %v13343_v24 = vld [vmem:[#allocation61_spill] sm:$0xff] }
 0x28b   : >> { %4341 = vmatprep.subr.bf16.mxu0 %v11345_v21  ;;  %4303 = vmatpush1.bf16.msra.mxu1 %v11375_v45  ;;  %13318 = vst [vmem:[#allocation192_spill] sm:$0xff] %v11416_v34  ;;  %13323 = vst [vmem:[#allocation194_spill] sm:$0xff] %v11428_v6  ;;  %v11440_v3 = vcombine.high %v13326_v56, %v13325_v19  ;;  %v11455_v43 = vcombine.low %v13326_v56, %v13325_v19 }
 0x28c   : >> { %4394 = vmatprep.subr.bf16.mxu1 %v11381_v33  ;;  %13324 = vst [vmem:[#allocation195_spill] sm:$0xff] %v11434_v5  ;;  %13328 = vst [vmem:[#allocation197_spill] sm:$0xff] %v11445_v51 }
 0x28d   : >> { %4268 = vmatmul.mubr.bf16.vlgmr.msra.gmra.mrb[32].mxu0 %v11355_v62  ;;  %13327 = vst [vmem:[#allocation196_spill] sm:$0xff] %v11440_v3  ;;  %13334 = vst [vmem:[#allocation199_spill] sm:$0xff] %v11455_v43 }
 0x28e   : >> { %4342 = vmatpush1.bf16.msra.mxu0 %v11365_v47  ;;  %4277 = vmatprep.mubr.bf16.mxu0 %v13187_v36 }
 0x28f   : >> { %4343 = vmatprep.subr.bf16.mxu0 %v11370_v53  ;;  %4321 = vmatmul.mubr.bf16.vlgmr.msra.gmra.mrb[32].mxu1 %v11355_v62 }
 0x290   : >> { %4395 = vmatpush1.bf16.msra.mxu1 %v11397_v15  ;;  %4330 = vmatprep.mubr.bf16.mxu1 %v13187_v36 }
 0x291   : >> { %4396 = vmatprep.subr.bf16.mxu1 %v11402_v2 }
 0x292   : >> { %4344 = vmatpush1.bf16.msra.mxu0 %v11386_v55  ;;  %v13331_v55 = vld [vmem:[#allocation53_spill] sm:$0xff] }
 0x293   : >> { %4345 = vmatprep.subr.bf16.mxu0 %v11392_v54  ;;  %v13332_v2 = vmov %v13331_v55 }
 0x294   : >> { %4397 = vmatpush1.bf16.msra.mxu1 %v11422_v14  ;;  %v13337_v14 = vld [vmem:[#allocation68_spill] sm:$0xff] }
 0x295   : >> { %4278 = vmatmul.mubr.bf16.gmra.mrb[36].mxu0 %v11406_v18  ;;  %4398 = vmatprep.subr.bf16.mxu1 %v11428_v6  ;;  %v13338_v32 = vmov %v13337_v14 }
 0x296   : >> { %4346 = vmatpush1.bf16.msra.mxu0 %v11411_v11  ;;  %4373 = vmatprep.mubr.bf16.mxu0 %v13187_v36  ;;  %v13329_v11 = vld [vmem:[#allocation57_spill] sm:$0xff] }
 0x297   : >> { %4347 = vmatprep.subr.bf16.mxu0 %v11416_v34  ;;  %v13330_v54 = vmov %v13329_v11  ;;  %v11450_v42 = vcombine.high %v13331_v55, %v13329_v11  ;;  %v13335_v34 = vld [vmem:[#allocation72_spill] sm:$0xff]  ;;  %4331 = vmatmul.mubr.bf16.gmra.mrb[36].mxu1 %v11406_v18  ;;  %v13341_v55 = vld [vmem:[#allocation65_spill] sm:$0xff] }
 0x298   : >> { %v13336_v33 = vmov %v13335_v34  ;;  %v11460_v53 = vcombine.high %v13337_v14, %v13335_v34  ;;  %4399 = vmatpush1.bf16.msra.mxu1 %v11445_v51  ;;  %v11466_v11 = vcombine.low %v13332_v2, %v13330_v54  ;;  %4426 = vmatprep.mubr.bf16.mxu1 %v13187_v36  ;;  %v13342_v19 = vmov %v13341_v55  ;;  %v13346_v14 = vld [vmem:[#allocation80_spill] sm:$0xff] }
 0x299   : >> { %13333 = vst [vmem:[#allocation198_spill] sm:$0xff] %v11450_v42  ;;  %4400 = vmatprep.subr.bf16.mxu1 %v11450_v42  ;;  %v11472_v46 = vcombine.high %v13343_v24, %v13341_v55  ;;  %v11477_v34 = vcombine.low %v13338_v32, %v13336_v33  ;;  %v13347_v56 = vmov %v13346_v14  ;;  %v13348_v2 = vld [vmem:[#allocation76_spill] sm:$0xff]  ;;  %v13351_v55 = vld [vmem:[#allocation73_spill] sm:$0xff] }
 0x29a   : >> { %4348 = vmatpush1.bf16.msra.mxu0 %v11434_v5  ;;  %13339 = vst [vmem:[#allocation200_spill] sm:$0xff] %v11460_v53  ;;  %13340 = vst [vmem:[#allocation201_spill] sm:$0xff] %v11466_v11  ;;  %v11482_v54 = vcombine.high %v13348_v2, %v13346_v14  ;;  %v13353_v5 = vld [vmem:[#allocation69_spill] sm:$0xff]  ;;  %v11497_v32 = vcombine.low %v13348_v2, %v13347_v56 }
 0x29b   : >> { %4349 = vmatprep.subr.bf16.mxu0 %v11440_v3  ;;  %13344 = vst [vmem:[#allocation202_spill] sm:$0xff] %v11472_v46  ;;  %13345 = vst [vmem:[#allocation203_spill] sm:$0xff] %v11477_v34  ;;  %v11487_v3 = vcombine.low %v13343_v24, %v13342_v19  ;;  %v13354_v42 = vmov %v13353_v5  ;;  %v11492_v51 = vcombine.high %v13353_v5, %v13351_v55  ;;  %v13356_v14 = vld [vmem:[#allocation25_spill] sm:$0xff]  ;;  %v13361_v19 = vld [vmem:[#allocation84_spill] sm:$0xff] }
 0x29c   : >> { %13349 = vst [vmem:[#allocation204_spill] sm:$0xff] %v11482_v54  ;;  %4401 = vmatpush1.bf16.msra.mxu1 %v11466_v11  ;;  %13355 = vst [vmem:[#allocation206_spill] sm:$0xff] %v11497_v32  ;;  %v13357_v33 = vmov %v13356_v14  ;;  %v13359_v11 = vld [vmem:[#allocation88_spill] sm:$0xff] }
 0x29d   : >> { %13350 = vst [vmem:[#allocation205_spill] sm:$0xff] %v11487_v3  ;;  %4402 = vmatprep.subr.bf16.mxu1 %v11472_v46  ;;  %v13360_v6 = vmov %v13359_v11  ;;  %v11505_v24 = vcombine.high %v13361_v19, %v13359_v11 }
 0x29e   : >> { %4350 = vmatpush1.bf16.msra.mxu0 %v11455_v43  ;;  %v13352_v43 = vmov %v13351_v55  ;;  %v13363_v55 = vstv %s11093_s15  ;;  %s4644_s15 = ssub.s32 7, %s10969_s19 }
 0x29f   : >> { %4351 = vmatprep.subr.bf16.mxu0 %v11460_v53  ;;  %v13358_v53 = vstv %s11060_s26  ;;  %13362 = vst [vmem:[#allocation207_spill] sm:$0xff] %v11505_v24  ;;  %v11511_v5 = vcombine.low %v13354_v42, %v13352_v43  ;;  %vm5429_vm12 = vcmp.lt.s32.totalorder %v13363_v55, %v13357_v33  ;;  %v13370_v55 = vld [vmem:[#allocation89_spill] sm:$0xff]  ;;  %s4640_s26 = scalar_lea.vmem %s9262_s11, %s6747_s24 [#allocation4] }
 0x2a0   : >> { %vm5013_vm11 = vcmp.lt.s32.totalorder %v13358_v53, %v13356_v14  ;;  %4403 = vmatpush1.bf16.msra.mxu1 %v11487_v3  ;;  %v13364_v53 = vld [vmem:[#allocation81_spill] sm:$0xff]  ;;  %v5433_v11 = vsel %vm5429_vm12, 1, %v13187_v36  ;;  %v13371_v42 = vmov %v13370_v55 }
 0x2a1   : >> { %v5017_v46 = vsel %vm5013_vm11, 1, %v13187_v36  ;;  %4404 = vmatprep.subr.bf16.mxu1 %v11492_v51  ;;  %v13365_v2 = vmov %v13364_v53  ;;  %v13366_v14 = vld [vmem:[#allocation77_spill] sm:$0xff] }
 0x2a2   : >> { %4352 = vmatpush1.bf16.msra.mxu0 %v11477_v34  ;;  %5028 = vperm.xlu1 %7882, %v5017_v46   ;;  %v13367_v56 = vmov %v13366_v14  ;;  %v11525_v34 = vcombine.low %v13361_v19, %v13360_v6  ;;  %v13374_v6 = vstv %s11130_s3  ;;  %s6748_s3 = sshll.u32 %s4644_s15, 4  ;;  %s6832_s15 = sadd.s32 32, %s11815_s21 }
 0x2a3   : >> { %4353 = vmatprep.subr.bf16.mxu0 %v11482_v54  ;;  %v11519_v54 = vcombine.high %v13366_v14, %v13364_v53  ;;  %v11531_v46 = vcombine.low %v13367_v56, %v13365_v2  ;;  %v13372_v53 = vld [vmem:[#allocation85_spill] sm:$0xff]  ;;  %vm5431_vm13 = vcmp.lt.s32.totalorder %v13374_v6, %v13357_v33  ;;  %v13382_v2 = vld [vmem:[#allocation173_spill] sm:$0xff]  ;;  %s4653_s0 = sshra.s32 %s6748_s3, 3  ;;  %s5473_s3 = sshra.s32 %s6832_s15, 3 }
 0x2a4   : >> { %4405 = vmatpush1.bf16.msra.mxu1 %v11511_v5  ;;  %v13373_v43 = vmov %v13372_v53  ;;  %v11536_v14 = vcombine.high %v13372_v53, %v13370_v55  ;;  %v5435_v19 = vsel %vm5431_vm13, 1, %v13187_v36  ;;  %v13375_v55 = vstv %s11166_s27  ;;  %s6751_s17 = sshll.u32 %s4653_s0, 2  ;;  %s6826_s27 = sadd.s32 16, %s11815_s21 }
 0x2a5   : >> { %13368 = vst [vmem:[#allocation208_spill] sm:$0xff] %v11519_v54  ;;  %13369 = vst [vmem:[#allocation209_spill] sm:$0xff] %v11531_v46  ;;  %4406 = vmatprep.subr.bf16.mxu1 %v11519_v54  ;;  %vm5847_vm14 = vcmp.lt.s32.totalorder %v13375_v55, %v13357_v33  ;;  %v13377_v55 = vld [vmem:[#allocation93_spill] sm:$0xff]  ;;  %s4656_s20 = scalar_lea.vmem %s9264_s18, %s6751_s17 [#allocation6]  ;;  %s5055_s12 = sshra.s32 %s6826_s27, 3 }
 0x2a6   : >> { %4354 = vmatpush1.bf16.msra.mxu0 %v11497_v32  ;;  %5440 = vperm.xlu1 %7882, %v5433_v11   ;;  %v11547_v11 = vcombine.low %v13373_v43, %v13371_v42  ;;  %v5851_v6 = vsel %vm5847_vm14, 1, %v13187_v36  ;;  %v13385_v42 = vld [vmem:[#allocation180_spill] sm:$0xff]  ;;  %v13386_v43 = vld [vmem:[#allocation187_spill] sm:$0xff]  ;;  %s6767_s4 = sshll.u32 %s5055_s12, 2  ;;  %s6787_s0 = sshll.u32 %s5473_s3, 2 }
 0x2a7   : >> { %4355 = vmatprep.subr.bf16.mxu0 %v11505_v24  ;;  %s5058_s16 = scalar_lea.vmem %s9262_s11, %s6767_s4 [#allocation4]  ;;  %s5476_s17 = scalar_lea.vmem %s9262_s11, %s6787_s0 [#allocation4] }
 0x2a8   : >> { %4407 = vmatpush1.bf16.msra.mxu1 %v11531_v46 }
 0x2a9   : >> { %4408 = vmatprep.subr.bf16.mxu1 %v11536_v14 }
 0x2aa   : >> { %4356 = vmatpush1.bf16.msra.mxu0 %v11525_v34  ;;  %5446 = vperm.xlu1 %7882, %v5435_v19   ;;  %v13376_v19 = vstv %s11187_s2  ;;  %s6768_s2 = sshll.u32 %s5062_s5, 4  ;;  %s6838_s5 = sadd.s32 48, %s11815_s21 }
 0x2ab   : >> { %4662 = vmatprep.subr.bf16.mxu0 %v11177_v0  ;;  %vm5849_vm15 = vcmp.lt.s32.totalorder %v13376_v19, %v13357_v33  ;;  %v13380_v19 = vld [vmem:[#allocation169_spill] sm:$0xff]  ;;  %v13383_v33 = vld [vmem:[#allocation174_spill] sm:$0xff]  ;;  %s5071_s1 = sshra.s32 %s6768_s2, 3  ;;  %s5891_s2 = sshra.s32 %s6838_s5, 3 }
 0x2ac   : >> { %4409 = vmatpush1.bf16.msra.mxu1 %v11547_v11  ;;  %v5853_v53 = vsel %vm5849_vm15, 1, %v13187_v36  ;;  %s6771_s24 = sshll.u32 %s5071_s1, 2  ;;  %s6807_s1 = sshll.u32 %s5891_s2, 2 }
 0x2ad   : >> { %4374 = vmatmul.mubr.bf16.vlgmr.msra.gmra.mrb[40].mxu0 %v11355_v62  ;;  %4715 = vmatprep.subr.bf16.mxu1 %v11181_v8  ;;  %s5898_s21 = ssub.s32 4, %s10969_s19 }
 0x2ae   : >> { %4383 = vmatprep.mubr.bf16.mxu0 %v13187_v36  ;;  %4663 = vmatpush1.bf16.msra.mxu0 %v11192_v29 }
 0x2af   : >> { %4664 = vmatprep.subr.bf16.mxu0 %v11200_v9  ;;  %5858 = vperm.xlu1 %7882, %v5851_v6   ;;  %v13379_v6 = vld [vmem:[#allocation165_spill] sm:$0xff] }
 0x2b0   : >> { %4427 = vmatmul.mubr.bf16.vlgmr.msra.gmra.mrb[40].mxu1 %v11355_v62  ;;  %v13378_v62 = vld [vmem:[#allocation166_spill] sm:$0xff] }
 0x2b1   : >> { %4436 = vmatprep.mubr.bf16.mxu1 %v13187_v36  ;;  %4716 = vmatpush1.bf16.msra.mxu1 %v11206_v4 }
 0x2b2   : >> { %4665 = vmatpush1.bf16.msra.mxu0 %v11216_v1  ;;  %4717 = vmatprep.subr.bf16.mxu1 %v11210_v44 }
 0x2b3   : >> { %4666 = vmatprep.subr.bf16.mxu0 %v11226_v40  ;;  %5864 = vperm.xlu1 %7882, %v5853_v53   ;;  %v13381_v53 = vld [vmem:[#allocation171_spill] sm:$0xff] }
 0x2b5   : >> { %4384 = vmatmul.mubr.bf16.gmra.mrb[44].mxu0 %v11406_v18  ;;  %4718 = vmatpush1.bf16.msra.mxu1 %v11231_v60 }
 0x2b6   : >> { %4667 = vmatpush1.bf16.msra.mxu0 %v13377_v55  ;;  %4694 = vmatprep.mubr.bf16.mxu0 %v13187_v36 }
 0x2b7   : >> { %4668 = vmatprep.subr.bf16.mxu0 %v11244_v52  ;;  %4719 = vmatprep.subr.bf16.mxu1 %v11249_v48 }
 0x2b8   : >> { %4437 = vmatmul.mubr.bf16.gmra.mrb[44].mxu1 %v11406_v18  ;;  %v13384_v18 = vld [vmem:[#allocation179_spill] sm:$0xff] }
 0x2b9   : >> { %4747 = vmatprep.mubr.bf16.mxu1 %v13187_v36  ;;  %4720 = vmatpush1.bf16.msra.mxu1 %v13379_v6 }
 0x2ba   : >> { %4669 = vmatpush1.bf16.msra.mxu0 %v13378_v62  ;;  %4721 = vmatprep.subr.bf16.mxu1 %v11263_v49 }
 0x2bb   : >> { %4670 = vmatprep.subr.bf16.mxu0 %v11269_v13 }
 0x2bd   : >> { %4722 = vmatpush1.bf16.msra.mxu1 %v13381_v53 }
 0x2be   : >> { %4671 = vmatpush1.bf16.msra.mxu0 %v13380_v19  ;;  %4723 = vmatprep.subr.bf16.mxu1 %v11291_v7 }
 0x2bf   : >> { %4672 = vmatprep.subr.bf16.mxu0 %v11283_v12 }
 0x2c1   : >> { %4724 = vmatpush1.bf16.msra.mxu1 %v11308_v10  ;;  %v13392_v10 = vld [vmem:[#allocation100_spill] sm:$0xff] }
 0x2c2   : >> { %4673 = vmatpush1.bf16.msra.mxu0 %v13382_v2  ;;  %4725 = vmatprep.subr.bf16.mxu1 %v11324_v17  ;;  %v13393_v6 = vmov %v13392_v10 }
 0x2c3   : >> { %4674 = vmatprep.subr.bf16.mxu0 %v13383_v33  ;;  %v13387_v33 = vld [vmem:[#allocation98_spill] sm:$0xff] }
 0x2c5   : >> { %4726 = vmatpush1.bf16.msra.mxu1 %v13384_v18  ;;  %v13389_v18 = vld [vmem:[#allocation99_spill] sm:$0xff] }
 0x2c6   : >> { %4675 = vmatpush1.bf16.msra.mxu0 %v11315_v30  ;;  %4727 = vmatprep.subr.bf16.mxu1 %v13385_v42  ;;  %v13390_v19 = vmov %v13389_v18 }
 0x2c7   : >> { %4676 = vmatprep.subr.bf16.mxu0 %v11320_v27 }
 0x2c9   : >> { %4728 = vmatpush1.bf16.msra.mxu1 %v11350_v57  ;;  %v13395_v57 = vld [vmem:[#allocation101_spill] sm:$0xff] }
 0x2ca   : >> { %4677 = vmatpush1.bf16.msra.mxu0 %v11338_v37  ;;  %4729 = vmatprep.subr.bf16.mxu1 %v11360_v59  ;;  %v13396_v46 = vmov %v13395_v57 }
 0x2cb   : >> { %4768 = vmatprep.subr.bf16.mxu0 %v11345_v21 }
 0x2cd   : >> { %4730 = vmatpush1.bf16.msra.mxu1 %v11375_v45 }
 0x2ce   : >> { %4821 = vmatprep.subr.bf16.mxu1 %v13386_v43 }
 0x31e   : >> { %v3479_v30 = vpop.f32.mrb[0].mxu1 }
 0x31f   : >> { %v11604_v17 = vadd.f32 %v3479_v30, %v13389_v18   ;;  %v3481_v37 = vpop.f32.mrb[1].mxu1 }
 0x320   : >> { %v3406_v56 = vpop.f32.mrb[0].mxu0  ;;  %v11610_v7 = vadd.f32 %v3481_v37, %v13395_v57   ;;  %v3483_v45 = vpop.f32.mrb[2].mxu1 }
 0x321   : >> { %v11601_v27 = vadd.f32 %v3406_v56, %v13387_v33   ;;  %13391 = vst [vmem:[#allocation90_spill] sm:$0xff] %v11604_v17  ;;  %v3408_v12 = vpop.f32.mrb[1].mxu0  ;;  %v11616_v13 = vadd.f32 %v3483_v45, %v13390_v19   ;;  %v3485_v2 = vpop.f32.mrb[3].mxu1 }
 0x322   : >> { %v11607_v21 = vadd.f32 %v3408_v12, %v13392_v10   ;;  %13397 = vst [vmem:[#allocation211_spill] sm:$0xff] %v11610_v7  ;;  %v3410_v59 = vpop.f32.mrb[2].mxu0  ;;  %v11622_v30 = vadd.f32 %v3485_v2, %v13396_v46  }
 0x323   : >> { %13388 = vst [vmem:[#allocation91_spill] sm:$0xff] %v11601_v27  ;;  %v11613_v43 = vadd.f32 %v3410_v59, %v13387_v33   ;;  %13399 = vst [vmem:[#allocation213_spill] sm:$0xff] %v11616_v13  ;;  %v3412_v27 = vpop.f32.mrb[3].mxu0 }
 0x324   : >> { %13394 = vst [vmem:[#allocation210_spill] sm:$0xff] %v11607_v21  ;;  %v11619_v17 = vadd.f32 %v3412_v27, %v13393_v6   ;;  %13401 = vst [vmem:[#allocation215_spill] sm:$0xff] %v11622_v30 }
 0x325   : >> { %13398 = vst [vmem:[#allocation212_spill] sm:$0xff] %v11613_v43 }
 0x326   : >> { %13400 = vst [vmem:[#allocation214_spill] sm:$0xff] %v11619_v17  ;;  %v3489_v12 = vpop.f32.mrb[4].mxu1 }
 0x327   : >> { %v11628_v10 = vadd.f32 %v3489_v12, %v13390_v19   ;;  %v3491_v37 = vpop.f32.mrb[5].mxu1 }
 0x328   : >> { %v3416_v21 = vpop.f32.mrb[4].mxu0  ;;  %v11634_v13 = vadd.f32 %v3491_v37, %v13396_v46   ;;  %v3493_v18 = vpop.f32.mrb[6].mxu1 }
 0x329   : >> { %v11625_v7 = vadd.f32 %v3416_v21, %v13387_v33   ;;  %13403 = vst [vmem:[#allocation217_spill] sm:$0xff] %v11628_v10  ;;  %v3418_v59 = vpop.f32.mrb[5].mxu0  ;;  %v11640_v27 = vadd.f32 %v3493_v18, %v13390_v19   ;;  %v3495_v30 = vpop.f32.mrb[7].mxu1 }
 0x32a   : >> { %v11631_v45 = vadd.f32 %v3418_v59, %v13393_v6   ;;  %13405 = vst [vmem:[#allocation219_spill] sm:$0xff] %v11634_v13  ;;  %v3420_v57 = vpop.f32.mrb[6].mxu0 }
 0x32b   : >> { %13402 = vst [vmem:[#allocation216_spill] sm:$0xff] %v11625_v7  ;;  %v11637_v2 = vadd.f32 %v3420_v57, %v13387_v33   ;;  %13407 = vst [vmem:[#allocation221_spill] sm:$0xff] %v11640_v27  ;;  %v3422_v17 = vpop.f32.mrb[7].mxu0 }
 0x32c   : >> { %13404 = vst [vmem:[#allocation218_spill] sm:$0xff] %v11631_v45  ;;  %v11643_v18 = vadd.f32 %v3422_v17, %v13393_v6   ;;  %v11646_v45 = vadd.f32 %v3495_v30, %v13396_v46  }
 0x32d   : >> { %13406 = vst [vmem:[#allocation220_spill] sm:$0xff] %v11637_v2 }
 0x32e   : >> { %13408 = vst [vmem:[#allocation222_spill] sm:$0xff] %v11643_v18  ;;  %13409 = vst [vmem:[#allocation223_spill] sm:$0xff] %v11646_v45  ;;  %v3499_v12 = vpop.f32.mrb[8].mxu1 }
 0x32f   : >> { %v11652_v10 = vadd.f32 %v3499_v12, %v13390_v19   ;;  %v3501_v37 = vpop.f32.mrb[9].mxu1 }
 0x330   : >> { %v3426_v21 = vpop.f32.mrb[8].mxu0  ;;  %v11658_v57 = vadd.f32 %v3501_v37, %v13396_v46   ;;  %v3503_v17 = vpop.f32.mrb[10].mxu1 }
 0x331   : >> { %v11649_v7 = vadd.f32 %v3426_v21, %v13387_v33   ;;  %13411 = vst [vmem:[#allocation225_spill] sm:$0xff] %v11652_v10  ;;  %v3428_v59 = vpop.f32.mrb[9].mxu0  ;;  %v11664_v37 = vadd.f32 %v3503_v17, %v13390_v19   ;;  %v3505_v21 = vpop.f32.mrb[11].mxu1 }
 0x332   : >> { %v11655_v13 = vadd.f32 %v3428_v59, %v13393_v6   ;;  %13413 = vst [vmem:[#allocation227_spill] sm:$0xff] %v11658_v57  ;;  %v3430_v27 = vpop.f32.mrb[10].mxu0  ;;  %v11670_v32 = vadd.f32 %v3505_v21, %v13396_v46  }
 0x333   : >> { %13410 = vst [vmem:[#allocation224_spill] sm:$0xff] %v11649_v7  ;;  %v11661_v57 = vadd.f32 %v3430_v27, %v13387_v33   ;;  %13415 = vst [vmem:[#allocation229_spill] sm:$0xff] %v11664_v37  ;;  %v3432_v30 = vpop.f32.mrb[11].mxu0  ;;  %v13429_v37 = vld [vmem:[#allocation114_spill] sm:$0xff] }
 0x334   : >> { %13412 = vst [vmem:[#allocation226_spill] sm:$0xff] %v11655_v13  ;;  %v11667_v12 = vadd.f32 %v3432_v30, %v13393_v6   ;;  %13417 = vst [vmem:[#allocation231_spill] sm:$0xff] %v11670_v32  ;;  %v13430_v32 = vmov %v13429_v37 }
 0x335   : >> { %13414 = vst [vmem:[#allocation228_spill] sm:$0xff] %v11661_v57 }
 0x336   : >> { %13416 = vst [vmem:[#allocation230_spill] sm:$0xff] %v11667_v12  ;;  %v3509_v13 = vpop.f32.mrb[12].mxu1 }
 0x337   : >> { %v11676_v2 = vadd.f32 %v3509_v13, %v13390_v19   ;;  %v3511_v18 = vpop.f32.mrb[13].mxu1 }
 0x338   : >> { %v3436_v59 = vpop.f32.mrb[12].mxu0  ;;  %v11682_v45 = vadd.f32 %v3511_v18, %v13396_v46   ;;  %v3513_v12 = vpop.f32.mrb[14].mxu1  ;;  %v13426_v18 = vld [vmem:[#allocation113_spill] sm:$0xff] }
 0x339   : >> { %v11673_v56 = vadd.f32 %v3436_v59, %v13387_v33   ;;  %13419 = vst [vmem:[#allocation233_spill] sm:$0xff] %v11676_v2  ;;  %v3438_v27 = vpop.f32.mrb[13].mxu0  ;;  %v11688_v21 = vadd.f32 %v3513_v12, %v13390_v19   ;;  %v3515_v54 = vpop.f32.mrb[15].mxu1  ;;  %v13427_v43 = vmov %v13426_v18  ;;  %v13432_v12 = vld [vmem:[#allocation115_spill] sm:$0xff] }
 0x33a   : >> { %v11679_v17 = vadd.f32 %v3438_v27, %v13393_v6   ;;  %13421 = vst [vmem:[#allocation235_spill] sm:$0xff] %v11682_v45  ;;  %v3440_v30 = vpop.f32.mrb[14].mxu0  ;;  %v11694_v24 = vadd.f32 %v3515_v54, %v13396_v46   ;;  %v13433_v19 = vmov %v13432_v12  ;;  %v13435_v45 = vld [vmem:[#allocation116_spill] sm:$0xff] }
 0x33b   : >> { %13418 = vst [vmem:[#allocation232_spill] sm:$0xff] %v11673_v56  ;;  %v11685_v30 = vadd.f32 %v3440_v30, %v13387_v33   ;;  %13423 = vst [vmem:[#allocation237_spill] sm:$0xff] %v11688_v21  ;;  %v3442_v59 = vpop.f32.mrb[15].mxu0  ;;  %v13436_v3 = vmov %v13435_v45 }
 0x33c   : >> { %13420 = vst [vmem:[#allocation234_spill] sm:$0xff] %v11679_v17  ;;  %v11691_v13 = vadd.f32 %v3442_v59, %v13393_v6   ;;  %13425 = vst [vmem:[#allocation239_spill] sm:$0xff] %v11694_v24 }
 0x33d   : >> { %13422 = vst [vmem:[#allocation236_spill] sm:$0xff] %v11685_v30 }
 0x33e   : >> { %13424 = vst [vmem:[#allocation238_spill] sm:$0xff] %v11691_v13  ;;  %v3809_v17 = vpop.f32.mrb[16].mxu1 }
 0x33f   : >> { %v11700_v56 = vadd.f32 %v3809_v17, %v13429_v37   ;;  %v3811_v42 = vpop.f32.mrb[17].mxu1 }
 0x340   : >> { %v3736_v27 = vpop.f32.mrb[16].mxu0  ;;  %v11706_v30 = vadd.f32 %v3811_v42, %v13435_v45   ;;  %v3813_v13 = vpop.f32.mrb[18].mxu1 }
 0x341   : >> { %v11697_v57 = vadd.f32 %v3736_v27, %v13426_v18   ;;  %13431 = vst [vmem:[#allocation241_spill] sm:$0xff] %v11700_v56  ;;  %v3738_v33 = vpop.f32.mrb[17].mxu0  ;;  %v11712_v6 = vadd.f32 %v3813_v13, %v13430_v32   ;;  %v3815_v18 = vpop.f32.mrb[19].mxu1 }
 0x342   : >> { %v11703_v21 = vadd.f32 %v3738_v33, %v13432_v12   ;;  %13437 = vst [vmem:[#allocation243_spill] sm:$0xff] %v11706_v30  ;;  %v3740_v59 = vpop.f32.mrb[18].mxu0  ;;  %v11718_v17 = vadd.f32 %v3815_v18, %v13436_v3  }
 0x343   : >> { %13428 = vst [vmem:[#allocation240_spill] sm:$0xff] %v11697_v57  ;;  %v11709_v54 = vadd.f32 %v3740_v59, %v13427_v43   ;;  %13439 = vst [vmem:[#allocation245_spill] sm:$0xff] %v11712_v6  ;;  %v3742_v27 = vpop.f32.mrb[19].mxu0 }
 0x344   : >> { %13434 = vst [vmem:[#allocation242_spill] sm:$0xff] %v11703_v21  ;;  %v11715_v37 = vadd.f32 %v3742_v27, %v13433_v19   ;;  %13441 = vst [vmem:[#allocation247_spill] sm:$0xff] %v11718_v17 }
 0x345   : >> { %13438 = vst [vmem:[#allocation244_spill] sm:$0xff] %v11709_v54 }
 0x346   : >> { %13440 = vst [vmem:[#allocation246_spill] sm:$0xff] %v11715_v37  ;;  %v3819_v21 = vpop.f32.mrb[20].mxu1 }
 0x347   : >> { %v11724_v42 = vadd.f32 %v3819_v21, %v13430_v32   ;;  %v3821_v59 = vpop.f32.mrb[21].mxu1 }
 0x348   : >> { %v3746_v12 = vpop.f32.mrb[20].mxu0  ;;  %v11730_v10 = vadd.f32 %v3821_v59, %v13436_v3   ;;  %v3823_v7 = vpop.f32.mrb[22].mxu1 }
 0x349   : >> { %v11721_v13 = vadd.f32 %v3746_v12, %v13427_v43   ;;  %13443 = vst [vmem:[#allocation249_spill] sm:$0xff] %v11724_v42  ;;  %v3748_v45 = vpop.f32.mrb[21].mxu0  ;;  %v11736_v18 = vadd.f32 %v3823_v7, %v13430_v32   ;;  %v3825_v24 = vpop.f32.mrb[23].mxu1 }
 0x34a   : >> { %v11727_v46 = vadd.f32 %v3748_v45, %v13433_v19   ;;  %13445 = vst [vmem:[#allocation251_spill] sm:$0xff] %v11730_v10  ;;  %v3750_v27 = vpop.f32.mrb[22].mxu0  ;;  %v11742_v21 = vadd.f32 %v3825_v24, %v13436_v3  }
 0x34b   : >> { %13442 = vst [vmem:[#allocation248_spill] sm:$0xff] %v11721_v13  ;;  %v11733_v12 = vadd.f32 %v3750_v27, %v13427_v43   ;;  %13447 = vst [vmem:[#allocation253_spill] sm:$0xff] %v11736_v18  ;;  %v3752_v17 = vpop.f32.mrb[23].mxu0 }
 0x34c   : >> { %13444 = vst [vmem:[#allocation250_spill] sm:$0xff] %v11727_v46  ;;  %v11739_v27 = vadd.f32 %v3752_v17, %v13433_v19   ;;  %13449 = vst [vmem:[#allocation255_spill] sm:$0xff] %v11742_v21 }
 0x34d   : >> { %13446 = vst [vmem:[#allocation252_spill] sm:$0xff] %v11733_v12 }
 0x34e   : >> { %13448 = vst [vmem:[#allocation254_spill] sm:$0xff] %v11739_v27  ;;  %v3829_v2 = vpop.f32.mrb[24].mxu1 }
 0x34f   : >> { %v11748_v17 = vadd.f32 %v3829_v2, %v13430_v32   ;;  %v3831_v30 = vpop.f32.mrb[25].mxu1 }
 0x350   : >> { %v3756_v57 = vpop.f32.mrb[24].mxu0  ;;  %v11754_v21 = vadd.f32 %v3831_v30, %v13436_v3   ;;  %v3833_v37 = vpop.f32.mrb[26].mxu1 }
 0x351   : >> { %v11745_v59 = vadd.f32 %v3756_v57, %v13427_v43   ;;  %13451 = vst [vmem:[#allocation257_spill] sm:$0xff] %v11748_v17  ;;  %v3758_v56 = vpop.f32.mrb[25].mxu0  ;;  %v11760_v6 = vadd.f32 %v3833_v37, %v13430_v32   ;;  %v3835_v33 = vpop.f32.mrb[27].mxu1 }
 0x352   : >> { %v11751_v7 = vadd.f32 %v3758_v56, %v13433_v19   ;;  %13453 = vst [vmem:[#allocation259_spill] sm:$0xff] %v11754_v21  ;;  %v3760_v54 = vpop.f32.mrb[26].mxu0  ;;  %v11766_v13 = vadd.f32 %v3835_v33, %v13436_v3  }
 0x353   : >> { %13450 = vst [vmem:[#allocation256_spill] sm:$0xff] %v11745_v59  ;;  %v11757_v24 = vadd.f32 %v3760_v54, %v13427_v43   ;;  %13455 = vst [vmem:[#allocation261_spill] sm:$0xff] %v11760_v6  ;;  %v3762_v57 = vpop.f32.mrb[27].mxu0  ;;  %v13486_v6 = vld [vmem:[#allocation110_spill] sm:$0xff] }
 0x354   : >> { %13452 = vst [vmem:[#allocation258_spill] sm:$0xff] %v11751_v7  ;;  %v11763_v2 = vadd.f32 %v3762_v57, %v13433_v19   ;;  %13457 = vst [vmem:[#allocation263_spill] sm:$0xff] %v11766_v13 }
 0x355   : >> { %13454 = vst [vmem:[#allocation260_spill] sm:$0xff] %v11757_v24 }
 0x356   : >> { %13456 = vst [vmem:[#allocation262_spill] sm:$0xff] %v11763_v2  ;;  %v3839_v46 = vpop.f32.mrb[28].mxu1 }
 0x357   : >> { %v11772_v42 = vadd.f32 %v3839_v46, %v13430_v32   ;;  %v3841_v10 = vpop.f32.mrb[29].mxu1 }
 0x358   : >> { %v3766_v56 = vpop.f32.mrb[28].mxu0  ;;  %v11778_v12 = vadd.f32 %v3841_v10, %v13436_v3   ;;  %v3843_v27 = vpop.f32.mrb[30].mxu1 }
 0x359   : >> { %v11769_v30 = vadd.f32 %v3766_v56, %v13427_v43   ;;  %13459 = vst [vmem:[#allocation265_spill] sm:$0xff] %v11772_v42  ;;  %v3768_v54 = vpop.f32.mrb[29].mxu0  ;;  %v11784_v18 = vadd.f32 %v3843_v27, %v13430_v32   ;;  %v3845_v45 = vpop.f32.mrb[31].mxu1 }
 0x35a   : >> { %v11775_v37 = vadd.f32 %v3768_v54, %v13433_v19   ;;  %13461 = vst [vmem:[#allocation267_spill] sm:$0xff] %v11778_v12  ;;  %v3770_v57 = vpop.f32.mrb[30].mxu0  ;;  %v11790_v59 = vadd.f32 %v3845_v45, %v13436_v3  }
 0x35b   : >> { %13458 = vst [vmem:[#allocation264_spill] sm:$0xff] %v11769_v30  ;;  %v11781_v33 = vadd.f32 %v3770_v57, %v13427_v43   ;;  %13463 = vst [vmem:[#allocation269_spill] sm:$0xff] %v11784_v18  ;;  %v3772_v56 = vpop.f32.mrb[31].mxu0  ;;  %v13487_v30 = vld [vmem:[#allocation200_spill] sm:$0xff] }
 0x35c   : >> { %13460 = vst [vmem:[#allocation266_spill] sm:$0xff] %v11775_v37  ;;  %v11787_v46 = vadd.f32 %v3772_v56, %v13433_v19   ;;  %13465 = vst [vmem:[#allocation271_spill] sm:$0xff] %v11790_v59  ;;  %v13491_v59 = vld [vmem:[#allocation204_spill] sm:$0xff] }
 0x35d   : >> { %13462 = vst [vmem:[#allocation268_spill] sm:$0xff] %v11781_v33 }
 0x35e   : >> { %13464 = vst [vmem:[#allocation270_spill] sm:$0xff] %v11787_v46  ;;  %v13489_v46 = vld [vmem:[#allocation203_spill] sm:$0xff] }
 0x360   : >> { %v4269_v54 = vpop.f32.mrb[32].mxu0 }
 0x361   : >> { %v4471_v10 = vadd.f32 %v13170_v25, %v4269_v54  ;;  %v4271_v7 = vpop.f32.mrb[33].mxu0 }
 0x362   : >> { %v4472_v17 = vadd.f32 %v13169_v20, %v4271_v7  ;;  %v4273_v21 = vpop.f32.mrb[34].mxu0  ;;  %v4322_v45 = vpop.f32.mrb[32].mxu1 }
 0x363   : >> { %v6732_v57 = vmul.f32 -1.442695, %v4471_v10  ;;  %v4475_v43 = vadd.f32 %v13166_v26, %v4273_v21  ;;  %v4275_v27 = vpop.f32.mrb[35].mxu0  ;;  %v4324_v3 = vpop.f32.mrb[33].mxu1  ;;  %v4473_v26 = vadd.f32 %v13168_v63, %v4322_v45 }
 0x364   : >> { %v6736_v32 = vmul.f32 -1.442695, %v4472_v17  ;;  %v4476_v24 = vadd.f32 %v13165_v28, %v4275_v27  ;;  %v4474_v25 = vadd.f32 %v13167_v23, %v4324_v3  ;;  %v4326_v54 = vpop.f32.mrb[34].mxu1 }
 0x365   : >> { %8091 = vpow2.f32 %v6732_v57  ;;  %v6733_v56 = vmul.f32 -1.442695, %v4475_v43  ;;  %v4328_v7 = vpop.f32.mrb[35].mxu1 }
 0x366   : >> { %8093 = vpow2.f32 %v6736_v32  ;;  %v6737_v19 = vmul.f32 -1.442695, %v4476_v24  ;;  %v4478_v17 = vadd.f32 %v13163_v41, %v4328_v7  ;;  %v6740_v28 = vmul.f32 -1.442695, %v4474_v25 }
 0x367   : >> { %8095 = vpow2.f32 %v6733_v56  ;;  %v4477_v32 = vadd.f32 %v13164_v16, %v4326_v54  ;;  %v11800_v54 = vpop.permute.xlu0 %4601 }
 0x368   : >> { %8097 = vpow2.f32 %v6737_v19  ;;  %v4279_v20 = vpop.f32.mrb[36].mxu0  ;;  %v6741_v43 = vmul.f32 -1.442695, %v4478_v17  ;;  %vm4612_vm0 = vcmp.eq.s32.totalorder %v11800_v54, 1 }
 0x369   : >> { %v4281_v10 = vpop.f32.mrb[37].mxu0  ;;  %8099 = vtanh.f32 %v4473_v26 }
 0x36a   : >> { %v4283_v21 = vpop.f32.mrb[38].mxu0  ;;  %v4332_v24 = vpop.f32.mrb[36].mxu1  ;;  %8101 = vpow2.f32 %v6740_v28 }
 0x36b   : >> { %v4285_v57 = vpop.f32.mrb[39].mxu0  ;;  %v4334_v19 = vpop.f32.mrb[37].mxu1  ;;  %8103 = vtanh.f32 %v4477_v32 }
 0x36c   : >> { %v4336_v56 = vpop.f32.mrb[38].mxu1  ;;  %8105 = vpow2.f32 %v6741_v43  ;;  %v13466_v43 = vld [vmem:[#allocation107_spill] sm:$0xff]  ;;  %v4605_v19 = vpop.permute.xlu0 %4604 }
 0x36d   : >> { %v4338_v63 = vpop.f32.mrb[39].mxu1  ;;  %vm4613_vm1 = vcmp.eq.s32.totalorder %v4605_v19, 1 }
 0x36e   : >> { %v13467_v63 = vld [vmem:[#allocation109_spill] sm:$0xff] }
 0x36f   : >> { %v8092_v27 = vpop.eup %8091 }
 0x370   : >> { %v8094_v23 = vpop.eup %8093  ;;  %v4499_v3 = vadd.f32 1.0, %v8092_v27 }
 0x371   : >> { %v8096_v20 = vpop.eup %8095  ;;  %v4523_v10 = vadd.f32 1.0, %v8094_v23 }
 0x372   : >> { %v8098_v41 = vpop.eup %8097  ;;  %8107 = vrcp.f32 %v4499_v3  ;;  %v4500_v45 = vadd.f32 1.0, %v8096_v20 }
 0x373   : >> { %8109 = vrcp.f32 %v4523_v10  ;;  %v4524_v25 = vadd.f32 1.0, %v8098_v41  ;;  %v8100_v16 = vpop.eup %8099 }
 0x374   : >> { %8111 = vrcp.f32 %v4500_v45  ;;  %v8102_v7 = vpop.eup %8101 }
 0x375   : >> { %8113 = vrcp.f32 %v4524_v25  ;;  %v8104_v26 = vpop.eup %8103  ;;  %v4551_v28 = vadd.f32 1.0, %v8102_v7 }
 0x376   : >> { %v8106_v17 = vpop.eup %8105 }
 0x377   : >> { %v4552_v3 = vadd.f32 1.0, %v8106_v17  ;;  %8115 = vrcp.f32 %v4551_v28 }
 0x37c   : >> { %v8108_v21 = vpop.eup %8107 }
 0x37d   : >> { %v8110_v57 = vpop.eup %8109  ;;  %v4567_v32 = vmul.f32 %v8108_v21, %v8100_v16 }
 0x37e   : >> { %v8112_v24 = vpop.eup %8111  ;;  %v4563_v27 = vmul.f32 %v13466_v43, %v8110_v57 }
 0x37f   : >> { %v8114_v23 = vpop.eup %8113  ;;  %v4568_v56 = vmul.f32 %v8112_v24, %v8104_v26 }
 0x380   : >> { %v4571_v20 = vadd.f32 %v4567_v32, %v4563_v27  ;;  %v4375_v10 = vpop.f32.mrb[40].mxu0  ;;  %v4564_v41 = vmul.f32 %v13467_v63, %v8114_v23 }
 0x381   : >> { %v4377_v45 = vpop.f32.mrb[41].mxu0  ;;  %v8116_v23 = vpop.eup %8115 }
 0x382   : >> { %8117 = vtanh.f32 %v4571_v20  ;;  %v11808_v25 = vsel %vm4612_vm0, %v4571_v20, %v13466_v43  ;;  %v4572_v16 = vadd.f32 %v4568_v56, %v4564_v41  ;;  %v4379_v7 = vpop.f32.mrb[42].mxu0 }
 0x383   : >> { %8119 = vrcp.f32 %v4552_v3  ;;  %v4381_v17 = vpop.f32.mrb[43].mxu0  ;;  %v4428_v21 = vpop.f32.mrb[40].mxu1 }
 0x384   : >> { %8121 = vtanh.f32 %v4572_v16  ;;  %v11812_v26 = vsel %vm4613_vm1, %v4572_v16, %v13467_v63  ;;  %v4430_v28 = vpop.f32.mrb[41].mxu1 }
 0x385   : >> { %v4432_v32 = vpop.f32.mrb[42].mxu1 }
 0x386   : >> { %v4434_v27 = vpop.f32.mrb[43].mxu1 }
 0x388   : >> { %v4385_v57 = vpop.f32.mrb[44].mxu0 }
 0x389   : >> { %v4479_v24 = vadd.f32 %v8789_v31, %v4385_v57  ;;  %v4387_v43 = vpop.f32.mrb[45].mxu0 }
 0x38a   : >> { %v4480_v3 = vadd.f32 %v8785_v38, %v4387_v43  ;;  %v4389_v56 = vpop.f32.mrb[46].mxu0  ;;  %v13468_v43 = vld [vmem:[#allocation103_spill] sm:$0xff] }
 0x38b   : >> { %v6734_v20 = vmul.f32 -1.442695, %v4479_v24  ;;  %v4483_v10 = vadd.f32 %v8773_v22, %v4389_v56  ;;  %v4391_v63 = vpop.f32.mrb[47].mxu0  ;;  %v4438_v38 = vpop.f32.mrb[44].mxu1 }
 0x38c   : >> { %v8118_v41 = vpop.eup %8117  ;;  %v6738_v45 = vmul.f32 -1.442695, %v4480_v3  ;;  %v4484_v16 = vadd.f32 %v8769_v61, %v4391_v63  ;;  %v4440_v32 = vpop.f32.mrb[45].mxu1  ;;  %v4481_v63 = vadd.f32 %v8781_v58, %v4438_v38 }
 0x38d   : >> { %v8120_v7 = vpop.eup %8119  ;;  %v4579_v17 = vmul.f32 %v8118_v41, %v8116_v23  ;;  %8123 = vpow2.f32 %v6734_v20  ;;  %v6735_v31 = vmul.f32 -1.442695, %v4483_v10  ;;  %v4482_v22 = vadd.f32 %v8777_v39, %v4440_v32  ;;  %v4442_v24 = vpop.f32.mrb[46].mxu1  ;;  %v13469_v23 = vld [vmem:[#allocation105_spill] sm:$0xff]  ;;  %v13474_v32 = vld [vmem:[#allocation189_spill] sm:$0xff] }
 0x38e   : >> { %v8122_v21 = vpop.eup %8121  ;;  %8125 = vpow2.f32 %v6738_v45  ;;  %v6739_v28 = vmul.f32 -1.442695, %v4484_v16  ;;  %v4444_v20 = vpop.f32.mrb[47].mxu1  ;;  %v4485_v54 = vadd.f32 %v8765_v50, %v4442_v24  ;;  %v13470_v16 = vld [vmem:[#allocation185_spill] sm:$0xff] }
 0x38f   : >> { %v4580_v57 = vmul.f32 %v8122_v21, %v8120_v7  ;;  %8127 = vpow2.f32 %v6735_v31  ;;  %v11826_v61 = vsel %vm4612_vm0, %v4579_v17, %v13468_v43  ;;  %v4624_v27 = vsel %vm4612_vm0, %v4579_v17, 0.0  ;;  %v13471_v7 = vld [vmem:[#allocation190_spill] sm:$0xff]  ;;  %v13472_v21 = vld [vmem:[#allocation188_spill] sm:$0xff]  ;;  %v13476_v43 = vld [vmem:[#allocation191_spill] sm:$0xff] }
 0x390   : >> { %8129 = vpow2.f32 %v6739_v28  ;;  %v6742_v41 = vmul.f32 -1.442695, %v4482_v22  ;;  %v4486_v45 = vadd.f32 %v8761_v35, %v4444_v20  ;;  %v13473_v28 = vld [vmem:[#allocation193_spill] sm:$0xff]  ;;  %v13475_v22 = vld [vmem:[#allocation194_spill] sm:$0xff] }
 0x391   : >> { %v11833_v3 = vsel %vm4613_vm1, %v4580_v57, %v13469_v23  ;;  %v4625_v56 = vsel %vm4613_vm1, %v4580_v57, 0.0  ;;  %8131 = vtanh.f32 %v4481_v63  ;;  %v13478_v23 = vld [vmem:[#allocation192_spill] sm:$0xff]  ;;  %v13480_v63 = vld [vmem:[#allocation195_spill] sm:$0xff] }
 0x392   : >> { %v6848_v10 = vpack.c.bf16 %v4625_v56, %v4624_v27  ;;  %v11838_v39 = vpack.c.bf16 %v11833_v3, %v11826_v61  ;;  %v6743_v19 = vmul.f32 -1.442695, %v4486_v45  ;;  %8133 = vpow2.f32 %v6742_v41  ;;  %v13477_v27 = vld [vmem:[#allocation197_spill] sm:$0xff]  ;;  %v13479_v56 = vld [vmem:[#allocation198_spill] sm:$0xff] }
 0x393   : >> { %8135 = vtanh.f32 %v4485_v54  ;;  %v13481_v41 = vld [vmem:[#allocation201_spill] sm:$0xff]  ;;  %v4608_v54 = vpop.permute.xlu1 %4607 }
 0x394   : >> { %6849 = vst [vmem:[%s4640_s26] sm:$0xff] %v6848_v10   ;;  %4695 = vmatmul.mubr.bf16.vlgmr.msra.gmra.mrb[48].mxu0 %v11838_v39  ;;  %4748 = vmatmul.mubr.bf16.vlgmr.msra.gmra.mrb[48].mxu1 %v11838_v39  ;;  %8137 = vpow2.f32 %v6743_v19  ;;  %v13482_v19 = vld [vmem:[#allocation196_spill] sm:$0xff]  ;;  %vm4614_vm2 = vcmp.eq.s32.totalorder %v4608_v54, 1  ;;  %v13503_v54 = vld [vmem:[#allocation175_spill] sm:$0xff]  ;;  %s5074_s26 = scalar_lea.vmem %s9264_s18, %s6771_s24 [#allocation6]  ;;  %s5894_s24 = scalar_lea.vmem %s9262_s11, %s6807_s1 [#allocation4] }
 0x395   : >> { %4769 = vmatpush1.bf16.msra.mxu0 %v11365_v47  ;;  %4822 = vmatpush1.bf16.msra.mxu1 %v11397_v15 }
 0x396   : >> { %4770 = vmatprep.subr.bf16.mxu0 %v13470_v16  ;;  %4823 = vmatprep.subr.bf16.mxu1 %v13471_v7 }
 0x397   : >> { %v8124_v58 = vpop.eup %8123  ;;  %4704 = vmatprep.mubr.bf16.mxu0 %v13187_v36  ;;  %4757 = vmatprep.mubr.bf16.mxu1 %v13187_v36  ;;  %v4611_v33 = vpop.permute.xlu1 %4610 }
 0x398   : >> { %v8126_v35 = vpop.eup %8125  ;;  %v4501_v17 = vadd.f32 1.0, %v8124_v58  ;;  %v13483_v58 = vld [vmem:[#allocation202_spill] sm:$0xff]  ;;  %vm4615_vm3 = vcmp.eq.s32.totalorder %v4611_v33, 1  ;;  %v13501_v33 = vld [vmem:[#allocation172_spill] sm:$0xff] }
 0x399   : >> { %v8128_v50 = vpop.eup %8127  ;;  %v4525_v31 = vadd.f32 1.0, %v8126_v35  ;;  %4771 = vmatpush1.bf16.msra.mxu0 %v13472_v21  ;;  %4824 = vmatpush1.bf16.msra.mxu1 %v13473_v28 }
 0x39a   : >> { %v8130_v38 = vpop.eup %8129  ;;  %8139 = vrcp.f32 %v4501_v17  ;;  %v4502_v57 = vadd.f32 1.0, %v8128_v50  ;;  %4772 = vmatprep.subr.bf16.mxu0 %v13474_v32  ;;  %4825 = vmatprep.subr.bf16.mxu1 %v13475_v22 }
 0x39b   : >> { %8141 = vrcp.f32 %v4525_v31  ;;  %v4526_v24 = vadd.f32 1.0, %v8130_v38  ;;  %v8132_v20 = vpop.eup %8131 }
 0x39c   : >> { %8143 = vrcp.f32 %v4502_v57  ;;  %v8134_v10 = vpop.eup %8133  ;;  %v13484_v57 = vld [vmem:[#allocation199_spill] sm:$0xff] }
 0x39d   : >> { %8145 = vrcp.f32 %v4526_v24  ;;  %4773 = vmatpush1.bf16.msra.mxu0 %v13476_v43  ;;  %4826 = vmatpush1.bf16.msra.mxu1 %v13477_v27  ;;  %v8136_v45 = vpop.eup %8135  ;;  %v4553_v50 = vadd.f32 1.0, %v8134_v10  ;;  %v13485_v24 = vld [vmem:[#allocation205_spill] sm:$0xff] }
 0x39e   : >> { %4774 = vmatprep.subr.bf16.mxu0 %v13478_v23  ;;  %4827 = vmatprep.subr.bf16.mxu1 %v13479_v56  ;;  %v8138_v35 = vpop.eup %8137 }
 0x39f   : >> { %v4554_v42 = vadd.f32 1.0, %v8138_v35  ;;  %8147 = vrcp.f32 %v4553_v50  ;;  %v13496_v35 = vld [vmem:[#allocation207_spill] sm:$0xff] }
 0x3a1   : >> { %4775 = vmatpush1.bf16.msra.mxu0 %v13480_v63  ;;  %4828 = vmatpush1.bf16.msra.mxu1 %v13481_v41 }
 0x3a2   : >> { %4776 = vmatprep.subr.bf16.mxu0 %v13482_v19  ;;  %4829 = vmatprep.subr.bf16.mxu1 %v13483_v58 }
 0x3a4   : >> { %v8140_v17 = vpop.eup %8139 }
 0x3a5   : >> { %v8142_v31 = vpop.eup %8141  ;;  %v4569_v38 = vmul.f32 %v8140_v17, %v8132_v20  ;;  %4777 = vmatpush1.bf16.msra.mxu0 %v13484_v57  ;;  %4830 = vmatpush1.bf16.msra.mxu1 %v13485_v24  ;;  %v13488_v20 = vld [vmem:[#allocation112_spill] sm:$0xff] }
 0x3a6   : >> { %v8144_v2 = vpop.eup %8143  ;;  %v4565_v13 = vmul.f32 %v13486_v6, %v8142_v31  ;;  %4778 = vmatprep.subr.bf16.mxu0 %v13487_v30  ;;  %4831 = vmatprep.subr.bf16.mxu1 %v11492_v51 }
 0x3a7   : >> { %v8146_v37 = vpop.eup %8145  ;;  %v4570_v12 = vmul.f32 %v8144_v2, %v8136_v45  ;;  %v13492_v2 = vld [vmem:[#allocation208_spill] sm:$0xff]  ;;  %v13495_v45 = vld [vmem:[#allocation209_spill] sm:$0xff] }
 0x3a8   : >> { %v4573_v10 = vadd.f32 %v4569_v38, %v4565_v13  ;;  %v4566_v17 = vmul.f32 %v13488_v20, %v8146_v37  ;;  %v13494_v37 = vld [vmem:[#allocation206_spill] sm:$0xff] }
 0x3a9   : >> { %4779 = vmatpush1.bf16.msra.mxu0 %v13489_v46  ;;  %4832 = vmatpush1.bf16.msra.mxu1 %v11511_v5 }
 0x3aa   : >> { %8149 = vtanh.f32 %v4573_v10  ;;  %v11873_v31 = vsel %vm4614_vm2, %v4573_v10, %v13486_v6  ;;  %v4574_v18 = vadd.f32 %v4570_v12, %v4566_v17  ;;  %4780 = vmatprep.subr.bf16.mxu0 %v13491_v59  ;;  %4833 = vmatprep.subr.bf16.mxu1 %v13492_v2  ;;  %v8148_v6 = vpop.eup %8147  ;;  %v13497_v10 = vld [vmem:[#allocation106_spill] sm:$0xff] }
 0x3ab   : >> { %13490 = vst [vmem:[#allocation112_spill] sm:$0xff] %v11873_v31  ;;  %8151 = vrcp.f32 %v4554_v42 }
 0x3ac   : >> { %8153 = vtanh.f32 %v4574_v18  ;;  %v11879_v13 = vsel %vm4615_vm3, %v4574_v18, %v13488_v20 }
 0x3ad   : >> { %13493 = vst [vmem:[#allocation110_spill] sm:$0xff] %v11879_v13  ;;  %4781 = vmatpush1.bf16.msra.mxu0 %v13494_v37  ;;  %4834 = vmatpush1.bf16.msra.mxu1 %v13495_v45  ;;  %v13498_v13 = vld [vmem:[#allocation108_spill] sm:$0xff] }
 0x3ae   : >> { %4782 = vmatprep.subr.bf16.mxu0 %v13496_v35  ;;  %4835 = vmatprep.subr.bf16.mxu1 %v11536_v14 }
 0x3b1   : >> { %4783 = vmatpush1.bf16.msra.mxu0 %v11525_v34  ;;  %4836 = vmatpush1.bf16.msra.mxu1 %v11547_v11 }
 0x3b2   : >> { %5080 = vmatprep.subr.bf16.mxu0 %v11177_v0  ;;  %5133 = vmatprep.subr.bf16.mxu1 %v11181_v8 }
 0x3b4   : >> { %v8150_v12 = vpop.eup %8149 }
 0x3b5   : >> { %v8152_v42 = vpop.eup %8151  ;;  %v4581_v18 = vmul.f32 %v8150_v12, %v8148_v6  ;;  %v13505_v12 = vld [vmem:[#allocation178_spill] sm:$0xff] }
 0x3b6   : >> { %v8154_v50 = vpop.eup %8153 }
 0x3b7   : >> { %v4582_v38 = vmul.f32 %v8154_v50, %v8152_v42  ;;  %v11892_v20 = vsel %vm4614_vm2, %v4581_v18, %v13497_v10  ;;  %v4626_v17 = vsel %vm4614_vm2, %v4581_v18, 0.0  ;;  %v13506_v42 = vld [vmem:[#allocation173_spill] sm:$0xff]  ;;  %v13507_v18 = vld [vmem:[#allocation179_spill] sm:$0xff]  ;;  %v13508_v50 = vld [vmem:[#allocation174_spill] sm:$0xff] }
 0x3b8   : >> { %v13510_v10 = vld [vmem:[#allocation176_spill] sm:$0xff] }
 0x3b9   : >> { %v11898_v31 = vsel %vm4615_vm3, %v4582_v38, %v13498_v13  ;;  %v4627_v8 = vsel %vm4615_vm3, %v4582_v38, 0.0  ;;  %v13504_v13 = vld [vmem:[#allocation170_spill] sm:$0xff]  ;;  %v13509_v38 = vld [vmem:[#allocation180_spill] sm:$0xff] }
 0x3ba   : >> { %v6853_v0 = vpack.c.bf16 %v4627_v8, %v4626_v17  ;;  %v4661_v6 = vpack.c.bf16 %v11898_v31, %v11892_v20  ;;  %v13500_v8 = vld [vmem:[#allocation168_spill] sm:$0xff]  ;;  %v13511_v17 = vld [vmem:[#allocation183_spill] sm:$0xff] }
 0x3bc   : >> { %6854 = vst [vmem:[%s4656_s20] sm:$0xff] %v6853_v0   ;;  %4705 = vmatmul.mubr.bf16.gmra.mrb[52].mxu0 %v4661_v6  ;;  %4758 = vmatmul.mubr.bf16.gmra.mrb[52].mxu1 %v4661_v6  ;;  %v13499_v0 = vld [vmem:[#allocation165_spill] sm:$0xff]  ;;  %s5480_s20 = ssub.s32 5, %s10969_s19 }
 0x3bd   : >> { %4800 = vmatprep.mubr.bf16.mxu0 %v13187_v36  ;;  %4853 = vmatprep.mubr.bf16.mxu1 %v13187_v36  ;;  %s6788_s27 = sshll.u32 %s5480_s20, 4 }
 0x3be   : >> { %s5489_s12 = sshra.s32 %s6788_s27, 3 }
 0x3bf   : >> { %s6791_s4 = sshll.u32 %s5489_s12, 2 }
 0x3c4   : >> { %4801 = vmatmul.mubr.bf16.vlgmr.msra.gmra.mrb[56].mxu0 %v11838_v39  ;;  %4854 = vmatmul.mubr.bf16.vlgmr.msra.gmra.mrb[56].mxu1 %v11838_v39  ;;  %v13502_v39 = vld [vmem:[#allocation169_spill] sm:$0xff] }
 0x3c5   : >> { %4810 = vmatprep.mubr.bf16.mxu0 %v13187_v36  ;;  %4863 = vmatprep.mubr.bf16.mxu1 %v13187_v36 }
 0x3c6   : >> { %5081 = vmatpush1.bf16.msra.mxu0 %v11192_v29  ;;  %5134 = vmatpush1.bf16.msra.mxu1 %v11206_v4 }
 0x3c7   : >> { %5082 = vmatprep.subr.bf16.mxu0 %v11200_v9  ;;  %5135 = vmatprep.subr.bf16.mxu1 %v11210_v44 }
 0x3ca   : >> { %5083 = vmatpush1.bf16.msra.mxu0 %v11216_v1  ;;  %5136 = vmatpush1.bf16.msra.mxu1 %v11231_v60  ;;  %v13524_v60 = vld [vmem:[#allocation157_spill] sm:$0xff]  ;;  %v13525_v1 = vld [vmem:[#allocation158_spill] sm:$0xff] }
 0x3cb   : >> { %5084 = vmatprep.subr.bf16.mxu0 %v11226_v40  ;;  %5137 = vmatprep.subr.bf16.mxu1 %v11249_v48  ;;  %v13522_v40 = vld [vmem:[#allocation161_spill] sm:$0xff] }
 0x3cc   : >> { %4811 = vmatmul.mubr.bf16.gmra.mrb[60].mxu0 %v4661_v6  ;;  %4864 = vmatmul.mubr.bf16.gmra.mrb[60].mxu1 %v4661_v6  ;;  %v13512_v6 = vld [vmem:[#allocation177_spill] sm:$0xff] }
 0x3cd   : >> { %5112 = vmatprep.mubr.bf16.mxu0 %v13187_v36  ;;  %5165 = vmatprep.mubr.bf16.mxu1 %v13187_v36 }
 0x3ce   : >> { %5085 = vmatpush1.bf16.msra.mxu0 %v13377_v55  ;;  %5138 = vmatpush1.bf16.msra.mxu1 %v13499_v0  ;;  %v13521_v55 = vld [vmem:[#allocation159_spill] sm:$0xff] }
 0x3cf   : >> { %5086 = vmatprep.subr.bf16.mxu0 %v11244_v52  ;;  %5139 = vmatprep.subr.bf16.mxu1 %v11263_v49 }
 0x3d2   : >> { %5087 = vmatpush1.bf16.msra.mxu0 %v13378_v62  ;;  %5140 = vmatpush1.bf16.msra.mxu1 %v13381_v53  ;;  %v13519_v53 = vld [vmem:[#allocation163_spill] sm:$0xff] }
 0x3d3   : >> { %5088 = vmatprep.subr.bf16.mxu0 %v13500_v8  ;;  %5141 = vmatprep.subr.bf16.mxu1 %v13501_v33  ;;  %v13518_v33 = vld [vmem:[#allocation111_spill] sm:$0xff] }
 0x3d6   : >> { %5089 = vmatpush1.bf16.msra.mxu0 %v13502_v39  ;;  %5142 = vmatpush1.bf16.msra.mxu1 %v13503_v54  ;;  %v13513_v39 = vld [vmem:[#allocation184_spill] sm:$0xff]  ;;  %v13514_v54 = vld [vmem:[#allocation181_spill] sm:$0xff] }
 0x3d7   : >> { %5090 = vmatprep.subr.bf16.mxu0 %v13504_v13  ;;  %5143 = vmatprep.subr.bf16.mxu1 %v13505_v12  ;;  %v13515_v13 = vld [vmem:[#allocation186_spill] sm:$0xff] }
 0x3d8   : >> { %v13516_v12 = vld [vmem:[#allocation182_spill] sm:$0xff] }
 0x3da   : >> { %5091 = vmatpush1.bf16.msra.mxu0 %v13506_v42  ;;  %5144 = vmatpush1.bf16.msra.mxu1 %v13507_v18  ;;  %v13517_v42 = vld [vmem:[#allocation187_spill] sm:$0xff] }
 0x3db   : >> { %5092 = vmatprep.subr.bf16.mxu0 %v13508_v50  ;;  %5145 = vmatprep.subr.bf16.mxu1 %v13509_v38 }
 0x3de   : >> { %5093 = vmatpush1.bf16.msra.mxu0 %v13510_v10  ;;  %5146 = vmatpush1.bf16.msra.mxu1 %v13511_v17 }
 0x3df   : >> { %5094 = vmatprep.subr.bf16.mxu0 %v13512_v6  ;;  %5147 = vmatprep.subr.bf16.mxu1 %v13513_v39  ;;  %v13520_v39 = vld [vmem:[#allocation160_spill] sm:$0xff] }
 0x3e2   : >> { %5095 = vmatpush1.bf16.msra.mxu0 %v13514_v54  ;;  %5148 = vmatpush1.bf16.msra.mxu1 %v13515_v13 }
 0x3e3   : >> { %5186 = vmatprep.subr.bf16.mxu0 %v13516_v12  ;;  %5239 = vmatprep.subr.bf16.mxu1 %v13517_v42 }
 0x467   : >> { %v4696_v18 = vpop.f32.mrb[48].mxu0  ;;  %v4749_v50 = vpop.f32.mrb[48].mxu1 }
 0x468   : >> { %v4890_v38 = vadd.f32 %v13518_v33, %v4696_v18  ;;  %v4698_v8 = vpop.f32.mrb[49].mxu0  ;;  %v4751_v10 = vpop.f32.mrb[49].mxu1  ;;  %v13523_v18 = vld [vmem:[#allocation162_spill] sm:$0xff] }
 0x469   : >> { %v4891_v17 = vadd.f32 %v13519_v53, %v4698_v8  ;;  %v4700_v62 = vpop.f32.mrb[50].mxu0  ;;  %v4753_v6 = vpop.f32.mrb[50].mxu1  ;;  %v4893_v33 = vadd.f32 %v13522_v40, %v4751_v10  ;;  %v4892_v53 = vadd.f32 %v13523_v18, %v4749_v50 }
 0x46a   : >> { %v6752_v49 = vmul.f32 -1.442695, %v4890_v38  ;;  %v4894_v52 = vadd.f32 %v13520_v39, %v4700_v62  ;;  %v4702_v54 = vpop.f32.mrb[51].mxu0  ;;  %v4755_v0 = vpop.f32.mrb[51].mxu1  ;;  %v4896_v62 = vadd.f32 %v13525_v1, %v4753_v6 }
 0x46b   : >> { %v6756_v13 = vmul.f32 -1.442695, %v4891_v17  ;;  %v4895_v12 = vadd.f32 %v13521_v55, %v4702_v54  ;;  %v6760_v8 = vmul.f32 -1.442695, %v4893_v33  ;;  %v4897_v38 = vadd.f32 %v13524_v60, %v4755_v0  ;;  %v5020_v18 = vpop.permute.xlu0 %5019 }
 0x46c   : >> { %8155 = vpow2.f32 %v6752_v49  ;;  %v6753_v42 = vmul.f32 -1.442695, %v4894_v52  ;;  %vm5030_vm4 = vcmp.eq.s32.totalorder %v5020_v18, 1 }
 0x46d   : >> { %8157 = vpow2.f32 %v6756_v13  ;;  %v6757_v48 = vmul.f32 -1.442695, %v4895_v12  ;;  %v6761_v49 = vmul.f32 -1.442695, %v4897_v38 }
 0x46e   : >> { %8159 = vpow2.f32 %v6753_v42 }
 0x46f   : >> { %8161 = vpow2.f32 %v6757_v48 }
 0x470   : >> { %8163 = vtanh.f32 %v4892_v53 }
 0x471   : >> { %8165 = vpow2.f32 %v6760_v8 }
 0x472   : >> { %8167 = vtanh.f32 %v4896_v62 }
 0x476   : >> { %v8156_v39 = vpop.eup %8155 }
 0x477   : >> { %v8158_v17 = vpop.eup %8157  ;;  %v4918_v44 = vadd.f32 1.0, %v8156_v39 }
 0x478   : >> { %v4942_v52 = vadd.f32 1.0, %v8158_v17  ;;  %v8160_v55 = vpop.eup %8159  ;;  %v5023_v17 = vpop.permute.xlu1 %5022 }
 0x479   : >> { %8169 = vrcp.f32 %v4918_v44  ;;  %v4919_v40 = vadd.f32 1.0, %v8160_v55  ;;  %v8162_v48 = vpop.eup %8161  ;;  %vm5031_vm5 = vcmp.eq.s32.totalorder %v5023_v17, 1 }
 0x47a   : >> { %8171 = vrcp.f32 %v4942_v52  ;;  %v4943_v54 = vadd.f32 1.0, %v8162_v48  ;;  %v8164_v60 = vpop.eup %8163 }
 0x47b   : >> { %8173 = vpow2.f32 %v6761_v49  ;;  %v8166_v0 = vpop.eup %8165 }
 0x47c   : >> { %8175 = vrcp.f32 %v4919_v40  ;;  %v8168_v1 = vpop.eup %8167  ;;  %v4970_v50 = vadd.f32 1.0, %v8166_v0 }
 0x47d   : >> { %8177 = vrcp.f32 %v4943_v54 }
 0x47e   : >> { %8179 = vrcp.f32 %v4970_v50 }
 0x483   : >> { %v8170_v13 = vpop.eup %8169 }
 0x484   : >> { %v8172_v12 = vpop.eup %8171  ;;  %v4986_v42 = vmul.f32 %v8170_v13, %v8164_v60 }
 0x485   : >> { %v8174_v10 = vpop.eup %8173  ;;  %v4982_v6 = vmul.f32 %v8172_v12, %v11808_v25 }
 0x486   : >> { %v8176_v33 = vpop.eup %8175  ;;  %v4971_v38 = vadd.f32 1.0, %v8174_v10 }
 0x487   : >> { %v4990_v44 = vadd.f32 %v4986_v42, %v4982_v6  ;;  %v4987_v53 = vmul.f32 %v8176_v33, %v8168_v1  ;;  %v8178_v8 = vpop.eup %8177 }
 0x488   : >> { %v4983_v62 = vmul.f32 %v8178_v8, %v11812_v26  ;;  %v8180_v1 = vpop.eup %8179 }
 0x489   : >> { %8181 = vtanh.f32 %v4990_v44  ;;  %v11955_v39 = vsel %vm5030_vm4, %v4990_v44, %v11808_v25 }
 0x48a   : >> { %v4991_v49 = vadd.f32 %v4987_v53, %v4983_v62  ;;  %8183 = vrcp.f32 %v4971_v38 }
 0x48c   : >> { %8185 = vtanh.f32 %v4991_v49  ;;  %v11959_v52 = vsel %vm5031_vm5, %v4991_v49, %v11812_v26 }
 0x48f   : >> { %v4706_v55 = vpop.f32.mrb[52].mxu0  ;;  %v4759_v40 = vpop.f32.mrb[52].mxu1 }
 0x490   : >> { %v4708_v48 = vpop.f32.mrb[53].mxu0  ;;  %v4761_v54 = vpop.f32.mrb[53].mxu1 }
 0x491   : >> { %v4710_v60 = vpop.f32.mrb[54].mxu0  ;;  %v4763_v0 = vpop.f32.mrb[54].mxu1 }
 0x492   : >> { %v4712_v25 = vpop.f32.mrb[55].mxu0  ;;  %v4765_v13 = vpop.f32.mrb[55].mxu1 }
 0x493   : >> { %v8182_v12 = vpop.eup %8181  ;;  %v13527_v13 = vld [vmem:[#allocation126_spill] sm:$0xff] }
 0x494   : >> { %v4998_v42 = vmul.f32 %v8182_v12, %v8180_v1  ;;  %v8184_v50 = vpop.eup %8183 }
 0x496   : >> { %v8186_v10 = vpop.eup %8185  ;;  %v5042_v62 = vsel %vm5030_vm4, %v4998_v42, 0.0  ;;  %v11967_v48 = vsel %vm5030_vm4, %v4998_v42, %v11826_v61 }
 0x497   : >> { %v4802_v6 = vpop.f32.mrb[56].mxu0  ;;  %v4855_v26 = vpop.f32.mrb[56].mxu1  ;;  %v4999_v33 = vmul.f32 %v8186_v10, %v8184_v50 }
 0x498   : >> { %v4804_v44 = vpop.f32.mrb[57].mxu0  ;;  %v4857_v53 = vpop.f32.mrb[57].mxu1  ;;  %v13528_v6 = vld [vmem:[#allocation123_spill] sm:$0xff] }
 0x499   : >> { %v4806_v8 = vpop.f32.mrb[58].mxu0  ;;  %v4859_v38 = vpop.f32.mrb[58].mxu1  ;;  %v5043_v49 = vsel %vm5031_vm5, %v4999_v33, 0.0  ;;  %v11971_v54 = vsel %vm5031_vm5, %v4999_v33, %v11833_v3  ;;  %v13526_v3 = vld [vmem:[#allocation127_spill] sm:$0xff] }
 0x49a   : >> { %v4808_v55 = vpop.f32.mrb[59].mxu0  ;;  %v4861_v40 = vpop.f32.mrb[59].mxu1  ;;  %v6858_v60 = vpack.c.bf16 %v5043_v49, %v5042_v62  ;;  %v11975_v0 = vpack.c.bf16 %v11971_v54, %v11967_v48  ;;  %v13529_v8 = vld [vmem:[#allocation122_spill] sm:$0xff] }
 0x49b   : >> { %v13530_v55 = vld [vmem:[#allocation124_spill] sm:$0xff] }
 0x49c   : >> { %6859 = vst [vmem:[%s5058_s16] sm:$0xff] %v6858_v60   ;;  %5113 = vmatmul.mubr.bf16.vlgmr.msra.gmra.mrb[64].mxu0 %v11975_v0  ;;  %5166 = vmatmul.mubr.bf16.vlgmr.msra.gmra.mrb[64].mxu1 %v11975_v0  ;;  %v13531_v60 = vld [vmem:[#allocation125_spill] sm:$0xff]  ;;  %s5492_s16 = scalar_lea.vmem %s9264_s18, %s6791_s4 [#allocation6] }
 0x49d   : >> { %5187 = vmatpush1.bf16.msra.mxu0 %v11365_v47  ;;  %5240 = vmatpush1.bf16.msra.mxu1 %v11397_v15 }
 0x49e   : >> { %5188 = vmatprep.subr.bf16.mxu0 %v13470_v16  ;;  %5241 = vmatprep.subr.bf16.mxu1 %v13471_v7 }
 0x49f   : >> { %v4812_v61 = vpop.f32.mrb[60].mxu0  ;;  %v4865_v18 = vpop.f32.mrb[60].mxu1  ;;  %5122 = vmatprep.mubr.bf16.mxu0 %v13187_v36  ;;  %5175 = vmatprep.mubr.bf16.mxu1 %v13187_v36 }
 0x4a0   : >> { %v4898_v17 = vadd.f32 %v13526_v3, %v4812_v61  ;;  %v4814_v1 = vpop.f32.mrb[61].mxu0  ;;  %v4867_v25 = vpop.f32.mrb[61].mxu1  ;;  %v4900_v61 = vadd.f32 %v13531_v60, %v4865_v18 }
 0x4a1   : >> { %v4899_v12 = vadd.f32 %v13527_v13, %v4814_v1  ;;  %v4816_v42 = vpop.f32.mrb[62].mxu0  ;;  %v4869_v50 = vpop.f32.mrb[62].mxu1  ;;  %5189 = vmatpush1.bf16.msra.mxu0 %v13472_v21  ;;  %5242 = vmatpush1.bf16.msra.mxu1 %v13473_v28  ;;  %v4901_v40 = vadd.f32 %v13530_v55, %v4867_v25  ;;  %v13533_v25 = vld [vmem:[#allocation121_spill] sm:$0xff] }
 0x4a2   : >> { %v6754_v10 = vmul.f32 -1.442695, %v4898_v17  ;;  %v4902_v26 = vadd.f32 %v13528_v6, %v4816_v42  ;;  %v4818_v33 = vpop.f32.mrb[63].mxu0  ;;  %v4871_v44 = vpop.f32.mrb[63].mxu1  ;;  %5190 = vmatprep.subr.bf16.mxu0 %v13474_v32  ;;  %5243 = vmatprep.subr.bf16.mxu1 %v13475_v22  ;;  %v13532_v17 = vld [vmem:[#allocation120_spill] sm:$0xff]  ;;  %v4904_v13 = vadd.f32 %v13533_v25, %v4869_v50  ;;  %v13535_v55 = vld [vmem:[#allocation102_spill] sm:$0xff] }
 0x4a3   : >> { %v6758_v53 = vmul.f32 -1.442695, %v4899_v12  ;;  %v4903_v38 = vadd.f32 %v13529_v8, %v4818_v33  ;;  %v6762_v3 = vmul.f32 -1.442695, %v4901_v40  ;;  %v4905_v1 = vadd.f32 %v13532_v17, %v4871_v44  ;;  %v13536_v17 = vld [vmem:[#allocation112_spill] sm:$0xff] }
 0x4a4   : >> { %8187 = vpow2.f32 %v6754_v10  ;;  %v6755_v62 = vmul.f32 -1.442695, %v4902_v26 }
 0x4a5   : >> { %8189 = vpow2.f32 %v6758_v53  ;;  %v6759_v49 = vmul.f32 -1.442695, %v4903_v38  ;;  %5191 = vmatpush1.bf16.msra.mxu0 %v13476_v43  ;;  %5244 = vmatpush1.bf16.msra.mxu1 %v13477_v27  ;;  %v6763_v10 = vmul.f32 -1.442695, %v4905_v1 }
 0x4a6   : >> { %8191 = vpow2.f32 %v6755_v62  ;;  %5192 = vmatprep.subr.bf16.mxu0 %v13478_v23  ;;  %5245 = vmatprep.subr.bf16.mxu1 %v13479_v56 }
 0x4a7   : >> { %8193 = vpow2.f32 %v6759_v49  ;;  %v13534_v49 = vld [vmem:[#allocation104_spill] sm:$0xff] }
 0x4a8   : >> { %8195 = vtanh.f32 %v4900_v61 }
 0x4a9   : >> { %5193 = vmatpush1.bf16.msra.mxu0 %v13480_v63  ;;  %5246 = vmatpush1.bf16.msra.mxu1 %v13481_v41  ;;  %8197 = vpow2.f32 %v6762_v3 }
 0x4aa   : >> { %5194 = vmatprep.subr.bf16.mxu0 %v13482_v19  ;;  %5247 = vmatprep.subr.bf16.mxu1 %v13483_v58  ;;  %8199 = vtanh.f32 %v4904_v13  ;;  %v5026_v13 = vpop.permute.xlu0 %5025 }
 0x4ab   : >> { %vm5032_vm6 = vcmp.eq.s32.totalorder %v5026_v13, 1  ;;  %v13540_v13 = vld [vmem:[#allocation94_spill] sm:$0xff] }
 0x4ad   : >> { %5195 = vmatpush1.bf16.msra.mxu0 %v13484_v57  ;;  %5248 = vmatpush1.bf16.msra.mxu1 %v13485_v24 }
 0x4ae   : >> { %v8188_v12 = vpop.eup %8187  ;;  %5196 = vmatprep.subr.bf16.mxu0 %v13487_v30  ;;  %5249 = vmatprep.subr.bf16.mxu1 %v11492_v51 }
 0x4af   : >> { %v8190_v18 = vpop.eup %8189  ;;  %v4920_v42 = vadd.f32 1.0, %v8188_v12 }
 0x4b0   : >> { %v4944_v6 = vadd.f32 1.0, %v8190_v18  ;;  %v8192_v26 = vpop.eup %8191 }
 0x4b1   : >> { %8201 = vrcp.f32 %v4920_v42  ;;  %v4921_v50 = vadd.f32 1.0, %v8192_v26  ;;  %5197 = vmatpush1.bf16.msra.mxu0 %v13489_v46  ;;  %5250 = vmatpush1.bf16.msra.mxu1 %v11511_v5  ;;  %v8194_v33 = vpop.eup %8193 }
 0x4b2   : >> { %8203 = vrcp.f32 %v4944_v6  ;;  %5198 = vmatprep.subr.bf16.mxu0 %v13491_v59  ;;  %5251 = vmatprep.subr.bf16.mxu1 %v13492_v2  ;;  %v4945_v44 = vadd.f32 1.0, %v8194_v33  ;;  %v8196_v53 = vpop.eup %8195  ;;  %v13537_v6 = vld [vmem:[#allocation110_spill] sm:$0xff]  ;;  %v5029_v33 = vpop.permute.xlu1 %5028 }
 0x4b3   : >> { %8205 = vpow2.f32 %v6763_v10  ;;  %v8198_v8 = vpop.eup %8197  ;;  %vm5033_vm7 = vcmp.eq.s32.totalorder %v5029_v33, 1  ;;  %v13551_v33 = vld [vmem:[#allocation169_spill] sm:$0xff] }
 0x4b4   : >> { %8207 = vrcp.f32 %v4921_v50  ;;  %v8200_v38 = vpop.eup %8199  ;;  %v4972_v61 = vadd.f32 1.0, %v8198_v8 }
 0x4b5   : >> { %8209 = vrcp.f32 %v4945_v44  ;;  %5199 = vmatpush1.bf16.msra.mxu0 %v13494_v37  ;;  %5252 = vmatpush1.bf16.msra.mxu1 %v13495_v45 }
 0x4b6   : >> { %5200 = vmatprep.subr.bf16.mxu0 %v13496_v35  ;;  %5253 = vmatprep.subr.bf16.mxu1 %v11536_v14  ;;  %8211 = vrcp.f32 %v4972_v61 }
 0x4b9   : >> { %5201 = vmatpush1.bf16.msra.mxu0 %v11525_v34  ;;  %5254 = vmatpush1.bf16.msra.mxu1 %v11547_v11 }
 0x4ba   : >> { %5498 = vmatprep.subr.bf16.mxu0 %v13534_v49  ;;  %5551 = vmatprep.subr.bf16.mxu1 %v13535_v55 }
 0x4bb   : >> { %v8202_v62 = vpop.eup %8201 }
 0x4bc   : >> { %v8204_v40 = vpop.eup %8203  ;;  %v4988_v60 = vmul.f32 %v8202_v62, %v8196_v53 }
 0x4bd   : >> { %v8206_v3 = vpop.eup %8205  ;;  %v4984_v1 = vmul.f32 %v8204_v40, %v13536_v17 }
 0x4be   : >> { %v8208_v25 = vpop.eup %8207  ;;  %v4973_v10 = vadd.f32 1.0, %v8206_v3 }
 0x4bf   : >> { %v4992_v12 = vadd.f32 %v4988_v60, %v4984_v1  ;;  %v4989_v18 = vmul.f32 %v8208_v25, %v8200_v38  ;;  %v8210_v42 = vpop.eup %8209 }
 0x4c0   : >> { %v4985_v26 = vmul.f32 %v8210_v42, %v13537_v6  ;;  %v8212_v8 = vpop.eup %8211  ;;  %v13547_v42 = vld [vmem:[#allocation166_spill] sm:$0xff] }
 0x4c1   : >> { %8213 = vtanh.f32 %v4992_v12  ;;  %v12025_v50 = vsel %vm5032_vm6, %v4992_v12, %v13536_v17  ;;  %v13541_v12 = vld [vmem:[#allocation95_spill] sm:$0xff] }
 0x4c2   : >> { %v4993_v44 = vadd.f32 %v4989_v18, %v4985_v26  ;;  %8215 = vrcp.f32 %v4973_v10  ;;  %v13542_v18 = vld [vmem:[#allocation164_spill] sm:$0xff]  ;;  %v13548_v10 = vld [vmem:[#allocation171_spill] sm:$0xff] }
 0x4c3   : >> { %v13550_v26 = vld [vmem:[#allocation172_spill] sm:$0xff] }
 0x4c4   : >> { %8217 = vtanh.f32 %v4993_v44  ;;  %v12029_v53 = vsel %vm5033_vm7, %v4993_v44, %v13537_v6  ;;  %v13549_v6 = vld [vmem:[#allocation168_spill] sm:$0xff]  ;;  %v13552_v44 = vld [vmem:[#allocation175_spill] sm:$0xff] }
 0x4cb   : >> { %v8214_v38 = vpop.eup %8213 }
 0x4cc   : >> { %v5000_v62 = vmul.f32 %v8214_v38, %v8212_v8  ;;  %v8216_v49 = vpop.eup %8215  ;;  %v13553_v8 = vld [vmem:[#allocation170_spill] sm:$0xff] }
 0x4cd   : >> { %v13554_v38 = vld [vmem:[#allocation178_spill] sm:$0xff] }
 0x4ce   : >> { %v8218_v55 = vpop.eup %8217  ;;  %v12034_v60 = vsel %vm5032_vm6, %v5000_v62, %v11892_v20  ;;  %v5044_v3 = vsel %vm5032_vm6, %v5000_v62, 0.0  ;;  %v13539_v20 = vld [vmem:[#allocation96_spill] sm:$0xff]  ;;  %v13555_v62 = vld [vmem:[#allocation173_spill] sm:$0xff] }
 0x4cf   : >> { %v5001_v40 = vmul.f32 %v8218_v55, %v8216_v49  ;;  %v13556_v49 = vld [vmem:[#allocation179_spill] sm:$0xff]  ;;  %v13557_v55 = vld [vmem:[#allocation174_spill] sm:$0xff] }
 0x4d1   : >> { %v12038_v61 = vsel %vm5033_vm7, %v5001_v40, %v11898_v31  ;;  %v5045_v17 = vsel %vm5033_vm7, %v5001_v40, 0.0  ;;  %v13538_v31 = vld [vmem:[#allocation97_spill] sm:$0xff] }
 0x4d2   : >> { %v6863_v1 = vpack.c.bf16 %v5045_v17, %v5044_v3  ;;  %v5079_v25 = vpack.c.bf16 %v12038_v61, %v12034_v60  ;;  %v13558_v40 = vld [vmem:[#allocation180_spill] sm:$0xff]  ;;  %v13560_v17 = vld [vmem:[#allocation183_spill] sm:$0xff] }
 0x4d3   : >> { %v13559_v3 = vld [vmem:[#allocation176_spill] sm:$0xff] }
 0x4d4   : >> { %6864 = vst [vmem:[%s5074_s26] sm:$0xff] %v6863_v1   ;;  %5123 = vmatmul.mubr.bf16.gmra.mrb[68].mxu0 %v5079_v25  ;;  %5176 = vmatmul.mubr.bf16.gmra.mrb[68].mxu1 %v5079_v25  ;;  %v13561_v1 = vld [vmem:[#allocation177_spill] sm:$0xff]  ;;  %s6808_s26 = sshll.u32 %s5898_s21, 4 }
 0x4d5   : >> { %5218 = vmatprep.mubr.bf16.mxu0 %v13187_v36  ;;  %5271 = vmatprep.mubr.bf16.mxu1 %v13187_v36  ;;  %s5907_s15 = sshra.s32 %s6808_s26, 3 }
 0x4d6   : >> { %s6811_s3 = sshll.u32 %s5907_s15, 2 }
 0x4d7   : >> { %s5910_s19 = scalar_lea.vmem %s9264_s18, %s6811_s3 [#allocation6] }
 0x4dc   : >> { %5219 = vmatmul.mubr.bf16.vlgmr.msra.gmra.mrb[72].mxu0 %v11975_v0  ;;  %5272 = vmatmul.mubr.bf16.vlgmr.msra.gmra.mrb[72].mxu1 %v11975_v0  ;;  %v13546_v0 = vld [vmem:[#allocation167_spill] sm:$0xff] }
 0x4dd   : >> { %5228 = vmatprep.mubr.bf16.mxu0 %v13187_v36  ;;  %5281 = vmatprep.mubr.bf16.mxu1 %v13187_v36 }
 0x4de   : >> { %5499 = vmatpush1.bf16.msra.mxu0 %v11192_v29  ;;  %5552 = vmatpush1.bf16.msra.mxu1 %v11206_v4  ;;  %v13543_v29 = vld [vmem:[#allocation93_spill] sm:$0xff]  ;;  %v13544_v4 = vld [vmem:[#allocation165_spill] sm:$0xff] }
 0x4df   : >> { %5500 = vmatprep.subr.bf16.mxu0 %v11200_v9  ;;  %5553 = vmatprep.subr.bf16.mxu1 %v13538_v31  ;;  %v13545_v9 = vld [vmem:[#allocation92_spill] sm:$0xff]  ;;  %v13563_v31 = vld [vmem:[#allocation181_spill] sm:$0xff] }
 0x4e2   : >> { %5501 = vmatpush1.bf16.msra.mxu0 %v13539_v20  ;;  %5554 = vmatpush1.bf16.msra.mxu1 %v13540_v13  ;;  %v13564_v20 = vld [vmem:[#allocation186_spill] sm:$0xff] }
 0x4e3   : >> { %5502 = vmatprep.subr.bf16.mxu0 %v13541_v12  ;;  %5555 = vmatprep.subr.bf16.mxu1 %v13542_v18  ;;  %v13565_v13 = vld [vmem:[#allocation182_spill] sm:$0xff]  ;;  %v13566_v12 = vld [vmem:[#allocation187_spill] sm:$0xff] }
 0x4e4   : >> { %5229 = vmatmul.mubr.bf16.gmra.mrb[76].mxu0 %v5079_v25  ;;  %5282 = vmatmul.mubr.bf16.gmra.mrb[76].mxu1 %v5079_v25  ;;  %v13562_v25 = vld [vmem:[#allocation184_spill] sm:$0xff] }
 0x4e5   : >> { %5530 = vmatprep.mubr.bf16.mxu0 %v13187_v36  ;;  %5583 = vmatprep.mubr.bf16.mxu1 %v13187_v36 }
 0x4e6   : >> { %5503 = vmatpush1.bf16.msra.mxu0 %v13543_v29  ;;  %5556 = vmatpush1.bf16.msra.mxu1 %v13544_v4  ;;  %v13567_v4 = vld [vmem:[#allocation156_spill] sm:$0xff] }
 0x4e7   : >> { %5504 = vmatprep.subr.bf16.mxu0 %v13545_v9  ;;  %5557 = vmatprep.subr.bf16.mxu1 %v13546_v0 }
 0x4ea   : >> { %5505 = vmatpush1.bf16.msra.mxu0 %v13547_v42  ;;  %5558 = vmatpush1.bf16.msra.mxu1 %v13548_v10  ;;  %v13568_v10 = vld [vmem:[#allocation155_spill] sm:$0xff] }
 0x4eb   : >> { %5506 = vmatprep.subr.bf16.mxu0 %v13549_v6  ;;  %5559 = vmatprep.subr.bf16.mxu1 %v13550_v26 }
 0x4ee   : >> { %5507 = vmatpush1.bf16.msra.mxu0 %v13551_v33  ;;  %5560 = vmatpush1.bf16.msra.mxu1 %v13552_v44 }
 0x4ef   : >> { %5508 = vmatprep.subr.bf16.mxu0 %v13553_v8  ;;  %5561 = vmatprep.subr.bf16.mxu1 %v13554_v38  ;;  %v13569_v8 = vld [vmem:[#allocation152_spill] sm:$0xff] }
 0x4f2   : >> { %5509 = vmatpush1.bf16.msra.mxu0 %v13555_v62  ;;  %5562 = vmatpush1.bf16.msra.mxu1 %v13556_v49 }
 0x4f3   : >> { %5510 = vmatprep.subr.bf16.mxu0 %v13557_v55  ;;  %5563 = vmatprep.subr.bf16.mxu1 %v13558_v40  ;;  %v13570_v40 = vld [vmem:[#allocation151_spill] sm:$0xff] }
 0x4f6   : >> { %5511 = vmatpush1.bf16.msra.mxu0 %v13559_v3  ;;  %5564 = vmatpush1.bf16.msra.mxu1 %v13560_v17 }
 0x4f7   : >> { %5512 = vmatprep.subr.bf16.mxu0 %v13561_v1  ;;  %5565 = vmatprep.subr.bf16.mxu1 %v13562_v25  ;;  %v13571_v25 = vld [vmem:[#allocation153_spill] sm:$0xff] }
 0x4fa   : >> { %5513 = vmatpush1.bf16.msra.mxu0 %v13563_v31  ;;  %5566 = vmatpush1.bf16.msra.mxu1 %v13564_v20  ;;  %v13572_v20 = vld [vmem:[#allocation154_spill] sm:$0xff] }
 0x4fb   : >> { %5604 = vmatprep.subr.bf16.mxu0 %v13565_v13  ;;  %5657 = vmatprep.subr.bf16.mxu1 %v13566_v12 }
 0x56f   : >> { %v5114_v18 = vpop.f32.mrb[64].mxu0  ;;  %v5167_v29 = vpop.f32.mrb[64].mxu1 }
 0x570   : >> { %v5308_v9 = vadd.f32 %v13567_v4, %v5114_v18  ;;  %v5116_v0 = vpop.f32.mrb[65].mxu0  ;;  %v5169_v42 = vpop.f32.mrb[65].mxu1  ;;  %v5310_v13 = vadd.f32 %v13572_v20, %v5167_v29  ;;  %v13573_v18 = vld [vmem:[#allocation149_spill] sm:$0xff] }
 0x571   : >> { %v5309_v6 = vadd.f32 %v13568_v10, %v5116_v0  ;;  %v5118_v26 = vpop.f32.mrb[66].mxu0  ;;  %v5171_v33 = vpop.f32.mrb[66].mxu1  ;;  %v5311_v31 = vadd.f32 %v13571_v25, %v5169_v42 }
 0x572   : >> { %v6772_v44 = vmul.f32 -1.442695, %v5308_v9  ;;  %v5312_v38 = vadd.f32 %v13569_v8, %v5118_v26  ;;  %v5120_v62 = vpop.f32.mrb[67].mxu0  ;;  %v5173_v49 = vpop.f32.mrb[67].mxu1  ;;  %v13574_v9 = vld [vmem:[#allocation150_spill] sm:$0xff] }
 0x573   : >> { %v6776_v55 = vmul.f32 -1.442695, %v5309_v6  ;;  %v5313_v3 = vadd.f32 %v13570_v40, %v5120_v62  ;;  %v6780_v12 = vmul.f32 -1.442695, %v5311_v31  ;;  %v5315_v4 = vadd.f32 %v13573_v18, %v5173_v49 }
 0x574   : >> { %8219 = vpow2.f32 %v6772_v44  ;;  %v6773_v17 = vmul.f32 -1.442695, %v5312_v38  ;;  %v5314_v0 = vadd.f32 %v13574_v9, %v5171_v33 }
 0x575   : >> { %8221 = vpow2.f32 %v6776_v55  ;;  %v6777_v1 = vmul.f32 -1.442695, %v5313_v3  ;;  %v6781_v44 = vmul.f32 -1.442695, %v5315_v4 }
 0x576   : >> { %8223 = vpow2.f32 %v6773_v17 }
 0x577   : >> { %8225 = vpow2.f32 %v6777_v1 }
 0x578   : >> { %8227 = vtanh.f32 %v5310_v13  ;;  %v5438_v13 = vpop.permute.xlu0 %5437 }
 0x579   : >> { %8229 = vpow2.f32 %v6780_v12  ;;  %vm5448_vm8 = vcmp.eq.s32.totalorder %v5438_v13, 1 }
 0x57a   : >> { %8231 = vtanh.f32 %v5314_v0 }
 0x57e   : >> { %v8220_v10 = vpop.eup %8219 }
 0x57f   : >> { %v8222_v6 = vpop.eup %8221  ;;  %v5336_v26 = vadd.f32 1.0, %v8220_v10 }
 0x580   : >> { %v5360_v8 = vadd.f32 1.0, %v8222_v6  ;;  %v8224_v38 = vpop.eup %8223  ;;  %v5441_v6 = vpop.permute.xlu1 %5440 }
 0x581   : >> { %8233 = vrcp.f32 %v5336_v26  ;;  %v5337_v42 = vadd.f32 1.0, %v8224_v38  ;;  %v8226_v62 = vpop.eup %8225  ;;  %vm5449_vm9 = vcmp.eq.s32.totalorder %v5441_v6, 1 }
 0x582   : >> { %8235 = vrcp.f32 %v5360_v8  ;;  %v5361_v29 = vadd.f32 1.0, %v8226_v62  ;;  %v8228_v49 = vpop.eup %8227 }
 0x583   : >> { %8237 = vpow2.f32 %v6781_v44  ;;  %v8230_v55 = vpop.eup %8229 }
 0x584   : >> { %8239 = vrcp.f32 %v5337_v42  ;;  %v8232_v33 = vpop.eup %8231  ;;  %v5388_v1 = vadd.f32 1.0, %v8230_v55 }
 0x585   : >> { %8241 = vrcp.f32 %v5361_v29 }
 0x586   : >> { %8243 = vrcp.f32 %v5388_v1 }
 0x58b   : >> { %v8234_v40 = vpop.eup %8233 }
 0x58c   : >> { %v8236_v3 = vpop.eup %8235  ;;  %v5404_v17 = vmul.f32 %v8234_v40, %v8228_v49 }
 0x58d   : >> { %v8238_v25 = vpop.eup %8237  ;;  %v5400_v31 = vmul.f32 %v8236_v3, %v11955_v39 }
 0x58e   : >> { %v8240_v20 = vpop.eup %8239  ;;  %v5389_v9 = vadd.f32 1.0, %v8238_v25 }
 0x58f   : >> { %v5408_v12 = vadd.f32 %v5404_v17, %v5400_v31  ;;  %v5405_v18 = vmul.f32 %v8240_v20, %v8232_v33  ;;  %v8242_v4 = vpop.eup %8241 }
 0x590   : >> { %v5401_v0 = vmul.f32 %v8242_v4, %v11959_v52  ;;  %v8244_v8 = vpop.eup %8243 }
 0x591   : >> { %8245 = vtanh.f32 %v5408_v12  ;;  %v12097_v10 = vsel %vm5448_vm8, %v5408_v12, %v11955_v39 }
 0x592   : >> { %v5409_v26 = vadd.f32 %v5405_v18, %v5401_v0  ;;  %8247 = vrcp.f32 %v5389_v9 }
 0x594   : >> { %8249 = vtanh.f32 %v5409_v26  ;;  %v12101_v44 = vsel %vm5449_vm9, %v5409_v26, %v11959_v52 }
 0x59b   : >> { %v8246_v38 = vpop.eup %8245 }
 0x59c   : >> { %v5416_v42 = vmul.f32 %v8246_v38, %v8244_v8  ;;  %v8248_v62 = vpop.eup %8247  ;;  %v13579_v38 = vld [vmem:[#allocation132_spill] sm:$0xff] }
 0x59e   : >> { %v8250_v29 = vpop.eup %8249  ;;  %v5460_v49 = vsel %vm5448_vm8, %v5416_v42, 0.0  ;;  %v12109_v33 = vsel %vm5448_vm8, %v5416_v42, %v11967_v48 }
 0x59f   : >> { %v5417_v39 = vmul.f32 %v8250_v29, %v8248_v62 }
 0x5a1   : >> { %v5461_v55 = vsel %vm5449_vm9, %v5417_v39, 0.0  ;;  %v12113_v52 = vsel %vm5449_vm9, %v5417_v39, %v11971_v54 }
 0x5a2   : >> { %v6868_v40 = vpack.c.bf16 %v5461_v55, %v5460_v49  ;;  %v12117_v3 = vpack.c.bf16 %v12113_v52, %v12109_v33 }
 0x5a4   : >> { %6869 = vst [vmem:[%s5476_s17] sm:$0xff] %v6868_v40   ;;  %5531 = vmatmul.mubr.bf16.vlgmr.msra.gmra.mrb[80].mxu0 %v12117_v3  ;;  %5584 = vmatmul.mubr.bf16.vlgmr.msra.gmra.mrb[80].mxu1 %v12117_v3 }
 0x5a5   : >> { %5605 = vmatpush1.bf16.msra.mxu0 %v11365_v47  ;;  %5658 = vmatpush1.bf16.msra.mxu1 %v11397_v15 }
 0x5a6   : >> { %5606 = vmatprep.subr.bf16.mxu0 %v13470_v16  ;;  %5659 = vmatprep.subr.bf16.mxu1 %v13471_v7 }
 0x5a7   : >> { %v5124_v48 = vpop.f32.mrb[68].mxu0  ;;  %v5177_v17 = vpop.f32.mrb[68].mxu1  ;;  %5540 = vmatprep.mubr.bf16.mxu0 %v13187_v36  ;;  %5593 = vmatprep.mubr.bf16.mxu1 %v13187_v36 }
 0x5a8   : >> { %v5126_v54 = vpop.f32.mrb[69].mxu0  ;;  %v5179_v1 = vpop.f32.mrb[69].mxu1 }
 0x5a9   : >> { %v5128_v25 = vpop.f32.mrb[70].mxu0  ;;  %v5181_v31 = vpop.f32.mrb[70].mxu1  ;;  %5607 = vmatpush1.bf16.msra.mxu0 %v13472_v21  ;;  %5660 = vmatpush1.bf16.msra.mxu1 %v13473_v28 }
 0x5aa   : >> { %v5130_v20 = vpop.f32.mrb[71].mxu0  ;;  %v5183_v13 = vpop.f32.mrb[71].mxu1  ;;  %5608 = vmatprep.subr.bf16.mxu0 %v13474_v32  ;;  %5661 = vmatprep.subr.bf16.mxu1 %v13475_v22 }
 0x5ad   : >> { %5609 = vmatpush1.bf16.msra.mxu0 %v13476_v43  ;;  %5662 = vmatpush1.bf16.msra.mxu1 %v13477_v27  ;;  %v13575_v43 = vld [vmem:[#allocation134_spill] sm:$0xff] }
 0x5ae   : >> { %5610 = vmatprep.subr.bf16.mxu0 %v13478_v23  ;;  %5663 = vmatprep.subr.bf16.mxu1 %v13479_v56 }
 0x5af   : >> { %v5220_v47 = vpop.f32.mrb[72].mxu0  ;;  %v5273_v15 = vpop.f32.mrb[72].mxu1 }
 0x5b0   : >> { %v5222_v16 = vpop.f32.mrb[73].mxu0  ;;  %v5275_v7 = vpop.f32.mrb[73].mxu1 }
 0x5b1   : >> { %v5224_v12 = vpop.f32.mrb[74].mxu0  ;;  %v5277_v21 = vpop.f32.mrb[74].mxu1  ;;  %5611 = vmatpush1.bf16.msra.mxu0 %v13480_v63  ;;  %5664 = vmatpush1.bf16.msra.mxu1 %v13481_v41  ;;  %v13576_v63 = vld [vmem:[#allocation117_spill] sm:$0xff] }
 0x5b2   : >> { %v5226_v18 = vpop.f32.mrb[75].mxu0  ;;  %v5279_v28 = vpop.f32.mrb[75].mxu1  ;;  %5612 = vmatprep.subr.bf16.mxu0 %v13482_v19  ;;  %5665 = vmatprep.subr.bf16.mxu1 %v13483_v58  ;;  %v13577_v58 = vld [vmem:[#allocation131_spill] sm:$0xff] }
 0x5b3   : >> { %v5444_v16 = vpop.permute.xlu0 %5443 }
 0x5b4   : >> { %vm5450_vm10 = vcmp.eq.s32.totalorder %v5444_v16, 1 }
 0x5b5   : >> { %5613 = vmatpush1.bf16.msra.mxu0 %v13484_v57  ;;  %5666 = vmatpush1.bf16.msra.mxu1 %v13485_v24  ;;  %v13578_v24 = vld [vmem:[#allocation130_spill] sm:$0xff] }
 0x5b6   : >> { %5614 = vmatprep.subr.bf16.mxu0 %v13487_v30  ;;  %5667 = vmatprep.subr.bf16.mxu1 %v11492_v51 }
 0x5b7   : >> { %v5230_v32 = vpop.f32.mrb[76].mxu0  ;;  %v5283_v22 = vpop.f32.mrb[76].mxu1 }
 0x5b8   : >> { %v5316_v27 = vadd.f32 %v13575_v43, %v5230_v32  ;;  %v5232_v23 = vpop.f32.mrb[77].mxu0  ;;  %v5285_v56 = vpop.f32.mrb[77].mxu1 }
 0x5b9   : >> { %v5317_v41 = vadd.f32 %v13576_v63, %v5232_v23  ;;  %v5234_v4 = vpop.f32.mrb[78].mxu0  ;;  %v5287_v19 = vpop.f32.mrb[78].mxu1  ;;  %5615 = vmatpush1.bf16.msra.mxu0 %v13489_v46  ;;  %5668 = vmatpush1.bf16.msra.mxu1 %v11511_v5  ;;  %v5319_v42 = vadd.f32 %v13579_v38, %v5285_v56  ;;  %v13580_v5 = vld [vmem:[#allocation133_spill] sm:$0xff] }
 0x5ba   : >> { %v6774_v9 = vmul.f32 -1.442695, %v5316_v27  ;;  %v5320_v0 = vadd.f32 %v13577_v58, %v5234_v4  ;;  %v5236_v57 = vpop.f32.mrb[79].mxu0  ;;  %v5289_v6 = vpop.f32.mrb[79].mxu1  ;;  %5616 = vmatprep.subr.bf16.mxu0 %v13491_v59  ;;  %5669 = vmatprep.subr.bf16.mxu1 %v13492_v2  ;;  %v5318_v59 = vadd.f32 %v13580_v5, %v5283_v22  ;;  %v13581_v2 = vld [vmem:[#allocation128_spill] sm:$0xff] }
 0x5bb   : >> { %v6778_v30 = vmul.f32 -1.442695, %v5317_v41  ;;  %v5321_v51 = vadd.f32 %v13578_v24, %v5236_v57  ;;  %v6782_v46 = vmul.f32 -1.442695, %v5319_v42  ;;  %v5323_v62 = vadd.f32 %v13581_v2, %v5289_v6  ;;  %v5447_v22 = vpop.permute.xlu1 %5446  ;;  %v13583_v6 = vld [vmem:[#allocation148_spill] sm:$0xff] }
 0x5bc   : >> { %8251 = vpow2.f32 %v6774_v9  ;;  %v6775_v26 = vmul.f32 -1.442695, %v5320_v0  ;;  %vm5451_vm11 = vcmp.eq.s32.totalorder %v5447_v22, 1 }
 0x5bd   : >> { %8253 = vpow2.f32 %v6778_v30  ;;  %v6779_v8 = vmul.f32 -1.442695, %v5321_v51  ;;  %5617 = vmatpush1.bf16.msra.mxu0 %v13494_v37  ;;  %5670 = vmatpush1.bf16.msra.mxu1 %v13495_v45  ;;  %v13582_v37 = vld [vmem:[#allocation129_spill] sm:$0xff] }
 0x5be   : >> { %8255 = vpow2.f32 %v6775_v26  ;;  %5618 = vmatprep.subr.bf16.mxu0 %v13496_v35  ;;  %5671 = vmatprep.subr.bf16.mxu1 %v11536_v14  ;;  %v5322_v29 = vadd.f32 %v13582_v37, %v5287_v19  ;;  %v6783_v35 = vmul.f32 -1.442695, %v5323_v62  ;;  %v13584_v26 = vld [vmem:[#allocation119_spill] sm:$0xff]  ;;  %v13586_v37 = vld [vmem:[#allocation118_spill] sm:$0xff] }
 0x5bf   : >> { %8257 = vpow2.f32 %v6779_v8 }
 0x5c0   : >> { %8259 = vtanh.f32 %v5318_v59  ;;  %v13585_v59 = vld [vmem:[#allocation145_spill] sm:$0xff] }
 0x5c1   : >> { %5619 = vmatpush1.bf16.msra.mxu0 %v11525_v34  ;;  %5672 = vmatpush1.bf16.msra.mxu1 %v11547_v11  ;;  %8261 = vpow2.f32 %v6782_v46 }
 0x5c2   : >> { %8263 = vtanh.f32 %v5322_v29 }
 0x5c6   : >> { %v8252_v45 = vpop.eup %8251 }
 0x5c7   : >> { %v8254_v39 = vpop.eup %8253  ;;  %v5338_v49 = vadd.f32 1.0, %v8252_v45 }
 0x5c8   : >> { %v5362_v55 = vadd.f32 1.0, %v8254_v39  ;;  %v8256_v14 = vpop.eup %8255  ;;  %v13587_v39 = vld [vmem:[#allocation146_spill] sm:$0xff] }
 0x5c9   : >> { %8265 = vrcp.f32 %v5338_v49  ;;  %v5339_v40 = vadd.f32 1.0, %v8256_v14  ;;  %v8258_v34 = vpop.eup %8257 }
 0x5ca   : >> { %8267 = vrcp.f32 %v5362_v55  ;;  %v5363_v11 = vadd.f32 1.0, %v8258_v34  ;;  %v8260_v48 = vpop.eup %8259 }
 0x5cb   : >> { %8269 = vpow2.f32 %v6783_v35  ;;  %v8262_v17 = vpop.eup %8261  ;;  %v13588_v35 = vld [vmem:[#allocation147_spill] sm:$0xff] }
 0x5cc   : >> { %8271 = vrcp.f32 %v5339_v40  ;;  %v8264_v54 = vpop.eup %8263  ;;  %v5390_v20 = vadd.f32 1.0, %v8262_v17  ;;  %v13589_v40 = vld [vmem:[#allocation143_spill] sm:$0xff] }
 0x5cd   : >> { %8273 = vrcp.f32 %v5363_v11  ;;  %v13590_v11 = vld [vmem:[#allocation144_spill] sm:$0xff] }
 0x5ce   : >> { %8275 = vrcp.f32 %v5390_v20 }
 0x5d3   : >> { %v8266_v1 = vpop.eup %8265 }
 0x5d4   : >> { %v8268_v25 = vpop.eup %8267  ;;  %v5406_v31 = vmul.f32 %v8266_v1, %v8260_v48 }
 0x5d5   : >> { %v8270_v13 = vpop.eup %8269  ;;  %v5402_v47 = vmul.f32 %v8268_v25, %v12025_v50 }
 0x5d6   : >> { %v8272_v15 = vpop.eup %8271  ;;  %v5391_v18 = vadd.f32 1.0, %v8270_v13 }
 0x5d7   : >> { %v5410_v7 = vadd.f32 %v5406_v31, %v5402_v47  ;;  %v5407_v12 = vmul.f32 %v8272_v15, %v8264_v54  ;;  %v8274_v21 = vpop.eup %8273 }
 0x5d8   : >> { %v5403_v28 = vmul.f32 %v8274_v21, %v12029_v53  ;;  %v8276_v23 = vpop.eup %8275 }
 0x5d9   : >> { %8277 = vtanh.f32 %v5410_v7  ;;  %v12165_v32 = vsel %vm5450_vm10, %v5410_v7, %v12025_v50 }
 0x5da   : >> { %v5411_v43 = vadd.f32 %v5407_v12, %v5403_v28  ;;  %8279 = vrcp.f32 %v5391_v18 }
 0x5dc   : >> { %8281 = vtanh.f32 %v5411_v43  ;;  %v12169_v27 = vsel %vm5451_vm11, %v5411_v43, %v12029_v53 }
 0x5e3   : >> { %v8278_v56 = vpop.eup %8277 }
 0x5e4   : >> { %v5418_v63 = vmul.f32 %v8278_v56, %v8276_v23  ;;  %v8280_v41 = vpop.eup %8279 }
 0x5e6   : >> { %v8282_v4 = vpop.eup %8281  ;;  %v12174_v19 = vsel %vm5450_vm10, %v5418_v63, %v12034_v60  ;;  %v5462_v53 = vsel %vm5450_vm10, %v5418_v63, 0.0  ;;  %v5856_v63 = vpop.permute.xlu0 %5855 }
 0x5e7   : >> { %v5419_v50 = vmul.f32 %v8282_v4, %v8280_v41  ;;  %vm5866_vm12 = vcmp.eq.s32.totalorder %v5856_v63, 1 }
 0x5e9   : >> { %v12178_v9 = vsel %vm5451_vm11, %v5419_v50, %v12038_v61  ;;  %v5463_v58 = vsel %vm5451_vm11, %v5419_v50, 0.0 }
 0x5ea   : >> { %v6873_v0 = vpack.c.bf16 %v5463_v58, %v5462_v53  ;;  %v5497_v57 = vpack.c.bf16 %v12178_v9, %v12174_v19 }
 0x5ec   : >> { %6874 = vst [vmem:[%s5492_s16] sm:$0xff] %v6873_v0   ;;  %5541 = vmatmul.mubr.bf16.gmra.mrb[84].mxu0 %v5497_v57  ;;  %5594 = vmatmul.mubr.bf16.gmra.mrb[84].mxu1 %v5497_v57  ;;  %v5859_v0 = vpop.permute.xlu1 %5858 }
 0x5ed   : >> { %5636 = vmatprep.mubr.bf16.mxu0 %v13187_v36  ;;  %5689 = vmatprep.mubr.bf16.mxu1 %v13187_v36  ;;  %vm5867_vm13 = vcmp.eq.s32.totalorder %v5859_v0, 1  ;;  %v13600_v0 = vld [vmem:[#allocation136_spill] sm:$0xff] }
 0x5f4   : >> { %5637 = vmatmul.mubr.bf16.vlgmr.msra.gmra.mrb[88].mxu0 %v12117_v3  ;;  %5690 = vmatmul.mubr.bf16.vlgmr.msra.gmra.mrb[88].mxu1 %v12117_v3 }
 0x5f5   : >> { %5646 = vmatprep.mubr.bf16.mxu0 %v13187_v36  ;;  %5699 = vmatprep.mubr.bf16.mxu1 %v13187_v36 }
 0x5fc   : >> { %5647 = vmatmul.mubr.bf16.gmra.mrb[92].mxu0 %v5497_v57  ;;  %5700 = vmatmul.mubr.bf16.gmra.mrb[92].mxu1 %v5497_v57 }
 0x677   : >> { %v5532_v60 = vpop.f32.mrb[80].mxu0  ;;  %v5585_v61 = vpop.f32.mrb[80].mxu1 }
 0x678   : >> { %v5726_v30 = vadd.f32 %v13583_v6, %v5532_v60  ;;  %v5534_v24 = vpop.f32.mrb[81].mxu0  ;;  %v5587_v51 = vpop.f32.mrb[81].mxu1  ;;  %v5728_v55 = vadd.f32 %v13588_v35, %v5585_v61 }
 0x679   : >> { %v5727_v8 = vadd.f32 %v13584_v26, %v5534_v24  ;;  %v5536_v38 = vpop.f32.mrb[82].mxu0  ;;  %v5589_v42 = vpop.f32.mrb[82].mxu1  ;;  %v5729_v49 = vadd.f32 %v13587_v39, %v5587_v51  ;;  %v13669_v24 = vld [vmem:[#allocation212_spill] sm:$0xff] }
 0x67a   : >> { %v6792_v5 = vmul.f32 -1.442695, %v5726_v30  ;;  %v5730_v46 = vadd.f32 %v13585_v59, %v5536_v38  ;;  %v5538_v3 = vpop.f32.mrb[83].mxu0  ;;  %v5591_v2 = vpop.f32.mrb[83].mxu1  ;;  %v5732_v48 = vadd.f32 %v13590_v11, %v5589_v42  ;;  %13670 = vst [vmem:[#allocation107_spill] sm:$0xff] %v13669_v24  ;;  %v13671_v42 = vld [vmem:[#allocation211_spill] sm:$0xff] }
 0x67b   : >> { %v6796_v62 = vmul.f32 -1.442695, %v5727_v8  ;;  %v5731_v36 = vadd.f32 %v13586_v37, %v5538_v3  ;;  %v6800_v14 = vmul.f32 -1.442695, %v5729_v49  ;;  %v5733_v34 = vadd.f32 %v13589_v40, %v5591_v2  ;;  %13672 = vst [vmem:[#allocation108_spill] sm:$0xff] %v13671_v42 }
 0x67c   : >> { %8283 = vpow2.f32 %v6792_v5  ;;  %v6793_v29 = vmul.f32 -1.442695, %v5730_v46 }
 0x67d   : >> { %8285 = vpow2.f32 %v6796_v62  ;;  %v6797_v45 = vmul.f32 -1.442695, %v5731_v36  ;;  %v6801_v25 = vmul.f32 -1.442695, %v5733_v34 }
 0x67e   : >> { %8287 = vpow2.f32 %v6793_v29 }
 0x67f   : >> { %8289 = vpow2.f32 %v6797_v45 }
 0x680   : >> { %8291 = vtanh.f32 %v5728_v55 }
 0x681   : >> { %8293 = vpow2.f32 %v6800_v14 }
 0x682   : >> { %8295 = vtanh.f32 %v5732_v48  ;;  %v13593_v48 = vld [vmem:[#allocation142_spill] sm:$0xff] }
 0x686   : >> { %v8284_v17 = vpop.eup %8283 }
 0x687   : >> { %v8286_v54 = vpop.eup %8285  ;;  %v5754_v1 = vadd.f32 1.0, %v8284_v17 }
 0x688   : >> { %v5778_v31 = vadd.f32 1.0, %v8286_v54  ;;  %v8288_v20 = vpop.eup %8287 }
 0x689   : >> { %8297 = vrcp.f32 %v5754_v1  ;;  %v5755_v13 = vadd.f32 1.0, %v8288_v20  ;;  %v8290_v47 = vpop.eup %8289 }
 0x68a   : >> { %8299 = vrcp.f32 %v5778_v31  ;;  %v5779_v15 = vadd.f32 1.0, %v8290_v47  ;;  %v8292_v16 = vpop.eup %8291 }
 0x68b   : >> { %8301 = vpow2.f32 %v6801_v25  ;;  %v8294_v7 = vpop.eup %8293  ;;  %v13594_v25 = vld [vmem:[#allocation141_spill] sm:$0xff] }
 0x68c   : >> { %8303 = vrcp.f32 %v5755_v13  ;;  %v8296_v12 = vpop.eup %8295  ;;  %v5806_v22 = vadd.f32 1.0, %v8294_v7 }
 0x68d   : >> { %8305 = vrcp.f32 %v5779_v15  ;;  %v13595_v15 = vld [vmem:[#allocation138_spill] sm:$0xff] }
 0x68e   : >> { %8307 = vrcp.f32 %v5806_v22 }
 0x693   : >> { %v8298_v21 = vpop.eup %8297 }
 0x694   : >> { %v8300_v18 = vpop.eup %8299  ;;  %v5822_v28 = vmul.f32 %v8298_v21, %v8292_v16 }
 0x695   : >> { %v8302_v43 = vpop.eup %8301  ;;  %v5818_v23 = vmul.f32 %v8300_v18, %v12097_v10  ;;  %v13596_v18 = vld [vmem:[#allocation137_spill] sm:$0xff] }
 0x696   : >> { %v8304_v56 = vpop.eup %8303  ;;  %v5807_v53 = vadd.f32 1.0, %v8302_v43 }
 0x697   : >> { %v5826_v41 = vadd.f32 %v5822_v28, %v5818_v23  ;;  %v5823_v4 = vmul.f32 %v8304_v56, %v8296_v12  ;;  %v8306_v50 = vpop.eup %8305  ;;  %v13597_v56 = vld [vmem:[#allocation139_spill] sm:$0xff] }
 0x698   : >> { %v5819_v58 = vmul.f32 %v8306_v50, %v12101_v44  ;;  %v8308_v60 = vpop.eup %8307 }
 0x699   : >> { %8309 = vtanh.f32 %v5826_v41  ;;  %v12202_v43 = vsel %vm5866_vm12, %v5826_v41, %v12097_v10   ;;  %v13598_v41 = vld [vmem:[#allocation140_spill] sm:$0xff] }
 0x69a   : >> { %v5827_v57 = vadd.f32 %v5823_v4, %v5819_v58  ;;  %8311 = vrcp.f32 %v5807_v53  ;;  %v13599_v53 = vld [vmem:[#allocation135_spill] sm:$0xff]  ;;  %13682 = vst [vmem:[#allocation96_spill] sm:$0xff] %v12202_v43  ;;  %5917 = vst [vmem:[#allocation3] sm:$0xff] (%p2274_p7), %v12202_v43 }
 0x69c   : >> { %8313 = vtanh.f32 %v5827_v57  ;;  %v12207_v2 = vsel %vm5867_vm13, %v5827_v57, %v12101_v44  }
 0x69d   : >> { %13681 = vst [vmem:[#allocation97_spill] sm:$0xff] %v12207_v2  ;;  %5918 = vst [vmem:[#allocation3 + $0x8] sm:$0xff] (%p2274_p7), %v12207_v2 }
 0x6a3   : >> { %v8310_v61 = vpop.eup %8309 }
 0x6a4   : >> { %v5834_v6 = vmul.f32 %v8310_v61, %v8308_v60  ;;  %v8312_v30 = vpop.eup %8311 }
 0x6a6   : >> { %v12212_v10 = vsel %vm5866_vm12, %v5834_v6, %v12109_v33   ;;  %v8314_v51 = vpop.eup %8313  ;;  %v5878_v8 = vsel %vm5866_vm12, %v5834_v6, 0.0 }
 0x6a7   : >> { %13591 = vst [vmem:[#allocation272_spill] sm:$0xff] %v12212_v10  ;;  %v5835_v26 = vmul.f32 %v8314_v51, %v8312_v30 }
 0x6a9   : >> { %v12218_v44 = vsel %vm5867_vm13, %v5835_v26, %v12113_v52   ;;  %v5879_v38 = vsel %vm5867_vm13, %v5835_v26, 0.0 }
 0x6aa   : >> { %13592 = vst [vmem:[#allocation273_spill] sm:$0xff] %v12218_v44  ;;  %v6878_v5 = vpack.c.bf16 %v5879_v38, %v5878_v8 }
 0x6ac   : >> { %6879 = vst [vmem:[%s5894_s24] sm:$0xff] %v6878_v5   ;;  %s13690_s24 = smov %s10674_s23 }
 0x6ae   : > { %v13691_v42 = vld [vmem:[#allocation272_spill] sm:$0xff] (%p2274_p7) }
 0x6af   : > { %5913 = vst [vmem:[#allocation2] sm:$0xff] (%p2274_p7), %v13691_v42 }
 0x6b1   : >> { %v13686_v24 = vld [vmem:[#allocation273_spill] sm:$0xff] }
 0x6b2   : >> { %13687 = vst [vmem:[#allocation93_spill] sm:$0xff] %v13686_v24 }
 0x6bf   : >> { %v5542_v59 = vpop.f32.mrb[84].mxu0  ;;  %v5595_v46 = vpop.f32.mrb[84].mxu1 }
 0x6c0   : >> { %v5544_v3 = vpop.f32.mrb[85].mxu0  ;;  %v5597_v62 = vpop.f32.mrb[85].mxu1 }
 0x6c1   : >> { %v5546_v33 = vpop.f32.mrb[86].mxu0  ;;  %v5599_v37 = vpop.f32.mrb[86].mxu1 }
 0x6c2   : >> { %v5548_v36 = vpop.f32.mrb[87].mxu0  ;;  %v5601_v29 = vpop.f32.mrb[87].mxu1 }
 0x6c3   : >> { %v5862_v36 = vpop.permute.xlu0 %5861 }
 0x6c4   : >> { %vm5868_vm14 = vcmp.eq.s32.totalorder %v5862_v36, 1  ;;  %v13642_v36 = vld [vmem:[#allocation233_spill] sm:$0xff] }
 0x6c7   : >> { %v5638_v45 = vpop.f32.mrb[88].mxu0  ;;  %v5691_v39 = vpop.f32.mrb[88].mxu1 }
 0x6c8   : >> { %v5640_v49 = vpop.f32.mrb[89].mxu0  ;;  %v5693_v35 = vpop.f32.mrb[89].mxu1 }
 0x6c9   : >> { %v5642_v55 = vpop.f32.mrb[90].mxu0  ;;  %v5695_v14 = vpop.f32.mrb[90].mxu1 }
 0x6ca   : >> { %v5644_v52 = vpop.f32.mrb[91].mxu0  ;;  %v5697_v40 = vpop.f32.mrb[91].mxu1 }
 0x6cb   : >> { %v5865_v14 = vpop.permute.xlu1 %5864 }
 0x6cc   : >> { %vm5869_vm15 = vcmp.eq.s32.totalorder %v5865_v14, 1  ;;  %v13659_v14 = vld [vmem:[#allocation217_spill] sm:$0xff] }
 0x6cf   : >> { %v5648_v34 = vpop.f32.mrb[92].mxu0  ;;  %v5701_v11 = vpop.f32.mrb[92].mxu1 }
 0x6d0   : >> { %v5734_v17 = vadd.f32 %v13593_v48, %v5648_v34  ;;  %v5650_v54 = vpop.f32.mrb[93].mxu0  ;;  %v5703_v1 = vpop.f32.mrb[93].mxu1  ;;  %v5736_v4 = vadd.f32 %v13598_v41, %v5701_v11  ;;  %v13629_v41 = vld [vmem:[#allocation245_spill] sm:$0xff] }
 0x6d1   : >> { %v5735_v31 = vadd.f32 %v13594_v25, %v5650_v54  ;;  %v5652_v20 = vpop.f32.mrb[94].mxu0  ;;  %v5705_v13 = vpop.f32.mrb[94].mxu1  ;;  %v5737_v63 = vadd.f32 %v13597_v56, %v5703_v1 }
 0x6d2   : >> { %v6794_v47 = vmul.f32 -1.442695, %v5734_v17  ;;  %v5738_v16 = vadd.f32 %v13595_v15, %v5652_v20  ;;  %v5654_v7 = vpop.f32.mrb[95].mxu0  ;;  %v5707_v12 = vpop.f32.mrb[95].mxu1  ;;  %v5740_v57 = vadd.f32 %v13600_v0, %v5705_v13  ;;  %v13614_v15 = vld [vmem:[#allocation260_spill] sm:$0xff]  ;;  %v13634_v20 = vld [vmem:[#allocation242_spill] sm:$0xff] }
 0x6d3   : >> { %v6798_v21 = vmul.f32 -1.442695, %v5735_v31  ;;  %v5739_v28 = vadd.f32 %v13596_v18, %v5654_v7  ;;  %v6802_v50 = vmul.f32 -1.442695, %v5737_v63  ;;  %v5741_v58 = vadd.f32 %v13599_v53, %v5707_v12  ;;  %v13622_v12 = vld [vmem:[#allocation252_spill] sm:$0xff]  ;;  %v13643_v7 = vld [vmem:[#allocation234_spill] sm:$0xff] }
 0x6d4   : >> { %8315 = vpow2.f32 %v6794_v47  ;;  %v6795_v22 = vmul.f32 -1.442695, %v5738_v16  ;;  %v13612_v47 = vld [vmem:[#allocation261_spill] sm:$0xff]  ;;  %v13627_v13 = vld [vmem:[#allocation248_spill] sm:$0xff]  ;;  %v13628_v16 = vld [vmem:[#allocation247_spill] sm:$0xff]  ;;  %13644 = vst [vmem:[#allocation119_spill] sm:$0xff] %v13643_v7 }
 0x6d5   : >> { %8317 = vpow2.f32 %v6798_v21  ;;  %v6799_v23 = vmul.f32 -1.442695, %v5739_v28  ;;  %v6803_v30 = vmul.f32 -1.442695, %v5741_v58  ;;  %v13608_v58 = vld [vmem:[#allocation265_spill] sm:$0xff]  ;;  %v13615_v21 = vld [vmem:[#allocation259_spill] sm:$0xff] }
 0x6d6   : >> { %8319 = vpow2.f32 %v6795_v22  ;;  %v13606_v22 = vld [vmem:[#allocation268_spill] sm:$0xff]  ;;  %v13633_v28 = vld [vmem:[#allocation241_spill] sm:$0xff]  ;;  %v13656_v18 = vld [vmem:[#allocation222_spill] sm:$0xff] }
 0x6d7   : >> { %8321 = vpow2.f32 %v6799_v23  ;;  %v13630_v23 = vld [vmem:[#allocation246_spill] sm:$0xff]  ;;  %v13631_v63 = vld [vmem:[#allocation244_spill] sm:$0xff]  ;;  %v13655_v53 = vld [vmem:[#allocation221_spill] sm:$0xff] }
 0x6d8   : >> { %8323 = vtanh.f32 %v5736_v4  ;;  %v13619_v4 = vld [vmem:[#allocation255_spill] sm:$0xff]  ;;  %v13645_v0 = vld [vmem:[#allocation232_spill] sm:$0xff] }
 0x6d9   : >> { %8325 = vpow2.f32 %v6802_v50  ;;  %v13604_v50 = vld [vmem:[#allocation269_spill] sm:$0xff]  ;;  %v13653_v7 = vld [vmem:[#allocation224_spill] sm:$0xff] }
 0x6da   : >> { %8327 = vtanh.f32 %v5740_v57  ;;  %v13649_v57 = vld [vmem:[#allocation228_spill] sm:$0xff] }
 0x6de   : >> { %v8316_v60 = vpop.eup %8315 }
 0x6df   : >> { %v8318_v61 = vpop.eup %8317  ;;  %v5756_v6 = vadd.f32 1.0, %v8316_v60  ;;  %v13651_v60 = vld [vmem:[#allocation225_spill] sm:$0xff] }
 0x6e0   : >> { %v5780_v10 = vadd.f32 1.0, %v8318_v61  ;;  %v8320_v51 = vpop.eup %8319  ;;  %v13605_v61 = vld [vmem:[#allocation270_spill] sm:$0xff] }
 0x6e1   : >> { %8329 = vrcp.f32 %v5756_v6  ;;  %v5757_v26 = vadd.f32 1.0, %v8320_v51  ;;  %v8322_v8 = vpop.eup %8321  ;;  %v13617_v51 = vld [vmem:[#allocation258_spill] sm:$0xff]  ;;  %v13661_v6 = vld [vmem:[#allocation216_spill] sm:$0xff] }
 0x6e2   : >> { %8331 = vrcp.f32 %v5780_v10  ;;  %v5781_v44 = vadd.f32 1.0, %v8322_v8  ;;  %v8324_v38 = vpop.eup %8323  ;;  %v13623_v8 = vld [vmem:[#allocation251_spill] sm:$0xff]  ;;  %v13652_v10 = vld [vmem:[#allocation226_spill] sm:$0xff]  ;;  %13662 = vst [vmem:[#allocation111_spill] sm:$0xff] %v13661_v6 }
 0x6e3   : >> { %8333 = vpow2.f32 %v6803_v30  ;;  %v8326_v5 = vpop.eup %8325  ;;  %v13640_v30 = vld [vmem:[#allocation236_spill] sm:$0xff]  ;;  %v13675_v6 = vld [vmem:[#allocation210_spill] sm:$0xff] }
 0x6e4   : >> { %8335 = vrcp.f32 %v5757_v26  ;;  %v8328_v59 = vpop.eup %8327  ;;  %v5808_v33 = vadd.f32 1.0, %v8326_v5  ;;  %v13632_v26 = vld [vmem:[#allocation243_spill] sm:$0xff]  ;;  %13676 = vst [vmem:[#allocation105_spill] sm:$0xff] %v13675_v6 }
 0x6e5   : >> { %8337 = vrcp.f32 %v5781_v44  ;;  %v13646_v44 = vld [vmem:[#allocation231_spill] sm:$0xff] }
 0x6e6   : >> { %8339 = vrcp.f32 %v5808_v33  ;;  %v13658_v5 = vld [vmem:[#allocation219_spill] sm:$0xff] }
 0x6eb   : >> { %v8330_v46 = vpop.eup %8329 }
 0x6ec   : >> { %v8332_v3 = vpop.eup %8331  ;;  %v5824_v62 = vmul.f32 %v8330_v46, %v8324_v38  ;;  %v13609_v38 = vld [vmem:[#allocation266_spill] sm:$0xff] }
 0x6ed   : >> { %v8334_v37 = vpop.eup %8333  ;;  %v5820_v29 = vmul.f32 %v8332_v3, %v12165_v32 }
 0x6ee   : >> { %v8336_v45 = vpop.eup %8335  ;;  %v5809_v55 = vadd.f32 1.0, %v8334_v37  ;;  %v13647_v37 = vld [vmem:[#allocation229_spill] sm:$0xff] }
 0x6ef   : >> { %v5828_v39 = vadd.f32 %v5824_v62, %v5820_v29  ;;  %v5825_v49 = vmul.f32 %v8336_v45, %v8328_v59  ;;  %v8338_v35 = vpop.eup %8337  ;;  %v13613_v62 = vld [vmem:[#allocation262_spill] sm:$0xff]  ;;  %v13618_v59 = vld [vmem:[#allocation256_spill] sm:$0xff]  ;;  %v13641_v29 = vld [vmem:[#allocation235_spill] sm:$0xff] }
 0x6f0   : >> { %v5821_v52 = vmul.f32 %v8338_v35, %v12169_v27  ;;  %v8340_v34 = vpop.eup %8339  ;;  %v13603_v35 = vld [vmem:[#allocation271_spill] sm:$0xff] }
 0x6f1   : >> { %8341 = vtanh.f32 %v5828_v39  ;;  %v12232_v3 = vsel %vm5868_vm14, %v5828_v39, %v12165_v32   ;;  %v13607_v39 = vld [vmem:[#allocation267_spill] sm:$0xff] }
 0x6f2   : >> { %v5829_v40 = vadd.f32 %v5825_v49, %v5821_v52  ;;  %8343 = vrcp.f32 %v5809_v55  ;;  %v13611_v55 = vld [vmem:[#allocation263_spill] sm:$0xff]  ;;  %v13648_v49 = vld [vmem:[#allocation230_spill] sm:$0xff]  ;;  %13680 = vst [vmem:[#allocation102_spill] sm:$0xff] %v12232_v3  ;;  %5919 = vst [vmem:[#allocation3 + $0x10] sm:$0xff] (%p2274_p7), %v12232_v3 }
 0x6f3   : >> { %v13650_v52 = vld [vmem:[#allocation227_spill] sm:$0xff] }
 0x6f4   : >> { %8345 = vtanh.f32 %v5829_v40  ;;  %v12237_v46 = vsel %vm5869_vm15, %v5829_v40, %v12169_v27   ;;  %v13636_v40 = vld [vmem:[#allocation239_spill] sm:$0xff] }
 0x6f5   : >> { %v13654_v45 = vld [vmem:[#allocation223_spill] sm:$0xff]  ;;  %13679 = vst [vmem:[#allocation104_spill] sm:$0xff] %v12237_v46  ;;  %5920 = vst [vmem:[#allocation3 + $0x18] sm:$0xff] (%p2274_p7), %v12237_v46 }
 0x6fb   : >> { %v8342_v11 = vpop.eup %8341 }
 0x6fc   : >> { %v5836_v48 = vmul.f32 %v8342_v11, %v8340_v34  ;;  %v8344_v17 = vpop.eup %8343  ;;  %v13657_v11 = vld [vmem:[#allocation220_spill] sm:$0xff]  ;;  %v13660_v34 = vld [vmem:[#allocation218_spill] sm:$0xff] }
 0x6fe   : >> { %v12242_v33 = vsel %vm5868_vm14, %v5836_v48, %v12174_v19   ;;  %v8346_v32 = vpop.eup %8345  ;;  %v5880_v1 = vsel %vm5868_vm14, %v5836_v48, 0.0  ;;  %v13637_v48 = vld [vmem:[#allocation237_spill] sm:$0xff]  ;;  %v13638_v19 = vld [vmem:[#allocation238_spill] sm:$0xff] }
 0x6ff   : >> { %13601 = vst [vmem:[#allocation274_spill] sm:$0xff] %v12242_v33  ;;  %v5837_v54 = vmul.f32 %v8346_v32, %v8344_v17  ;;  %v13616_v17 = vld [vmem:[#allocation257_spill] sm:$0xff]  ;;  %13639 = vst [vmem:[#allocation118_spill] sm:$0xff] %v13638_v19  ;;  %v13663_v19 = vld [vmem:[#allocation215_spill] sm:$0xff] }
 0x700   : >> { %13664 = vst [vmem:[#allocation112_spill] sm:$0xff] %v13663_v19  ;;  %v13665_v32 = vld [vmem:[#allocation213_spill] sm:$0xff]  ;;  %v13673_v33 = vld [vmem:[#allocation90_spill] sm:$0xff] }
 0x701   : >> { %v12247_v27 = vsel %vm5869_vm15, %v5837_v54, %v12178_v9   ;;  %v5881_v25 = vsel %vm5869_vm15, %v5837_v54, 0.0  ;;  %v13624_v9 = vld [vmem:[#allocation249_spill] sm:$0xff]  ;;  %v13625_v54 = vld [vmem:[#allocation250_spill] sm:$0xff]  ;;  %13666 = vst [vmem:[#allocation110_spill] sm:$0xff] %v13665_v32  ;;  %13674 = vst [vmem:[#allocation106_spill] sm:$0xff] %v13673_v33 }
 0x702   : >> { %v13602_v56 = vmov %v12247_v27  ;;  %v6883_v31 = vpack.c.bf16 %v5881_v25, %v5880_v1  ;;  %v13620_v1 = vld [vmem:[#allocation253_spill] sm:$0xff]  ;;  %v13621_v27 = vld [vmem:[#allocation254_spill] sm:$0xff]  ;;  %13626 = vst [vmem:[#allocation117_spill] sm:$0xff] %v13625_v54  ;;  %v13635_v25 = vld [vmem:[#allocation240_spill] sm:$0xff] }
 0x703   : >> { %v13667_v54 = vld [vmem:[#allocation214_spill] sm:$0xff]  ;;  %v13677_v19 = vld [vmem:[#allocation91_spill] sm:$0xff]  ;;  %13683 = vst [vmem:[#allocation95_spill] sm:$0xff] %v13602_v56  ;;  %v13688_v32 = vld [vmem:[#allocation272_spill] sm:$0xff] }
 0x704   : >> { %6884 = vst [vmem:[%s5910_s19] sm:$0xff] %v6883_v31   ;;  %v13610_v31 = vld [vmem:[#allocation264_spill] sm:$0xff]  ;;  %13668 = vst [vmem:[#allocation109_spill] sm:$0xff] %v13667_v54  ;;  %v13692_v54 = vld [vmem:[#allocation273_spill] sm:$0xff] (%p2274_p7) }
 0x705   : >> { %13678 = vst [vmem:[#allocation103_spill] sm:$0xff] %v13677_v19  ;;  %13689 = vst [vmem:[#allocation92_spill] sm:$0xff] %v13688_v32 }
 0x706   : >> { %v13684_v33 = vld [vmem:[#allocation274_spill] sm:$0xff]  ;;  %5914 = vst [vmem:[#allocation2 + $0x8] sm:$0xff] (%p2274_p7), %v13692_v54  ;;  %5916 = vst [vmem:[#allocation2 + $0x18] sm:$0xff] (%p2274_p7), %v13602_v56 }
 0x707   : >> { %13685 = vst [vmem:[#allocation94_spill] sm:$0xff] %v13684_v33  ;;  %2276 = sbr.rel (!%p2274_p7) target bundleno = 477 (0x1dd), region = 172  ;;  %v13693_v6 = vld [vmem:[#allocation274_spill] sm:$0xff] (%p2274_p7) }
 0x708   : > { %5915 = vst [vmem:[#allocation2 + $0x10] sm:$0xff] (%p2274_p7), %v13693_v6 }
 0x70e   : > { %5924 = sbr.rel (%p6812_p8) target bundleno = 1814 (0x716), region = 83  ;;  %v5925_v24 = vld [vmem:[#allocation2] sm:$0xff] (!%p6812_p8)  ;;  %v5926_v9 = vld [vmem:[#allocation2 + $0x8] sm:$0xff] (!%p6812_p8)  ;;  %s13694_s13 = sld [smem:[#allocation284_spill]] (!%p6812_p8)  ;;  %v5930_v2 = vld [vmem:[#allocation2 + $0x18] sm:$0xff] (!%p6812_p8) }
 0x70f   : > { %v5929_v20 = vld [vmem:[#allocation2 + $0x10] sm:$0xff] (!%p6812_p8)  ;;  %s13695_s17 = sld [smem:[#allocation285_spill]] (!%p6812_p8) }
 0x714   : > { %5927 = vst [vmem:[%s13694_s13] sm:$0xff] (!%p6812_p8), %v5925_v24  ;;  %5928 = vst [vmem:[%s13694_s13 + $0x8] sm:$0xff] (!%p6812_p8), %v5926_v9 }
 0x715   : > { %5931 = vst [vmem:[%s13695_s17] sm:$0xff] %v5929_v20  ;;  %5932 = vst [vmem:[%s13695_s17 + $0x8] sm:$0xff] %v5930_v2 }
 0x716 PF: > { %s13696_s12 = sld [smem:[#allocation14_spill]]  ;;  %s6843_s16 = sshll.u32 %s9174_s25, 10 }
 0x717   : > { %s13698_s1 = sld [smem:[#allocation282_spill]]  ;;  %s5952_s21 = sshll.u32 %s9262_s11, 4  ;;  %s12501_s21 = int_to_ptr.vmem [resolvable:$true] %s5952_s21 }
 0x718   : > { %s8347_s3 = scalar_lea.vmem %s12501_s21, 1024  ;;  %s9054_s25 = smov [#allocation4]  }
 0x719   : > { %p8348_p9 = scmp.ne.s32.totalorder %s12501_s21, %s8347_s3  ;;  %s8351_s19 = sshll.u32 %s9054_s25, 4  ;;  %s8352_s19 = int_to_ptr.vmem [resolvable:$false] %s8351_s19 }
 0x71a   : > { %s8353_s22 = scalar_lea.vmem %s8352_s19, 2048  ;;  %p8354_p0 = scmp.lt.s32.totalorder %s12501_s21, %s8352_s19 }
 0x71b   : > { %p8349_p10 = pnand %p8348_p9, %p9197_p5  ;;  %p8355_p1 = scmp.lt.s32.totalorder %s8353_s22, %s8347_s3 }
 0x71c   : > { %s13699_s26 = sand.u32 1, %s13696_s12  }
 0x71d   : > { %s12498_s24 = scalar_lea.hbm %s13698_s1, %s6843_s16  ;;  %s12505_s15 = scalar_lea.sflag [#allocation5], %s13699_s26 }
 0x71e   : > { %p8350_p13 = pneg %p8349_p10  ;;  %p8356_p2 = por %p8355_p1, %p8354_p0 }
 0x720   : > { %p8357_p3 = pnand %p8356_p2, %p8350_p13 }
 0x722   : > { %8360 = shalt.err (!%p8357_p3)
}
 0x723   : > { %s8361_s11 = scalar_lea.hbm %s12498_s24, 1024  ;;  %s8365_s14 = scalar_lea.hbm %s13698_s1, 2048 }
 0x724   : > { %p8362_p4 = scmp.ne.s32.totalorder %s12498_s24, %s8361_s11  ;;  %p8366_p9 = scmp.lt.u32.totalorder %s12498_s24, %s13698_s1 }
 0x725   : > { %p8367_p10 = scmp.lt.u32.totalorder %s8365_s14, %s8361_s11  ;;  %p8369_p0 = scmp.lt.u32.totalorder %s8361_s11, %s12498_s24 }
 0x726   : > { %p8363_p7 = pnand %p8362_p4, %p9197_p5 }
 0x727   : > { %p8368_p13 = por %p8367_p10, %p8366_p9 }
 0x728   : > { %p8364_p8 = pneg %p8363_p7 }
 0x729   : > { %p8370_p1 = por %p8369_p0, %p8368_p13 }
 0x72b   : > { %p8371_p2 = pnand %p8370_p1, %p8364_p8 }
 0x72d   : > { %8374 = shalt.err (!%p8371_p2)
}
 0x72e   : > { %s9055_s20 = smov 64   ;;  %s13700_s27 = sld [smem:[#allocation11_spill]] }
 0x72f   : > { %s9056_s16 = smov 4   ;;  %s6844_s5 = sshll.u32 %s9239_s28, 10 }
 0x730   : > { %7016 = dma.vmem_to_hbm [thread:$0]  (%p9197_p5), %s12501_s21, 1024, %s12498_s24, %s12505_s15, %s9055_s20, %s9055_s20, %s9056_s16  }
 0x731   : > { %s5969_s2 = sshll.u32 %s9264_s18, 4  ;;  %s13702_s25 = sld [smem:[#allocation283_spill]]  ;;  %s12539_s2 = int_to_ptr.vmem [resolvable:$true] %s5969_s2 }
 0x732   : > { %s8375_s4 = scalar_lea.vmem %s12539_s2, 1024  ;;  %s9057_s28 = smov [#allocation6]  }
 0x733   : > { %p8376_p3 = scmp.ne.s32.totalorder %s12539_s2, %s8375_s4  ;;  %s8379_s18 = sshll.u32 %s9057_s28, 4  ;;  %s8380_s18 = int_to_ptr.vmem [resolvable:$false] %s8379_s18 }
 0x734   : > { %s13703_s22 = sand.u32 1, %s13700_s27   ;;  %s8381_s24 = scalar_lea.vmem %s8380_s18, 2048 }
 0x735   : > { %s12543_s11 = scalar_lea.sflag [#allocation7], %s13703_s22  ;;  %p8377_p4 = pnand %p8376_p3, %p9220_p11 }
 0x736   : > { %p8382_p7 = scmp.lt.s32.totalorder %s12539_s2, %s8380_s18  ;;  %p8383_p8 = scmp.lt.s32.totalorder %s8381_s24, %s8375_s4 }
 0x737   : > { %s12537_s19 = scalar_lea.hbm %s13702_s25, %s6844_s5  ;;  %p8378_p5 = pneg %p8377_p4 }
 0x738   : > { %p8384_p9 = por %p8383_p8, %p8382_p7 }
 0x73a   : > { %p8385_p10 = pnand %p8384_p9, %p8378_p5 }
 0x73c   : > { %8388 = shalt.err (!%p8385_p10)
}
 0x73d   : > { %s8389_s21 = scalar_lea.hbm %s12537_s19, 1024  ;;  %s8393_s30 = scalar_lea.hbm %s13702_s25, 2048 }
 0x73e   : > { %p8390_p13 = scmp.ne.s32.totalorder %s12537_s19, %s8389_s21  ;;  %p8394_p2 = scmp.lt.u32.totalorder %s12537_s19, %s13702_s25 }
 0x73f   : > { %p8395_p3 = scmp.lt.u32.totalorder %s8393_s30, %s8389_s21  ;;  %p8397_p5 = scmp.lt.u32.totalorder %s8389_s21, %s12537_s19 }
 0x740   : > { %p8391_p0 = pnand %p8390_p13, %p9220_p11 }
 0x741   : > { %p8396_p4 = por %p8395_p3, %p8394_p2 }
 0x742   : > { %p8392_p1 = pneg %p8391_p0 }
 0x743   : > { %p8398_p7 = por %p8397_p5, %p8396_p4 }
 0x745   : > { %p8399_p8 = pnand %p8398_p7, %p8392_p1 }
 0x747   : > { %8402 = shalt.err (!%p8399_p8)
}
 0x748   : > { %7017 = dma.vmem_to_hbm [thread:$0]  (%p9220_p11), %s12539_s2, 1024, %s12537_s19, %s12543_s11, %s9055_s20, %s9055_s20, %s9056_s16  }
 0x749 PF: > { %s13704_s0 = sld [smem:[#allocation16_spill]]  ;;  %s13705_s27 = sld [smem:[#allocation13_spill]] }
 0x74f   : > { %p7027_p9 = scmp.ge.s32.totalorder %s13704_s0, 2  ;;  %s5996_s26 = sand.u32 1, %s13705_s27  }
 0x750   : > { %s5997_s3 = scalar_lea.sflag [#allocation5], %s5996_s26 }
 0x751   : > { %p7021_p10 = pnand %p7027_p9, %p9203_p6 }
 0x753   : > { %8724 = dma.done.wait (!%p7021_p10), %s5997_s3, 1024  }
 0x754   : > { %8726 = vsyncadd (!%p7021_p10), %s5997_s3, 4294966272  ;;  %s13707_s22 = sld [smem:[#allocation10_spill]]  ;;  %p7024_p13 = pnand %p7027_p9, %p9226_p12 }
 0x75a   : > { %s6005_s4 = sand.u32 1, %s13707_s22  }
 0x75b   : > { %s6006_s28 = scalar_lea.sflag [#allocation7], %s6005_s4 }
 0x75c   : > { %8728 = dma.done.wait (!%p7024_p13), %s6006_s28, 1024  }
 0x75d   : > { %8730 = vsyncadd (!%p7024_p13), %s6006_s28, 4294966272  ;;  %s13709_s24 = sld [smem:[#allocation17_spill]]  ;;  %s13710_s18 = sld [smem:[#allocation11_spill]] }
 0x75e   : > { %s13711_s19 = sld [smem:[#allocation12_spill]]  ;;  %s13712_s20 = sld [smem:[#allocation21_spill]] }
 0x75f   : > { %s13713_s21 = sld [smem:[#allocation14_spill]]  ;;  %s13714_s22 = sld [smem:[#allocation15_spill]] }
 0x760   : > { %s13715_s23 = sld [smem:[#allocation18_spill]] }
 0x763   : > { %p29_p6 = scmp.ge.s32.totalorder %s13709_s24, 4  }
 0x765   :  { %31 = sbr.rel (!%p29_p6) target bundleno = 19 (0x13), region = 183 }
 0x76c   :  { %6011 = vsyncpa [#allocation5], 1 }
 0x76d   :  { %6013 = vsyncpa [#allocation5 + $0x1], 1 }
 0x76e   :  { %6014 = vsyncpa [#allocation7], 1 }
 0x76f   :  { %6016 = vsyncpa [#allocation7 + $0x1], 1 }

</bundles_post_ra>
